<compile_context>
chip_gen: v5e
topology: v5e:2x2
jax: 0.10.0
libtpu: 0.0.40
codegen_flags: <defaults>
</compile_context>

<pallas_src>
import functools

import jax
import jax.numpy as jnp
from jax import lax
from jax.experimental import pallas as pl
from jax.experimental.pallas import tpu as pltpu


_SQRT_HALF = 0.7071067811865476


def _gelu(x):
    # exact (erf) GELU -- matches torch.nn.GELU() default (approximate='none')
    return 0.5 * x * (1.0 + lax.erf(x * _SQRT_HALF))


def _layernorm_f32(x, w, b, eps):
    # channels-first LayerNorm: per-pixel mean/var over the channel axis, biased variance.
    x = x.astype(jnp.float32)
    u = jnp.mean(x, axis=-1, keepdims=True)
    d = x - u
    s = jnp.mean(d * d, axis=-1, keepdims=True)
    return d * lax.rsqrt(s + eps) * w + b


def _largest_div(n, cap, multiple):
    """Largest divisor of `n` that is a multiple of `multiple` and <= cap (fallback: n)."""
    cap = int(max(multiple, min(cap, n)))
    d = (cap // multiple) * multiple
    while d >= multiple:
        if n % d == 0:
            return d
        d -= multiple
    return n


# -----------------------------------------------------------------------------
# Pallas kernels
# -----------------------------------------------------------------------------
def _safm_aggr_kernel(x_ref, fh_ref, lw_ref, lb_ref, wa_ref, ba_ref, o_ref, *, cd, eps):
    # Recompute LayerNorm1 in-kernel (drops the xn1 HBM stream), then:
    #   z = [ln1(x)[:, :cd] | feat_hi] @ Wa + ba   (split matmul avoids a lane concat)
    #   out = gelu(z) * ln1(x) + x
    x = x_ref[...].astype(jnp.float32)                    # (br, C)
    xn = _layernorm_f32(x, lw_ref[...], lb_ref[...], eps)
    fh = fh_ref[...].astype(jnp.float32)                  # (br, C - cd)
    wa = wa_ref[...]
    z = jnp.dot(xn[:, :cd], wa[:cd, :], preferred_element_type=jnp.float32)
    z = z + jnp.dot(fh, wa[cd:, :], preferred_element_type=jnp.float32)
    z = z + ba_ref[...]
    y = _gelu(z) * xn + x
    o_ref[...] = y.astype(o_ref.dtype)


def _ccm_kernel(xb_ref, top_ref, bot_ref, lw_ref, lb_ref,
                w1_ref, b1_ref, w2_ref, b2_ref, o_ref, f_ref, *, bw, eps):
    # LN2 + 3x3 conv (halo band, 9 shifted in-VMEM matmuls) + GELU + 1x1 conv + residual.
    rows, C = xb_ref.shape            # rows = hb * bw  (hb image rows of width bw)
    hidden = w1_ref.shape[1]
    OFF = 8                           # small dead zone so every shifted read start is >= 0

    h = pl.program_id(1)
    nh = pl.num_programs(1)
    top_valid = (h > 0).astype(jnp.float32)        # zero the halo at the image border
    bot_valid = (h < nh - 1).astype(jnp.float32)

    lw = lw_ref[...]
    lb = lb_ref[...]
    xband = xb_ref[...]

    # Assemble the LayerNorm2'ed, halo-extended band into VMEM scratch:
    #   f[OFF + k*bw + x] = ln2(image[row h*hb - 1 + k, col x]),   k in [0, hb+2)
    f_ref[pl.ds(OFF, bw), :] = _layernorm_f32(top_ref[...], lw, lb, eps) * top_valid
    f_ref[pl.ds(OFF + bw, rows), :] = _layernorm_f32(xband, lw, lb, eps)
    f_ref[pl.ds(OFF + bw + rows, bw), :] = _layernorm_f32(bot_ref[...], lw, lb, eps) * bot_valid

    # Column masks implementing the conv's left/right zero padding: the flat shifted reads
    # wrap across image rows at x == 0 / x == bw-1; those taps are zero in the real conv.
    col = lax.broadcasted_iota(jnp.int32, (rows, 1), 0) % bw
    not_left = col != 0
    not_right = col != (bw - 1)

    w1 = w1_ref[...]                  # (9*C, hidden), rows ordered (ky*3 + kx)*C + ci
    acc = jnp.zeros((rows, hidden), jnp.float32) + b1_ref[...]
    k = 0
    for dy in (-1, 0, 1):
        for dx in (-1, 0, 1):
            start = OFF + (dy + 1) * bw + dx
            slab = f_ref[pl.ds(start, rows), :]
            if dx == -1:
                slab = jnp.where(not_left, slab, 0.0)
            elif dx == 1:
                slab = jnp.where(not_right, slab, 0.0)
            acc = acc + jnp.dot(slab, w1[k * C:(k + 1) * C, :],
                                preferred_element_type=jnp.float32)
            k += 1

    y = jnp.dot(_gelu(acc), w2_ref[...], preferred_element_type=jnp.float32) + b2_ref[...]
    o_ref[...] = (y + xband.astype(jnp.float32)).astype(o_ref.dtype)


# -----------------------------------------------------------------------------
# pallas_call wrappers
# -----------------------------------------------------------------------------
def safm_aggr(xf, feat_hi, ln1_w, ln1_b, wa, ba, *, eps, block_rows=2048):
    rows, C = xf.shape
    cd = C - feat_hi.shape[1]
    br = _largest_div(rows, min(block_rows, max(8, rows // 2)), 8)
    kern = functools.partial(_safm_aggr_kernel, cd=cd, eps=eps)
    return pl.pallas_call(
        kern,
        out_shape=jax.ShapeDtypeStruct((rows, C), xf.dtype),
        grid=(rows // br,),
        in_specs=[
            pl.BlockSpec((br, C), lambda i: (i, 0)),
            pl.BlockSpec((br, C - cd), lambda i: (i, 0)),
            pl.BlockSpec((1, C), lambda i: (0, 0)),
            pl.BlockSpec((1, C), lambda i: (0, 0)),
            pl.BlockSpec((C, C), lambda i: (0, 0)),
            pl.BlockSpec((1, C), lambda i: (0, 0)),
        ],
        out_specs=pl.BlockSpec((br, C), lambda i: (i, 0)),
        compiler_params=pltpu.CompilerParams(dimension_semantics=("parallel",)),
    )(xf, feat_hi, ln1_w.reshape(1, C), ln1_b.reshape(1, C), wa, ba.reshape(1, C))


def ccm_fused(x1, ln2_w, ln2_b, w1, b1, w2, b2, *, N, H, W, eps, block_rows=2048):
    rows, C = x1.shape
    hidden = w1.shape[1]
    assert rows == N * H * W
    # pick an H-band size so the block has ~block_rows pixel rows (and >= 2 grid steps)
    hb_cap = max(1, min(block_rows, max(W, (H * W) // 2)) // W)
    hb = _largest_div(H, hb_cap, 1)
    nhb = H // hb
    brows = hb * W
    kern = functools.partial(_ccm_kernel, bw=W, eps=eps)

    def band_idx(n, h):
        return (n * nhb + h, 0)

    def top_idx(n, h):            # image row just above the band (clamped; zeroed in-kernel)
        return (n * H + jnp.maximum(h * hb - 1, 0), 0)

    def bot_idx(n, h):            # image row just below the band (clamped; zeroed in-kernel)
        return (n * H + jnp.minimum(h * hb + hb, H - 1), 0)

    return pl.pallas_call(
        kern,
        out_shape=jax.ShapeDtypeStruct((rows, C), x1.dtype),
        grid=(N, nhb),
        in_specs=[
            pl.BlockSpec((brows, C), band_idx),
            pl.BlockSpec((W, C), top_idx),
            pl.BlockSpec((W, C), bot_idx),
            pl.BlockSpec((1, C), lambda n, h: (0, 0)),
            pl.BlockSpec((1, C), lambda n, h: (0, 0)),
            pl.BlockSpec((9 * C, hidden), lambda n, h: (0, 0)),
            pl.BlockSpec((1, hidden), lambda n, h: (0, 0)),
            pl.BlockSpec((hidden, C), lambda n, h: (0, 0)),
            pl.BlockSpec((1, C), lambda n, h: (0, 0)),
        ],
        out_specs=pl.BlockSpec((brows, C), band_idx),
        scratch_shapes=[pltpu.VMEM((brows + 2 * W + 16, C), jnp.float32)],
        compiler_params=pltpu.CompilerParams(dimension_semantics=("parallel", "parallel")),
    )(x1, x1, x1, ln2_w.reshape(1, C), ln2_b.reshape(1, C),
      w1, b1.reshape(1, hidden), w2, b2.reshape(1, C))


# -----------------------------------------------------------------------------
# parameters & forward
# -----------------------------------------------------------------------------
def init_params(key, dim, ffn_scale=2.0, dtype=jnp.float32):
    hidden = int(dim * ffn_scale)
    ks = jax.random.split(key, 6)
    return {
        "ln1_w": jnp.ones((dim,), dtype), "ln1_b": jnp.zeros((dim,), dtype),
        "ln2_w": jnp.ones((dim,), dtype), "ln2_b": jnp.zeros((dim,), dtype),
        # aggr 1x1 conv, matmul layout (Cin, Cout) == conv_w[:, :, 0, 0].T
        "aggr_w": 0.1 * jax.random.normal(ks[0], (dim, dim), dtype),
        "aggr_b": 0.1 * jax.random.normal(ks[1], (dim,), dtype),
        # CCM conv1 (3x3, dim->hidden), matmul layout ((ky*3+kx)*Cin + ci, Cout)
        # == transpose(conv_w, (2, 3, 1, 0)).reshape(9*dim, hidden)
        "ccm_w1": 0.1 * jax.random.normal(ks[2], (9 * dim, hidden), dtype),
        "ccm_b1": 0.1 * jax.random.normal(ks[3], (hidden,), dtype),
        # CCM conv2 (1x1, hidden->dim), matmul layout (hidden, dim)
        "ccm_w2": 0.1 * jax.random.normal(ks[4], (hidden, dim), dtype),
        "ccm_b2": 0.1 * jax.random.normal(ks[5], (dim,), dtype),
    }


def safm_block_forward(x_nchw, params, n_levels=4, eps=1e-6):
    N, C, H, W = x_nchw.shape
    cd = C // n_levels
    fmax = 2 ** (n_levels - 1)
    assert C % n_levels == 0 and H % fmax == 0 and W % fmax == 0

    x = jnp.transpose(x_nchw, (0, 2, 3, 1))          # NHWC
    rows = N * H * W
    xf = x.reshape(rows, C)

    # ---- multi-scale branch (levels 1..n_levels-1): small XLA glue ----------------
    # LN1 here only feeds the pooled branches; LN1 for the gate / level-0 chunk is
    # recomputed inside the Pallas aggregation kernel.
    xn1 = _layernorm_f32(x, params["ln1_w"], params["ln1_b"], eps)
    feats = []
    for i in range(1, n_levels):
        f = 2 ** i
        c = xn1[..., i * cd:(i + 1) * cd]
        # adaptive_max_pool2d with evenly dividing output == strided max pool
        p = c.reshape(N, H // f, f, W // f, f, cd).max(axis=(2, 4))
        # TODO(synk): EFTB (mfr[i]) definition is not provided in the source file; treated as identity.
        up = jnp.repeat(jnp.repeat(p, f, axis=1), f, axis=2)   # nearest upsample to (H, W)
        feats.append(up)
    feat_hi = jnp.concatenate(feats, axis=-1).reshape(rows, C - cd).astype(x.dtype)
    # TODO(synk): EFTB (mfr[0]) treated as identity as well.

    # ---- Pallas kernel 1: LN1 (recomputed) + SAFM 1x1 aggr + GELU gate + residual --
    x1 = safm_aggr(xf, feat_hi, params["ln1_w"], params["ln1_b"],
                   params["aggr_w"], params["aggr_b"], eps=eps)

    # ---- Pallas kernel 2: LN2 + halo-tiled 3x3 conv + GELU + 1x1 conv + residual ---
    x2 = ccm_fused(x1, params["ln2_w"], params["ln2_b"],
                   params["ccm_w1"], params["ccm_b1"],
                   params["ccm_w2"], params["ccm_b2"],
                   N=N, H=H, W=W, eps=eps)

    return jnp.transpose(x2.reshape(N, H, W, C), (0, 3, 1, 2))   # back to NCHW


# -----------------------------------------------------------------------------
# pure-JAX reference (documents the intended semantics / weight layouts)
# -----------------------------------------------------------------------------
def safm_block_reference(x_nchw, params, n_levels=4, eps=1e-6):
    N, C, H, W = x_nchw.shape
    cd = C // n_levels
    hp = lax.Precision.HIGHEST
    x = jnp.transpose(x_nchw, (0, 2, 3, 1)).astype(jnp.float32)
    xn1 = _layernorm_f32(x, params["ln1_w"], params["ln1_b"], eps)
    feats = []
    for i in range(n_levels):
        c = xn1[..., i * cd:(i + 1) * cd]
        if i > 0:
            f = 2 ** i
            p = c.reshape(N, H // f, f, W // f, f, cd).max(axis=(2, 4))
            c = jnp.repeat(jnp.repeat(p, f, axis=1), f, axis=2)
        feats.append(c)
    feat = jnp.concatenate(feats, axis=-1)
    z = jnp.einsum("nhwc,cd->nhwd", feat, params["aggr_w"], precision=hp) + params["aggr_b"]
    x1 = _gelu(z) * xn1 + x
    xn2 = _layernorm_f32(x1, params["ln2_w"], params["ln2_b"], eps)
    xp = jnp.pad(xn2, ((0, 0), (1, 1), (1, 1), (0, 0)))
    patches = jnp.concatenate(
        [xp[:, dy:dy + H, dx:dx + W, :] for dy in range(3) for dx in range(3)], axis=-1)
    h1 = _gelu(jnp.einsum("nhwk,kf->nhwf", patches, params["ccm_w1"], precision=hp)
               + params["ccm_b1"])
    y = jnp.einsum("nhwf,fc->nhwc", h1, params["ccm_w2"], precision=hp) + params["ccm_b2"]
    return jnp.transpose(y + x1, (0, 3, 1, 2))


# -----------------------------------------------------------------------------
# main
# -----------------------------------------------------------------------------
if __name__ == "__main__":
    key = jax.random.PRNGKey(0)
    k_x, k_p = jax.random.split(key)

    N, C, H, W = 2, 16, 16, 16          # dim=16 -> chunk_dim=4, CCM hidden=32
    x = jax.random.normal(k_x, (N, C, H, W), jnp.float32)
    params = init_params(k_p, dim=C, ffn_scale=2.0)

    fwd = jax.jit(safm_block_forward)
    out = fwd(x, params)
    jax.block_until_ready(out)
    assert out.shape == (N, C, H, W) and out.dtype == jnp.float32

    ref = jax.jit(safm_block_reference)(x, params)
    jax.block_until_ready(ref)
    err = float(jnp.max(jnp.abs(out.astype(jnp.float32) - ref)))
    if err > 1e-2:
        print(f"WARNING: max abs diff vs reference = {err:.3e}")
    print("KERNEL_OK")
</pallas_src>

<mosaic_0001>
module attributes {stable_mosaic.version = 11 : i64} {
  func.func @_safm_aggr_kernel(%arg0: i32, %arg1: memref<256x16xf32, #tpu.memory_space<vmem>>, %arg2: memref<256x12xf32, #tpu.memory_space<vmem>>, %arg3: memref<1x16xf32, #tpu.memory_space<vmem>>, %arg4: memref<1x16xf32, #tpu.memory_space<vmem>>, %arg5: memref<16x16xf32, #tpu.memory_space<vmem>>, %arg6: memref<1x16xf32, #tpu.memory_space<vmem>>, %arg7: memref<256x16xf32, #tpu.memory_space<vmem>>) attributes {dimension_semantics = [#tpu.dimension_semantics<parallel>], iteration_bounds = array<i64: 2>, scalar_prefetch = 0 : i64, scratch_operands = 0 : i64, tpu.core_type = #tpu.core_type<tc>, window_params = [{transform_indices = @transform_0, window_bounds = array<i64: 256, 16>}, {transform_indices = @transform_1, window_bounds = array<i64: 256, 12>}, {pipeline_mode = #tpu.pipeline_mode<synchronous>, transform_indices = @transform_2, window_bounds = array<i64: 1, 16>}, {pipeline_mode = #tpu.pipeline_mode<synchronous>, transform_indices = @transform_3, window_bounds = array<i64: 1, 16>}, {pipeline_mode = #tpu.pipeline_mode<synchronous>, transform_indices = @transform_4, window_bounds = array<i64: 16, 16>}, {pipeline_mode = #tpu.pipeline_mode<synchronous>, transform_indices = @transform_5, window_bounds = array<i64: 1, 16>}, {transform_indices = @transform_6, window_bounds = array<i64: 256, 16>}]} {
    %c0 = arith.constant 0 : index
    %c0_0 = arith.constant 0 : index
    %0 = vector.load %arg1[%c0, %c0_0] : memref<256x16xf32, #tpu.memory_space<vmem>>, vector<256x16xf32>
    %c0_1 = arith.constant 0 : index
    %c0_2 = arith.constant 0 : index
    %1 = vector.load %arg3[%c0_1, %c0_2] : memref<1x16xf32, #tpu.memory_space<vmem>>, vector<1x16xf32>
    %c0_3 = arith.constant 0 : index
    %c0_4 = arith.constant 0 : index
    %2 = vector.load %arg4[%c0_3, %c0_4] : memref<1x16xf32, #tpu.memory_space<vmem>>, vector<1x16xf32>
    %cst = arith.constant dense<0.000000e+00> : vector<256xf32>
    %3 = vector.multi_reduction <add>, %0, %cst [1] : vector<256x16xf32> to vector<256xf32>
    %4 = vector.shape_cast %3 : vector<256xf32> to vector<256x1xf32>
    %cst_5 = arith.constant 1.600000e+01 : f32
    %5 = vector.broadcast %cst_5 : f32 to vector<256x1xf32>
    %6 = arith.divf %4, %5 : vector<256x1xf32>
    %7 = vector.broadcast %6 : vector<256x1xf32> to vector<256x16xf32>
    %8 = arith.subf %0, %7 : vector<256x16xf32>
    %9 = arith.mulf %8, %8 : vector<256x16xf32>
    %cst_6 = arith.constant dense<0.000000e+00> : vector<256xf32>
    %10 = vector.multi_reduction <add>, %9, %cst_6 [1] : vector<256x16xf32> to vector<256xf32>
    %11 = vector.shape_cast %10 : vector<256xf32> to vector<256x1xf32>
    %cst_7 = arith.constant 1.600000e+01 : f32
    %12 = vector.broadcast %cst_7 : f32 to vector<256x1xf32>
    %13 = arith.divf %11, %12 : vector<256x1xf32>
    %cst_8 = arith.constant 9.99999997E-7 : f32
    %14 = vector.broadcast %cst_8 : f32 to vector<256x1xf32>
    %15 = arith.addf %13, %14 : vector<256x1xf32>
    %16 = math.rsqrt %15 : vector<256x1xf32>
    %17 = vector.broadcast %16 : vector<256x1xf32> to vector<256x16xf32>
    %18 = arith.mulf %8, %17 : vector<256x16xf32>
    %19 = vector.broadcast %1 : vector<1x16xf32> to vector<256x16xf32>
    %20 = arith.mulf %18, %19 : vector<256x16xf32>
    %21 = vector.broadcast %2 : vector<1x16xf32> to vector<256x16xf32>
    %22 = arith.addf %20, %21 : vector<256x16xf32>
    %c0_9 = arith.constant 0 : index
    %c0_10 = arith.constant 0 : index
    %23 = vector.load %arg2[%c0_9, %c0_10] : memref<256x12xf32, #tpu.memory_space<vmem>>, vector<256x12xf32>
    %c0_11 = arith.constant 0 : index
    %c0_12 = arith.constant 0 : index
    %24 = vector.load %arg5[%c0_11, %c0_12] : memref<16x16xf32, #tpu.memory_space<vmem>>, vector<16x16xf32>
    %25 = vector.extract_strided_slice %22 {offsets = [0, 0], sizes = [256, 4], strides = [1, 1]} : vector<256x16xf32> to vector<256x4xf32>
    %26 = vector.extract_strided_slice %24 {offsets = [0, 0], sizes = [4, 16], strides = [1, 1]} : vector<16x16xf32> to vector<4x16xf32>
    %cst_13 = arith.constant dense<0.000000e+00> : vector<256x16xf32>
    %27 = tpu.matmul %25, %26, %cst_13 {dimension_numbers = #tpu.dot_dimension_numbers<[1], [0], [0], [1], [0, 0, 1, 1], [], []>} : vector<256x4xf32>, vector<4x16xf32>, vector<256x16xf32> -> vector<256x16xf32>
    %28 = vector.extract_strided_slice %24 {offsets = [4, 0], sizes = [12, 16], strides = [1, 1]} : vector<16x16xf32> to vector<12x16xf32>
    %cst_14 = arith.constant dense<0.000000e+00> : vector<256x16xf32>
    %29 = tpu.matmul %23, %28, %cst_14 {dimension_numbers = #tpu.dot_dimension_numbers<[1], [0], [0], [1], [0, 0, 1, 1], [], []>} : vector<256x12xf32>, vector<12x16xf32>, vector<256x16xf32> -> vector<256x16xf32>
    %30 = arith.addf %27, %29 : vector<256x16xf32>
    %c0_15 = arith.constant 0 : index
    %c0_16 = arith.constant 0 : index
    %31 = vector.load %arg6[%c0_15, %c0_16] : memref<1x16xf32, #tpu.memory_space<vmem>>, vector<1x16xf32>
    %32 = vector.broadcast %31 : vector<1x16xf32> to vector<256x16xf32>
    %33 = arith.addf %30, %32 : vector<256x16xf32>
    %cst_17 = arith.constant 5.000000e-01 : f32
    %34 = vector.broadcast %cst_17 : f32 to vector<256x16xf32>
    %35 = arith.mulf %34, %33 : vector<256x16xf32>
    %cst_18 = arith.constant 0.707106769 : f32
    %36 = vector.broadcast %cst_18 : f32 to vector<256x16xf32>
    %37 = arith.mulf %33, %36 : vector<256x16xf32>
    %38 = math.erf %37 : vector<256x16xf32>
    %cst_19 = arith.constant 1.000000e+00 : f32
    %39 = vector.broadcast %cst_19 : f32 to vector<256x16xf32>
    %40 = arith.addf %39, %38 : vector<256x16xf32>
    %41 = arith.mulf %35, %40 : vector<256x16xf32>
    %42 = arith.mulf %41, %22 : vector<256x16xf32>
    %43 = arith.addf %42, %0 : vector<256x16xf32>
    %c0_20 = arith.constant 0 : index
    %c0_21 = arith.constant 0 : index
    %44 = vector.load %arg7[%c0_20, %c0_21] : memref<256x16xf32, #tpu.memory_space<vmem>>, vector<256x16xf32>
    tpu.vector_store %arg7[%c0_20, %c0_21], %43 {strides = array<i32>} : memref<256x16xf32, #tpu.memory_space<vmem>>, vector<256x16xf32>,
    return
  }
  func.func @transform_0(%arg0: i32) -> (i32, i32) {
    %c0_i32 = arith.constant 0 : i32
    %c0_i32_0 = arith.constant 0 : i32
    return %arg0, %c0_i32 : i32, i32
  }
  func.func @transform_1(%arg0: i32) -> (i32, i32) {
    %c0_i32 = arith.constant 0 : i32
    %c0_i32_0 = arith.constant 0 : i32
    return %arg0, %c0_i32 : i32, i32
  }
  func.func @transform_2(%arg0: i32) -> (i32, i32) {
    %c0_i32 = arith.constant 0 : i32
    %c0_i32_0 = arith.constant 0 : i32
    %c0_i32_1 = arith.constant 0 : i32
    return %c0_i32, %c0_i32_0 : i32, i32
  }
  func.func @transform_3(%arg0: i32) -> (i32, i32) {
    %c0_i32 = arith.constant 0 : i32
    %c0_i32_0 = arith.constant 0 : i32
    %c0_i32_1 = arith.constant 0 : i32
    return %c0_i32, %c0_i32_0 : i32, i32
  }
  func.func @transform_4(%arg0: i32) -> (i32, i32) {
    %c0_i32 = arith.constant 0 : i32
    %c0_i32_0 = arith.constant 0 : i32
    %c0_i32_1 = arith.constant 0 : i32
    return %c0_i32, %c0_i32_0 : i32, i32
  }
  func.func @transform_5(%arg0: i32) -> (i32, i32) {
    %c0_i32 = arith.constant 0 : i32
    %c0_i32_0 = arith.constant 0 : i32
    %c0_i32_1 = arith.constant 0 : i32
    return %c0_i32, %c0_i32_0 : i32, i32
  }
  func.func @transform_6(%arg0: i32) -> (i32, i32) {
    %c0_i32 = arith.constant 0 : i32
    %c0_i32_0 = arith.constant 0 : i32
    return %arg0, %c0_i32 : i32, i32
  }
}

module attributes {stable_mosaic.version = 11 : i64} {
  func.func @_ccm_kernel(%arg0: i32, %arg1: i32, %arg2: memref<128x16xf32, #tpu.memory_space<vmem>>, %arg3: memref<16x16xf32, #tpu.memory_space<vmem>>, %arg4: memref<16x16xf32, #tpu.memory_space<vmem>>, %arg5: memref<1x16xf32, #tpu.memory_space<vmem>>, %arg6: memref<1x16xf32, #tpu.memory_space<vmem>>, %arg7: memref<144x32xf32, #tpu.memory_space<vmem>>, %arg8: memref<1x32xf32, #tpu.memory_space<vmem>>, %arg9: memref<32x16xf32, #tpu.memory_space<vmem>>, %arg10: memref<1x16xf32, #tpu.memory_space<vmem>>, %arg11: memref<128x16xf32, #tpu.memory_space<vmem>>, %arg12: memref<176x16xf32, #tpu.memory_space<vmem>>) attributes {dimension_semantics = [#tpu.dimension_semantics<parallel>, #tpu.dimension_semantics<parallel>], iteration_bounds = array<i64: 2, 2>, scalar_prefetch = 0 : i64, scratch_operands = 1 : i64, tpu.core_type = #tpu.core_type<tc>, window_params = [{transform_indices = @transform_0, window_bounds = array<i64: 128, 16>}, {transform_indices = @transform_1, window_bounds = array<i64: 16, 16>}, {transform_indices = @transform_2, window_bounds = array<i64: 16, 16>}, {pipeline_mode = #tpu.pipeline_mode<synchronous>, transform_indices = @transform_3, window_bounds = array<i64: 1, 16>}, {pipeline_mode = #tpu.pipeline_mode<synchronous>, transform_indices = @transform_4, window_bounds = array<i64: 1, 16>}, {pipeline_mode = #tpu.pipeline_mode<synchronous>, transform_indices = @transform_5, window_bounds = array<i64: 144, 32>}, {pipeline_mode = #tpu.pipeline_mode<synchronous>, transform_indices = @transform_6, window_bounds = array<i64: 1, 32>}, {pipeline_mode = #tpu.pipeline_mode<synchronous>, transform_indices = @transform_7, window_bounds = array<i64: 32, 16>}, {pipeline_mode = #tpu.pipeline_mode<synchronous>, transform_indices = @transform_8, window_bounds = array<i64: 1, 16>}, {transform_indices = @transform_9, window_bounds = array<i64: 128, 16>}]} {
    %c0_i32 = arith.constant 0 : i32
    %0 = arith.cmpi sgt, %arg1, %c0_i32 : i32
    %1 = arith.extui %0 : i1 to i32
    %2 = arith.sitofp %1 : i32 to f32
    %c1_i32 = arith.constant 1 : i32
    %3 = arith.cmpi slt, %arg1, %c1_i32 : i32
    %4 = arith.extui %3 : i1 to i32
    %5 = arith.sitofp %4 : i32 to f32
    %c0 = arith.constant 0 : index
    %c0_0 = arith.constant 0 : index
    %6 = vector.load %arg5[%c0, %c0_0] : memref<1x16xf32, #tpu.memory_space<vmem>>, vector<1x16xf32>
    %c0_1 = arith.constant 0 : index
    %c0_2 = arith.constant 0 : index
    %7 = vector.load %arg6[%c0_1, %c0_2] : memref<1x16xf32, #tpu.memory_space<vmem>>, vector<1x16xf32>
    %c0_3 = arith.constant 0 : index
    %c0_4 = arith.constant 0 : index
    %8 = vector.load %arg2[%c0_3, %c0_4] : memref<128x16xf32, #tpu.memory_space<vmem>>, vector<128x16xf32>
    %c0_5 = arith.constant 0 : index
    %c0_6 = arith.constant 0 : index
    %9 = vector.load %arg3[%c0_5, %c0_6] : memref<16x16xf32, #tpu.memory_space<vmem>>, vector<16x16xf32>
    %cst = arith.constant dense<0.000000e+00> : vector<16xf32>
    %10 = vector.multi_reduction <add>, %9, %cst [1] : vector<16x16xf32> to vector<16xf32>
    %11 = vector.shape_cast %10 : vector<16xf32> to vector<16x1xf32>
    %cst_7 = arith.constant 1.600000e+01 : f32
    %12 = vector.broadcast %cst_7 : f32 to vector<16x1xf32>
    %13 = arith.divf %11, %12 : vector<16x1xf32>
    %14 = vector.broadcast %13 : vector<16x1xf32> to vector<16x16xf32>
    %15 = arith.subf %9, %14 : vector<16x16xf32>
    %16 = arith.mulf %15, %15 : vector<16x16xf32>
    %cst_8 = arith.constant dense<0.000000e+00> : vector<16xf32>
    %17 = vector.multi_reduction <add>, %16, %cst_8 [1] : vector<16x16xf32> to vector<16xf32>
    %18 = vector.shape_cast %17 : vector<16xf32> to vector<16x1xf32>
    %cst_9 = arith.constant 1.600000e+01 : f32
    %19 = vector.broadcast %cst_9 : f32 to vector<16x1xf32>
    %20 = arith.divf %18, %19 : vector<16x1xf32>
    %cst_10 = arith.constant 9.99999997E-7 : f32
    %21 = vector.broadcast %cst_10 : f32 to vector<16x1xf32>
    %22 = arith.addf %20, %21 : vector<16x1xf32>
    %23 = math.rsqrt %22 : vector<16x1xf32>
    %24 = vector.broadcast %23 : vector<16x1xf32> to vector<16x16xf32>
    %25 = arith.mulf %15, %24 : vector<16x16xf32>
    %26 = vector.broadcast %6 : vector<1x16xf32> to vector<16x16xf32>
    %27 = arith.mulf %25, %26 : vector<16x16xf32>
    %28 = vector.broadcast %7 : vector<1x16xf32> to vector<16x16xf32>
    %29 = arith.addf %27, %28 : vector<16x16xf32>
    %30 = vector.broadcast %2 : f32 to vector<16x16xf32>
    %31 = arith.mulf %29, %30 : vector<16x16xf32>
    %c8 = arith.constant 8 : index
    %c0_11 = arith.constant 0 : index
    %32 = vector.load %arg12[%c8, %c0_11] : memref<176x16xf32, #tpu.memory_space<vmem>>, vector<16x16xf32>
    tpu.vector_store %arg12[%c8, %c0_11], %31 {strides = array<i32>} : memref<176x16xf32, #tpu.memory_space<vmem>>, vector<16x16xf32>,
    %cst_12 = arith.constant dense<0.000000e+00> : vector<128xf32>
    %33 = vector.multi_reduction <add>, %8, %cst_12 [1] : vector<128x16xf32> to vector<128xf32>
    %34 = vector.shape_cast %33 : vector<128xf32> to vector<128x1xf32>
    %cst_13 = arith.constant 1.600000e+01 : f32
    %35 = vector.broadcast %cst_13 : f32 to vector<128x1xf32>
    %36 = arith.divf %34, %35 : vector<128x1xf32>
    %37 = vector.broadcast %36 : vector<128x1xf32> to vector<128x16xf32>
    %38 = arith.subf %8, %37 : vector<128x16xf32>
    %39 = arith.mulf %38, %38 : vector<128x16xf32>
    %cst_14 = arith.constant dense<0.000000e+00> : vector<128xf32>
    %40 = vector.multi_reduction <add>, %39, %cst_14 [1] : vector<128x16xf32> to vector<128xf32>
    %41 = vector.shape_cast %40 : vector<128xf32> to vector<128x1xf32>
    %cst_15 = arith.constant 1.600000e+01 : f32
    %42 = vector.broadcast %cst_15 : f32 to vector<128x1xf32>
    %43 = arith.divf %41, %42 : vector<128x1xf32>
    %cst_16 = arith.constant 9.99999997E-7 : f32
    %44 = vector.broadcast %cst_16 : f32 to vector<128x1xf32>
    %45 = arith.addf %43, %44 : vector<128x1xf32>
    %46 = math.rsqrt %45 : vector<128x1xf32>
    %47 = vector.broadcast %46 : vector<128x1xf32> to vector<128x16xf32>
    %48 = arith.mulf %38, %47 : vector<128x16xf32>
    %49 = vector.broadcast %6 : vector<1x16xf32> to vector<128x16xf32>
    %50 = arith.mulf %48, %49 : vector<128x16xf32>
    %51 = vector.broadcast %7 : vector<1x16xf32> to vector<128x16xf32>
    %52 = arith.addf %50, %51 : vector<128x16xf32>
    %c24 = arith.constant 24 : index
    %c0_17 = arith.constant 0 : index
    %53 = vector.load %arg12[%c24, %c0_17] : memref<176x16xf32, #tpu.memory_space<vmem>>, vector<128x16xf32>
    tpu.vector_store %arg12[%c24, %c0_17], %52 {strides = array<i32>} : memref<176x16xf32, #tpu.memory_space<vmem>>, vector<128x16xf32>,
    %c0_18 = arith.constant 0 : index
    %c0_19 = arith.constant 0 : index
    %54 = vector.load %arg4[%c0_18, %c0_19] : memref<16x16xf32, #tpu.memory_space<vmem>>, vector<16x16xf32>
    %cst_20 = arith.constant dense<0.000000e+00> : vector<16xf32>
    %55 = vector.multi_reduction <add>, %54, %cst_20 [1] : vector<16x16xf32> to vector<16xf32>
    %56 = vector.shape_cast %55 : vector<16xf32> to vector<16x1xf32>
    %cst_21 = arith.constant 1.600000e+01 : f32
    %57 = vector.broadcast %cst_21 : f32 to vector<16x1xf32>
    %58 = arith.divf %56, %57 : vector<16x1xf32>
    %59 = vector.broadcast %58 : vector<16x1xf32> to vector<16x16xf32>
    %60 = arith.subf %54, %59 : vector<16x16xf32>
    %61 = arith.mulf %60, %60 : vector<16x16xf32>
    %cst_22 = arith.constant dense<0.000000e+00> : vector<16xf32>
    %62 = vector.multi_reduction <add>, %61, %cst_22 [1] : vector<16x16xf32> to vector<16xf32>
    %63 = vector.shape_cast %62 : vector<16xf32> to vector<16x1xf32>
    %cst_23 = arith.constant 1.600000e+01 : f32
    %64 = vector.broadcast %cst_23 : f32 to vector<16x1xf32>
    %65 = arith.divf %63, %64 : vector<16x1xf32>
    %cst_24 = arith.constant 9.99999997E-7 : f32
    %66 = vector.broadcast %cst_24 : f32 to vector<16x1xf32>
    %67 = arith.addf %65, %66 : vector<16x1xf32>
    %68 = math.rsqrt %67 : vector<16x1xf32>
    %69 = vector.broadcast %68 : vector<16x1xf32> to vector<16x16xf32>
    %70 = arith.mulf %60, %69 : vector<16x16xf32>
    %71 = vector.broadcast %6 : vector<1x16xf32> to vector<16x16xf32>
    %72 = arith.mulf %70, %71 : vector<16x16xf32>
    %73 = vector.broadcast %7 : vector<1x16xf32> to vector<16x16xf32>
    %74 = arith.addf %72, %73 : vector<16x16xf32>
    %75 = vector.broadcast %5 : f32 to vector<16x16xf32>
    %76 = arith.mulf %74, %75 : vector<16x16xf32>
    %c152 = arith.constant 152 : index
    %c0_25 = arith.constant 0 : index
    %77 = vector.load %arg12[%c152, %c0_25] : memref<176x16xf32, #tpu.memory_space<vmem>>, vector<16x16xf32>
    tpu.vector_store %arg12[%c152, %c0_25], %76 {strides = array<i32>} : memref<176x16xf32, #tpu.memory_space<vmem>>, vector<16x16xf32>,
    %78 = tpu.iota {dimensions = array<i32: 0>} : vector<128x1xi32>
    %c16_i32 = arith.constant 16 : i32
    %c0_i32_26 = arith.constant 0 : i32
    %79 = arith.cmpi eq, %c16_i32, %c0_i32_26 : i32
    %c1_i32_27 = arith.constant 1 : i32
    %80 = arith.select %79, %c1_i32_27, %c16_i32 : i32
    %81 = vector.broadcast %80 : i32 to vector<128x1xi32>
    %82 = arith.remsi %78, %81 : vector<128x1xi32>
    %c0_i32_28 = arith.constant 0 : i32
    %83 = vector.broadcast %c0_i32_28 : i32 to vector<128x1xi32>
    %84 = arith.cmpi ne, %82, %83 : vector<128x1xi32>
    %c0_i32_29 = arith.constant 0 : i32
    %85 = vector.broadcast %c0_i32_29 : i32 to vector<128x1xi32>
    %86 = arith.cmpi slt, %82, %85 : vector<128x1xi32>
    %c0_i32_30 = arith.constant 0 : i32
    %87 = arith.cmpi slt, %80, %c0_i32_30 : i32
    %88 = vector.broadcast %87 : i1 to vector<128x1xi1>
    %89 = vector.broadcast %88 : vector<128x1xi1> to vector<128x1xi1>
    %90 = arith.xori %86, %89 : vector<128x1xi1>
    %91 = arith.andi %90, %84 : vector<128x1xi1>
    %92 = vector.broadcast %80 : i32 to vector<128x1xi32>
    %93 = arith.addi %82, %92 : vector<128x1xi32>
    %94 = arith.select %91, %93, %82 : vector<128x1xi1>, vector<128x1xi32>
    %c0_i32_31 = arith.constant 0 : i32
    %95 = vector.broadcast %c0_i32_31 : i32 to vector<128x1xi32>
    %96 = arith.cmpi ne, %94, %95 : vector<128x1xi32>
    %c15_i32 = arith.constant 15 : i32
    %97 = vector.broadcast %c15_i32 : i32 to vector<128x1xi32>
    %98 = arith.cmpi ne, %94, %97 : vector<128x1xi32>
    %c0_32 = arith.constant 0 : index
    %c0_33 = arith.constant 0 : index
    %99 = vector.load %arg7[%c0_32, %c0_33] : memref<144x32xf32, #tpu.memory_space<vmem>>, vector<144x32xf32>
    %cst_34 = arith.constant 0.000000e+00 : f32
    %100 = vector.broadcast %cst_34 : f32 to vector<128x32xf32>
    %c0_35 = arith.constant 0 : index
    %c0_36 = arith.constant 0 : index
    %101 = vector.load %arg8[%c0_35, %c0_36] : memref<1x32xf32, #tpu.memory_space<vmem>>, vector<1x32xf32>
    %102 = vector.broadcast %101 : vector<1x32xf32> to vector<128x32xf32>
    %103 = arith.addf %100, %102 : vector<128x32xf32>
    %c7 = arith.constant 7 : index
    %c0_37 = arith.constant 0 : index
    %104 = vector.load %arg12[%c7, %c0_37] : memref<176x16xf32, #tpu.memory_space<vmem>>, vector<128x16xf32>
    %cst_38 = arith.constant 0.000000e+00 : f32
    %105 = vector.shape_cast %96 : vector<128x1xi1> to vector<128x1xi1>
    %106 = vector.broadcast %105 : vector<128x1xi1> to vector<128x16xi1>
    %107 = vector.broadcast %cst_38 : f32 to vector<128x16xf32>
    %108 = arith.select %106, %104, %107 : vector<128x16xi1>, vector<128x16xf32>
    %109 = vector.extract_strided_slice %99 {offsets = [0, 0], sizes = [16, 32], strides = [1, 1]} : vector<144x32xf32> to vector<16x32xf32>
    %cst_39 = arith.constant dense<0.000000e+00> : vector<128x32xf32>
    %110 = tpu.matmul %108, %109, %cst_39 {dimension_numbers = #tpu.dot_dimension_numbers<[1], [0], [0], [1], [0, 0, 1, 1], [], []>} : vector<128x16xf32>, vector<16x32xf32>, vector<128x32xf32> -> vector<128x32xf32>
    %111 = arith.addf %103, %110 : vector<128x32xf32>
    %c8_40 = arith.constant 8 : index
    %c0_41 = arith.constant 0 : index
    %112 = vector.load %arg12[%c8_40, %c0_41] : memref<176x16xf32, #tpu.memory_space<vmem>>, vector<128x16xf32>
    %113 = vector.extract_strided_slice %99 {offsets = [16, 0], sizes = [16, 32], strides = [1, 1]} : vector<144x32xf32> to vector<16x32xf32>
    %cst_42 = arith.constant dense<0.000000e+00> : vector<128x32xf32>
    %114 = tpu.matmul %112, %113, %cst_42 {dimension_numbers = #tpu.dot_dimension_numbers<[1], [0], [0], [1], [0, 0, 1, 1], [], []>} : vector<128x16xf32>, vector<16x32xf32>, vector<128x32xf32> -> vector<128x32xf32>
    %115 = arith.addf %111, %114 : vector<128x32xf32>
    %c9 = arith.constant 9 : index
    %c0_43 = arith.constant 0 : index
    %116 = vector.load %arg12[%c9, %c0_43] : memref<176x16xf32, #tpu.memory_space<vmem>>, vector<128x16xf32>
    %cst_44 = arith.constant 0.000000e+00 : f32
    %117 = vector.shape_cast %98 : vector<128x1xi1> to vector<128x1xi1>
    %118 = vector.broadcast %117 : vector<128x1xi1> to vector<128x16xi1>
    %119 = vector.broadcast %cst_44 : f32 to vector<128x16xf32>
    %120 = arith.select %118, %116, %119 : vector<128x16xi1>, vector<128x16xf32>
    %121 = vector.extract_strided_slice %99 {offsets = [32, 0], sizes = [16, 32], strides = [1, 1]} : vector<144x32xf32> to vector<16x32xf32>
    %cst_45 = arith.constant dense<0.000000e+00> : vector<128x32xf32>
    %122 = tpu.matmul %120, %121, %cst_45 {dimension_numbers = #tpu.dot_dimension_numbers<[1], [0], [0], [1], [0, 0, 1, 1], [], []>} : vector<128x16xf32>, vector<16x32xf32>, vector<128x32xf32> -> vector<128x32xf32>
    %123 = arith.addf %115, %122 : vector<128x32xf32>
    %c23 = arith.constant 23 : index
    %c0_46 = arith.constant 0 : index
    %124 = vector.load %arg12[%c23, %c0_46] : memref<176x16xf32, #tpu.memory_space<vmem>>, vector<128x16xf32>
    %cst_47 = arith.constant 0.000000e+00 : f32
    %125 = vector.shape_cast %96 : vector<128x1xi1> to vector<128x1xi1>
    %126 = vector.broadcast %125 : vector<128x1xi1> to vector<128x16xi1>
    %127 = vector.broadcast %cst_47 : f32 to vector<128x16xf32>
    %128 = arith.select %126, %124, %127 : vector<128x16xi1>, vector<128x16xf32>
    %129 = vector.extract_strided_slice %99 {offsets = [48, 0], sizes = [16, 32], strides = [1, 1]} : vector<144x32xf32> to vector<16x32xf32>
    %cst_48 = arith.constant dense<0.000000e+00> : vector<128x32xf32>
    %130 = tpu.matmul %128, %129, %cst_48 {dimension_numbers = #tpu.dot_dimension_numbers<[1], [0], [0], [1], [0, 0, 1, 1], [], []>} : vector<128x16xf32>, vector<16x32xf32>, vector<128x32xf32> -> vector<128x32xf32>
    %131 = arith.addf %123, %130 : vector<128x32xf32>
    %c24_49 = arith.constant 24 : index
    %c0_50 = arith.constant 0 : index
    %132 = vector.load %arg12[%c24_49, %c0_50] : memref<176x16xf32, #tpu.memory_space<vmem>>, vector<128x16xf32>
    %133 = vector.extract_strided_slice %99 {offsets = [64, 0], sizes = [16, 32], strides = [1, 1]} : vector<144x32xf32> to vector<16x32xf32>
    %cst_51 = arith.constant dense<0.000000e+00> : vector<128x32xf32>
    %134 = tpu.matmul %132, %133, %cst_51 {dimension_numbers = #tpu.dot_dimension_numbers<[1], [0], [0], [1], [0, 0, 1, 1], [], []>} : vector<128x16xf32>, vector<16x32xf32>, vector<128x32xf32> -> vector<128x32xf32>
    %135 = arith.addf %131, %134 : vector<128x32xf32>
    %c25 = arith.constant 25 : index
    %c0_52 = arith.constant 0 : index
    %136 = vector.load %arg12[%c25, %c0_52] : memref<176x16xf32, #tpu.memory_space<vmem>>, vector<128x16xf32>
    %cst_53 = arith.constant 0.000000e+00 : f32
    %137 = vector.shape_cast %98 : vector<128x1xi1> to vector<128x1xi1>
    %138 = vector.broadcast %137 : vector<128x1xi1> to vector<128x16xi1>
    %139 = vector.broadcast %cst_53 : f32 to vector<128x16xf32>
    %140 = arith.select %138, %136, %139 : vector<128x16xi1>, vector<128x16xf32>
    %141 = vector.extract_strided_slice %99 {offsets = [80, 0], sizes = [16, 32], strides = [1, 1]} : vector<144x32xf32> to vector<16x32xf32>
    %cst_54 = arith.constant dense<0.000000e+00> : vector<128x32xf32>
    %142 = tpu.matmul %140, %141, %cst_54 {dimension_numbers = #tpu.dot_dimension_numbers<[1], [0], [0], [1], [0, 0, 1, 1], [], []>} : vector<128x16xf32>, vector<16x32xf32>, vector<128x32xf32> -> vector<128x32xf32>
    %143 = arith.addf %135, %142 : vector<128x32xf32>
    %c39 = arith.constant 39 : index
    %c0_55 = arith.constant 0 : index
    %144 = vector.load %arg12[%c39, %c0_55] : memref<176x16xf32, #tpu.memory_space<vmem>>, vector<128x16xf32>
    %cst_56 = arith.constant 0.000000e+00 : f32
    %145 = vector.shape_cast %96 : vector<128x1xi1> to vector<128x1xi1>
    %146 = vector.broadcast %145 : vector<128x1xi1> to vector<128x16xi1>
    %147 = vector.broadcast %cst_56 : f32 to vector<128x16xf32>
    %148 = arith.select %146, %144, %147 : vector<128x16xi1>, vector<128x16xf32>
    %149 = vector.extract_strided_slice %99 {offsets = [96, 0], sizes = [16, 32], strides = [1, 1]} : vector<144x32xf32> to vector<16x32xf32>
    %cst_57 = arith.constant dense<0.000000e+00> : vector<128x32xf32>
    %150 = tpu.matmul %148, %149, %cst_57 {dimension_numbers = #tpu.dot_dimension_numbers<[1], [0], [0], [1], [0, 0, 1, 1], [], []>} : vector<128x16xf32>, vector<16x32xf32>, vector<128x32xf32> -> vector<128x32xf32>
    %151 = arith.addf %143, %150 : vector<128x32xf32>
    %c40 = arith.constant 40 : index
    %c0_58 = arith.constant 0 : index
    %152 = vector.load %arg12[%c40, %c0_58] : memref<176x16xf32, #tpu.memory_space<vmem>>, vector<128x16xf32>
    %153 = vector.extract_strided_slice %99 {offsets = [112, 0], sizes = [16, 32], strides = [1, 1]} : vector<144x32xf32> to vector<16x32xf32>
    %cst_59 = arith.constant dense<0.000000e+00> : vector<128x32xf32>
    %154 = tpu.matmul %152, %153, %cst_59 {dimension_numbers = #tpu.dot_dimension_numbers<[1], [0], [0], [1], [0, 0, 1, 1], [], []>} : vector<128x16xf32>, vector<16x32xf32>, vector<128x32xf32> -> vector<128x32xf32>
    %155 = arith.addf %151, %154 : vector<128x32xf32>
    %c41 = arith.constant 41 : index
    %c0_60 = arith.constant 0 : index
    %156 = vector.load %arg12[%c41, %c0_60] : memref<176x16xf32, #tpu.memory_space<vmem>>, vector<128x16xf32>
    %cst_61 = arith.constant 0.000000e+00 : f32
    %157 = vector.shape_cast %98 : vector<128x1xi1> to vector<128x1xi1>
    %158 = vector.broadcast %157 : vector<128x1xi1> to vector<128x16xi1>
    %159 = vector.broadcast %cst_61 : f32 to vector<128x16xf32>
    %160 = arith.select %158, %156, %159 : vector<128x16xi1>, vector<128x16xf32>
    %161 = vector.extract_strided_slice %99 {offsets = [128, 0], sizes = [16, 32], strides = [1, 1]} : vector<144x32xf32> to vector<16x32xf32>
    %cst_62 = arith.constant dense<0.000000e+00> : vector<128x32xf32>
    %162 = tpu.matmul %160, %161, %cst_62 {dimension_numbers = #tpu.dot_dimension_numbers<[1], [0], [0], [1], [0, 0, 1, 1], [], []>} : vector<128x16xf32>, vector<16x32xf32>, vector<128x32xf32> -> vector<128x32xf32>
    %163 = arith.addf %155, %162 : vector<128x32xf32>
    %cst_63 = arith.constant 5.000000e-01 : f32
    %164 = vector.broadcast %cst_63 : f32 to vector<128x32xf32>
    %165 = arith.mulf %164, %163 : vector<128x32xf32>
    %cst_64 = arith.constant 0.707106769 : f32
    %166 = vector.broadcast %cst_64 : f32 to vector<128x32xf32>
    %167 = arith.mulf %163, %166 : vector<128x32xf32>
    %168 = math.erf %167 : vector<128x32xf32>
    %cst_65 = arith.constant 1.000000e+00 : f32
    %169 = vector.broadcast %cst_65 : f32 to vector<128x32xf32>
    %170 = arith.addf %169, %168 : vector<128x32xf32>
    %171 = arith.mulf %165, %170 : vector<128x32xf32>
    %c0_66 = arith.constant 0 : index
    %c0_67 = arith.constant 0 : index
    %172 = vector.load %arg9[%c0_66, %c0_67] : memref<32x16xf32, #tpu.memory_space<vmem>>, vector<32x16xf32>
    %cst_68 = arith.constant dense<0.000000e+00> : vector<128x16xf32>
    %173 = tpu.matmul %171, %172, %cst_68 {dimension_numbers = #tpu.dot_dimension_numbers<[1], [0], [0], [1], [0, 0, 1, 1], [], []>} : vector<128x32xf32>, vector<32x16xf32>, vector<128x16xf32> -> vector<128x16xf32>
    %c0_69 = arith.constant 0 : index
    %c0_70 = arith.constant 0 : index
    %174 = vector.load %arg10[%c0_69, %c0_70] : memref<1x16xf32, #tpu.memory_space<vmem>>, vector<1x16xf32>
    %175 = vector.broadcast %174 : vector<1x16xf32> to vector<128x16xf32>
    %176 = arith.addf %173, %175 : vector<128x16xf32>
    %177 = arith.addf %176, %8 : vector<128x16xf32>
    %c0_71 = arith.constant 0 : index
    %c0_72 = arith.constant 0 : index
    %178 = vector.load %arg11[%c0_71, %c0_72] : memref<128x16xf32, #tpu.memory_space<vmem>>, vector<128x16xf32>
    tpu.vector_store %arg11[%c0_71, %c0_72], %177 {strides = array<i32>} : memref<128x16xf32, #tpu.memory_space<vmem>>, vector<128x16xf32>,
    return
  }
  func.func @transform_0(%arg0: i32, %arg1: i32) -> (i32, i32) {
    %c2_i32 = arith.constant 2 : i32
    %0 = arith.muli %arg0, %c2_i32 : i32
    %1 = arith.addi %0, %arg1 : i32
    %c0_i32 = arith.constant 0 : i32
    %c0_i32_0 = arith.constant 0 : i32
    return %1, %c0_i32 : i32, i32
  }
  func.func @transform_1(%arg0: i32, %arg1: i32) -> (i32, i32) {
    %c16_i32 = arith.constant 16 : i32
    %0 = arith.muli %arg0, %c16_i32 : i32
    %c8_i32 = arith.constant 8 : i32
    %1 = arith.muli %arg1, %c8_i32 : i32
    %c1_i32 = arith.constant 1 : i32
    %2 = arith.subi %1, %c1_i32 : i32
    %c0_i32 = arith.constant 0 : i32
    %3 = arith.maxsi %2, %c0_i32 : i32
    %4 = arith.addi %0, %3 : i32
    %c0_i32_0 = arith.constant 0 : i32
    %c0_i32_1 = arith.constant 0 : i32
    return %4, %c0_i32_0 : i32, i32
  }
  func.func @transform_2(%arg0: i32, %arg1: i32) -> (i32, i32) {
    %c16_i32 = arith.constant 16 : i32
    %0 = arith.muli %arg0, %c16_i32 : i32
    %c8_i32 = arith.constant 8 : i32
    %1 = arith.muli %arg1, %c8_i32 : i32
    %c8_i32_0 = arith.constant 8 : i32
    %2 = arith.addi %1, %c8_i32_0 : i32
    %c15_i32 = arith.constant 15 : i32
    %3 = arith.minsi %2, %c15_i32 : i32
    %4 = arith.addi %0, %3 : i32
    %c0_i32 = arith.constant 0 : i32
    %c0_i32_1 = arith.constant 0 : i32
    return %4, %c0_i32 : i32, i32
  }
  func.func @transform_3(%arg0: i32, %arg1: i32) -> (i32, i32) {
    %c0_i32 = arith.constant 0 : i32
    %c0_i32_0 = arith.constant 0 : i32
    %c0_i32_1 = arith.constant 0 : i32
    return %c0_i32, %c0_i32_0 : i32, i32
  }
  func.func @transform_4(%arg0: i32, %arg1: i32) -> (i32, i32) {
    %c0_i32 = arith.constant 0 : i32
    %c0_i32_0 = arith.constant 0 : i32
    %c0_i32_1 = arith.constant 0 : i32
    return %c0_i32, %c0_i32_0 : i32, i32
  }
  func.func @transform_5(%arg0: i32, %arg1: i32) -> (i32, i32) {
    %c0_i32 = arith.constant 0 : i32
    %c0_i32_0 = arith.constant 0 : i32
    %c0_i32_1 = arith.constant 0 : i32
    return %c0_i32, %c0_i32_0 : i32, i32
  }
  func.func @transform_6(%arg0: i32, %arg1: i32) -> (i32, i32) {
    %c0_i32 = arith.constant 0 : i32
    %c0_i32_0 = arith.constant 0 : i32
    %c0_i32_1 = arith.constant 0 : i32
    return %c0_i32, %c0_i32_0 : i32, i32
  }
  func.func @transform_7(%arg0: i32, %arg1: i32) -> (i32, i32) {
    %c0_i32 = arith.constant 0 : i32
    %c0_i32_0 = arith.constant 0 : i32
    %c0_i32_1 = arith.constant 0 : i32
    return %c0_i32, %c0_i32_0 : i32, i32
  }
  func.func @transform_8(%arg0: i32, %arg1: i32) -> (i32, i32) {
    %c0_i32 = arith.constant 0 : i32
    %c0_i32_0 = arith.constant 0 : i32
    %c0_i32_1 = arith.constant 0 : i32
    return %c0_i32, %c0_i32_0 : i32, i32
  }
  func.func @transform_9(%arg0: i32, %arg1: i32) -> (i32, i32) {
    %c2_i32 = arith.constant 2 : i32
    %0 = arith.muli %arg0, %c2_i32 : i32
    %1 = arith.addi %0, %arg1 : i32
    %c0_i32 = arith.constant 0 : i32
    %c0_i32_0 = arith.constant 0 : i32
    return %1, %c0_i32 : i32, i32
  }
}

</mosaic_0001>

<bundles_post_ra>
// kernel: safm_block_forward.2
= control target key start
LH: loop header
LB: loop body
LE: loop exit
PB: predicated region body
PF: predicated region fallthrough
CT: control target
= control target key end

     0   :  { %s3505_s21 = smov 0   ;;  %s6120_s0 = inlined_call_operand.vmem [shape: f32[512,16], index: 0, kind: input, shape index: {}]   ;;  %s6121_s1 = inlined_call_operand.vmem [shape: f32[512,12], index: 1, kind: input, shape index: {}]   ;;  %s6122_s2 = inlined_call_operand.vmem [shape: f32[1,16], index: 2, kind: input, shape index: {}]   ;;  %s6123_s3 = inlined_call_operand.vmem [shape: f32[1,16], index: 3, kind: input, shape index: {}]   ;;  %s6124_s4 = inlined_call_operand.vmem [shape: f32[16,16], index: 4, kind: input, shape index: {}]   ;;  %s6125_s5 = inlined_call_operand.vmem [shape: f32[1,16], index: 5, kind: input, shape index: {}]   ;;  %s6126_s6 = inlined_call_operand.vmem [shape: f32[512,16], index: 6, kind: output, shape index: {}]  }
   0x1 LB: > { %s3166_s22 = sadd.s32 4294967295, %s3467_s21   ;;  %p3170_p0 = scmp.ge.s32.totalorder %s3467_s21, 1  ;;  %s3467_s21 = sphi %s3505_s21, %s16_s21  }
   0x2   : > { %p224_p1 = scmp.lt.s32.totalorder %s3467_s21, 3 }
   0x4   : > { %p225_p2 = pnand %p3170_p0, %p224_p1 }
   0x6   : > { %228 = sbr.rel (%p225_p2) target bundleno = 838 (0x346), region = 44 }
   0xb   : > { %s3171_s23 = sshll.u32 %s3166_s22, 5  ;;  %vm311_vm0 = vcmask 130048   ;;  %v3469_v44 = vmov 16.0   ;;  %vm1129_vm2 = vcmask 1043456   ;;  %vm1134_vm3 = vcmask 97280  }
   0xc   : > { %p260_p3 = scmp.lt.s32.totalorder %s3171_s23, 63  ;;  %3292 = vrcp.f32 %v3469_v44  ;;  %vm1346_vm12 = vcmask 31744  }
   0xe   : > { %s6251_s23 = smov (!%p260_p3, %s3171_s23), 63 }
   0xf   : > { %s3513_s24 = sshll.u32 %s6251_s23, 3 }
  0x10   : > { %s3519_s27 = scalar_lea.vmem %s6120_s0, %s3513_s24  ;;  %s3847_s10 = scalar_lea.vmem %s6121_s1, %s3513_s24 }
  0x11   : > { %v3522_v0 = vld [vmem:[%s3519_s27 + $0x90] sm:$0xff]  ;;  %v3525_v1 = vld [vmem:[%s3519_s27 + $0x88] sm:$0xff]  ;;  %v3528_v2 = vld [vmem:[%s3519_s27] sm:$0xff]  ;;  %s4754_s25 = scalar_lea.vmem %s6126_s6, %s3513_s24 }
  0x12   : > { %v366_v3 = vsel %vm311_vm0, %v3522_v0, 0.0  ;;  %v363_v4 = vsel %vm311_vm0, %v3525_v1, 0.0  ;;  %v312_v5 = vsel %vm311_vm0, %v3528_v2, 0.0  ;;  %v3537_v6 = vld [vmem:[%s3519_s27 + $0x18] sm:$0xff]  ;;  %v3540_v7 = vld [vmem:[%s3519_s27 + $0x10] sm:$0xff]  ;;  %v3543_v8 = vld [vmem:[%s3519_s27 + $0x8] sm:$0xff]  ;;  %v3293_v45 = vpop.eup %3292 }
  0x13   : > { %367 = vadd.xlane.f32.xlu2 %v366_v3  ;;  %364 = vadd.xlane.f32.xlu1 %v363_v4  ;;  %v321_v9 = vsel %vm311_vm0, %v3537_v6, 0.0  ;;  %v318_v10 = vsel %vm311_vm0, %v3540_v7, 0.0  ;;  %v315_v11 = vsel %vm311_vm0, %v3543_v8, 0.0  ;;  %v3552_v12 = vld [vmem:[%s3519_s27 + $0xa0] sm:$0xff]  ;;  %v3558_v14 = vld [vmem:[%s3519_s27 + $0x98] sm:$0xff]  ;;  %v3567_v18 = vld [vmem:[%s3519_s27 + $0xa8] sm:$0xff]  ;;  %vm413_vm1 = vweird.f32 %v3293_v45 }
  0x14   : > { %313 = vadd.xlane.f32.xlu0 %v312_v5  ;;  %v3555_v13 = vld [vmem:[%s3519_s27 + $0x20] sm:$0xff]  ;;  %v372_v15 = vsel %vm311_vm0, %v3552_v12, 0.0  ;;  %v369_v17 = vsel %vm311_vm0, %v3558_v14, 0.0  ;;  %v3570_v19 = vld [vmem:[%s3519_s27 + $0xb8] sm:$0xff]  ;;  %v3573_v20 = vld [vmem:[%s3519_s27 + $0x28] sm:$0xff]  ;;  %v375_v21 = vsel %vm311_vm0, %v3567_v18, 0.0 }
  0x15   : > { %v324_v16 = vsel %vm311_vm0, %v3555_v13, 0.0  ;;  %v381_v22 = vsel %vm311_vm0, %v3570_v19, 0.0  ;;  %v327_v23 = vsel %vm311_vm0, %v3573_v20, 0.0  ;;  %v3582_v24 = vld [vmem:[%s3519_s27 + $0xb0] sm:$0xff]  ;;  %v3585_v25 = vld [vmem:[%s3519_s27 + $0x48] sm:$0xff]  ;;  %v3597_v30 = vld [vmem:[%s3519_s27 + $0x40] sm:$0xff] }
  0x16   : > { %v3588_v26 = vld [vmem:[%s3519_s27 + $0x30] sm:$0xff]  ;;  %v378_v27 = vsel %vm311_vm0, %v3582_v24, 0.0  ;;  %v339_v28 = vsel %vm311_vm0, %v3585_v25, 0.0  ;;  %v3603_v32 = vld [vmem:[%s3519_s27 + $0x38] sm:$0xff]  ;;  %v336_v33 = vsel %vm311_vm0, %v3597_v30, 0.0  ;;  %v3612_v36 = vld [vmem:[%s3519_s27 + $0xc8] sm:$0xff] }
  0x17   : > { %v330_v29 = vsel %vm311_vm0, %v3588_v26, 0.0  ;;  %v3600_v31 = vld [vmem:[%s3519_s27 + $0xd0] sm:$0xff]  ;;  %v333_v35 = vsel %vm311_vm0, %v3603_v32, 0.0  ;;  %v3615_v37 = vld [vmem:[%s3519_s27 + $0xc0] sm:$0xff]  ;;  %v387_v38 = vsel %vm311_vm0, %v3612_v36, 0.0  ;;  %v3622_v40 = vld [vmem:[%s3519_s27 + $0x58] sm:$0xff] }
  0x18   : > { %v390_v34 = vsel %vm311_vm0, %v3600_v31, 0.0  ;;  %v384_v39 = vsel %vm311_vm0, %v3615_v37, 0.0  ;;  %v3625_v41 = vld [vmem:[%s3519_s27 + $0x50] sm:$0xff]  ;;  %v345_v42 = vsel %vm311_vm0, %v3622_v40, 0.0  ;;  %v409_v46 = vmul.f32 16.0, %v3293_v45 }
  0x19   : > { %v342_v43 = vsel %vm311_vm0, %v3625_v41, 0.0 }
  0x1a   : > { %v410_v47 = vsub.f32 1.0, %v409_v46 }
  0x1b   : > { %322 = vadd.xlane.f32.xlu2 %v321_v9  ;;  %319 = vadd.xlane.f32.xlu1 %v318_v10 }
  0x1c   : > { %316 = vadd.xlane.f32.xlu0 %v315_v11  ;;  %v411_v48 = vmul.f32 %v3293_v45, %v410_v47 }
  0x1e   : > { %v412_v49 = vadd.f32 %v3293_v45, %v411_v48  ;;  %v3700_v48 = vld [vmem:[%s3519_s27 + $0x60] sm:$0xff] }
  0x20   : > { %v3631_v50 = vsel %vm413_vm1, %v3293_v45, %v412_v49 }
  0x23   : > { %373 = vadd.xlane.f32.xlu2 %v372_v15  ;;  %325 = vadd.xlane.f32.xlu1 %v324_v16 }
  0x24   : > { %370 = vadd.xlane.f32.xlu0 %v369_v17 }
  0x2b   : > { %376 = vadd.xlane.f32.xlu1 %v375_v21  ;;  %382 = vadd.xlane.f32.xlu2 %v381_v22 }
  0x2c   : > { %328 = vadd.xlane.f32.xlu0 %v327_v23 }
  0x33   : > { %379 = vadd.xlane.f32.xlu1 %v378_v27  ;;  %340 = vadd.xlane.f32.xlu2 %v339_v28 }
  0x34   : > { %331 = vadd.xlane.f32.xlu0 %v330_v29 }
  0x3b   : > { %337 = vadd.xlane.f32.xlu1 %v336_v33  ;;  %391 = vadd.xlane.f32.xlu2 %v390_v34  ;;  %v3675_v33 = vld [vmem:[%s3519_s27 + $0xe0] sm:$0xff]  ;;  %v3678_v34 = vld [vmem:[%s3519_s27 + $0xd8] sm:$0xff] }
  0x3c   : > { %334 = vadd.xlane.f32.xlu0 %v333_v35 }
  0x43   : > { %388 = vadd.xlane.f32.xlu1 %v387_v38 }
  0x44   : > { %385 = vadd.xlane.f32.xlu0 %v384_v39  ;;  %v396_v39 = vsel %vm311_vm0, %v3675_v33, 0.0 }
  0x4b   : > { %346 = vadd.xlane.f32.xlu1 %v345_v42  ;;  %v393_v42 = vsel %vm311_vm0, %v3678_v34, 0.0 }
  0x4c   : > { %343 = vadd.xlane.f32.xlu0 %v342_v43 }
  0x86   : > { %v368_v51 = vpop.xlane.xlu2 %367  ;;  %v365_v52 = vpop.xlane.xlu1 %364 }
  0x87   : > { %v432_v53 = vmul.f32 %v3631_v50, %v365_v52  ;;  %v314_v54 = vpop.xlane.xlu0 %313  ;;  %v433_v10 = vmul.f32 %v3631_v50, %v368_v51 }
  0x88   : > { %v415_v55 = vmul.f32 %v3631_v50, %v314_v54  ;;  %v348_v54 = vsel %vm311_vm0, %v3700_v48, 0.0 }
  0x89   : > { %v3636_v56 = vsub.f32 %v3525_v1, %v432_v53  ;;  %v3669_v21 = vsub.f32 %v3522_v0, %v433_v10 }
  0x8a   : > { %v3639_v57 = vsub.f32 %v3528_v2, %v415_v55 }
  0x8b   : > { %v496_v58 = vmul.f32 %v3636_v56, %v3636_v56  ;;  %v497_v0 = vmul.f32 %v3669_v21, %v3669_v21 }
  0x8c   : > { %v479_v59 = vmul.f32 %v3639_v57, %v3639_v57 }
  0x8d   : > { %v562_v60 = vsel %vm311_vm0, %v496_v58, 0.0  ;;  %v565_v43 = vsel %vm311_vm0, %v497_v0, 0.0 }
  0x8e   : > { %v323_v61 = vpop.xlane.xlu2 %322  ;;  %563 = vadd.xlane.f32.xlu1 %v562_v60  ;;  %v320_v62 = vpop.xlane.xlu1 %319  ;;  %v511_v63 = vsel %vm311_vm0, %v479_v59, 0.0 }
  0x8f   : > { %v418_v3 = vmul.f32 %v3631_v50, %v323_v61  ;;  %v417_v1 = vmul.f32 %v3631_v50, %v320_v62  ;;  %512 = vadd.xlane.f32.xlu2 %v511_v63  ;;  %v317_v2 = vpop.xlane.xlu0 %316 }
  0x90   : > { %v416_v4 = vmul.f32 %v3631_v50, %v317_v2 }
  0x91   : > { %v3651_v5 = vsub.f32 %v3537_v6, %v418_v3  ;;  %v3654_v9 = vsub.f32 %v3540_v7, %v417_v1 }
  0x92   : > { %v3658_v11 = vsub.f32 %v3543_v8, %v416_v4 }
  0x93   : > { %v482_v15 = vmul.f32 %v3651_v5, %v3651_v5  ;;  %v481_v16 = vmul.f32 %v3654_v9, %v3654_v9 }
  0x94   : > { %v480_v6 = vmul.f32 %v3658_v11, %v3658_v11 }
  0x95   : > { %v520_v17 = vsel %vm311_vm0, %v482_v15, 0.0  ;;  %v517_v7 = vsel %vm311_vm0, %v481_v16, 0.0  ;;  %v3734_v16 = vld [vmem:[%s3519_s27 + $0x68] sm:$0xff] }
  0x96   : > { %521 = vadd.xlane.f32.xlu1 %v520_v17  ;;  %518 = vadd.xlane.f32.xlu0 %v517_v7  ;;  %v514_v8 = vsel %vm311_vm0, %v480_v6, 0.0  ;;  %v374_v22 = vpop.xlane.xlu2 %373  ;;  %v326_v23 = vpop.xlane.xlu1 %325  ;;  %v351_v17 = vsel %vm311_vm0, %v3734_v16, 0.0 }
  0x97   : > { %515 = vadd.xlane.f32.xlu2 %v514_v8  ;;  %v371_v27 = vpop.xlane.xlu0 %370  ;;  %v435_v28 = vmul.f32 %v3631_v50, %v374_v22  ;;  %v419_v46 = vmul.f32 %v3631_v50, %v326_v23 }
  0x98   : > { %v434_v29 = vmul.f32 %v3631_v50, %v371_v27 }
  0x99   : > { %v3686_v38 = vsub.f32 %v3552_v12, %v435_v28  ;;  %v3708_v53 = vsub.f32 %v3555_v13, %v419_v46 }
  0x9a   : > { %v3683_v35 = vsub.f32 %v3558_v14, %v434_v29 }
  0x9b   : > { %v499_v45 = vmul.f32 %v3686_v38, %v3686_v38  ;;  %v483_v60 = vmul.f32 %v3708_v53, %v3708_v53 }
  0x9c   : > { %v498_v14 = vmul.f32 %v3683_v35, %v3683_v35 }
  0x9d   : > { %v571_v51 = vsel %vm311_vm0, %v499_v45, 0.0  ;;  %v523_v1 = vsel %vm311_vm0, %v483_v60, 0.0 }
  0x9e   : > { %397 = vadd.xlane.f32.xlu1 %v396_v39  ;;  %394 = vadd.xlane.f32.xlu0 %v393_v42  ;;  %v377_v47 = vpop.xlane.xlu1 %376  ;;  %v568_v52 = vsel %vm311_vm0, %v498_v14, 0.0  ;;  %v383_v63 = vpop.xlane.xlu2 %382  ;;  %v3758_v42 = vld [vmem:[%s3519_s27 + $0xe8] sm:$0xff] }
  0x9f   : > { %566 = vadd.xlane.f32.xlu2 %v565_v43  ;;  %v329_v44 = vpop.xlane.xlu0 %328  ;;  %v436_v59 = vmul.f32 %v3631_v50, %v377_v47  ;;  %v438_v10 = vmul.f32 %v3631_v50, %v383_v63  ;;  %v399_v14 = vsel %vm311_vm0, %v3758_v42, 0.0 }
  0xa0   : > { %v420_v12 = vmul.f32 %v3631_v50, %v329_v44 }
  0xa1   : > { %v3723_v3 = vsub.f32 %v3567_v18, %v436_v59  ;;  %v3737_v18 = vld [vmem:[%s3519_s27 + $0x70] sm:$0xff]  ;;  %v3745_v8 = vsub.f32 %v3570_v19, %v438_v10 }
  0xa2   : > { %v3703_v49 = vsub.f32 %v3573_v20, %v420_v12  ;;  %v354_v23 = vsel %vm311_vm0, %v3737_v18, 0.0 }
  0xa3   : > { %v500_v15 = vmul.f32 %v3723_v3, %v3723_v3  ;;  %v502_v19 = vmul.f32 %v3745_v8, %v3745_v8 }
  0xa4   : > { %v484_v58 = vmul.f32 %v3703_v49, %v3703_v49 }
  0xa5   : > { %v574_v22 = vsel %vm311_vm0, %v500_v15, 0.0  ;;  %v580_v12 = vsel %vm311_vm0, %v502_v19, 0.0 }
  0xa6   : > { %572 = vadd.xlane.f32.xlu1 %v571_v51  ;;  %569 = vadd.xlane.f32.xlu0 %v568_v52  ;;  %v380_v61 = vpop.xlane.xlu1 %379  ;;  %v526_v62 = vsel %vm311_vm0, %v484_v58, 0.0  ;;  %v341_v28 = vpop.xlane.xlu2 %340 }
  0xa7   : > { %349 = vadd.xlane.f32.xlu2 %v348_v54  ;;  %v332_v55 = vpop.xlane.xlu0 %331  ;;  %v424_v0 = vmul.f32 %v3631_v50, %v341_v28 }
  0xa8   : > { %v421_v20 = vmul.f32 %v3631_v50, %v332_v55 }
  0xa9   : > { %v3765_v45 = vsub.f32 %v3585_v25, %v424_v0  ;;  %v3824_v0 = vld [vmem:[%s3519_s27 + $0x80] sm:$0xff] }
  0xaa   : > { %v3719_v13 = vsub.f32 %v3588_v26, %v421_v20  ;;  %v437_v26 = vmul.f32 %v3631_v50, %v380_v61 }
  0xab   : > { %v488_v25 = vmul.f32 %v3765_v45, %v3765_v45 }
  0xac   : > { %v485_v2 = vmul.f32 %v3719_v13, %v3719_v13  ;;  %v3740_v6 = vsub.f32 %v3582_v24, %v437_v26 }
  0xad   : > { %v538_v54 = vsel %vm311_vm0, %v488_v25, 0.0 }
  0xae   : > { %527 = vadd.xlane.f32.xlu0 %v526_v62  ;;  %v529_v4 = vsel %vm311_vm0, %v485_v2, 0.0  ;;  %v338_v27 = vpop.xlane.xlu1 %337  ;;  %v501_v29 = vmul.f32 %v3740_v6, %v3740_v6  ;;  %v392_v59 = vpop.xlane.xlu2 %391  ;;  %v3789_v62 = vld [vmem:[%s3519_s27 + $0xf0] sm:$0xff] }
  0xaf   : > { %524 = vadd.xlane.f32.xlu2 %v523_v1  ;;  %530 = vadd.xlane.f32.xlu1 %v529_v4  ;;  %v335_v7 = vpop.xlane.xlu0 %334  ;;  %v423_v24 = vmul.f32 %v3631_v50, %v338_v27  ;;  %v441_v61 = vmul.f32 %v3631_v50, %v392_v59  ;;  %v3794_v1 = vld [vmem:[%s3519_s27 + $0xf8] sm:$0xff]  ;;  %v402_v2 = vsel %vm311_vm0, %v3789_v62, 0.0 }
  0xb0   : > { %v422_v39 = vmul.f32 %v3631_v50, %v335_v7  ;;  %v577_v44 = vsel %vm311_vm0, %v501_v29, 0.0  ;;  %v405_v26 = vsel %vm311_vm0, %v3794_v1, 0.0 }
  0xb1   : > { %v3761_v43 = vsub.f32 %v3597_v30, %v423_v24  ;;  %v3802_v4 = vsub.f32 %v3600_v31, %v441_v61  ;;  %v3813_v31 = vld [vmem:[%s3519_s27 + $0x78] sm:$0xff] }
  0xb2   : > { %v3771_v46 = vsub.f32 %v3603_v32, %v422_v39  ;;  %v357_v27 = vsel %vm311_vm0, %v3813_v31, 0.0  ;;  %v360_v39 = vsel %vm311_vm0, %v3824_v0, 0.0 }
  0xb3   : > { %v487_v30 = vmul.f32 %v3761_v43, %v3761_v43 }
  0xb4   : > { %v486_v51 = vmul.f32 %v3771_v46, %v3771_v46 }
  0xb5   : > { %v535_v32 = vsel %vm311_vm0, %v487_v30, 0.0 }
  0xb6   : > { %352 = vadd.xlane.f32.xlu0 %v351_v17  ;;  %v532_v55 = vsel %vm311_vm0, %v486_v51, 0.0  ;;  %v389_v20 = vpop.xlane.xlu1 %388  ;;  %v505_v17 = vmul.f32 %v3802_v4, %v3802_v4 }
  0xb7   : > { %575 = vadd.xlane.f32.xlu2 %v574_v22  ;;  %355 = vadd.xlane.f32.xlu1 %v354_v23  ;;  %v386_v47 = vpop.xlane.xlu0 %385  ;;  %v440_v60 = vmul.f32 %v3631_v50, %v389_v20 }
  0xb8   : > { %v439_v52 = vmul.f32 %v3631_v50, %v386_v47  ;;  %v589_v23 = vsel %vm311_vm0, %v505_v17, 0.0  ;;  %v1126_v47 = vld [vmem:[%s6124_s4 + $0x8] sm:$0xff] }
  0xb9   : > { %v1131_v30 = vrot.slane %v1126_v47, 4 }
  0xba   : > { %v3784_v58 = vsub.f32 %v3615_v37, %v439_v52  ;;  %v3797_v37 = vsub.f32 %v3612_v36, %v440_v60  ;;  %v1109_v52 = vld [vmem:[%s3847_s10 + $0x80] sm:$0xff] }
  0xbb   : > { %3277 = vmatpush.msk.msra.mxu2 %vm1129_vm2, %v1131_v30  ;;  %3177 = vmatpush.msk.msra.mxu0 %vm1129_vm2, %v1131_v30 }
  0xbc   : > { %v503_v63 = vmul.f32 %v3784_v58, %v3784_v58  ;;  %v504_v36 = vmul.f32 %v3797_v37, %v3797_v37 }
  0xbe   : > { %578 = vadd.xlane.f32.xlu0 %v577_v44  ;;  %v583_v10 = vsel %vm311_vm0, %v503_v63, 0.0  ;;  %v586_v22 = vsel %vm311_vm0, %v504_v36, 0.0  ;;  %v347_v24 = vpop.xlane.xlu1 %346 }
  0xbf   : > { %400 = vadd.xlane.f32.xlu2 %v399_v14  ;;  %581 = vadd.xlane.f32.xlu1 %v580_v12  ;;  %v344_v15 = vpop.xlane.xlu0 %343  ;;  %v426_v29 = vmul.f32 %v3631_v50, %v347_v24 }
  0xc0   : > { %v425_v7 = vmul.f32 %v3631_v50, %v344_v15 }
  0xc1   : > { %v3831_v44 = vsub.f32 %v3622_v40, %v426_v29  ;;  %v1125_v40 = vld [vmem:[%s6124_s4] sm:$0xff] }
  0xc2   : > { %v3820_v28 = vsub.f32 %v3625_v41, %v425_v7  ;;  %v1130_v25 = vrot.slane %v1125_v40, 4  ;;  %3210 = vmatpush.msk.msra.mxu1 %vm1129_vm2, %v1125_v40  ;;  %3279 = vmatpush.msk.msra.mxu3 %vm1129_vm2, %v1125_v40  ;;  %v1094_v7 = vld [vmem:[%s3847_s10 + $0x8] sm:$0xff] }
  0xc3   : > { %v490_v14 = vmul.f32 %v3831_v44, %v3831_v44 }
  0xc4   : > { %v489_v19 = vmul.f32 %v3820_v28, %v3820_v28  ;;  %v1132_v51 = vsel %vm1129_vm2, %v1130_v25, %v1131_v30 }
  0xc5   : > { %v544_v12 = vsel %vm311_vm0, %v490_v14, 0.0  ;;  %3278 = vmatpush.msra.mxu2 %v1132_v51  ;;  %1248 = vmatpush.msra.mxu0 %v1132_v51 }
  0xc6   : > { %536 = vadd.xlane.f32.xlu0 %v535_v32  ;;  %v541_v41 = vsel %vm311_vm0, %v489_v19, 0.0  ;;  %3194 = vmatmul.msk.f32.vlgmr.msra.gmra.mxu2 %vm1134_vm3, %v1109_v52  ;;  %v1093_v32 = vld [vmem:[%s3847_s10] sm:$0xff] }
  0xc7   : > { %539 = vadd.xlane.f32.xlu1 %v538_v54  ;;  %533 = vadd.xlane.f32.xlu2 %v532_v55  ;;  %v1110_v54 = vld [vmem:[%s3847_s10 + $0x88] sm:$0xff] }
  0xc8   : > { %3178 = vmatmul.msk.f32.vlgmr.msra.gmra.mxu0 %vm1134_vm3, %v1093_v32 }
  0xce   : > { %403 = vadd.xlane.f32.xlu0 %v402_v2  ;;  %3195 = vmatmul.msk.f32.gmra.mxu2 %vm1134_vm3, %v1110_v54 }
  0xcf   : > { %406 = vadd.xlane.f32.xlu1 %v405_v26  ;;  %584 = vadd.xlane.f32.xlu2 %v583_v10 }
  0xd0   : > { %3179 = vmatmul.msk.f32.gmra.mxu0 %vm1134_vm3, %v1094_v7 }
  0xd6   : > { %587 = vadd.xlane.f32.xlu0 %v586_v22 }
  0xd7   : > { %590 = vadd.xlane.f32.xlu1 %v589_v23  ;;  %358 = vadd.xlane.f32.xlu2 %v357_v27 }
  0xde   : > { %361 = vadd.xlane.f32.xlu0 %v360_v39 }
  0xdf   : > { %542 = vadd.xlane.f32.xlu2 %v541_v41 }
  0xe7   : > { %545 = vadd.xlane.f32.xlu2 %v544_v12 }
 0x101   : > { %v564_v55 = vpop.xlane.xlu1 %563 }
 0x102   : > { %v624_v20 = vmul.f32 %v564_v55, %v3631_v50  ;;  %v513_v59 = vpop.xlane.xlu2 %512  ;;  %v1095_v55 = vld [vmem:[%s3847_s10 + $0x10] sm:$0xff] }
 0x103   : > { %v607_v60 = vmul.f32 %v513_v59, %v3631_v50  ;;  %3180 = vmatmul.msk.f32.gmra.mxu0 %vm1134_vm3, %v1095_v55 }
 0x104   : > { %v656_v61 = vadd.f32 1e-06, %v624_v20  ;;  %v1111_v20 = vld [vmem:[%s3847_s10 + $0x90] sm:$0xff] }
 0x105   : > { %v639_v63 = vadd.f32 1e-06, %v607_v60  ;;  %3196 = vmatmul.msk.f32.gmra.mxu2 %vm1134_vm3, %v1111_v20 }
 0x106   : > { %3294 = vrsqrt.f32 %v656_v61  ;;  %vm847_vm7 = vweird.f32 %v656_v61 }
 0x107   : > { %3296 = vrsqrt.f32 %v639_v63  ;;  %vm677_vm6 = vweird.f32 %v639_v63 }
 0x109   : > { %v522_v2 = vpop.xlane.xlu1 %521  ;;  %v519_v26 = vpop.xlane.xlu0 %518 }
 0x10a   : > { %v610_v10 = vmul.f32 %v522_v2, %v3631_v50  ;;  %v516_v15 = vpop.xlane.xlu2 %515  ;;  %v609_v36 = vmul.f32 %v519_v26, %v3631_v50 }
 0x10b   : > { %v608_v17 = vmul.f32 %v516_v15, %v3631_v50 }
 0x10c   : > { %v3861_v22 = vpop.eup %3294  ;;  %v3863_v23 = vadd.f32 1e-06, %v610_v10  ;;  %v3865_v27 = vadd.f32 1e-06, %v609_v36 }
 0x10d   : > { %v3297_v24 = vpop.eup %3296  ;;  %v842_v29 = vmul.f32 %v3861_v22, %v656_v61  ;;  %v3869_v19 = vadd.f32 1e-06, %v608_v17  ;;  %vm848_vm4 = vweird.f32 %v3861_v22 }
 0x10e   : > { %v672_v39 = vmul.f32 %v3297_v24, %v639_v63  ;;  %3298 = vrsqrt.f32 %v3863_v23  ;;  %vm678_vm5 = vweird.f32 %v3297_v24  ;;  %vm3914_vm9 = vmor %vm847_vm7, %vm848_vm4  ;;  %vm707_vm13 = vweird.f32 %v3863_v23 }
 0x10f   : > { %v843_v41 = vmul.f32 %v3861_v22, %v842_v29  ;;  %3300 = vrsqrt.f32 %v3869_v19  ;;  %vm3905_vm8 = vmor %vm677_vm6, %vm678_vm5  ;;  %vm687_vm11 = vweird.f32 %v3869_v19  ;;  %vm697_vm2 = vweird.f32 %v3865_v27 }
 0x110   : > { %v673_v14 = vmul.f32 %v3297_v24, %v672_v39  ;;  %3302 = vrsqrt.f32 %v3865_v27 }
 0x111   : > { %v844_v12 = vmul.f32 0.5, %v843_v41  ;;  %v398_v47 = vpop.xlane.xlu1 %397  ;;  %v395_v30 = vpop.xlane.xlu0 %394  ;;  %v1112_v41 = vld [vmem:[%s3847_s10 + $0x98] sm:$0xff] }
 0x112   : > { %v674_v40 = vmul.f32 0.5, %v673_v14  ;;  %v443_v25 = vmul.f32 %v3631_v50, %v398_v47  ;;  %v567_v51 = vpop.xlane.xlu2 %566  ;;  %v442_v52 = vmul.f32 %v3631_v50, %v395_v30  ;;  %v3926_v47 = vld [vmem:[%s6122_s2] ss:$0 sm:$0xff]  ;;  %3197 = vmatmul.msk.f32.gmra.mxu2 %vm1134_vm3, %v1112_v41 }
 0x113   : > { %v845_v32 = vsub.f32 1.5, %v844_v12  ;;  %v625_v54 = vmul.f32 %v567_v51, %v3631_v50  ;;  %v1097_v41 = vld [vmem:[%s3847_s10 + $0x20] sm:$0xff] }
 0x114   : > { %v3880_v59 = vpop.eup %3298  ;;  %v675_v60 = vsub.f32 1.5, %v674_v40  ;;  %v3884_v2 = vsub.f32 %v3675_v33, %v443_v25  ;;  %v3896_v17 = vsub.f32 %v3678_v34, %v442_v52 }
 0x115   : > { %v3888_v26 = vpop.eup %3300  ;;  %v846_v10 = vmul.f32 %v3861_v22, %v845_v32  ;;  %v702_v15 = vmul.f32 %v3880_v59, %v3863_v23  ;;  %v3893_v36 = vadd.f32 1e-06, %v625_v54  ;;  %vm708_vm1 = vweird.f32 %v3880_v59 }
 0x116   : > { %v3898_v7 = vpop.eup %3302  ;;  %v676_v33 = vmul.f32 %v3297_v24, %v675_v60  ;;  %v682_v29 = vmul.f32 %v3888_v26, %v3869_v19  ;;  %v507_v39 = vmul.f32 %v3884_v2, %v3884_v2  ;;  %vm688_vm10 = vweird.f32 %v3888_v26  ;;  %v3941_v60 = vld [vmem:[%s6123_s3] ss:$0 sm:$0xff]  ;;  %vm4029_vm6 = vmor %vm707_vm13, %vm708_vm1 }
 0x117   : > { %v703_v14 = vmul.f32 %v3880_v59, %v702_v15  ;;  %v692_v34 = vmul.f32 %v3898_v7, %v3865_v27  ;;  %3304 = vrsqrt.f32 %v3893_v36  ;;  %v850_v30 = vsel %vm3914_vm9, %v3861_v22, %v846_v10  ;;  %vm689_vm14 = vmor %vm687_vm11, %vm688_vm10 }
 0x118   : > { %v680_v12 = vsel %vm3905_vm8, %v3297_v24, %v676_v33  ;;  %v683_v61 = vmul.f32 %v3888_v26, %v682_v29  ;;  %v595_v24 = vsel %vm311_vm0, %v507_v39, 0.0  ;;  %v506_v51 = vmul.f32 %v3896_v17, %v3896_v17  ;;  %v1096_v39 = vld [vmem:[%s3847_s10 + $0x18] sm:$0xff] }
 0x119   : > { %v693_v40 = vmul.f32 %v3898_v7, %v692_v34  ;;  %v573_v25 = vpop.xlane.xlu1 %572  ;;  %v570_v52 = vpop.xlane.xlu0 %569  ;;  %596 = vadd.xlane.f32.xlu2 %v595_v24  ;;  %v991_v22 = vmul.f32 %v680_v12, %v3639_v57  ;;  %v704_v10 = vmul.f32 0.5, %v703_v14  ;;  %3181 = vmatmul.msk.f32.gmra.mxu0 %vm1134_vm3, %v1096_v39  ;;  %vm698_vm15 = vweird.f32 %v3898_v7 }
 0x11a   : > { %v684_v32 = vmul.f32 0.5, %v683_v61  ;;  %v627_v54 = vmul.f32 %v573_v25, %v3631_v50  ;;  %v350_v55 = vpop.xlane.xlu2 %349  ;;  %v626_v20 = vmul.f32 %v570_v52, %v3631_v50  ;;  %v592_v29 = vsel %vm311_vm0, %v506_v51, 0.0  ;;  %vm3998_vm4 = vmor %vm697_vm2, %vm698_vm15 }
 0x11b   : > { %v694_v15 = vmul.f32 0.5, %v693_v40  ;;  %v427_v33 = vmul.f32 %v3631_v50, %v350_v55  ;;  %593 = vadd.xlane.f32.xlu0 %v592_v29  ;;  %v1026_v57 = vmul.f32 %v3926_v47, %v991_v22  ;;  %v1008_v40 = vmul.f32 %v850_v30, %v3636_v56 }
 0x11c   : > { %v685_v34 = vsub.f32 1.5, %v684_v32  ;;  %v3947_v63 = vadd.f32 1e-06, %v627_v54  ;;  %v3949_v61 = vadd.f32 1e-06, %v626_v20  ;;  %v705_v51 = vsub.f32 1.5, %v704_v10 }
 0x11d   : > { %v695_v12 = vsub.f32 1.5, %v694_v15  ;;  %v3954_v14 = vsub.f32 %v3700_v48, %v427_v33  ;;  %v3958_v25 = vpop.eup %3304  ;;  %v3972_v19 = vadd.f32 %v3941_v60, %v1026_v57  ;;  %v1043_v30 = vmul.f32 %v3926_v47, %v1008_v40 }
 0x11e   : > { %v686_v24 = vmul.f32 %v3888_v26, %v685_v34  ;;  %3306 = vrsqrt.f32 %v3947_v63  ;;  %v852_v56 = vmul.f32 %v3958_v25, %v3893_v36  ;;  %v1113_v34 = vld [vmem:[%s3847_s10 + $0xa0] sm:$0xff]  ;;  %v706_v57 = vmul.f32 %v3880_v59, %v705_v51 }
 0x11f   : > { %3308 = vrsqrt.f32 %v3949_v61  ;;  %v696_v52 = vmul.f32 %v3898_v7, %v695_v12  ;;  %v491_v54 = vmul.f32 %v3954_v14, %v3954_v14  ;;  %3211 = vmatmul.msk.f32.vlgmr.msra.gmra.mxu1 %vm1346_vm12, %v3972_v19  ;;  %vm858_vm5 = vweird.f32 %v3958_v25  ;;  %3198 = vmatmul.msk.f32.gmra.mxu2 %vm1134_vm3, %v1113_v34 }
 0x120   : > { %v690_v48 = vsel %vm689_vm14, %v3888_v26, %v686_v24  ;;  %v853_v32 = vmul.f32 %v3958_v25, %v852_v56  ;;  %v3985_v26 = vadd.f32 %v3941_v60, %v1043_v30  ;;  %vm857_vm7 = vweird.f32 %v3893_v36 }
 0x121   : > { %v528_v55 = vpop.xlane.xlu0 %527  ;;  %v992_v20 = vmul.f32 %v690_v48, %v3658_v11  ;;  %v547_v39 = vsel %vm311_vm0, %v491_v54, 0.0  ;;  %v700_v51 = vsel %vm3998_vm4, %v3898_v7, %v696_v52  ;;  %3182 = vmatmul.msk.f32.gmra.mxu0 %vm1134_vm3, %v1097_v41  ;;  %vm859_vm8 = vmor %vm857_vm7, %vm858_vm5  ;;  %vm877_vm9 = vweird.f32 %v3947_v63 }
 0x122   : > { %v525_v22 = vpop.xlane.xlu2 %524  ;;  %v531_v10 = vpop.xlane.xlu1 %530  ;;  %v612_v15 = vmul.f32 %v528_v55, %v3631_v50  ;;  %v854_v33 = vmul.f32 0.5, %v853_v32  ;;  %3228 = vmatmul.msk.f32.vlgmr.msra.gmra.mxu3 %vm1346_vm12, %v3985_v26  ;;  %548 = vadd.xlane.f32.xlu1 %v547_v39  ;;  %v993_v23 = vmul.f32 %v700_v51, %v3654_v9  ;;  %vm867_vm10 = vweird.f32 %v3949_v61 }
 0x123   : > { %v611_v29 = vmul.f32 %v525_v22, %v3631_v50  ;;  %v613_v11 = vmul.f32 %v531_v10, %v3631_v50  ;;  %v1027_v24 = vmul.f32 %v3926_v47, %v992_v20  ;;  %v710_v10 = vsel %vm4029_vm6, %v3880_v59, %v706_v57 }
 0x124   : > { %v3993_v27 = vpop.eup %3306  ;;  %v4005_v40 = vadd.f32 1e-06, %v612_v15  ;;  %v855_v56 = vsub.f32 1.5, %v854_v33  ;;  %v994_v57 = vmul.f32 %v710_v10, %v3651_v5  ;;  %v1028_v51 = vmul.f32 %v3926_v47, %v993_v23  ;;  %v1114_v5 = vld [vmem:[%s3847_s10 + $0xa8] sm:$0xff] }
 0x125   : > { %v872_v48 = vmul.f32 %v3993_v27, %v3947_v63  ;;  %v4013_v30 = vadd.f32 1e-06, %v611_v29  ;;  %v4017_v32 = vpop.eup %3308  ;;  %v4019_v54 = vadd.f32 1e-06, %v613_v11  ;;  %v4023_v55 = vadd.f32 %v3941_v60, %v1027_v24 }
 0x126   : > { %3310 = vrsqrt.f32 %v4005_v40  ;;  %v856_v52 = vmul.f32 %v3958_v25, %v855_v56  ;;  %v862_v22 = vmul.f32 %v4017_v32, %v3949_v61  ;;  %vm868_vm11 = vweird.f32 %v4017_v32 }
 0x127   : > { %v873_v20 = vmul.f32 %v3993_v27, %v872_v48  ;;  %3312 = vrsqrt.f32 %v4013_v30  ;;  %3212 = vmatmul.msk.f32.gmra.mxu1 %vm1346_vm12, %v4023_v55  ;;  %3199 = vmatmul.msk.f32.gmra.mxu2 %vm1134_vm3, %v1114_v5  ;;  %vm878_vm13 = vweird.f32 %v3993_v27  ;;  %vm4094_vm14 = vmor %vm867_vm10, %vm868_vm11  ;;  %vm727_vm15 = vweird.f32 %v4005_v40 }
 0x128   : > { %v860_v15 = vsel %vm859_vm8, %v3958_v25, %v856_v52  ;;  %v863_v36 = vmul.f32 %v4017_v32, %v862_v22  ;;  %3314 = vrsqrt.f32 %v4019_v54  ;;  %v1098_v52 = vld [vmem:[%s3847_s10 + $0x28] sm:$0xff]  ;;  %vm4140_vm2 = vmor %vm877_vm9, %vm878_vm13  ;;  %vm717_vm4 = vweird.f32 %v4013_v30 }
 0x129   : > { %v874_v33 = vmul.f32 0.5, %v873_v20  ;;  %v353_v29 = vpop.xlane.xlu0 %352  ;;  %v1009_v41 = vmul.f32 %v860_v15, %v3669_v21  ;;  %3183 = vmatmul.msk.f32.gmra.mxu0 %vm1134_vm3, %v1098_v52  ;;  %vm737_vm5 = vweird.f32 %v4019_v54 }
 0x12a   : > { %v576_v39 = vpop.xlane.xlu2 %575  ;;  %v356_v59 = vpop.xlane.xlu1 %355  ;;  %v428_v11 = vmul.f32 %v3631_v50, %v353_v29  ;;  %v864_v9 = vmul.f32 0.5, %v863_v36  ;;  %v1029_v36 = vmul.f32 %v3926_v47, %v994_v57 }
 0x12b   : > { %v628_v25 = vmul.f32 %v576_v39, %v3631_v50  ;;  %v429_v34 = vmul.f32 %v3631_v50, %v356_v59  ;;  %v1044_v21 = vmul.f32 %v3926_v47, %v1009_v41  ;;  %v875_v56 = vsub.f32 1.5, %v874_v33 }
 0x12c   : > { %v4056_v12 = vpop.eup %3310  ;;  %v4060_v24 = vsub.f32 %v3734_v16, %v428_v11  ;;  %v865_v48 = vsub.f32 1.5, %v864_v9  ;;  %v4103_v11 = vadd.f32 %v3941_v60, %v1028_v51 }
 0x12d   : > { %v722_v7 = vmul.f32 %v4056_v12, %v4005_v40  ;;  %v4069_v20 = vpop.eup %3312  ;;  %v4071_v22 = vadd.f32 1e-06, %v628_v25  ;;  %v4074_v16 = vsub.f32 %v3737_v18, %v429_v34  ;;  %v4077_v10 = vadd.f32 %v3941_v60, %v1044_v21 }
 0x12e   : > { %v492_v23 = vmul.f32 %v4060_v24, %v4060_v24  ;;  %v4083_v15 = vpop.eup %3314  ;;  %v866_v33 = vmul.f32 %v4017_v32, %v865_v48  ;;  %v712_v18 = vmul.f32 %v4069_v20, %v4013_v30  ;;  %v876_v41 = vmul.f32 %v3993_v27, %v875_v56 }
 0x12f   : > { %6151 = vst [vmem:[#allocation2_spill] sm:$0xff] %v4074_v16  ;;  %v732_v39 = vmul.f32 %v4083_v15, %v4019_v54  ;;  %v723_v59 = vmul.f32 %v4056_v12, %v722_v7  ;;  %3316 = vrsqrt.f32 %v4071_v22  ;;  %3229 = vmatmul.msk.f32.gmra.mxu3 %vm1346_vm12, %v4077_v10  ;;  %v493_v25 = vmul.f32 %v4074_v16, %v4074_v16 }
 0x130   : > { %v870_v61 = vsel %vm4094_vm14, %v4017_v32, %v866_v33  ;;  %v713_v9 = vmul.f32 %v4069_v20, %v712_v18  ;;  %3213 = vmatmul.msk.f32.gmra.mxu1 %vm1346_vm12, %v4103_v11  ;;  %v550_v48 = vsel %vm311_vm0, %v492_v23, 0.0  ;;  %vm718_vm1 = vweird.f32 %v4069_v20 }
 0x131   : > { %v579_v34 = vpop.xlane.xlu0 %578  ;;  %v733_v57 = vmul.f32 %v4083_v15, %v732_v39  ;;  %v724_v21 = vmul.f32 0.5, %v723_v59  ;;  %v553_v33 = vsel %vm311_vm0, %v493_v25, 0.0  ;;  %551 = vadd.xlane.f32.xlu0 %v550_v48  ;;  %v1010_v59 = vmul.f32 %v870_v61, %v3683_v35  ;;  %vm719_vm6 = vmor %vm717_vm4, %vm718_vm1 }
 0x132   : > { %v401_v51 = vpop.xlane.xlu2 %400  ;;  %v582_v56 = vpop.xlane.xlu1 %581  ;;  %v629_v32 = vmul.f32 %v579_v34, %v3631_v50  ;;  %v714_v7 = vmul.f32 0.5, %v713_v9  ;;  %554 = vadd.xlane.f32.xlu2 %v553_v33  ;;  %v4148_v35 = vadd.f32 %v3941_v60, %v1029_v36  ;;  %vm728_vm7 = vweird.f32 %v4056_v12 }
 0x133   : > { %v444_v52 = vmul.f32 %v3631_v50, %v401_v51  ;;  %v630_v5 = vmul.f32 %v582_v56, %v3631_v50  ;;  %v734_v18 = vmul.f32 0.5, %v733_v57  ;;  %v725_v29 = vsub.f32 1.5, %v724_v21  ;;  %v1099_v51 = vld [vmem:[%s3847_s10 + $0x30] sm:$0xff]  ;;  %vm4179_vm9 = vmor %vm727_vm15, %vm728_vm7 }
 0x134   : > { %v4123_v39 = vadd.f32 1e-06, %v629_v32  ;;  %v715_v23 = vsub.f32 1.5, %v714_v7  ;;  %v1115_v56 = vld [vmem:[%s3847_s10 + $0xb0] sm:$0xff]  ;;  %3184 = vmatmul.msk.f32.gmra.mxu0 %vm1134_vm3, %v1099_v51  ;;  %v1045_v57 = vmul.f32 %v3926_v47, %v1010_v59  ;;  %vm738_vm8 = vweird.f32 %v4083_v15 }
 0x135   : > { %v4128_v34 = vsub.f32 %v3758_v42, %v444_v52  ;;  %v4130_v9 = vadd.f32 1e-06, %v630_v5  ;;  %v4134_v16 = vpop.eup %3316  ;;  %3200 = vmatmul.msk.f32.gmra.mxu2 %vm1134_vm3, %v1115_v56  ;;  %v880_v42 = vsel %vm4140_vm2, %v3993_v27, %v876_v41  ;;  %v735_v36 = vsub.f32 1.5, %v734_v18  ;;  %vm4214_vm11 = vmor %vm737_vm5, %vm738_vm8 }
 0x136   : > { %3318 = vrsqrt.f32 %v4123_v39  ;;  %v716_v63 = vmul.f32 %v4069_v20, %v715_v23  ;;  %v882_v30 = vmul.f32 %v4134_v16, %v4071_v22  ;;  %v726_v61 = vmul.f32 %v4056_v12, %v725_v29 }
 0x137   : > { %3320 = vrsqrt.f32 %v4130_v9  ;;  %v508_v41 = vmul.f32 %v4128_v34, %v4128_v34  ;;  %v4172_v32 = vadd.f32 %v3941_v60, %v1045_v57  ;;  %v1011_v33 = vmul.f32 %v880_v42, %v3686_v38 }
 0x138   : > { %v720_v21 = vsel %vm719_vm6, %v4069_v20, %v716_v63  ;;  %v883_v27 = vmul.f32 %v4134_v16, %v882_v30  ;;  %3214 = vmatmul.msk.f32.gmra.mxu1 %vm1346_vm12, %v4148_v35  ;;  %v736_v25 = vmul.f32 %v4083_v15, %v735_v36  ;;  %v730_v38 = vsel %vm4179_vm9, %v4056_v12, %v726_v61 }
 0x139   : > { %v537_v48 = vpop.xlane.xlu0 %536  ;;  %v995_v20 = vmul.f32 %v720_v21, %v3708_v53  ;;  %v598_v59 = vsel %vm311_vm0, %v508_v41, 0.0  ;;  %vm888_vm10 = vweird.f32 %v4134_v16  ;;  %3230 = vmatmul.msk.f32.gmra.mxu3 %vm1346_vm12, %v4172_v32  ;;  %v1046_v57 = vmul.f32 %v3926_v47, %v1011_v33 }
 0x13a   : > { %v540_v7 = vpop.xlane.xlu1 %539  ;;  %v534_v52 = vpop.xlane.xlu2 %533  ;;  %v615_v5 = vmul.f32 %v537_v48, %v3631_v50  ;;  %v884_v29 = vmul.f32 0.5, %v883_v27  ;;  %599 = vadd.xlane.f32.xlu1 %v598_v59  ;;  %vm887_vm13 = vweird.f32 %v4071_v22  ;;  %v996_v54 = vmul.f32 %v730_v38, %v3703_v49  ;;  %v1116_v38 = vld [vmem:[%s3847_s10 + $0xb8] sm:$0xff] }
 0x13b   : > { %v616_v23 = vmul.f32 %v540_v7, %v3631_v50  ;;  %v614_v51 = vmul.f32 %v534_v52, %v3631_v50  ;;  %v1030_v36 = vmul.f32 %v3926_v47, %v995_v20  ;;  %vm889_vm14 = vmor %vm887_vm13, %vm888_vm10  ;;  %v740_v7 = vsel %vm4214_vm11, %v4083_v15, %v736_v25  ;;  %v1100_v25 = vld [vmem:[%s3847_s10 + $0x38] sm:$0xff] }
 0x13c   : > { %v4186_v56 = vpop.eup %3318  ;;  %v4195_v53 = vadd.f32 1e-06, %v615_v5  ;;  %v885_v42 = vsub.f32 1.5, %v884_v29  ;;  %v4235_v18 = vadd.f32 %v3941_v60, %v1046_v57  ;;  %vm897_vm15 = vweird.f32 %v4123_v39  ;;  %3185 = vmatmul.msk.f32.gmra.mxu0 %vm1134_vm3, %v1100_v25 }
 0x13d   : > { %v4197_v40 = vpop.eup %3320  ;;  %v892_v63 = vmul.f32 %v4186_v56, %v4123_v39  ;;  %v4201_v30 = vadd.f32 1e-06, %v616_v23  ;;  %v4206_v61 = vadd.f32 1e-06, %v614_v51  ;;  %v4232_v5 = vadd.f32 %v3941_v60, %v1030_v36  ;;  %3201 = vmatmul.msk.f32.gmra.mxu2 %vm1134_vm3, %v1116_v38 }
 0x13e   : > { %v902_v12 = vmul.f32 %v4197_v40, %v4130_v9  ;;  %3322 = vrsqrt.f32 %v4195_v53  ;;  %v886_v27 = vmul.f32 %v4134_v16, %v885_v42  ;;  %vm898_vm1 = vweird.f32 %v4186_v56 }
 0x13f   : > { %v893_v41 = vmul.f32 %v4186_v56, %v892_v63  ;;  %3324 = vrsqrt.f32 %v4201_v30  ;;  %v1031_v63 = vmul.f32 %v3926_v47, %v996_v54  ;;  %vm907_vm2 = vweird.f32 %v4130_v9  ;;  %vm4287_vm5 = vmor %vm897_vm15, %vm898_vm1 }
 0x140   : > { %v903_v48 = vmul.f32 %v4197_v40, %v902_v12  ;;  %3326 = vrsqrt.f32 %v4206_v61  ;;  %v890_v22 = vsel %vm889_vm14, %v4134_v16, %v886_v27  ;;  %3215 = vmatmul.msk.f32.gmra.mxu1 %vm1346_vm12, %v4232_v5  ;;  %vm908_vm4 = vweird.f32 %v4197_v40 }
 0x141   : > { %v894_v52 = vmul.f32 0.5, %v893_v41  ;;  %v404_v20 = vpop.xlane.xlu0 %403  ;;  %v1012_v23 = vmul.f32 %v890_v22, %v3723_v3  ;;  %3231 = vmatmul.msk.f32.gmra.mxu3 %vm1346_vm12, %v4235_v18  ;;  %v997_v3 = vmul.f32 %v740_v7, %v3719_v13  ;;  %vm4330_vm7 = vmor %vm907_vm2, %vm908_vm4  ;;  %vm747_vm8 = vweird.f32 %v4206_v61 }
 0x142   : > { %v904_v33 = vmul.f32 0.5, %v903_v48  ;;  %v407_v29 = vpop.xlane.xlu1 %406  ;;  %v585_v59 = vpop.xlane.xlu2 %584  ;;  %v445_v49 = vmul.f32 %v3631_v50, %v404_v20  ;;  %vm757_vm11 = vweird.f32 %v4195_v53  ;;  %vm767_vm1 = vweird.f32 %v4201_v30 }
 0x143   : > { %v895_v51 = vsub.f32 1.5, %v894_v52  ;;  %v446_v16 = vmul.f32 %v3631_v50, %v407_v29  ;;  %v631_v15 = vmul.f32 %v585_v59, %v3631_v50  ;;  %v1047_v21 = vmul.f32 %v3926_v47, %v1012_v23 }
 0x144   : > { %v4245_v42 = vpop.eup %3322  ;;  %v905_v41 = vsub.f32 1.5, %v904_v33  ;;  %v4269_v54 = vsub.f32 %v3789_v62, %v445_v49  ;;  %v4280_v52 = vadd.f32 %v3941_v60, %v1031_v63  ;;  %v1032_v62 = vmul.f32 %v3926_v47, %v997_v3 }
 0x145   : > { %v4253_v36 = vpop.eup %3324  ;;  %v752_v12 = vmul.f32 %v4245_v42, %v4195_v53  ;;  %v4259_v57 = vsub.f32 %v3794_v1, %v446_v16  ;;  %v896_v13 = vmul.f32 %v4186_v56, %v895_v51  ;;  %v4266_v48 = vadd.f32 1e-06, %v631_v15 }
 0x146   : > { %v4263_v27 = vpop.eup %3326  ;;  %v762_v22 = vmul.f32 %v4253_v36, %v4201_v30  ;;  %v4293_v59 = vadd.f32 %v3941_v60, %v1047_v21  ;;  %v906_v51 = vmul.f32 %v4197_v40, %v905_v41  ;;  %v509_v25 = vmul.f32 %v4269_v54, %v4269_v54  ;;  %v1101_v21 = vld [vmem:[%s3847_s10 + $0x40] sm:$0xff] }
 0x147   : > { %6160 = vst [vmem:[#allocation3_spill] sm:$0xff] %v4259_v57  ;;  %v742_v1 = vmul.f32 %v4263_v27, %v4206_v61  ;;  %v753_v7 = vmul.f32 %v4245_v42, %v752_v12  ;;  %3328 = vrsqrt.f32 %v4266_v48  ;;  %v510_v49 = vmul.f32 %v4259_v57, %v4259_v57  ;;  %v1117_v41 = vld [vmem:[%s3847_s10 + $0xc0] sm:$0xff]  ;;  %3186 = vmatmul.msk.f32.gmra.mxu0 %vm1134_vm3, %v1101_v21 }
 0x148   : > { %v900_v39 = vsel %vm4287_vm5, %v4186_v56, %v896_v13  ;;  %vm748_vm6 = vweird.f32 %v4263_v27  ;;  %3216 = vmatmul.msk.f32.gmra.mxu1 %vm1346_vm12, %v4280_v52  ;;  %v763_v56 = vmul.f32 %v4253_v36, %v762_v22  ;;  %3202 = vmatmul.msk.f32.gmra.mxu2 %vm1134_vm3, %v1117_v41  ;;  %vm758_vm9 = vweird.f32 %v4245_v42 }
 0x149   : > { %v743_v33 = vmul.f32 %v4263_v27, %v742_v1  ;;  %v754_v29 = vmul.f32 0.5, %v753_v7  ;;  %v588_v23 = vpop.xlane.xlu0 %587  ;;  %3232 = vmatmul.msk.f32.gmra.mxu3 %vm1346_vm12, %v4293_v59  ;;  %v604_v13 = vsel %vm311_vm0, %v510_v49, 0.0  ;;  %v601_v1 = vsel %vm311_vm0, %v509_v25, 0.0  ;;  %vm749_vm10 = vmor %vm747_vm8, %vm748_vm6 }
 0x14a   : > { %v591_v16 = vpop.xlane.xlu1 %590  ;;  %v359_v15 = vpop.xlane.xlu2 %358  ;;  %v632_v38 = vmul.f32 %v588_v23, %v3631_v50  ;;  %605 = vadd.xlane.f32.xlu2 %v604_v13  ;;  %602 = vadd.xlane.f32.xlu0 %v601_v1  ;;  %v764_v25 = vmul.f32 0.5, %v763_v56  ;;  %v1102_v56 = vld [vmem:[%s3847_s10 + $0x48] sm:$0xff]  ;;  %vm917_vm13 = vweird.f32 %v4266_v48  ;;  %vm4381_vm14 = vmor %vm757_vm11, %vm758_vm9  ;;  %vm768_vm4 = vweird.f32 %v4253_v36 }
 0x14b   : > { %v744_v63 = vmul.f32 0.5, %v743_v33  ;;  %v633_v3 = vmul.f32 %v591_v16, %v3631_v50  ;;  %v430_v12 = vmul.f32 %v3631_v50, %v359_v15  ;;  %v755_v33 = vsub.f32 1.5, %v754_v29  ;;  %vm4434_vm6 = vmor %vm767_vm1, %vm768_vm4 }
 0x14c   : > { %v4316_v7 = vadd.f32 1e-06, %v632_v38  ;;  %v1013_v29 = vmul.f32 %v900_v39, %v3740_v6  ;;  %v4349_v6 = vadd.f32 %v3941_v60, %v1032_v62 }
 0x14d   : > { %v745_v20 = vsub.f32 1.5, %v744_v63  ;;  %v4319_v23 = vadd.f32 1e-06, %v633_v3  ;;  %v4322_v16 = vsub.f32 %v3813_v31, %v430_v12  ;;  %v4324_v22 = vpop.eup %3328  ;;  %v910_v31 = vsel %vm4330_vm7, %v4197_v40, %v906_v51 }
 0x14e   : > { %3330 = vrsqrt.f32 %v4316_v7  ;;  %v912_v9 = vmul.f32 %v4324_v22, %v4266_v48  ;;  %v1048_v61 = vmul.f32 %v3926_v47, %v1013_v29  ;;  %v756_v51 = vmul.f32 %v4245_v42, %v755_v33 }
 0x14f   : > { %v746_v15 = vmul.f32 %v4263_v27, %v745_v20  ;;  %3332 = vrsqrt.f32 %v4319_v23  ;;  %v494_v38 = vmul.f32 %v4322_v16, %v4322_v16  ;;  %v1014_v41 = vmul.f32 %v910_v31, %v3745_v8  ;;  %v1118_v20 = vld [vmem:[%s3847_s10 + $0xc8] sm:$0xff]  ;;  %3187 = vmatmul.msk.f32.gmra.mxu0 %vm1134_vm3, %v1102_v56 }
 0x150   : > { %v913_v39 = vmul.f32 %v4324_v22, %v912_v9  ;;  %v4358_v3 = vadd.f32 %v3941_v60, %v1048_v61  ;;  %3217 = vmatmul.msk.f32.gmra.mxu1 %vm1346_vm12, %v4349_v6  ;;  %vm918_vm15 = vweird.f32 %v4324_v22  ;;  %v760_v9 = vsel %vm4381_vm14, %v4245_v42, %v756_v51  ;;  %3203 = vmatmul.msk.f32.gmra.mxu2 %vm1134_vm3, %v1118_v20  ;;  %v1119_v20 = vld [vmem:[%s3847_s10 + $0xd0] sm:$0xff] }
 0x151   : > { %v750_v40 = vsel %vm749_vm10, %v4263_v27, %v746_v15  ;;  %v362_v63 = vpop.xlane.xlu0 %361  ;;  %v556_v13 = vsel %vm311_vm0, %v494_v38, 0.0  ;;  %v765_v15 = vsub.f32 1.5, %v764_v25  ;;  %v1049_v61 = vmul.f32 %v3926_v47, %v1014_v41  ;;  %vm919_vm2 = vmor %vm917_vm13, %vm918_vm15 }
 0x152   : > { %6165 = vst [vmem:[#allocation4_spill] sm:$0xff] %v4358_v3  ;;  %v543_v12 = vpop.xlane.xlu2 %542  ;;  %v431_v62 = vmul.f32 %v3631_v50, %v362_v63  ;;  %v998_v21 = vmul.f32 %v750_v40, %v3771_v46  ;;  %v914_v27 = vmul.f32 0.5, %v913_v39  ;;  %3233 = vmatmul.msk.f32.gmra.mxu3 %vm1346_vm12, %v4358_v3  ;;  %557 = vadd.xlane.f32.xlu1 %v556_v13  ;;  %v1103_v13 = vld [vmem:[%s3847_s10 + $0x50] sm:$0xff]  ;;  %vm927_vm7 = vweird.f32 %v4316_v7 }
 0x153   : > { %v617_v1 = vmul.f32 %v543_v12, %v3631_v50  ;;  %v766_v41 = vmul.f32 %v4253_v36, %v765_v15  ;;  %v4420_v48 = vadd.f32 %v3941_v60, %v1049_v61  ;;  %vm937_vm9 = vweird.f32 %v4319_v23 }
 0x154   : > { %v4369_v33 = vpop.eup %3330  ;;  %v4376_v8 = vsub.f32 %v3824_v0, %v431_v62  ;;  %v1033_v46 = vmul.f32 %v3926_v47, %v998_v21  ;;  %v915_v29 = vsub.f32 1.5, %v914_v27  ;;  %v999_v21 = vmul.f32 %v760_v9, %v3761_v43 }
 0x155   : > { %v922_v53 = vmul.f32 %v4369_v33, %v4316_v7  ;;  %v4388_v31 = vadd.f32 1e-06, %v617_v1  ;;  %v4391_v0 = vpop.eup %3332  ;;  %6170 = vst [vmem:[#allocation7_spill] sm:$0xff] %v4420_v48  ;;  %vm928_vm5 = vweird.f32 %v4369_v33  ;;  %v770_v9 = vsel %vm4434_vm6, %v4253_v36, %v766_v41 }
 0x156   : > { %6166 = vst [vmem:[#allocation5_spill] sm:$0xff] %v4376_v8  ;;  %v495_v40 = vmul.f32 %v4376_v8, %v4376_v8  ;;  %v916_v39 = vmul.f32 %v4324_v22, %v915_v29  ;;  %v932_v38 = vmul.f32 %v4391_v0, %v4319_v23  ;;  %v4405_v25 = vadd.f32 %v3941_v60, %v1033_v46  ;;  %vm929_vm8 = vmor %vm927_vm7, %vm928_vm5 }
 0x157   : > { %v923_v63 = vmul.f32 %v4369_v33, %v922_v53  ;;  %3334 = vrsqrt.f32 %v4388_v31  ;;  %v1034_v53 = vmul.f32 %v3926_v47, %v999_v21  ;;  %3188 = vmatmul.msk.f32.gmra.mxu0 %vm1134_vm3, %v1103_v13  ;;  %vm938_vm10 = vweird.f32 %v4391_v0 }
 0x158   : > { %6169 = vst [vmem:[#allocation6_spill] sm:$0xff] %v4405_v25  ;;  %v559_v42 = vsel %vm311_vm0, %v495_v40, 0.0  ;;  %v920_v51 = vsel %vm919_vm2, %v4324_v22, %v916_v39  ;;  %v933_v12 = vmul.f32 %v4391_v0, %v932_v38  ;;  %3218 = vmatmul.msk.f32.gmra.mxu1 %vm1346_vm12, %v4405_v25  ;;  %3204 = vmatmul.msk.f32.gmra.mxu2 %vm1134_vm3, %v1119_v20  ;;  %vm777_vm11 = vweird.f32 %v4388_v31  ;;  %vm4463_vm14 = vmor %vm937_vm9, %vm938_vm10 }
 0x159   : > { %v924_v62 = vmul.f32 0.5, %v923_v63  ;;  %560 = vadd.xlane.f32.xlu0 %v559_v42  ;;  %v1015_v27 = vmul.f32 %v920_v51, %v3784_v58  ;;  %v4455_v36 = vadd.f32 %v3941_v60, %v1034_v53  ;;  %v1000_v63 = vmul.f32 %v770_v9, %v3765_v45  ;;  %v1104_v42 = vld [vmem:[%s3847_s10 + $0x58] sm:$0xff] }
 0x15a   : > { %v546_v56 = vpop.xlane.xlu2 %545  ;;  %v934_v1 = vmul.f32 0.5, %v933_v12  ;;  %3234 = vmatmul.msk.f32.gmra.mxu3 %vm1346_vm12, %v4420_v48 }
 0x15b   : > { %v925_v22 = vsub.f32 1.5, %v924_v62  ;;  %v618_v43 = vmul.f32 %v546_v56, %v3631_v50  ;;  %v1050_v46 = vmul.f32 %v3926_v47, %v1015_v27  ;;  %6174 = vst [vmem:[#allocation9_spill] sm:$0xff] %v4455_v36  ;;  %v1035_v12 = vmul.f32 %v3926_v47, %v1000_v63  ;;  %v1120_v63 = vld [vmem:[%s3847_s10 + $0xd8] sm:$0xff] }
 0x15c   : > { %v935_v30 = vsub.f32 1.5, %v934_v1 }
 0x15d   : > { %v926_v49 = vmul.f32 %v4369_v33, %v925_v22  ;;  %v650_v29 = vadd.f32 1e-06, %v618_v43  ;;  %v3335_v15 = vpop.eup %3334  ;;  %v4450_v7 = vadd.f32 %v3941_v60, %v1050_v46  ;;  %v4479_v1 = vadd.f32 %v3941_v60, %v1035_v12 }
 0x15e   : > { %v772_v40 = vmul.f32 %v3335_v15, %v4388_v31  ;;  %vm778_vm13 = vweird.f32 %v3335_v15 }
 0x15f   : > { %v930_v61 = vsel %vm929_vm8, %v4369_v33, %v926_v49  ;;  %3336 = vrsqrt.f32 %v650_v29  ;;  %6173 = vst [vmem:[#allocation8_spill] sm:$0xff] %v4450_v7  ;;  %v936_v33 = vmul.f32 %v4391_v0, %v935_v30  ;;  %3189 = vmatmul.msk.f32.gmra.mxu0 %vm1134_vm3, %v1104_v42  ;;  %vm779_vm15 = vmor %vm777_vm11, %vm778_vm13  ;;  %vm787_vm1 = vweird.f32 %v650_v29 }
 0x160   : > { %v1016_v39 = vmul.f32 %v930_v61, %v3797_v37  ;;  %v773_v38 = vmul.f32 %v3335_v15, %v772_v40  ;;  %3219 = vmatmul.msk.f32.gmra.mxu1 %vm1346_vm12, %v4455_v36  ;;  %6178 = vst [vmem:[#allocation11_spill] sm:$0xff] %v4479_v1  ;;  %3205 = vmatmul.msk.f32.gmra.mxu2 %vm1134_vm3, %v1120_v63 }
 0x161   : > { %v940_v31 = vsel %vm4463_vm14, %v4391_v0, %v936_v33 }
 0x162   : > { %v774_v51 = vmul.f32 0.5, %v773_v38  ;;  %3235 = vmatmul.msk.f32.gmra.mxu3 %vm1346_vm12, %v4450_v7  ;;  %v1051_v23 = vmul.f32 %v3926_v47, %v1016_v39  ;;  %v1017_v43 = vmul.f32 %v940_v31, %v3802_v4  ;;  %v4515_v31 = vpop.f32.mrf.mxu2 }
 0x163   : > { %6182 = vst [vmem:[#allocation15_spill] sm:$0xff] %v4515_v31 }
 0x164   : > { %v775_v45 = vsub.f32 1.5, %v774_v51  ;;  %v4476_v56 = vadd.f32 %v3941_v60, %v1051_v23  ;;  %v1052_v58 = vmul.f32 %v3926_v47, %v1017_v43 }
 0x165   : > { %v3337_v62 = vpop.eup %3336 }
 0x166   : > { %v776_v21 = vmul.f32 %v3335_v15, %v775_v45  ;;  %v782_v41 = vmul.f32 %v3337_v62, %v650_v29  ;;  %6177 = vst [vmem:[#allocation10_spill] sm:$0xff] %v4476_v56  ;;  %vm788_vm2 = vweird.f32 %v3337_v62  ;;  %v4493_v29 = vadd.f32 %v3941_v60, %v1052_v58 }
 0x167   : > { %vm789_vm4 = vmor %vm787_vm1, %vm788_vm2 }
 0x168   : > { %v780_v27 = vsel %vm779_vm15, %v3335_v15, %v776_v21  ;;  %v783_v13 = vmul.f32 %v3337_v62, %v782_v41  ;;  %3220 = vmatmul.msk.f32.gmra.mxu1 %vm1346_vm12, %v4479_v1  ;;  %6180 = vst [vmem:[#allocation13_spill] sm:$0xff] %v4493_v29  ;;  %v1250_v21 = vpop.f32.mrf.mxu0 }
 0x169   : > { %v1001_v22 = vmul.f32 %v780_v27, %v3820_v28 }
 0x16a   : > { %v784_v20 = vmul.f32 0.5, %v783_v13  ;;  %3236 = vmatmul.msk.f32.gmra.mxu3 %vm1346_vm12, %v4476_v56  ;;  %v4520_v13 = vld [vmem:[%s6125_s5] ss:$0 sm:$0xff] }
 0x16b   : > { %v1036_v0 = vmul.f32 %v3926_v47, %v1001_v22 }
 0x16c   : > { %v785_v46 = vsub.f32 1.5, %v784_v20 }
 0x16d   : > { %v4490_v28 = vadd.f32 %v3941_v60, %v1036_v0 }
 0x16e   : > { %v786_v49 = vmul.f32 %v3337_v62, %v785_v46 }
 0x16f   : > { %6179 = vst [vmem:[#allocation12_spill] sm:$0xff] %v4490_v28 }
 0x170   : > { %v790_v4 = vsel %vm789_vm4, %v3337_v62, %v786_v49  ;;  %3221 = vmatmul.msk.f32.gmra.mxu1 %vm1346_vm12, %v4490_v28 }
 0x171   : > { %v1002_v53 = vmul.f32 %v790_v4, %v3831_v44 }
 0x172   : > { %3237 = vmatmul.msk.f32.gmra.mxu3 %vm1346_vm12, %v4493_v29 }
 0x173   : > { %v1037_v15 = vmul.f32 %v3926_v47, %v1002_v53 }
 0x175   : > { %v4502_v9 = vadd.f32 %v3941_v60, %v1037_v15 }
 0x177   : > { %6181 = vst [vmem:[#allocation14_spill] sm:$0xff] %v4502_v9 }
 0x178   : > { %3222 = vmatmul.msk.f32.gmra.mxu1 %vm1346_vm12, %v4502_v9 }
 0x18c   : > { %v597_v30 = vpop.xlane.xlu2 %596 }
 0x18d   : > { %v635_v61 = vmul.f32 %v597_v30, %v3631_v50 }
 0x18e   : > { %v594_v40 = vpop.xlane.xlu0 %593 }
 0x18f   : > { %v667_v39 = vadd.f32 1e-06, %v635_v61  ;;  %v634_v44 = vmul.f32 %v594_v40, %v3631_v50 }
 0x191   : > { %3338 = vrsqrt.f32 %v667_v39  ;;  %v666_v38 = vadd.f32 1e-06, %v634_v44  ;;  %vm957_vm6 = vweird.f32 %v667_v39  ;;  %v1301_v44 = vpop.f32.mrf.mxu2 }
 0x193   : > { %3340 = vrsqrt.f32 %v666_v38  ;;  %vm947_vm7 = vweird.f32 %v666_v38 }
 0x195   : > { %v549_v42 = vpop.xlane.xlu1 %548 }
 0x196   : > { %v619_v51 = vmul.f32 %v549_v42, %v3631_v50 }
 0x197   : > { %v4510_v33 = vpop.eup %3338 }
 0x198   : > { %v952_v37 = vmul.f32 %v4510_v33, %v667_v39  ;;  %v651_v45 = vadd.f32 1e-06, %v619_v51  ;;  %vm958_vm8 = vweird.f32 %v4510_v33  ;;  %v1253_v39 = vpop.f32.mrf.mxu0 }
 0x199   : > { %v3341_v23 = vpop.eup %3340  ;;  %vm4530_vm10 = vmor %vm957_vm6, %vm958_vm8 }
 0x19a   : > { %v953_v12 = vmul.f32 %v4510_v33, %v952_v37  ;;  %v942_v62 = vmul.f32 %v3341_v23, %v666_v38  ;;  %3342 = vrsqrt.f32 %v651_v45  ;;  %vm948_vm5 = vweird.f32 %v3341_v23 }
 0x19b   : > { %vm949_vm9 = vmor %vm947_vm7, %vm948_vm5  ;;  %vm797_vm13 = vweird.f32 %v651_v45 }
 0x19c   : > { %v954_v41 = vmul.f32 0.5, %v953_v12  ;;  %v943_v27 = vmul.f32 %v3341_v23, %v942_v62  ;;  %v1462_v20 = vpop.f32.mrf.mxu1 }
 0x19d   : > { %v1463_v0 = vadd.f32 %v1462_v20, %v1250_v21  ;;  %v1121_v20 = vld [vmem:[%s3847_s10 + $0xe0] sm:$0xff] }
 0x19e   : > { %v955_v22 = vsub.f32 1.5, %v954_v41  ;;  %v944_v43 = vmul.f32 0.5, %v943_v27  ;;  %3206 = vmatmul.msk.f32.gmra.mxu2 %vm1134_vm3, %v1121_v20 }
 0x19f   : > { %v4523_v49 = vadd.f32 %v4520_v13, %v1463_v0 }
 0x1a0   : > { %v945_v46 = vsub.f32 1.5, %v944_v43  ;;  %v3343_v58 = vpop.eup %3342  ;;  %v956_v4 = vmul.f32 %v4510_v33, %v955_v22  ;;  %v1105_v43 = vld [vmem:[%s3847_s10 + $0x60] sm:$0xff] }
 0x1a1   : > { %v792_v15 = vmul.f32 %v3343_v58, %v651_v45  ;;  %v4528_v30 = vmul.f32 0.70710677, %v4523_v49  ;;  %vm798_vm11 = vweird.f32 %v3343_v58  ;;  %3190 = vmatmul.msk.f32.gmra.mxu0 %vm1134_vm3, %v1105_v43 }
 0x1a2   : > { %v946_v53 = vmul.f32 %v3341_v23, %v945_v46  ;;  %v960_v37 = vsel %vm4530_vm10, %v4510_v33, %v956_v4  ;;  %vm4561_vm14 = vmor %vm797_vm13, %vm798_vm11 }
 0x1a3   : > { %v793_v40 = vmul.f32 %v3343_v58, %v792_v15  ;;  %v1658_v63 = vmul.f32 %v4528_v30, %v4528_v30  ;;  %v1019_v38 = vmul.f32 %v960_v37, %v3884_v2 }
 0x1a4   : > { %v950_v61 = vsel %vm949_vm9, %v3341_v23, %v946_v53  ;;  %v552_v42 = vpop.xlane.xlu0 %551  ;;  %v1465_v62 = vpop.f32.mrf.mxu1 }
 0x1a5   : > { %v1018_v51 = vmul.f32 %v950_v61, %v3896_v17  ;;  %v794_v23 = vmul.f32 0.5, %v793_v40  ;;  %v1513_v12 = vpop.f32.mrf.mxu3  ;;  %v4540_v21 = vmin.f32 %v1658_v63, 16.0  ;;  %v1466_v27 = vadd.f32 %v1465_v62, %v1253_v39  ;;  %v555_v22 = vpop.xlane.xlu2 %554 }
 0x1a6   : > { %v1514_v41 = vadd.f32 %v1513_v12, %v1301_v44  ;;  %v621_v46 = vmul.f32 %v555_v22, %v3631_v50  ;;  %v620_v17 = vmul.f32 %v552_v42, %v3631_v50 }
 0x1a7   : > { %v795_v0 = vsub.f32 1.5, %v794_v23  ;;  %v1053_v53 = vmul.f32 %v3926_v47, %v1018_v51  ;;  %v1660_v33 = vmul.f32 2.1237322e-06, %v4540_v21  ;;  %v1671_v4 = vmul.f32 3.8918573e-05, %v4540_v21 }
 0x1a8   : > { %v4552_v15 = vadd.f32 %v4520_v13, %v1514_v41  ;;  %v4555_v61 = vadd.f32 %v4520_v13, %v1466_v27  ;;  %v4557_v44 = vadd.f32 1e-06, %v621_v46  ;;  %v4572_v23 = vadd.f32 1e-06, %v620_v17  ;;  %v4598_v46 = vld [vmem:[%s6122_s2] ss:$0 sm:$0xff] }
 0x1a9   : > { %v796_v40 = vmul.f32 %v3343_v58, %v795_v0  ;;  %v1661_v39 = vadd.f32 0.00028619796, %v1660_v33  ;;  %v1672_v47 = vadd.f32 0.001143296, %v1671_v4  ;;  %v4579_v12 = vadd.f32 %v3941_v60, %v1053_v53 }
 0x1aa   : > { %v4566_v42 = vmul.f32 0.70710677, %v4552_v15  ;;  %v4569_v51 = vmul.f32 0.70710677, %v4555_v61  ;;  %3344 = vrsqrt.f32 %v4557_v44  ;;  %v1054_v17 = vmul.f32 %v4598_v46, %v1019_v38 }
 0x1ab   : > { %v800_v45 = vsel %vm4561_vm14, %v3343_v58, %v796_v40  ;;  %v1662_v2 = vmul.f32 %v1661_v39, %v4540_v21  ;;  %v1673_v37 = vmul.f32 %v1672_v47, %v4540_v21  ;;  %6187 = vst [vmem:[#allocation16_spill] sm:$0xff] %v4579_v12  ;;  %3238 = vmatmul.msk.f32.gmra.mxu3 %vm1346_vm12, %v4579_v12  ;;  %3346 = vrsqrt.f32 %v4572_v23 }
 0x1ac   : > { %v2338_v62 = vmul.f32 %v4566_v42, %v4566_v42  ;;  %v1698_v41 = vmul.f32 %v4569_v51, %v4569_v51  ;;  %v1003_v20 = vmul.f32 %v800_v45, %v3954_v14  ;;  %vm817_vm10 = vweird.f32 %v4557_v44 }
 0x1ad   : > { %v1663_v27 = vadd.f32 0.0036580483, %v1662_v2  ;;  %v1674_v22 = vadd.f32 0.014752088, %v1673_v37 }
 0x1ae   : > { %v4587_v43 = vmin.f32 %v2338_v62, 16.0  ;;  %v4589_v58 = vmin.f32 %v1698_v41, 16.0  ;;  %v1038_v38 = vmul.f32 %v4598_v46, %v1003_v20  ;;  %v1256_v20 = vpop.f32.mrf.mxu0 }
 0x1af   : > { %v1664_v60 = vmul.f32 %v1663_v27, %v4540_v21  ;;  %v1675_v0 = vmul.f32 %v1674_v22, %v4540_v21  ;;  %v4615_v22 = vld [vmem:[%s6123_s3] ss:$0 sm:$0xff] }
 0x1b0   : > { %v4601_v53 = vpop.eup %3344  ;;  %v2340_v33 = vmul.f32 2.1237322e-06, %v4587_v43  ;;  %v2351_v4 = vmul.f32 3.8918573e-05, %v4587_v43  ;;  %v1700_v14 = vmul.f32 2.1237322e-06, %v4589_v58 }
 0x1b1   : > { %v1665_v40 = vadd.f32 0.05243302, %v1664_v60  ;;  %v1676_v39 = vadd.f32 0.112945676, %v1675_v0  ;;  %v1711_v47 = vmul.f32 3.8918573e-05, %v4589_v58  ;;  %v812_v63 = vmul.f32 %v4601_v53, %v4557_v44 }
 0x1b2   : > { %v2341_v45 = vadd.f32 0.00028619796, %v2340_v33  ;;  %v2352_v2 = vadd.f32 0.001143296, %v2351_v4  ;;  %v1701_v37 = vadd.f32 0.00028619796, %v1700_v14  ;;  %v4618_v60 = vadd.f32 %v4615_v22, %v1054_v17  ;;  %v1468_v14 = vpop.f32.mrf.mxu1 }
 0x1b3   : > { %v1666_v62 = vmul.f32 %v1665_v40, %v4540_v21  ;;  %v1677_v41 = vmul.f32 %v1676_v39, %v4540_v21  ;;  %v1712_v27 = vadd.f32 0.001143296, %v1711_v47  ;;  %v4623_v40 = vpop.eup %3346  ;;  %v813_v31 = vmul.f32 %v4601_v53, %v812_v63 }
 0x1b4   : > { %6188 = vst [vmem:[#allocation17_spill] sm:$0xff] %v4618_v60  ;;  %v2342_v0 = vmul.f32 %v2341_v45, %v4587_v43  ;;  %v2353_v33 = vmul.f32 %v2352_v2, %v4587_v43  ;;  %v1702_v4 = vmul.f32 %v1701_v37, %v4589_v58  ;;  %3239 = vmatmul.msk.f32.gmra.mxu3 %vm1346_vm12, %v4618_v60  ;;  %vm818_vm11 = vweird.f32 %v4601_v53 }
 0x1b5   : > { %v1678_v39 = vadd.f32 0.4994258, %v1677_v41  ;;  %v1713_v47 = vmul.f32 %v1712_v27, %v4589_v58  ;;  %v4630_v45 = vadd.f32 %v4615_v22, %v1038_v38  ;;  %v1667_v2 = vadd.f32 0.18741608, %v1666_v62 }
 0x1b6   : > { %v2343_v17 = vadd.f32 0.0036580483, %v2342_v0  ;;  %v2354_v12 = vadd.f32 0.014752088, %v2353_v33  ;;  %v1703_v9 = vadd.f32 0.0036580483, %v1702_v4  ;;  %v1469_v28 = vadd.f32 %v1468_v14, %v1256_v20 }
 0x1b7   : > { %6189 = vst [vmem:[#allocation18_spill] sm:$0xff] %v4630_v45  ;;  %v1679_v37 = vmul.f32 %v1678_v39, %v4540_v21  ;;  %v1714_v29 = vadd.f32 0.014752088, %v1713_v47  ;;  %v802_v60 = vmul.f32 %v4623_v40, %v4572_v23  ;;  %3223 = vmatmul.msk.f32.gmra.mxu1 %vm1346_vm12, %v4630_v45  ;;  %v814_v62 = vmul.f32 0.5, %v813_v31 }
 0x1b8   : > { %v2344_v41 = vmul.f32 %v2343_v17, %v4587_v43  ;;  %v2355_v27 = vmul.f32 %v2354_v12, %v4587_v43  ;;  %v1704_v63 = vmul.f32 %v1703_v9, %v4589_v58  ;;  %v1668_v14 = vmul.f32 %v1667_v2, %v4540_v21 }
 0x1b9   : > { %v4640_v0 = vadd.f32 1.0, %v1679_v37  ;;  %v1715_v38 = vmul.f32 %v1714_v29, %v4589_v58  ;;  %v4646_v9 = vadd.f32 %v4520_v13, %v1469_v28  ;;  %v803_v17 = vmul.f32 %v4623_v40, %v802_v60  ;;  %v600_v37 = vpop.xlane.xlu1 %599 }
 0x1ba   : > { %v2345_v33 = vadd.f32 0.05243302, %v2344_v41  ;;  %v2356_v4 = vadd.f32 0.112945676, %v2355_v27  ;;  %v1705_v20 = vadd.f32 0.05243302, %v1704_v63  ;;  %v1304_v27 = vpop.f32.mrf.mxu2  ;;  %v1516_v63 = vpop.f32.mrf.mxu3 }
 0x1bb   : > { %3348 = vrcp.f32 %v4640_v0  ;;  %v4653_v29 = vmul.f32 0.5, %v4523_v49  ;;  %v1716_v31 = vadd.f32 0.112945676, %v1715_v38  ;;  %v4656_v21 = vmul.f32 0.5, %v4552_v15 }
 0x1bc   : > { %v2346_v12 = vmul.f32 %v2345_v33, %v4587_v43  ;;  %v2357_v39 = vmul.f32 %v2356_v4, %v4587_v43  ;;  %v1706_v47 = vmul.f32 %v1705_v20, %v4589_v58  ;;  %v815_v28 = vsub.f32 1.5, %v814_v62 }
 0x1bd   : > { %v1669_v33 = vadd.f32 1.1283791, %v1668_v14  ;;  %v1717_v4 = vmul.f32 %v1716_v31, %v4589_v58  ;;  %v4660_v20 = vmul.f32 0.70710677, %v4646_v9  ;;  %v4664_v60 = vmul.f32 0.5, %v4555_v61 }
 0x1be   : > { %v2347_v2 = vadd.f32 0.18741608, %v2346_v12  ;;  %v2358_v41 = vadd.f32 0.4994258, %v2357_v39  ;;  %v1707_v45 = vadd.f32 0.18741608, %v1706_v47  ;;  %v636_v15 = vmul.f32 %v600_v37, %v3631_v50 }
 0x1bf   : > { %v4666_v38 = vmul.f32 0.5, %v803_v17  ;;  %v1718_v39 = vadd.f32 0.4994258, %v1717_v4  ;;  %v1738_v14 = vmul.f32 %v4660_v20, %v4660_v20  ;;  %v1517_v47 = vadd.f32 %v1516_v63, %v1304_v27 }
 0x1c0   : > { %v2359_v49 = vmul.f32 %v2358_v41, %v4587_v43  ;;  %v2348_v62 = vmul.f32 %v2347_v2, %v4587_v43  ;;  %v1708_v41 = vmul.f32 %v1707_v45, %v4589_v58  ;;  %v4677_v61 = vmul.f32 %v4601_v53, %v815_v28 }
 0x1c1   : > { %v3349_v12 = vpop.eup %3348  ;;  %v1670_v17 = vmul.f32 %v1669_v33, %v4528_v30  ;;  %v1690_v37 = vand.u32 2147483647, %v4640_v0  ;;  %v1719_v43 = vmul.f32 %v1718_v39, %v4589_v58  ;;  %v4682_v2 = vmin.f32 %v1738_v14, 16.0  ;;  %v1259_v14 = vpop.f32.mrf.mxu0 }
 0x1c2   : > { %v1682_v31 = vmul.f32 %v3349_v12, %v4640_v0  ;;  %v4673_v56 = vadd.f32 1.0, %v2359_v49  ;;  %v1692_v27 = vand.u32 2147483648, %v4640_v0  ;;  %v4686_v63 = vadd.f32 1e-06, %v636_v15 }
 0x1c3   : > { %vm1687_vm15 = vweird.f32 %v3349_v12  ;;  %v2349_v45 = vadd.f32 1.1283791, %v2348_v62  ;;  %v4688_v49 = vadd.f32 1.0, %v1719_v43  ;;  %v4691_v28 = vadd.f32 %v4520_v13, %v1517_v47 }
 0x1c4   : > { %v1683_v4 = vsub.f32 1.0, %v1682_v31  ;;  %3350 = vrcp.f32 %v4673_v56  ;;  %v1709_v33 = vadd.f32 1.1283791, %v1708_v41  ;;  %v1740_v58 = vmul.f32 2.1237322e-06, %v4682_v2 }
 0x1c5   : > { %v1751_v39 = vmul.f32 3.8918573e-05, %v4682_v2  ;;  %vm1686_vm1 = vweird.f32 %v4640_v0  ;;  %vm4696_vm2 = vcmp.eq.f32.partialorder %v1690_v37, 8.507059e+37  ;;  %v2370_v15 = vand.u32 2147483647, %v4673_v56 }
 0x1c6   : > { %v1684_v30 = vmul.f32 %v3349_v12, %v1683_v4  ;;  %3352 = vrcp.f32 %v4688_v49  ;;  %v1693_v31 = vor.u32 1.1754944e-38, %v1692_v27  ;;  %v2372_v47 = vand.u32 2147483648, %v4673_v56  ;;  %vm1688_vm4 = vmor %vm1686_vm1, %vm1687_vm15 }
 0x1c7   : > { %v1741_v43 = vadd.f32 0.00028619796, %v1740_v58  ;;  %v2350_v41 = vmul.f32 %v2349_v45, %v4566_v42  ;;  %v1752_v4 = vadd.f32 0.001143296, %v1751_v39  ;;  %3354 = vrsqrt.f32 %v4686_v63 }
 0x1c8   : > { %v1685_v62 = vadd.f32 %v3349_v12, %v1684_v30  ;;  %v4707_v0 = vmul.f32 0.70710677, %v4691_v28  ;;  %vm2366_vm5 = vweird.f32 %v4673_v56  ;;  %v4711_v30 = vmul.f32 %v1709_v33, %v4569_v51 }
 0x1c9   : > { %v1742_v27 = vmul.f32 %v1741_v43, %v4682_v2  ;;  %vm4717_vm6 = vcmp.eq.f32.partialorder %v2370_v15, 8.507059e+37  ;;  %v1753_v39 = vmul.f32 %v1752_v4, %v4682_v2  ;;  %vm1726_vm7 = vweird.f32 %v4688_v49  ;;  %v1471_v15 = vpop.f32.mrf.mxu1 }
 0x1ca   : > { %v3351_v37 = vpop.eup %3350  ;;  %v1689_v1 = vsel %vm1688_vm4, %v3349_v12, %v1685_v62  ;;  %v2373_v12 = vor.u32 1.1754944e-38, %v2372_v47  ;;  %v1730_v43 = vand.u32 2147483647, %v4688_v49  ;;  %v1732_v4 = vand.u32 2147483648, %v4688_v49  ;;  %vm4791_vm4 = vmor %vm817_vm10, %vm818_vm11 }
 0x1cb   : > { %v1694_v58 = vsel %vm4696_vm2, %v1693_v31, %v1689_v1  ;;  %v2362_v42 = vmul.f32 %v3351_v37, %v4673_v56  ;;  %v1743_v62 = vadd.f32 0.0036580483, %v1742_v27  ;;  %v1754_v36 = vadd.f32 0.014752088, %v1753_v39  ;;  %v3424_v56 = vld [vmem:[%s3519_s27] sm:$0xff] }
 0x1cc   : > { %v1695_v7 = vmul.f32 %v1694_v58, %v1670_v17  ;;  %v3353_v51 = vpop.eup %3352  ;;  %v2378_v1 = vmul.f32 %v4707_v0, %v4707_v0  ;;  %vm2367_vm8 = vweird.f32 %v3351_v37  ;;  %v1472_v8 = vadd.f32 %v1471_v15, %v1259_v14 }
 0x1cd   : > { %v2363_v33 = vsub.f32 1.0, %v2362_v42  ;;  %v1722_v48 = vmul.f32 %v3353_v51, %v4688_v49  ;;  %v1744_v17 = vmul.f32 %v1743_v62, %v4682_v2  ;;  %v4729_v47 = vpop.eup %3354  ;;  %v1755_v58 = vmul.f32 %v1754_v36, %v4682_v2  ;;  %vm2368_vm13 = vmor %vm2366_vm5, %vm2367_vm8  ;;  %v1519_v49 = vpop.f32.mrf.mxu3 }
 0x1ce   : > { %v3243_v31 = vclamps-f32 %v1695_v7, 1.0  ;;  %v4732_v42 = vmin.f32 %v2378_v1, 16.0  ;;  %vm4734_vm9 = vcmp.eq.f32.partialorder %v1730_v43, 8.507059e+37  ;;  %vm1727_vm14 = vweird.f32 %v3353_v51 }
 0x1cf   : > { %v2364_v27 = vmul.f32 %v3351_v37, %v2363_v33  ;;  %v1723_v25 = vsub.f32 1.0, %v1722_v48  ;;  %v1745_v3 = vadd.f32 0.05243302, %v1744_v17  ;;  %v1756_v62 = vadd.f32 0.112945676, %v1755_v58  ;;  %vm1728_vm15 = vmor %vm1726_vm7, %vm1727_vm14 }
 0x1d0   : > { %v2938_v39 = vadd.f32 1.0, %v3243_v31  ;;  %v2380_v33 = vmul.f32 2.1237322e-06, %v4732_v42  ;;  %v2391_v43 = vmul.f32 3.8918573e-05, %v4732_v42  ;;  %v1733_v58 = vor.u32 1.1754944e-38, %v1732_v4 }
 0x1d1   : > { %v2365_v57 = vadd.f32 %v3351_v37, %v2364_v27  ;;  %v1724_v48 = vmul.f32 %v3353_v51, %v1723_v25  ;;  %v1746_v14 = vmul.f32 %v1745_v3, %v4682_v2  ;;  %v1757_v15 = vmul.f32 %v1756_v62, %v4682_v2 }
 0x1d2   : > { %v2970_v36 = vmul.f32 %v2938_v39, %v4653_v29  ;;  %v2381_v31 = vadd.f32 0.00028619796, %v2380_v33  ;;  %vm807_vm1 = vweird.f32 %v4572_v23  ;;  %v2392_v4 = vadd.f32 0.001143296, %v2391_v43 }
 0x1d3   : > { %v2369_v1 = vsel %vm2368_vm13, %v3351_v37, %v2365_v57  ;;  %v1725_v29 = vadd.f32 %v3353_v51, %v1724_v48  ;;  %v1758_v57 = vadd.f32 0.4994258, %v1757_v15  ;;  %v1747_v33 = vadd.f32 0.18741608, %v1746_v14 }
 0x1d4   : > { %v3002_v17 = vmul.f32 %v2970_v36, %v3972_v19  ;;  %v2374_v27 = vsel %vm4717_vm6, %v2373_v12, %v2369_v1  ;;  %v2382_v3 = vmul.f32 %v2381_v31, %v4732_v42  ;;  %v4760_v19 = vadd.f32 %v4520_v13, %v1472_v8 }
 0x1d5   : > { %v2375_v25 = vmul.f32 %v2374_v27, %v2350_v41  ;;  %v1729_v45 = vsel %vm1728_vm15, %v3353_v51, %v1725_v29  ;;  %v962_v12 = vmul.f32 %v4729_v47, %v4686_v63  ;;  %v1307_v41 = vpop.f32.mrf.mxu2  ;;  %v1759_v8 = vmul.f32 %v1758_v57, %v4682_v2 }
 0x1d6   : > { %v3034_v37 = vadd.f32 %v3424_v56, %v3002_v17  ;;  %v1734_v62 = vsel %vm4734_vm9, %v1733_v58, %v1729_v45  ;;  %v805_v36 = vsub.f32 1.5, %v4666_v38  ;;  %v2383_v48 = vadd.f32 0.0036580483, %v2382_v3  ;;  %v1106_v17 = vld [vmem:[%s3847_s10 + $0x68] sm:$0xff] }
 0x1d7   : > { %v3260_v39 = vclamps-f32 %v2375_v25, 1.0  ;;  %v1735_v51 = vmul.f32 %v1734_v62, %v4711_v30  ;;  %v2393_v1 = vmul.f32 %v2392_v4, %v4732_v42  ;;  %v4774_v15 = vadd.f32 1.0, %v1759_v8  ;;  %3191 = vmatmul.msk.f32.gmra.mxu0 %vm1134_vm3, %v1106_v17  ;;  %v3425_v62 = vld [vmem:[%s3519_s27 + $0x88] sm:$0xff] }
 0x1d8   : > { %3066 = vst.msk [vmem:[%s4754_s25] sm:$0xff] %vm311_vm0, %v3034_v37  ;;  %v4777_v31 = vmul.f32 0.70710677, %v4760_v19  ;;  %v1520_v7 = vadd.f32 %v1519_v49, %v1307_v41  ;;  %v963_v27 = vmul.f32 %v4729_v47, %v962_v12  ;;  %v2384_v29 = vmul.f32 %v2383_v48, %v4732_v42  ;;  %v1262_v49 = vpop.f32.mrf.mxu0 }
 0x1d9   : > { %v2955_v43 = vadd.f32 1.0, %v3260_v39  ;;  %v3244_v14 = vclamps-f32 %v1735_v51, 1.0  ;;  %v2394_v58 = vadd.f32 0.014752088, %v2393_v1  ;;  %vm808_vm2 = vweird.f32 %v4623_v40  ;;  %v1474_v39 = vpop.f32.mrf.mxu1 }
 0x1da   : > { %v1748_v30 = vmul.f32 %v1747_v33, %v4682_v2  ;;  %3356 = vrcp.f32 %v4774_v15  ;;  %v4796_v3 = vmul.f32 %v4623_v40, %v805_v36  ;;  %v1778_v44 = vmul.f32 %v4777_v31, %v4777_v31  ;;  %vm4820_vm5 = vmor %vm807_vm1, %vm808_vm2 }
 0x1db   : > { %v2987_v38 = vmul.f32 %v2955_v43, %v4656_v21  ;;  %v2939_v25 = vadd.f32 1.0, %v3244_v14  ;;  %v2385_v21 = vadd.f32 0.05243302, %v2384_v29  ;;  %v2395_v56 = vmul.f32 %v2394_v58, %v4732_v42 }
 0x1dc   : > { %v4807_v45 = vadd.f32 %v4520_v13, %v1520_v7  ;;  %v4811_v4 = vmul.f32 0.5, %v4646_v9  ;;  %v4813_v41 = vmul.f32 0.5, %v963_v27  ;;  %v4824_v9 = vmin.f32 %v1778_v44, 16.0  ;;  %v3426_v27 = vld [vmem:[%s3519_s27 + $0x8] sm:$0xff] }
 0x1dd   : > { %v3019_v2 = vmul.f32 %v2987_v38, %v3985_v26  ;;  %v2971_v12 = vmul.f32 %v2939_v25, %v4664_v60  ;;  %v2396_v26 = vadd.f32 0.112945676, %v2395_v56  ;;  %v1749_v60 = vadd.f32 1.1283791, %v1748_v30 }
 0x1de   : > { %v4827_v51 = vmul.f32 0.70710677, %v4807_v45  ;;  %v810_v48 = vsel %vm4820_vm5, %v4623_v40, %v4796_v3  ;;  %v2386_v1 = vmul.f32 %v2385_v21, %v4732_v42  ;;  %v1780_v7 = vmul.f32 2.1237322e-06, %v4824_v9 }
 0x1df   : > { %v3051_v33 = vadd.f32 %v3425_v62, %v3019_v2  ;;  %v3003_v36 = vmul.f32 %v2971_v12, %v4023_v55  ;;  %v2397_v23 = vmul.f32 %v2396_v26, %v4732_v42  ;;  %v1791_v17 = vmul.f32 3.8918573e-05, %v4824_v9 }
 0x1e0   : > { %v3357_v43 = vpop.eup %3356  ;;  %v2418_v55 = vmul.f32 %v4827_v51, %v4827_v51  ;;  %v1475_v14 = vadd.f32 %v1474_v39, %v1262_v49  ;;  %v1770_v38 = vand.u32 2147483647, %v4774_v15  ;;  %v965_v30 = vsub.f32 1.5, %v4813_v41 }
 0x1e1   : > { %3083 = vst.msk [vmem:[%s4754_s25 + $0x88] sm:$0xff] %vm311_vm0, %v3051_v33  ;;  %v3035_v29 = vadd.f32 %v3426_v27, %v3003_v36  ;;  %v1762_v58 = vmul.f32 %v3357_v43, %v4774_v15  ;;  %v1750_v25 = vmul.f32 %v1749_v60, %v4660_v20  ;;  %v2398_v21 = vadd.f32 0.4994258, %v2397_v23 }
 0x1e2   : > { %v1781_v56 = vadd.f32 0.00028619796, %v1780_v7  ;;  %v1792_v2 = vadd.f32 0.001143296, %v1791_v17  ;;  %v1772_v12 = vand.u32 2147483648, %v4774_v15  ;;  %v4850_v49 = vmin.f32 %v2418_v55, 16.0 }
 0x1e3   : > { %3067 = vst.msk [vmem:[%s4754_s25 + $0x8] sm:$0xff] %vm311_vm0, %v3035_v29  ;;  %v1763_v44 = vsub.f32 1.0, %v1762_v58  ;;  %v2387_v26 = vadd.f32 0.18741608, %v2386_v1  ;;  %v2399_v39 = vmul.f32 %v2398_v21, %v4732_v42  ;;  %v4856_v41 = vadd.f32 %v4520_v13, %v1475_v14  ;;  %v606_v29 = vpop.xlane.xlu2 %605  ;;  %v603_v58 = vpop.xlane.xlu0 %602 }
 0x1e4   : > { %v1782_v62 = vmul.f32 %v1781_v56, %v4824_v9  ;;  %v1793_v33 = vmul.f32 %v1792_v2, %v4824_v9  ;;  %vm1767_vm6 = vweird.f32 %v3357_v43  ;;  %v2420_v60 = vmul.f32 2.1237322e-06, %v4850_v49 }
 0x1e5   : > { %v1764_v20 = vmul.f32 %v3357_v43, %v1763_v44  ;;  %v2431_v36 = vmul.f32 3.8918573e-05, %v4850_v49  ;;  %vm1766_vm7 = vweird.f32 %v4774_v15  ;;  %v4861_v1 = vadd.f32 1.0, %v2399_v39 }
 0x1e6   : > { %v1783_v23 = vadd.f32 0.0036580483, %v1782_v62  ;;  %v1794_v7 = vadd.f32 0.014752088, %v1793_v33  ;;  %vm1771_vm8 = vcmp.eq.f32.partialorder %v1770_v38, 8.507059e+37  ;;  %vm1768_vm9 = vmor %vm1766_vm7, %vm1767_vm6  ;;  %v1773_v14 = vor.u32 1.1754944e-38, %v1772_v12 }
 0x1e7   : > { %v1765_v17 = vadd.f32 %v3357_v43, %v1764_v20  ;;  %v2421_v55 = vadd.f32 0.00028619796, %v2420_v60  ;;  %v2432_v27 = vadd.f32 0.001143296, %v2431_v36  ;;  %v2388_v21 = vmul.f32 %v2387_v26, %v4732_v42 }
 0x1e8   : > { %3358 = vrcp.f32 %v4861_v1  ;;  %v4866_v56 = vmul.f32 0.70710677, %v4856_v41  ;;  %v1784_v2 = vmul.f32 %v1783_v23, %v4824_v9  ;;  %v1795_v44 = vmul.f32 %v1794_v7, %v4824_v9 }
 0x1e9   : > { %v1769_v15 = vsel %vm1768_vm9, %v3357_v43, %v1765_v17  ;;  %v2422_v38 = vmul.f32 %v2421_v55, %v4850_v49  ;;  %v2433_v62 = vmul.f32 %v2432_v27, %v4850_v49  ;;  %v638_v12 = vmul.f32 %v606_v29, %v3631_v50 }
 0x1ea   : > { %v1774_v39 = vsel %vm1771_vm8, %v1773_v14, %v1769_v15  ;;  %v637_v42 = vmul.f32 %v603_v58, %v3631_v50  ;;  %v1785_v33 = vadd.f32 0.05243302, %v1784_v2  ;;  %v1796_v20 = vadd.f32 0.112945676, %v1795_v44  ;;  %v1107_v58 = vld [vmem:[%s3847_s10 + $0x70] sm:$0xff] }
 0x1eb   : > { %v1775_v26 = vmul.f32 %v1774_v39, %v1750_v25  ;;  %v2423_v60 = vadd.f32 0.0036580483, %v2422_v38  ;;  %v4875_v43 = vmul.f32 %v4729_v47, %v965_v30  ;;  %v2389_v36 = vadd.f32 1.1283791, %v2388_v21  ;;  %v1122_v25 = vld [vmem:[%s3847_s10 + $0xe8] sm:$0xff]  ;;  %3192 = vmatmul.msk.f32.gmra.mxu0 %vm1134_vm3, %v1107_v58 }
 0x1ec   : > { %v2434_v23 = vadd.f32 0.014752088, %v2433_v62  ;;  %v1818_v7 = vmul.f32 %v4866_v56, %v4866_v56  ;;  %v1786_v55 = vmul.f32 %v1785_v33, %v4824_v9  ;;  %v1797_v27 = vmul.f32 %v1796_v20, %v4824_v9  ;;  %3207 = vmatmul.msk.f32.gmra.mxu2 %vm1134_vm3, %v1122_v25 }
 0x1ed   : > { %v3245_v17 = vclamps-f32 %v1775_v26, 1.0  ;;  %v2424_v29 = vmul.f32 %v2423_v60, %v4850_v49  ;;  %v2410_v15 = vand.u32 2147483647, %v4861_v1  ;;  %v2412_v30 = vand.u32 2147483648, %v4861_v1 }
 0x1ee   : > { %v3359_v14 = vpop.eup %3358  ;;  %v2435_v21 = vmul.f32 %v2434_v23, %v4850_v49  ;;  %v4887_v2 = vmin.f32 %v1818_v7, 16.0  ;;  %vm968_vm10 = vweird.f32 %v4729_v47  ;;  %v4893_v39 = vadd.f32 1e-06, %v638_v12 }
 0x1ef   : > { %v2940_v44 = vadd.f32 1.0, %v3245_v17  ;;  %v2402_v38 = vmul.f32 %v3359_v14, %v4861_v1  ;;  %v4895_v62 = vadd.f32 1e-06, %v637_v42  ;;  %vm2406_vm11 = vweird.f32 %v4861_v1 }
 0x1f0   : > { %v1798_v26 = vadd.f32 0.4994258, %v1797_v27  ;;  %v2425_v33 = vadd.f32 0.05243302, %v2424_v29  ;;  %v2436_v20 = vadd.f32 0.112945676, %v2435_v21  ;;  %vm2407_vm13 = vweird.f32 %v3359_v14 }
 0x1f1   : > { %v2972_v60 = vmul.f32 %v2940_v44, %v4811_v4  ;;  %v2403_v23 = vsub.f32 1.0, %v2402_v38  ;;  %v1787_v7 = vadd.f32 0.18741608, %v1786_v55  ;;  %v1820_v17 = vmul.f32 2.1237322e-06, %v4887_v2  ;;  %v3427_v44 = vld [vmem:[%s3519_s27 + $0x10] sm:$0xff]  ;;  %vm2408_vm14 = vmor %vm2406_vm11, %vm2407_vm13 }
 0x1f2   : > { %v1799_v58 = vmul.f32 %v1798_v26, %v4824_v9  ;;  %v2426_v12 = vmul.f32 %v2425_v33, %v4850_v49  ;;  %v2437_v42 = vmul.f32 %v2436_v20, %v4850_v49  ;;  %v1831_v29 = vmul.f32 3.8918573e-05, %v4887_v2 }
 0x1f3   : > { %v3004_v25 = vmul.f32 %v2972_v60, %v4103_v11  ;;  %v2404_v37 = vmul.f32 %v3359_v14, %v2403_v23  ;;  %v1821_v27 = vadd.f32 0.00028619796, %v1820_v17  ;;  %3360 = vrsqrt.f32 %v4893_v39 }
 0x1f4   : > { %v4905_v4 = vadd.f32 1.0, %v1799_v58  ;;  %v2427_v21 = vadd.f32 0.18741608, %v2426_v12  ;;  %v2438_v55 = vadd.f32 0.4994258, %v2437_v42  ;;  %v1788_v33 = vmul.f32 %v1787_v7, %v4824_v9 }
 0x1f5   : > { %v3036_v38 = vadd.f32 %v3427_v44, %v3004_v25  ;;  %v2405_v26 = vadd.f32 %v3359_v14, %v2404_v37  ;;  %v1822_v20 = vmul.f32 %v1821_v27, %v4887_v2  ;;  %v2390_v11 = vmul.f32 %v2389_v36, %v4707_v0 }
 0x1f6   : > { %vm2411_vm15 = vcmp.eq.f32.partialorder %v2410_v15, 8.507059e+37  ;;  %v2413_v60 = vor.u32 1.1754944e-38, %v2412_v30  ;;  %3362 = vrcp.f32 %v4905_v4  ;;  %v2439_v17 = vmul.f32 %v2438_v55, %v4850_v49 }
 0x1f7   : > { %3068 = vst.msk [vmem:[%s4754_s25 + $0x10] sm:$0xff] %vm311_vm0, %v3036_v38  ;;  %v2409_v23 = vsel %vm2408_vm14, %v3359_v14, %v2405_v26  ;;  %v1823_v37 = vadd.f32 0.0036580483, %v1822_v20  ;;  %3364 = vrsqrt.f32 %v4895_v62  ;;  %vm967_vm1 = vweird.f32 %v4686_v63 }
 0x1f8   : > { %v2414_v9 = vsel %vm2411_vm15, %v2413_v60, %v2409_v23  ;;  %v2428_v0 = vmul.f32 %v2427_v21, %v4850_v49  ;;  %v1832_v36 = vadd.f32 0.001143296, %v1831_v29  ;;  %v1789_v7 = vadd.f32 1.1283791, %v1788_v33  ;;  %vm4929_vm2 = vmor %vm967_vm1, %vm968_vm10 }
 0x1f9   : > { %v2415_v1 = vmul.f32 %v2414_v9, %v2390_v11  ;;  %v4922_v15 = vadd.f32 1.0, %v2439_v17  ;;  %v1824_v30 = vmul.f32 %v1823_v37, %v4887_v2  ;;  %v4925_v58 = vpop.eup %3360  ;;  %v1612_v63 = vmul.f32 0.5, %v4691_v28 }
 0x1fa   : > { %v1810_v12 = vand.u32 2147483647, %v4905_v4  ;;  %v1812_v49 = vand.u32 2147483648, %v4905_v4  ;;  %v1833_v42 = vmul.f32 %v1832_v36, %v4887_v2  ;;  %v970_v25 = vsel %vm4929_vm2, %v4729_v47, %v4875_v43  ;;  %v5079_v43 = vld [vmem:[%s6125_s5] ss:$0 sm:$0xff] }
 0x1fb   : > { %v3261_v27 = vclamps-f32 %v2415_v1, 1.0  ;;  %v4942_v29 = vmul.f32 0.5, %v4760_v19  ;;  %3366 = vrcp.f32 %v4922_v15  ;;  %v4946_v28 = vmul.f32 0.5, %v4807_v45 }
 0x1fc   : > { %v3363_v21 = vpop.eup %3362  ;;  %v2429_v55 = vadd.f32 1.1283791, %v2428_v0  ;;  %v1825_v44 = vadd.f32 0.05243302, %v1824_v30  ;;  %v1004_v38 = vmul.f32 %v810_v48, %v4060_v24  ;;  %v1790_v19 = vmul.f32 %v1789_v7, %v4777_v31 }
 0x1fd   : > { %v4954_v26 = vpop.eup %3364  ;;  %v2956_v33 = vadd.f32 1.0, %v3261_v27  ;;  %v1802_v20 = vmul.f32 %v3363_v21, %v4905_v4  ;;  %v1834_v11 = vadd.f32 0.014752088, %v1833_v42  ;;  %vm1806_vm6 = vweird.f32 %v4905_v4 }
 0x1fe   : > { %vm4959_vm7 = vcmp.eq.f32.partialorder %v1810_v12, 8.507059e+37  ;;  %v1813_v60 = vor.u32 1.1754944e-38, %v1812_v49  ;;  %v1826_v8 = vmul.f32 %v1825_v44, %v4887_v2  ;;  %v982_v3 = vmul.f32 %v4925_v58, %v4893_v39  ;;  %v1522_v12 = vpop.f32.mrf.mxu3  ;;  %v3428_v49 = vld [vmem:[%s3519_s27 + $0x90] sm:$0xff]  ;;  %v1265_v44 = vpop.f32.mrf.mxu0 }
 0x1ff   : > { %v2988_v23 = vmul.f32 %v2956_v33, %v1612_v63  ;;  %v1803_v40 = vsub.f32 1.0, %v1802_v20  ;;  %v1835_v24 = vmul.f32 %v1834_v11, %v4887_v2  ;;  %v2430_v31 = vmul.f32 %v2429_v55, %v4827_v51  ;;  %v1310_v63 = vpop.f32.mrf.mxu2 }
 0x200   : > { %v2450_v48 = vand.u32 2147483647, %v4922_v15  ;;  %v972_v17 = vmul.f32 %v4954_v26, %v4895_v62  ;;  %v1039_v37 = vmul.f32 %v4598_v46, %v1004_v38  ;;  %vm1807_vm5 = vweird.f32 %v3363_v21  ;;  %v1477_v38 = vpop.f32.mrf.mxu1 }
 0x201   : > { %v3367_v9 = vpop.eup %3366  ;;  %v3020_v0 = vmul.f32 %v2988_v23, %v4077_v10  ;;  %v1804_v36 = vmul.f32 %v3363_v21, %v1803_v40  ;;  %v1836_v1 = vadd.f32 0.112945676, %v1835_v24  ;;  %vm2446_vm8 = vweird.f32 %v4922_v15  ;;  %vm1808_vm9 = vmor %vm1806_vm6, %vm1807_vm5 }
 0x202   : > { %v2442_v7 = vmul.f32 %v3367_v9, %v4922_v15  ;;  %v2452_v30 = vand.u32 2147483648, %v4922_v15  ;;  %v1827_v51 = vadd.f32 0.18741608, %v1826_v8  ;;  %v983_v10 = vmul.f32 %v4925_v58, %v982_v3  ;;  %v558_v3 = vpop.xlane.xlu1 %557  ;;  %v6206_v15 = vld [vmem:[#allocation2_spill] sm:$0xff] }
 0x203   : > { %v3052_v42 = vadd.f32 %v3428_v49, %v3020_v0  ;;  %v1805_v27 = vadd.f32 %v3363_v21, %v1804_v36  ;;  %v1837_v55 = vmul.f32 %v1836_v1, %v4887_v2  ;;  %vm4982_vm10 = vcmp.eq.f32.partialorder %v2450_v48, 8.507059e+37 }
 0x204   : > { %v2443_v33 = vsub.f32 1.0, %v2442_v7  ;;  %v973_v11 = vmul.f32 %v4954_v26, %v972_v17  ;;  %v4988_v8 = vadd.f32 %v4615_v22, %v1039_v37  ;;  %vm2447_vm11 = vweird.f32 %v3367_v9 }
 0x205   : > { %3084 = vst.msk [vmem:[%s4754_s25 + $0x90] sm:$0xff] %vm311_vm0, %v3052_v42  ;;  %v1809_v23 = vsel %vm1808_vm9, %v3363_v21, %v1805_v27  ;;  %v1838_v40 = vadd.f32 0.4994258, %v1837_v55  ;;  %v1523_v24 = vadd.f32 %v1522_v12, %v1310_v63  ;;  %v1828_v48 = vmul.f32 %v1827_v51, %v4887_v2  ;;  %vm2448_vm13 = vmor %vm2446_vm8, %vm2447_vm11 }
 0x206   : > { %v1814_v4 = vsel %vm4959_vm7, %v1813_v60, %v1809_v23  ;;  %v2444_v0 = vmul.f32 %v3367_v9, %v2443_v33  ;;  %3224 = vmatmul.msk.f32.gmra.mxu1 %vm1346_vm12, %v4988_v8  ;;  %v1478_v17 = vadd.f32 %v1477_v38, %v1265_v44  ;;  %v2453_v37 = vor.u32 1.1754944e-38, %v2452_v30  ;;  %v1525_v23 = vpop.f32.mrf.mxu3 }
 0x207   : > { %v1815_v36 = vmul.f32 %v1814_v4, %v1790_v19  ;;  %v1839_v1 = vmul.f32 %v1838_v40, %v4887_v2  ;;  %v4999_v21 = vadd.f32 %v4520_v13, %v1523_v24  ;;  %v5001_v63 = vmul.f32 0.5, %v983_v10  ;;  %v1313_v20 = vpop.f32.mrf.mxu2 }
 0x208   : > { %v2445_v7 = vadd.f32 %v3367_v9, %v2444_v0  ;;  %v5004_v45 = vadd.f32 %v4520_v13, %v1478_v17  ;;  %v622_v60 = vmul.f32 %v558_v3, %v3631_v50  ;;  %v5012_v30 = vmul.f32 0.5, %v973_v11 }
 0x209   : > { %v3246_v51 = vclamps-f32 %v1815_v36, 1.0  ;;  %v5010_v19 = vadd.f32 1.0, %v1839_v1  ;;  %v5015_v2 = vmul.f32 0.70710677, %v4999_v21  ;;  %v1829_v49 = vadd.f32 1.1283791, %v1828_v48 }
 0x20a   : > { %v2449_v12 = vsel %vm2448_vm13, %v3367_v9, %v2445_v7  ;;  %v5018_v42 = vmul.f32 0.70710677, %v5004_v45  ;;  %v5020_v13 = vadd.f32 1e-06, %v622_v60  ;;  %v6207_v10 = vsel %vm4791_vm4, %v4601_v53, %v4677_v61 }
 0x20b   : > { %v2941_v27 = vadd.f32 1.0, %v3246_v51  ;;  %v2454_v55 = vsel %vm4982_vm10, %v2453_v37, %v2449_v12  ;;  %3368 = vrcp.f32 %v5010_v19  ;;  %v1005_v44 = vmul.f32 %v6207_v10, %v6206_v15  ;;  %v3429_v37 = vld [vmem:[%s3519_s27 + $0x18] sm:$0xff] }
 0x20c   : > { %v2455_v9 = vmul.f32 %v2454_v55, %v2430_v31  ;;  %v5032_v38 = vmul.f32 0.5, %v4856_v41  ;;  %v985_v33 = vsub.f32 1.5, %v5001_v63  ;;  %v2458_v11 = vmul.f32 %v5015_v2, %v5015_v2 }
 0x20d   : > { %v2973_v40 = vmul.f32 %v2941_v27, %v4942_v29  ;;  %v975_v24 = vsub.f32 1.5, %v5012_v30  ;;  %v1858_v57 = vmul.f32 %v5018_v42, %v5018_v42  ;;  %3370 = vrsqrt.f32 %v5020_v13 }
 0x20e   : > { %v3262_v53 = vclamps-f32 %v2455_v9, 1.0  ;;  %v5043_v61 = vmul.f32 %v1829_v49, %v4866_v56  ;;  %v1850_v41 = vand.u32 2147483647, %v5010_v19  ;;  %v5046_v31 = vmin.f32 %v2458_v11, 16.0 }
 0x20f   : > { %v3005_v3 = vmul.f32 %v2973_v40, %v4148_v35  ;;  %v5049_v4 = vmin.f32 %v1858_v57, 16.0  ;;  %v1040_v29 = vmul.f32 %v4598_v46, %v1005_v44  ;;  %v1526_v0 = vadd.f32 %v1525_v23, %v1313_v20  ;;  %v3431_v40 = vld [vmem:[%s3519_s27 + $0x98] sm:$0xff] }
 0x210   : > { %v2957_v48 = vadd.f32 1.0, %v3262_v53  ;;  %vm1846_vm4 = vweird.f32 %v5010_v19  ;;  %v2460_v17 = vmul.f32 2.1237322e-06, %v5046_v31  ;;  %v2471_v56 = vmul.f32 3.8918573e-05, %v5046_v31 }
 0x211   : > { %v1020_v35 = vmul.f32 %v970_v25, %v4128_v34  ;;  %v3369_v36 = vpop.eup %3368  ;;  %v3037_v1 = vadd.f32 %v3429_v37, %v3005_v3  ;;  %v1860_v7 = vmul.f32 2.1237322e-06, %v5049_v4  ;;  %v1871_v60 = vmul.f32 3.8918573e-05, %v5049_v4 }
 0x212   : > { %v5065_v51 = vadd.f32 %v4615_v22, %v1040_v29  ;;  %v2989_v12 = vmul.f32 %v2957_v48, %v4946_v28  ;;  %v1842_v49 = vmul.f32 %v3369_v36, %v5010_v19  ;;  %v1852_v14 = vand.u32 2147483648, %v5010_v19 }
 0x213   : > { %v2461_v27 = vadd.f32 0.00028619796, %v2460_v17  ;;  %v5070_v55 = vpop.eup %3370  ;;  %3069 = vst.msk [vmem:[%s4754_s25 + $0x18] sm:$0xff] %vm311_vm0, %v3037_v1  ;;  %vm1847_vm14 = vweird.f32 %v3369_v36  ;;  %v2472_v34 = vadd.f32 0.001143296, %v2471_v56  ;;  %v5082_v25 = vadd.f32 %v5079_v43, %v1526_v0 }
 0x214   : > { %v1861_v47 = vadd.f32 0.00028619796, %v1860_v7  ;;  %3225 = vmatmul.msk.f32.gmra.mxu1 %vm1346_vm12, %v5065_v51  ;;  %v3021_v28 = vmul.f32 %v2989_v12, %v4172_v32  ;;  %v1843_v15 = vsub.f32 1.0, %v1842_v49  ;;  %v1872_v44 = vadd.f32 0.001143296, %v1871_v60  ;;  %vm1848_vm7 = vmor %vm1846_vm4, %vm1847_vm14 }
 0x215   : > { %v2462_v10 = vmul.f32 %v2461_v27, %v5046_v31  ;;  %vm987_vm15 = vweird.f32 %v4893_v39  ;;  %vm988_vm1 = vweird.f32 %v4925_v58  ;;  %v2473_v9 = vmul.f32 %v2472_v34, %v5046_v31 }
 0x216   : > { %v1862_v11 = vmul.f32 %v1861_v47, %v5049_v4  ;;  %v822_v20 = vmul.f32 %v5070_v55, %v5020_v13  ;;  %v1055_v23 = vmul.f32 %v4598_v46, %v1020_v35  ;;  %v3053_v32 = vadd.f32 %v3431_v40, %v3021_v28  ;;  %vm5145_vm5 = vmor %vm987_vm15, %vm988_vm1 }
 0x217   : > { %v1844_v57 = vmul.f32 %v3369_v36, %v1843_v15  ;;  %v2463_v53 = vadd.f32 0.0036580483, %v2462_v10  ;;  %v1873_v3 = vmul.f32 %v1872_v44, %v5049_v4  ;;  %vm5095_vm2 = vcmp.eq.f32.partialorder %v1850_v41, 8.507059e+37  ;;  %v1268_v44 = vpop.f32.mrf.mxu0 }
 0x218   : > { %v1853_v0 = vor.u32 1.1754944e-38, %v1852_v14  ;;  %vm978_vm6 = vweird.f32 %v4954_v26  ;;  %v2474_v48 = vadd.f32 0.014752088, %v2473_v9  ;;  %v1863_v17 = vadd.f32 0.0036580483, %v1862_v11  ;;  %3085 = vst.msk [vmem:[%s4754_s25 + $0x98] sm:$0xff] %vm311_vm0, %v3053_v32  ;;  %v1480_v9 = vpop.f32.mrf.mxu1 }
 0x219   : > { %v1845_v56 = vadd.f32 %v3369_v36, %v1844_v57  ;;  %v2464_v46 = vmul.f32 %v2463_v53, %v5046_v31  ;;  %v1874_v35 = vadd.f32 0.014752088, %v1873_v3  ;;  %v5104_v37 = vmul.f32 0.70710677, %v5082_v25 }
 0x21a   : > { %v2475_v41 = vmul.f32 %v2474_v48, %v5046_v31  ;;  %v1864_v1 = vmul.f32 %v1863_v17, %v5049_v4  ;;  %v823_v7 = vmul.f32 %v5070_v55, %v822_v20  ;;  %v5113_v60 = vadd.f32 %v4615_v22, %v1055_v23 }
 0x21b   : > { %v1849_v12 = vsel %vm1848_vm7, %v3369_v36, %v1845_v56  ;;  %v2465_v49 = vadd.f32 0.05243302, %v2464_v46  ;;  %v1875_v14 = vmul.f32 %v1874_v35, %v5049_v4  ;;  %v2498_v27 = vmul.f32 %v5104_v37, %v5104_v37 }
 0x21c   : > { %v1854_v19 = vsel %vm5095_vm2, %v1853_v0, %v1849_v12  ;;  %v5123_v34 = vmul.f32 %v4925_v58, %v985_v33  ;;  %v2476_v47 = vadd.f32 0.112945676, %v2475_v41  ;;  %v1865_v28 = vadd.f32 0.05243302, %v1864_v1  ;;  %3240 = vmatmul.msk.f32.gmra.mxu3 %vm1346_vm12, %v5113_v60  ;;  %v1123_v12 = vld [vmem:[%s3847_s10 + $0xf0] sm:$0xff] }
 0x21d   : > { %v1855_v22 = vmul.f32 %v1854_v19, %v5043_v61  ;;  %v2466_v36 = vmul.f32 %v2465_v49, %v5046_v31  ;;  %v1876_v15 = vadd.f32 0.112945676, %v1875_v14  ;;  %v5129_v10 = vmin.f32 %v2498_v27, 16.0  ;;  %3208 = vmatmul.msk.f32.gmra.mxu2 %vm1134_vm3, %v1123_v12 }
 0x21e   : > { %v5134_v63 = vmul.f32 %v4954_v26, %v975_v24  ;;  %v2477_v33 = vmul.f32 %v2476_v47, %v5046_v31  ;;  %v1866_v11 = vmul.f32 %v1865_v28, %v5049_v4  ;;  %v824_v20 = vmul.f32 0.5, %v823_v7 }
 0x21f   : > { %v3247_v23 = vclamps-f32 %v1855_v22, 1.0  ;;  %v2467_v40 = vadd.f32 0.18741608, %v2466_v36  ;;  %v1877_v61 = vmul.f32 %v1876_v15, %v5049_v4  ;;  %v2500_v32 = vmul.f32 2.1237322e-06, %v5129_v10  ;;  %v561_v36 = vpop.xlane.xlu0 %560  ;;  %v3432_v15 = vld [vmem:[%s3519_s27 + $0x20] sm:$0xff] }
 0x220   : > { %v2478_v57 = vadd.f32 0.4994258, %v2477_v33  ;;  %v1867_v53 = vadd.f32 0.18741608, %v1866_v11  ;;  %v2511_v3 = vmul.f32 3.8918573e-05, %v5129_v10  ;;  %v1481_v30 = vadd.f32 %v1480_v9, %v1268_v44  ;;  %v1316_v33 = vpop.f32.mrf.mxu2 }
 0x221   : > { %v2942_v29 = vadd.f32 1.0, %v3247_v23  ;;  %vm977_vm8 = vweird.f32 %v4895_v62  ;;  %v1878_v0 = vadd.f32 0.4994258, %v1877_v61  ;;  %v2501_v48 = vadd.f32 0.00028619796, %v2500_v32 }
 0x222   : > { %v990_v17 = vsel %vm5145_vm5, %v4925_v58, %v5123_v34  ;;  %v2479_v56 = vmul.f32 %v2478_v57, %v5046_v31  ;;  %v825_v46 = vsub.f32 1.5, %v824_v20  ;;  %v2512_v35 = vadd.f32 0.001143296, %v2511_v3  ;;  %vm5158_vm9 = vmor %vm977_vm8, %vm978_vm6 }
 0x223   : > { %v2974_v41 = vmul.f32 %v2942_v29, %v5032_v38  ;;  %v2468_v62 = vmul.f32 %v2467_v40, %v5046_v31  ;;  %v1879_v1 = vmul.f32 %v1878_v0, %v5049_v4  ;;  %v2502_v7 = vmul.f32 %v2501_v48, %v5129_v10 }
 0x224   : > { %v980_v49 = vsel %vm5158_vm9, %v4954_v26, %v5134_v63  ;;  %v5170_v38 = vadd.f32 1.0, %v2479_v56  ;;  %v1868_v14 = vmul.f32 %v1867_v53, %v5049_v4  ;;  %v5174_v27 = vadd.f32 %v5079_v43, %v1481_v30 }
 0x225   : > { %v3006_v31 = vmul.f32 %v2974_v41, %v4232_v5  ;;  %v5178_v19 = vadd.f32 1.0, %v1879_v1  ;;  %v2503_v47 = vadd.f32 0.0036580483, %v2502_v7  ;;  %v2513_v28 = vmul.f32 %v2512_v35, %v5129_v10 }
 0x226   : > { %v5182_v22 = vmul.f32 0.5, %v4999_v21  ;;  %3372 = vrcp.f32 %v5170_v38  ;;  %v5186_v4 = vmul.f32 %v5070_v55, %v825_v46  ;;  %vm828_vm10 = vweird.f32 %v5070_v55  ;;  %v1528_v21 = vpop.f32.mrf.mxu3 }
 0x227   : > { %v3038_v44 = vadd.f32 %v3432_v15, %v3006_v31  ;;  %v2469_v5 = vadd.f32 1.1283791, %v2468_v62  ;;  %v5191_v9 = vmul.f32 0.5, %v5004_v45  ;;  %3374 = vrcp.f32 %v5178_v19  ;;  %v1483_v31 = vpop.f32.mrf.mxu1 }
 0x228   : > { %v2490_v11 = vand.u32 2147483647, %v5170_v38  ;;  %v2492_v20 = vand.u32 2147483648, %v5170_v38  ;;  %v1869_v23 = vadd.f32 1.1283791, %v1868_v14  ;;  %vm827_vm11 = vweird.f32 %v5020_v13  ;;  %v1271_v14 = vpop.f32.mrf.mxu0 }
 0x229   : > { %3070 = vst.msk [vmem:[%s4754_s25 + $0x20] sm:$0xff] %vm311_vm0, %v3038_v44  ;;  %vm5199_vm13 = vmor %vm827_vm11, %vm828_vm10  ;;  %v2504_v45 = vmul.f32 %v2503_v47, %v5129_v10  ;;  %v2514_v61 = vadd.f32 0.014752088, %v2513_v28  ;;  %v5205_v32 = vmul.f32 0.70710677, %v5174_v27  ;;  %v623_v57 = vmul.f32 %v561_v36, %v3631_v50 }
 0x22a   : > { %v1890_v53 = vand.u32 2147483647, %v5178_v19  ;;  %v830_v13 = vsel %vm5199_vm13, %v5070_v55, %v5186_v4  ;;  %v5214_v3 = vmul.f32 0.5, %v5082_v25  ;;  %v1529_v30 = vadd.f32 %v1528_v21, %v1316_v33 }
 0x22b   : > { %v2505_v29 = vadd.f32 0.05243302, %v2504_v45  ;;  %v2515_v0 = vmul.f32 %v2514_v61, %v5129_v10  ;;  %v1898_v48 = vmul.f32 %v5205_v32, %v5205_v32  ;;  %v5219_v56 = vadd.f32 1e-06, %v623_v57 }
 0x22c   : > { %v3373_v50 = vpop.eup %3372  ;;  %v2470_v46 = vmul.f32 %v2469_v5, %v5015_v2  ;;  %vm2486_vm4 = vweird.f32 %v5170_v38  ;;  %v1870_v35 = vmul.f32 %v1869_v23, %v5018_v42  ;;  %vm1886_vm14 = vweird.f32 %v5178_v19 }
 0x22d   : > { %v3375_v25 = vpop.eup %3374  ;;  %v2482_v41 = vmul.f32 %v3373_v50, %v5170_v38  ;;  %vm5226_vm15 = vcmp.eq.f32.partialorder %v2490_v11, 8.507059e+37  ;;  %v2493_v1 = vor.u32 1.1754944e-38, %v2492_v20  ;;  %v2506_v7 = vmul.f32 %v2505_v29, %v5129_v10 }
 0x22e   : > { %v2516_v12 = vadd.f32 0.112945676, %v2515_v0  ;;  %v1882_v2 = vmul.f32 %v3375_v25, %v5178_v19  ;;  %v1892_v47 = vand.u32 2147483648, %v5178_v19  ;;  %v5233_v42 = vmin.f32 %v1898_v48, 16.0 }
 0x22f   : > { %3376 = vrsqrt.f32 %v5219_v56  ;;  %v2483_v28 = vsub.f32 1.0, %v2482_v41  ;;  %vm5236_vm1 = vcmp.eq.f32.partialorder %v1890_v53, 8.507059e+37  ;;  %v5242_v44 = vadd.f32 %v5079_v43, %v1529_v30 }
 0x230   : > { %v2517_v15 = vmul.f32 %v2516_v12, %v5129_v10  ;;  %v1883_v5 = vsub.f32 1.0, %v1882_v2  ;;  %v1900_v33 = vmul.f32 2.1237322e-06, %v5233_v42  ;;  %v1911_v21 = vmul.f32 3.8918573e-05, %v5233_v42 }
 0x231   : > { %v1484_v11 = vadd.f32 %v1483_v31, %v1271_v14  ;;  %v2484_v20 = vmul.f32 %v3373_v50, %v2483_v28  ;;  %vm2487_vm2 = vweird.f32 %v3373_v50  ;;  %v2507_v23 = vadd.f32 0.18741608, %v2506_v7 }
 0x232   : > { %v2518_v45 = vadd.f32 0.4994258, %v2517_v15  ;;  %v1884_v61 = vmul.f32 %v3375_v25, %v1883_v5  ;;  %vm1887_vm6 = vweird.f32 %v3375_v25  ;;  %v1901_v57 = vadd.f32 0.00028619796, %v1900_v33  ;;  %vm2488_vm7 = vmor %vm2486_vm4, %vm2487_vm2  ;;  %v1319_v15 = vpop.f32.mrf.mxu2  ;;  %v1531_v5 = vpop.f32.mrf.mxu3 }
 0x233   : > { %v1912_v53 = vadd.f32 0.001143296, %v1911_v21  ;;  %v2485_v29 = vadd.f32 %v3373_v50, %v2484_v20  ;;  %v1893_v0 = vor.u32 1.1754944e-38, %v1892_v47  ;;  %v5248_v30 = vmul.f32 0.70710677, %v5242_v44  ;;  %vm1888_vm8 = vmor %vm1886_vm14, %vm1887_vm6 }
 0x234   : > { %v2519_v48 = vmul.f32 %v2518_v45, %v5129_v10  ;;  %v1885_v12 = vadd.f32 %v3375_v25, %v1884_v61  ;;  %v1902_v7 = vmul.f32 %v1901_v57, %v5233_v42  ;;  %v5257_v31 = vadd.f32 %v5079_v43, %v1484_v11 }
 0x235   : > { %v5250_v41 = vpop.eup %3376  ;;  %v1913_v14 = vmul.f32 %v1912_v53, %v5233_v42  ;;  %v2489_v2 = vsel %vm2488_vm7, %v3373_v50, %v2485_v29  ;;  %v2508_v47 = vmul.f32 %v2507_v23, %v5129_v10  ;;  %v2538_v10 = vmul.f32 %v5248_v30, %v5248_v30 }
 0x236   : > { %v5262_v28 = vadd.f32 1.0, %v2519_v48  ;;  %v832_v38 = vmul.f32 %v5250_v41, %v5219_v56  ;;  %v2494_v33 = vsel %vm5226_vm15, %v2493_v1, %v2489_v2  ;;  %v1889_v21 = vsel %vm1888_vm8, %v3375_v25, %v1885_v12 }
 0x237   : > { %v1903_v20 = vadd.f32 0.0036580483, %v1902_v7  ;;  %v1914_v11 = vadd.f32 0.014752088, %v1913_v14  ;;  %v2495_v45 = vmul.f32 %v2494_v33, %v2470_v46  ;;  %v1894_v19 = vsel %vm5236_vm1, %v1893_v0, %v1889_v21  ;;  %v1124_v14 = vld [vmem:[%s3847_s10 + $0xf8] sm:$0xff] }
 0x238   : > { %3378 = vrcp.f32 %v5262_v28  ;;  %v1895_v50 = vmul.f32 %v1894_v19, %v1870_v35  ;;  %v5274_v23 = vmul.f32 0.5, %v5174_v27  ;;  %v1532_v25 = vadd.f32 %v1531_v5, %v1319_v15  ;;  %v1108_v35 = vld [vmem:[%s3847_s10 + $0x78] sm:$0xff]  ;;  %3209 = vmatmul.msk.f32.gmra.mxu2 %vm1134_vm3, %v1124_v14 }
 0x239   : > { %v1904_v62 = vmul.f32 %v1903_v20, %v5233_v42  ;;  %v3263_v1 = vclamps-f32 %v2495_v45, 1.0  ;;  %v1915_v46 = vmul.f32 %v1914_v11, %v5233_v42  ;;  %v833_v36 = vmul.f32 %v5250_v41, %v832_v38  ;;  %3193 = vmatmul.msk.f32.gmra.mxu0 %vm1134_vm3, %v1108_v35 }
 0x23a   : > { %v5280_v61 = vmul.f32 0.70710677, %v5257_v31  ;;  %v3248_v57 = vclamps-f32 %v1895_v50, 1.0  ;;  %v2509_v53 = vadd.f32 1.1283791, %v2508_v47  ;;  %v5288_v27 = vmul.f32 %v980_v49, %v4269_v54 }
 0x23b   : > { %v1905_v29 = vadd.f32 0.05243302, %v1904_v62  ;;  %v2958_v0 = vadd.f32 1.0, %v3263_v1  ;;  %v1916_v48 = vadd.f32 0.112945676, %v1915_v46  ;;  %v834_v12 = vmul.f32 0.5, %v833_v36 }
 0x23c   : > { %v5291_v7 = vmin.f32 %v2538_v10, 16.0  ;;  %v2943_v2 = vadd.f32 1.0, %v3248_v57  ;;  %v2530_v47 = vand.u32 2147483647, %v5262_v28  ;;  %v2532_v38 = vand.u32 2147483648, %v5262_v28  ;;  %v3433_v1 = vld [vmem:[%s3519_s27 + $0xa0] sm:$0xff] }
 0x23d   : > { %v1906_v39 = vmul.f32 %v1905_v29, %v5233_v42  ;;  %v2990_v26 = vmul.f32 %v2958_v0, %v5182_v22  ;;  %v1917_v63 = vmul.f32 %v1916_v48, %v5233_v42  ;;  %v1938_v15 = vmul.f32 %v5280_v61, %v5280_v61 }
 0x23e   : > { %v3379_v54 = vpop.eup %3378  ;;  %v2540_v49 = vmul.f32 2.1237322e-06, %v5291_v7  ;;  %v2975_v5 = vmul.f32 %v2943_v2, %v5191_v9  ;;  %v5307_v20 = vadd.f32 %v5079_v43, %v1532_v25  ;;  %v835_v45 = vsub.f32 1.5, %v834_v12 }
 0x23f   : > { %v2522_v33 = vmul.f32 %v3379_v54, %v5262_v28  ;;  %v1907_v21 = vadd.f32 0.18741608, %v1906_v39  ;;  %v3022_v11 = vmul.f32 %v2990_v26, %v4235_v18  ;;  %v1918_v22 = vadd.f32 0.4994258, %v1917_v63  ;;  %v3434_v18 = vld [vmem:[%s3519_s27 + $0x28] sm:$0xff] }
 0x240   : > { %v2541_v19 = vadd.f32 0.00028619796, %v2540_v49  ;;  %v3007_v10 = vmul.f32 %v2975_v5, %v4280_v52  ;;  %v2551_v9 = vmul.f32 3.8918573e-05, %v5291_v7  ;;  %vm2527_vm3 = vweird.f32 %v3379_v54 }
 0x241   : > { %v2523_v50 = vsub.f32 1.0, %v2522_v33  ;;  %v1908_v62 = vmul.f32 %v1907_v21, %v5233_v42  ;;  %v3054_v46 = vadd.f32 %v3433_v1, %v3022_v11  ;;  %v1919_v25 = vmul.f32 %v1918_v22, %v5233_v42 }
 0x242   : > { %v2542_v36 = vmul.f32 %v2541_v19, %v5291_v7  ;;  %v3039_v57 = vadd.f32 %v3434_v18, %v3007_v10  ;;  %v2552_v0 = vadd.f32 0.001143296, %v2551_v9  ;;  %v2510_v52 = vmul.f32 %v2509_v53, %v5104_v37 }
 0x243   : > { %v2524_v29 = vmul.f32 %v3379_v54, %v2523_v50  ;;  %v1909_v35 = vadd.f32 1.1283791, %v1908_v62  ;;  %3086 = vst.msk [vmem:[%s4754_s25 + $0xa0] sm:$0xff] %vm311_vm0, %v3054_v46  ;;  %v5320_v48 = vadd.f32 1.0, %v1919_v25  ;;  %v5322_v14 = vmin.f32 %v1938_v15, 16.0  ;;  %v1486_v15 = vpop.f32.mrf.mxu1 }
 0x244   : > { %v2543_v12 = vadd.f32 0.0036580483, %v2542_v36  ;;  %3071 = vst.msk [vmem:[%s4754_s25 + $0x28] sm:$0xff] %vm311_vm0, %v3039_v57  ;;  %vm2526_vm9 = vweird.f32 %v5262_v28  ;;  %vm2531_vm10 = vcmp.eq.f32.partialorder %v2530_v47, 8.507059e+37  ;;  %v2553_v42 = vmul.f32 %v2552_v0, %v5291_v7  ;;  %v1274_v47 = vpop.f32.mrf.mxu0  ;;  %v5349_v50 = vld [vmem:[%s6122_s2] ss:$0 sm:$0xff] }
 0x245   : > { %v2525_v2 = vadd.f32 %v3379_v54, %v2524_v29  ;;  %vm2528_vm11 = vmor %vm2526_vm9, %vm2527_vm3  ;;  %v2533_v39 = vor.u32 1.1754944e-38, %v2532_v38  ;;  %3380 = vrcp.f32 %v5320_v48  ;;  %v5331_v37 = vmul.f32 %v5250_v41, %v835_v45 }
 0x246   : > { %v5334_v53 = vmul.f32 0.70710677, %v5307_v20  ;;  %v2544_v63 = vmul.f32 %v2543_v12, %v5291_v7  ;;  %v2554_v49 = vadd.f32 0.014752088, %v2553_v42  ;;  %v1940_v28 = vmul.f32 2.1237322e-06, %v5322_v14 }
 0x247   : > { %v2529_v26 = vsel %vm2528_vm11, %v3379_v54, %v2525_v2  ;;  %v5339_v33 = vmul.f32 %v1909_v35, %v5205_v32  ;;  %v1932_v38 = vand.u32 2147483648, %v5320_v48  ;;  %v1951_v21 = vmul.f32 3.8918573e-05, %v5322_v14 }
 0x248   : > { %v2534_v5 = vsel %vm2531_vm10, %v2533_v39, %v2529_v26  ;;  %v2545_v22 = vadd.f32 0.05243302, %v2544_v63  ;;  %v2555_v45 = vmul.f32 %v2554_v49, %v5291_v7  ;;  %v1941_v54 = vadd.f32 0.00028619796, %v1940_v28 }
 0x249   : > { %v2535_v11 = vmul.f32 %v2534_v5, %v2510_v52  ;;  %v1952_v19 = vadd.f32 0.001143296, %v1951_v21  ;;  %v2578_v10 = vmul.f32 %v5334_v53, %v5334_v53  ;;  %v1056_v32 = vmul.f32 %v5349_v50, %v5288_v27  ;;  %v5363_v27 = vld [vmem:[%s6123_s3] ss:$0 sm:$0xff] }
 0x24a   : > { %v1487_v62 = vadd.f32 %v1486_v15, %v1274_v47  ;;  %vm1926_vm4 = vweird.f32 %v5320_v48  ;;  %v2546_v1 = vmul.f32 %v2545_v22, %v5291_v7  ;;  %v2556_v46 = vadd.f32 0.112945676, %v2555_v45 }
 0x24b   : > { %v3264_v9 = vclamps-f32 %v2535_v11, 1.0  ;;  %v1942_v25 = vmul.f32 %v1941_v54, %v5322_v14  ;;  %v3381_v36 = vpop.eup %3380  ;;  %v1930_v18 = vand.u32 2147483647, %v5320_v48  ;;  %v1953_v57 = vmul.f32 %v1952_v19, %v5322_v14 }
 0x24c   : > { %v5358_v29 = vmin.f32 %v2578_v10, 16.0  ;;  %v5366_v35 = vadd.f32 %v5363_v27, %v1056_v32  ;;  %v1922_v52 = vmul.f32 %v3381_v36, %v5320_v48  ;;  %v1933_v12 = vor.u32 1.1754944e-38, %v1932_v38 }
 0x24d   : > { %v2959_v0 = vadd.f32 1.0, %v3264_v9  ;;  %vm838_vm14 = vweird.f32 %v5250_v41  ;;  %v5371_v2 = vadd.f32 %v5079_v43, %v1487_v62  ;;  %v2557_v42 = vmul.f32 %v2556_v46, %v5291_v7  ;;  %v3437_v62 = vld [vmem:[%s3519_s27 + $0xa8] sm:$0xff] }
 0x24e   : > { %v1943_v39 = vadd.f32 0.0036580483, %v1942_v25  ;;  %v1954_v26 = vadd.f32 0.014752088, %v1953_v57  ;;  %v2580_v63 = vmul.f32 2.1237322e-06, %v5358_v29  ;;  %3241 = vmatmul.msk.f32.gmra.mxu3 %vm1346_vm12, %v5366_v35  ;;  %vm1927_vm15 = vweird.f32 %v3381_v36 }
 0x24f   : > { %v2991_v49 = vmul.f32 %v2959_v0, %v5214_v3  ;;  %v1923_v28 = vsub.f32 1.0, %v1922_v52  ;;  %v2547_v47 = vadd.f32 0.18741608, %v2546_v1  ;;  %v2591_v15 = vmul.f32 3.8918573e-05, %v5358_v29  ;;  %vm1928_vm1 = vmor %vm1926_vm4, %vm1927_vm15 }
 0x250   : > { %v2558_v5 = vadd.f32 0.4994258, %v2557_v42  ;;  %v1944_v38 = vmul.f32 %v1943_v39, %v5322_v14  ;;  %v1955_v21 = vmul.f32 %v1954_v26, %v5322_v14  ;;  %v2581_v11 = vadd.f32 0.00028619796, %v2580_v63 }
 0x251   : > { %v3023_v22 = vmul.f32 %v2991_v49, %v4293_v59  ;;  %v1924_v45 = vmul.f32 %v3381_v36, %v1923_v28  ;;  %v2592_v54 = vadd.f32 0.001143296, %v2591_v15  ;;  %v2548_v46 = vmul.f32 %v2547_v47, %v5291_v7 }
 0x252   : > { %v2559_v19 = vmul.f32 %v2558_v5, %v5291_v7  ;;  %v1945_v3 = vadd.f32 0.05243302, %v1944_v38  ;;  %v1956_v10 = vadd.f32 0.112945676, %v1955_v21  ;;  %v2582_v32 = vmul.f32 %v2581_v11, %v5358_v29 }
 0x253   : > { %v3055_v9 = vadd.f32 %v3437_v62, %v3023_v22  ;;  %v1925_v1 = vadd.f32 %v3381_v36, %v1924_v45  ;;  %v2593_v25 = vmul.f32 %v2592_v54, %v5358_v29  ;;  %vm1931_vm2 = vcmp.eq.f32.partialorder %v1930_v18, 8.507059e+37 }
 0x254   : > { %v5389_v59 = vadd.f32 1.0, %v2559_v19  ;;  %v1946_v57 = vmul.f32 %v1945_v3, %v5322_v14  ;;  %v1957_v0 = vmul.f32 %v1956_v10, %v5322_v14  ;;  %v2583_v52 = vadd.f32 0.0036580483, %v2582_v32  ;;  %v1322_v10 = vpop.f32.mrf.mxu2  ;;  %v1534_v32 = vpop.f32.mrf.mxu3 }
 0x255   : > { %3087 = vst.msk [vmem:[%s4754_s25 + $0xa8] sm:$0xff] %vm311_vm0, %v3055_v9  ;;  %v1929_v42 = vsel %vm1928_vm1, %v3381_v36, %v1925_v1  ;;  %v2594_v39 = vadd.f32 0.014752088, %v2593_v25  ;;  %v5396_v26 = vmul.f32 0.70710677, %v5371_v2  ;;  %vm837_vm6 = vweird.f32 %v5219_v56 }
 0x256   : > { %v1934_v7 = vsel %vm1931_vm2, %v1933_v12, %v1929_v42  ;;  %v5400_v48 = vmul.f32 0.5, %v5242_v44  ;;  %3382 = vrcp.f32 %v5389_v59  ;;  %v2549_v49 = vadd.f32 1.1283791, %v2548_v46  ;;  %vm5406_vm7 = vmor %vm837_vm6, %vm838_vm14 }
 0x257   : > { %v1935_v63 = vmul.f32 %v1934_v7, %v5339_v33  ;;  %v1947_v28 = vadd.f32 0.18741608, %v1946_v57  ;;  %v1958_v47 = vadd.f32 0.4994258, %v1957_v0  ;;  %v5411_v18 = vmul.f32 0.5, %v5257_v31 }
 0x258   : > { %v2584_v56 = vmul.f32 %v2583_v52, %v5358_v29  ;;  %v2595_v44 = vmul.f32 %v2594_v39, %v5358_v29  ;;  %v1978_v12 = vmul.f32 %v5396_v26, %v5396_v26  ;;  %v840_v15 = vsel %vm5406_vm7, %v5250_v41, %v5331_v37 }
 0x259   : > { %v3249_v33 = vclamps-f32 %v1935_v63, 1.0  ;;  %v2570_v5 = vand.u32 2147483647, %v5389_v59  ;;  %v1959_v38 = vmul.f32 %v1958_v47, %v5322_v14  ;;  %v2572_v31 = vand.u32 2147483648, %v5389_v59 }
 0x25a   : > { %v2585_v21 = vadd.f32 0.05243302, %v2584_v56  ;;  %v2596_v11 = vadd.f32 0.112945676, %v2595_v44  ;;  %v5424_v22 = vmin.f32 %v1978_v12, 16.0  ;;  %v2550_v54 = vmul.f32 %v2549_v49, %v5248_v30  ;;  %v3438_v56 = vld [vmem:[%s3519_s27 + $0x30] sm:$0xff] }
 0x25b   : > { %v2944_v45 = vadd.f32 1.0, %v3249_v33  ;;  %v1948_v19 = vmul.f32 %v1947_v28, %v5322_v14  ;;  %v5428_v3 = vadd.f32 1.0, %v1959_v38  ;;  %vm2566_vm8 = vweird.f32 %v5389_v59 }
 0x25c   : > { %v3383_v62 = vpop.eup %3382  ;;  %v2586_v9 = vmul.f32 %v2585_v21, %v5358_v29  ;;  %v2597_v1 = vmul.f32 %v2596_v11, %v5358_v29  ;;  %v1980_v46 = vmul.f32 2.1237322e-06, %v5424_v22  ;;  %v1991_v25 = vmul.f32 3.8918573e-05, %v5424_v22 }
 0x25d   : > { %v2976_v57 = vmul.f32 %v2944_v45, %v5274_v23  ;;  %v2562_v30 = vmul.f32 %v3383_v62, %v5389_v59  ;;  %vm5437_vm3 = vcmp.eq.f32.partialorder %v2570_v5, 8.507059e+37  ;;  %v2573_v0 = vor.u32 1.1754944e-38, %v2572_v31 }
 0x25e   : > { %3384 = vrcp.f32 %v5428_v3  ;;  %v1006_v52 = vmul.f32 %v830_v13, %v4322_v16  ;;  %v1535_v23 = vadd.f32 %v1534_v32, %v1322_v10  ;;  %v2587_v7 = vadd.f32 0.18741608, %v2586_v9 }
 0x25f   : > { %v3008_v42 = vmul.f32 %v2976_v57, %v4349_v6  ;;  %v2563_v39 = vsub.f32 1.0, %v2562_v30  ;;  %v2598_v63 = vadd.f32 0.4994258, %v2597_v1  ;;  %vm2567_vm9 = vweird.f32 %v3383_v62 }
 0x260   : > { %v1949_v49 = vadd.f32 1.1283791, %v1948_v19  ;;  %v1981_v28 = vadd.f32 0.00028619796, %v1980_v46  ;;  %v1992_v47 = vadd.f32 0.001143296, %v1991_v25  ;;  %v2588_v40 = vmul.f32 %v2587_v7, %v5358_v29  ;;  %vm2568_vm13 = vmor %vm2566_vm8, %vm2567_vm9 }
 0x261   : > { %v3040_v44 = vadd.f32 %v3438_v56, %v3008_v42  ;;  %v2564_v12 = vmul.f32 %v3383_v62, %v2563_v39  ;;  %v2599_v33 = vmul.f32 %v2598_v63, %v5358_v29  ;;  %v1970_v16 = vand.u32 2147483647, %v5428_v3  ;;  %v6224_v19 = vld [vmem:[#allocation3_spill] sm:$0xff] }
 0x262   : > { %v1982_v55 = vmul.f32 %v1981_v28, %v5424_v22  ;;  %v1993_v6 = vmul.f32 %v1992_v47, %v5424_v22  ;;  %v1041_v4 = vmul.f32 %v5349_v50, %v1006_v52  ;;  %v1972_v5 = vand.u32 2147483648, %v5428_v3 }
 0x263   : > { %3072 = vst.msk [vmem:[%s4754_s25 + $0x30] sm:$0xff] %vm311_vm0, %v3040_v44  ;;  %v2565_v13 = vadd.f32 %v3383_v62, %v2564_v12  ;;  %v5459_v38 = vadd.f32 1.0, %v2599_v33  ;;  %v5462_v31 = vadd.f32 %v5079_v43, %v1535_v23  ;;  %v1022_v10 = vmul.f32 %v990_v17, %v6224_v19  ;;  %v6227_v33 = vld [vmem:[#allocation5_spill] sm:$0xff] }
 0x264   : > { %v3385_v21 = vpop.eup %3384  ;;  %v1983_v29 = vadd.f32 0.0036580483, %v1982_v55  ;;  %v1994_v11 = vadd.f32 0.014752088, %v1993_v6  ;;  %v5468_v45 = vadd.f32 %v5363_v27, %v1041_v4  ;;  %v1950_v9 = vmul.f32 %v1949_v49, %v5280_v61  ;;  %v1277_v61 = vpop.f32.mrf.mxu0 }
 0x265   : > { %v2569_v32 = vsel %vm2568_vm13, %v3383_v62, %v2565_v13  ;;  %v1962_v1 = vmul.f32 %v3385_v21, %v5428_v3  ;;  %v2589_v46 = vadd.f32 1.1283791, %v2588_v40  ;;  %vm1966_vm10 = vweird.f32 %v5428_v3  ;;  %v1489_v62 = vpop.f32.mrf.mxu1 }
 0x266   : > { %v2574_v59 = vsel %vm5437_vm3, %v2573_v0, %v2569_v32  ;;  %vm5481_vm11 = vcmp.eq.f32.partialorder %v1970_v16, 8.507059e+37  ;;  %3386 = vrcp.f32 %v5459_v38  ;;  %3226 = vmatmul.msk.f32.gmra.mxu1 %vm1346_vm12, %v5468_v45  ;;  %v1973_v24 = vor.u32 1.1754944e-38, %v1972_v5  ;;  %v3439_v32 = vld [vmem:[%s3519_s27 + $0xb0] sm:$0xff] }
 0x267   : > { %v2575_v58 = vmul.f32 %v2574_v59, %v2550_v54  ;;  %v1963_v34 = vsub.f32 1.0, %v1962_v1  ;;  %v1984_v17 = vmul.f32 %v1983_v29, %v5424_v22  ;;  %vm1967_vm5 = vweird.f32 %v3385_v21 }
 0x268   : > { %v1995_v57 = vmul.f32 %v1994_v11, %v5424_v22  ;;  %v5491_v30 = vmul.f32 0.70710677, %v5462_v31  ;;  %v1057_v14 = vmul.f32 %v5349_v50, %v1022_v10  ;;  %v5495_v23 = vmul.f32 %v2589_v46, %v5334_v53  ;;  %vm1968_vm4 = vmor %vm1966_vm10, %vm1967_vm5  ;;  %v6228_v11 = vld [vmem:[#allocation4_spill] sm:$0xff] }
 0x269   : > { %v3265_v0 = vclamps-f32 %v2575_v58, 1.0  ;;  %v1964_v52 = vmul.f32 %v3385_v21, %v1963_v34  ;;  %v1985_v54 = vadd.f32 0.05243302, %v1984_v17  ;;  %v1490_v63 = vadd.f32 %v1489_v62, %v1277_v61  ;;  %v1537_v17 = vpop.f32.mrf.mxu3 }
 0x26a   : > { %v1996_v42 = vadd.f32 0.112945676, %v1995_v57  ;;  %v2618_v39 = vmul.f32 %v5491_v30, %v5491_v30  ;;  %v5500_v7 = vadd.f32 %v5363_v27, %v1057_v14  ;;  %v2610_v47 = vand.u32 2147483647, %v5459_v38 }
 0x26b   : > { %v2960_v49 = vadd.f32 1.0, %v3265_v0  ;;  %v1965_v28 = vadd.f32 %v3385_v21, %v1964_v52  ;;  %v1986_v56 = vmul.f32 %v1985_v54, %v5424_v22  ;;  %v2612_v53 = vand.u32 2147483648, %v5459_v38 }
 0x26c   : > { %v3387_v44 = vpop.eup %3386  ;;  %v1997_v12 = vmul.f32 %v1996_v42, %v5424_v22  ;;  %v5509_v40 = vmin.f32 %v2618_v39, 16.0  ;;  %3242 = vmatmul.msk.f32.gmra.mxu3 %vm1346_vm12, %v5500_v7  ;;  %v1007_v16 = vmul.f32 %v840_v15, %v6227_v33  ;;  %v5522_v4 = vadd.f32 %v5079_v43, %v1490_v63 }
 0x26d   : > { %v2992_v55 = vmul.f32 %v2960_v49, %v5400_v48  ;;  %v1969_v3 = vsel %vm1968_vm4, %v3385_v21, %v1965_v28  ;;  %v2602_v6 = vmul.f32 %v3387_v44, %v5459_v38  ;;  %v1987_v5 = vadd.f32 0.18741608, %v1986_v56  ;;  %v6229_v28 = vld [vmem:[#allocation6_spill] sm:$0xff]  ;;  %v1492_v33 = vpop.f32.mrf.mxu1 }
 0x26e   : > { %v1974_v13 = vsel %vm5481_vm11, %v1973_v24, %v1969_v3  ;;  %v1998_v29 = vadd.f32 0.4994258, %v1997_v12  ;;  %v2620_v36 = vmul.f32 2.1237322e-06, %v5509_v40  ;;  %v2631_v48 = vmul.f32 3.8918573e-05, %v5509_v40  ;;  %v1325_v24 = vpop.f32.mrf.mxu2 }
 0x26f   : > { %v3024_v19 = vmul.f32 %v2992_v55, %v6228_v11  ;;  %v1975_v41 = vmul.f32 %v1974_v13, %v1950_v9  ;;  %v2603_v37 = vsub.f32 1.0, %v2602_v6  ;;  %vm2607_vm14 = vweird.f32 %v3387_v44  ;;  %v3440_v3 = vld [vmem:[%s3519_s27 + $0x38] sm:$0xff] }
 0x270   : > { %v1988_v15 = vmul.f32 %v1987_v5, %v5424_v22  ;;  %v1999_v21 = vmul.f32 %v1998_v29, %v5424_v22  ;;  %v2621_v10 = vadd.f32 0.00028619796, %v2620_v36  ;;  %v2632_v25 = vadd.f32 0.001143296, %v2631_v48 }
 0x271   : > { %v3056_v1 = vadd.f32 %v3439_v32, %v3024_v19  ;;  %v3250_v46 = vclamps-f32 %v1975_v41, 1.0  ;;  %v2604_v59 = vmul.f32 %v3387_v44, %v2603_v37  ;;  %vm2606_vm15 = vweird.f32 %v5459_v38 }
 0x272   : > { %v5533_v58 = vadd.f32 1.0, %v1999_v21  ;;  %v2622_v9 = vmul.f32 %v2621_v10, %v5509_v40  ;;  %v5537_v34 = vmul.f32 0.70710677, %v5522_v4  ;;  %vm2611_vm1 = vcmp.eq.f32.partialorder %v2610_v47, 8.507059e+37  ;;  %vm2608_vm2 = vmor %vm2606_vm15, %vm2607_vm14 }
 0x273   : > { %3088 = vst.msk [vmem:[%s4754_s25 + $0xb0] sm:$0xff] %vm311_vm0, %v3056_v1  ;;  %v2945_v22 = vadd.f32 1.0, %v3250_v46  ;;  %v2605_v61 = vadd.f32 %v3387_v44, %v2604_v59  ;;  %v2633_v62 = vmul.f32 %v2632_v25, %v5509_v40  ;;  %v2613_v57 = vor.u32 1.1754944e-38, %v2612_v53 }
 0x274   : > { %v1989_v38 = vadd.f32 1.1283791, %v1988_v15  ;;  %3388 = vrcp.f32 %v5533_v58  ;;  %v1042_v14 = vmul.f32 %v5349_v50, %v1007_v16  ;;  %v2623_v54 = vadd.f32 0.0036580483, %v2622_v9  ;;  %v1280_v50 = vpop.f32.mrf.mxu0 }
 0x275   : > { %v2977_v0 = vmul.f32 %v2945_v22, %v5411_v18  ;;  %v2609_v52 = vsel %vm2608_vm2, %v3387_v44, %v2605_v61  ;;  %v1538_v42 = vadd.f32 %v1537_v17, %v1325_v24  ;;  %v2634_v63 = vadd.f32 0.014752088, %v2633_v62  ;;  %v6230_v17 = vld [vmem:[#allocation7_spill] sm:$0xff] }
 0x276   : > { %v2614_v39 = vsel %vm2611_vm1, %v2613_v57, %v2609_v52  ;;  %v2018_v49 = vmul.f32 %v5537_v34, %v5537_v34  ;;  %v1617_v56 = vmul.f32 0.5, %v5307_v20  ;;  %v2624_v12 = vmul.f32 %v2623_v54, %v5509_v40  ;;  %v3441_v52 = vld [vmem:[%s3519_s27 + $0xb8] sm:$0xff] }
 0x277   : > { %v3009_v47 = vmul.f32 %v2977_v0, %v6229_v28  ;;  %v2615_v53 = vmul.f32 %v2614_v39, %v5495_v23  ;;  %v1990_v18 = vmul.f32 %v1989_v38, %v5396_v26  ;;  %v2635_v44 = vmul.f32 %v2634_v63, %v5509_v40 }
 0x278   : > { %v5554_v16 = vmin.f32 %v2018_v49, 16.0  ;;  %v5557_v55 = vadd.f32 %v5363_v27, %v1042_v14  ;;  %v2625_v20 = vadd.f32 0.05243302, %v2624_v12  ;;  %v5561_v23 = vadd.f32 %v5079_v43, %v1538_v42 }
 0x279   : > { %v3041_v6 = vadd.f32 %v3440_v3, %v3009_v47  ;;  %v3266_v13 = vclamps-f32 %v2615_v53, 1.0  ;;  %v2636_v29 = vadd.f32 0.112945676, %v2635_v44  ;;  %v1493_v11 = vadd.f32 %v1492_v33, %v1280_v50 }
 0x27a   : > { %v3389_v5 = vpop.eup %3388  ;;  %v2020_v36 = vmul.f32 2.1237322e-06, %v5554_v16  ;;  %v2031_v26 = vmul.f32 3.8918573e-05, %v5554_v16  ;;  %3227 = vmatmul.msk.f32.gmra.mxu1 %vm1346_vm12, %v5557_v55  ;;  %vm2006_vm6 = vweird.f32 %v5533_v58  ;;  %v2010_v41 = vand.u32 2147483647, %v5533_v58 }
 0x27b   : > { %3073 = vst.msk [vmem:[%s4754_s25 + $0x38] sm:$0xff] %vm311_vm0, %v3041_v6  ;;  %v2961_v27 = vadd.f32 1.0, %v3266_v13  ;;  %v2002_v19 = vmul.f32 %v3389_v5, %v5533_v58  ;;  %v2012_v37 = vand.u32 2147483648, %v5533_v58  ;;  %v2637_v48 = vmul.f32 %v2636_v29, %v5509_v40 }
 0x27c   : > { %v2021_v15 = vadd.f32 0.00028619796, %v2020_v36  ;;  %v2032_v21 = vadd.f32 0.001143296, %v2031_v26  ;;  %v2626_v1 = vmul.f32 %v2625_v20, %v5509_v40  ;;  %v5576_v46 = vmul.f32 0.70710677, %v5561_v23  ;;  %v1328_v36 = vpop.f32.mrf.mxu2  ;;  %v1540_v26 = vpop.f32.mrf.mxu3 }
 0x27d   : > { %v2993_v10 = vmul.f32 %v2961_v27, %v1617_v56  ;;  %v2003_v32 = vsub.f32 1.0, %v2002_v19  ;;  %v2638_v59 = vadd.f32 0.4994258, %v2637_v48  ;;  %v5581_v24 = vadd.f32 %v5079_v43, %v1493_v11 }
 0x27e   : > { %v2022_v25 = vmul.f32 %v2021_v15, %v5554_v16  ;;  %v2033_v9 = vmul.f32 %v2032_v21, %v5554_v16  ;;  %vm2007_vm12 = vweird.f32 %v3389_v5  ;;  %v2658_v62 = vmul.f32 %v5576_v46, %v5576_v46 }
 0x27f   : > { %v3025_v22 = vmul.f32 %v2993_v10, %v6230_v17  ;;  %v2004_v61 = vmul.f32 %v3389_v5, %v2003_v32  ;;  %v2013_v57 = vor.u32 1.1754944e-38, %v2012_v37  ;;  %v2639_v38 = vmul.f32 %v2638_v59, %v5509_v40  ;;  %vm2008_vm7 = vmor %vm2006_vm6, %vm2007_vm12 }
 0x280   : > { %v2023_v14 = vadd.f32 0.0036580483, %v2022_v25  ;;  %v2034_v0 = vadd.f32 0.014752088, %v2033_v9  ;;  %v2627_v39 = vadd.f32 0.18741608, %v2626_v1  ;;  %v1541_v32 = vadd.f32 %v1540_v26, %v1328_v36 }
 0x281   : > { %v3057_v54 = vadd.f32 %v3441_v52, %v3025_v22  ;;  %v2005_v42 = vadd.f32 %v3389_v5, %v2004_v61  ;;  %v5588_v63 = vmin.f32 %v2658_v62, 16.0  ;;  %v5592_v43 = vadd.f32 1.0, %v2639_v38  ;;  %v6231_v62 = vld [vmem:[#allocation9_spill] sm:$0xff]  ;;  %v1283_v52 = vpop.f32.mrf.mxu0 }
 0x282   : > { %v2024_v49 = vmul.f32 %v2023_v14, %v5554_v16  ;;  %v2035_v28 = vmul.f32 %v2034_v0, %v5554_v16  ;;  %v5597_v47 = vmul.f32 0.70710677, %v5581_v24  ;;  %vm2011_vm8 = vcmp.eq.f32.partialorder %v2010_v41, 8.507059e+37 }
 0x283   : > { %3089 = vst.msk [vmem:[%s4754_s25 + $0xb8] sm:$0xff] %vm311_vm0, %v3057_v54  ;;  %v2009_v56 = vsel %vm2008_vm7, %v3389_v5, %v2005_v42  ;;  %v2660_v53 = vmul.f32 2.1237322e-06, %v5588_v63  ;;  %v2671_v12 = vmul.f32 3.8918573e-05, %v5588_v63  ;;  %3390 = vrcp.f32 %v5592_v43  ;;  %v1495_v54 = vpop.f32.mrf.mxu1 }
 0x284   : > { %v2014_v50 = vsel %vm2011_vm8, %v2013_v57, %v2009_v56  ;;  %v2025_v33 = vadd.f32 0.05243302, %v2024_v49  ;;  %v2036_v44 = vadd.f32 0.112945676, %v2035_v28  ;;  %v2058_v13 = vmul.f32 %v5597_v47, %v5597_v47  ;;  %v3442_v28 = vld [vmem:[%s3519_s27 + $0x40] sm:$0xff] }
 0x285   : > { %v2015_v58 = vmul.f32 %v2014_v50, %v1990_v18  ;;  %v2661_v3 = vadd.f32 0.00028619796, %v2660_v53  ;;  %v2672_v6 = vadd.f32 0.001143296, %v2671_v12  ;;  %v2628_v29 = vmul.f32 %v2627_v39, %v5509_v40 }
 0x286   : > { %v2037_v5 = vmul.f32 %v2036_v44, %v5554_v16  ;;  %v2026_v11 = vmul.f32 %v2025_v33, %v5554_v16  ;;  %v5611_v19 = vmin.f32 %v2058_v13, 16.0  ;;  %v1602_v41 = vmul.f32 0.5, %v5371_v2 }
 0x287   : > { %v3251_v20 = vclamps-f32 %v2015_v58, 1.0  ;;  %v2662_v27 = vmul.f32 %v2661_v3, %v5588_v63  ;;  %v2673_v18 = vmul.f32 %v2672_v6, %v5588_v63  ;;  %v2629_v59 = vadd.f32 1.1283791, %v2628_v29  ;;  %v5631_v58 = vld [vmem:[%s6125_s5] ss:$0 sm:$0xff] }
 0x288   : > { %v2038_v48 = vadd.f32 0.4994258, %v2037_v5  ;;  %v2060_v40 = vmul.f32 2.1237322e-06, %v5611_v19  ;;  %v2650_v9 = vand.u32 2147483647, %v5592_v43  ;;  %vm2646_vm9 = vweird.f32 %v5592_v43 }
 0x289   : > { %v2946_v37 = vadd.f32 1.0, %v3251_v20  ;;  %v3391_v15 = vpop.eup %3390  ;;  %v2663_v21 = vadd.f32 0.0036580483, %v2662_v27  ;;  %v2674_v10 = vadd.f32 0.014752088, %v2673_v18  ;;  %v2652_v42 = vand.u32 2147483648, %v5592_v43 }
 0x28a   : > { %v2642_v25 = vmul.f32 %v3391_v15, %v5592_v43  ;;  %v2027_v17 = vadd.f32 0.18741608, %v2026_v11  ;;  %v2039_v22 = vmul.f32 %v2038_v48, %v5554_v16  ;;  %v2061_v14 = vadd.f32 0.00028619796, %v2060_v40 }
 0x28b   : > { %v2978_v1 = vmul.f32 %v2946_v37, %v1602_v41  ;;  %v2664_v2 = vmul.f32 %v2663_v21, %v5588_v63  ;;  %v2675_v61 = vmul.f32 %v2674_v10, %v5588_v63  ;;  %v2071_v0 = vmul.f32 3.8918573e-05, %v5611_v19 }
 0x28c   : > { %v2643_v38 = vsub.f32 1.0, %v2642_v25  ;;  %vm2647_vm3 = vweird.f32 %v3391_v15  ;;  %v5623_v39 = vadd.f32 1.0, %v2039_v22  ;;  %v5634_v33 = vadd.f32 %v5631_v58, %v1541_v32 }
 0x28d   : > { %v3010_v57 = vmul.f32 %v2978_v1, %v6231_v62  ;;  %v2676_v49 = vadd.f32 0.112945676, %v2675_v61  ;;  %v2665_v12 = vadd.f32 0.05243302, %v2664_v2  ;;  %v2072_v50 = vadd.f32 0.001143296, %v2071_v0  ;;  %vm2648_vm13 = vmor %vm2646_vm9, %vm2647_vm3 }
 0x28e   : > { %v2644_v53 = vmul.f32 %v3391_v15, %v2643_v38  ;;  %3392 = vrcp.f32 %v5623_v39  ;;  %v1496_v44 = vadd.f32 %v1495_v54, %v1283_v52  ;;  %v2028_v6 = vmul.f32 %v2027_v17, %v5554_v16 }
 0x28f   : > { %v3042_v56 = vadd.f32 %v3442_v28, %v3010_v57  ;;  %v2677_v13 = vmul.f32 %v2676_v49, %v5588_v63  ;;  %v2062_v43 = vmul.f32 %v2061_v14, %v5611_v19  ;;  %v2630_v20 = vmul.f32 %v2629_v59, %v5491_v30 }
 0x290   : > { %v2645_v3 = vadd.f32 %v3391_v15, %v2644_v53  ;;  %v2653_v29 = vor.u32 1.1754944e-38, %v2652_v42  ;;  %v2073_v5 = vmul.f32 %v2072_v50, %v5611_v19  ;;  %vm2651_vm10 = vcmp.eq.f32.partialorder %v2650_v9, 8.507059e+37 }
 0x291   : > { %3074 = vst.msk [vmem:[%s4754_s25 + $0x40] sm:$0xff] %vm311_vm0, %v3042_v56  ;;  %v2666_v26 = vmul.f32 %v2665_v12, %v5588_v63  ;;  %v2678_v11 = vadd.f32 0.4994258, %v2677_v13  ;;  %v5646_v16 = vmul.f32 0.70710677, %v5634_v33  ;;  %v5649_v41 = vadd.f32 %v5631_v58, %v1496_v44  ;;  %v6232_v56 = vld [vmem:[#allocation8_spill] sm:$0xff] }
 0x292   : > { %v2649_v36 = vsel %vm2648_vm13, %v3391_v15, %v2645_v3  ;;  %v2074_v18 = vadd.f32 0.014752088, %v2073_v5  ;;  %v2029_v30 = vadd.f32 1.1283791, %v2028_v6  ;;  %v2063_v21 = vadd.f32 0.0036580483, %v2062_v43 }
 0x293   : > { %v2654_v27 = vsel %vm2651_vm10, %v2653_v29, %v2649_v36  ;;  %v2679_v48 = vmul.f32 %v2678_v11, %v5588_v63  ;;  %v2698_v40 = vmul.f32 %v5646_v16, %v5646_v16  ;;  %v5656_v32 = vmul.f32 0.70710677, %v5649_v41 }
 0x294   : > { %v2655_v37 = vmul.f32 %v2654_v27, %v2630_v20  ;;  %v3393_v10 = vpop.eup %3392  ;;  %v2075_v15 = vmul.f32 %v2074_v18, %v5611_v19  ;;  %v1618_v1 = vmul.f32 0.5, %v5462_v31  ;;  %v2667_v9 = vadd.f32 0.18741608, %v2666_v26  ;;  %v3444_v20 = vld [vmem:[%s3519_s27 + $0xc0] sm:$0xff] }
 0x295   : > { %v2042_v25 = vmul.f32 %v3393_v10, %v5623_v39  ;;  %v5660_v17 = vadd.f32 1.0, %v2679_v48  ;;  %v5662_v2 = vmin.f32 %v2698_v40, 16.0  ;;  %v2030_v62 = vmul.f32 %v2029_v30, %v5537_v34 }
 0x296   : > { %v3267_v59 = vclamps-f32 %v2655_v37, 1.0  ;;  %v2076_v22 = vadd.f32 0.112945676, %v2075_v15  ;;  %v2064_v38 = vmul.f32 %v2063_v21, %v5611_v19  ;;  %v2050_v14 = vand.u32 2147483647, %v5623_v39 }
 0x297   : > { %v2043_v57 = vsub.f32 1.0, %v2042_v25  ;;  %v2052_v0 = vand.u32 2147483648, %v5623_v39  ;;  %3394 = vrcp.f32 %v5660_v17  ;;  %v2098_v31 = vmul.f32 %v5656_v32, %v5656_v32 }
 0x298   : > { %v2962_v61 = vadd.f32 1.0, %v3267_v59  ;;  %vm2047_vm11 = vweird.f32 %v3393_v10  ;;  %v2077_v42 = vmul.f32 %v2076_v22, %v5611_v19  ;;  %vm2046_vm5 = vweird.f32 %v5623_v39 }
 0x299   : > { %v2044_v54 = vmul.f32 %v3393_v10, %v2043_v57  ;;  %v2668_v34 = vmul.f32 %v2667_v9, %v5588_v63  ;;  %v2700_v49 = vmul.f32 2.1237322e-06, %v5662_v2  ;;  %v2711_v28 = vmul.f32 3.8918573e-05, %v5662_v2  ;;  %vm2048_vm4 = vmor %vm2046_vm5, %vm2047_vm11 }
 0x29a   : > { %v2994_v52 = vmul.f32 %v2962_v61, %v1618_v1  ;;  %v2065_v50 = vadd.f32 0.05243302, %v2064_v38  ;;  %v2078_v44 = vadd.f32 0.4994258, %v2077_v42  ;;  %v2053_v3 = vor.u32 1.1754944e-38, %v2052_v0 }
 0x29b   : > { %v2045_v12 = vadd.f32 %v3393_v10, %v2044_v54  ;;  %v2701_v6 = vadd.f32 0.00028619796, %v2700_v49  ;;  %v2712_v13 = vadd.f32 0.001143296, %v2711_v28  ;;  %v5677_v43 = vmin.f32 %v2098_v31, 16.0 }
 0x29c   : > { %v3026_v53 = vmul.f32 %v2994_v52, %v6232_v56  ;;  %vm2051_vm14 = vcmp.eq.f32.partialorder %v2050_v14, 8.507059e+37  ;;  %v2079_v63 = vmul.f32 %v2078_v44, %v5611_v19  ;;  %v1603_v18 = vmul.f32 0.5, %v5522_v4 }
 0x29d   : > { %v2049_v29 = vsel %vm2048_vm4, %v3393_v10, %v2045_v12  ;;  %v3395_v5 = vpop.eup %3394  ;;  %v2702_v26 = vmul.f32 %v2701_v6, %v5662_v2  ;;  %v2713_v11 = vmul.f32 %v2712_v13, %v5662_v2  ;;  %v2100_v27 = vmul.f32 2.1237322e-06, %v5677_v43  ;;  %v6233_v12 = vld [vmem:[#allocation11_spill] sm:$0xff] }
 0x29e   : > { %v3058_v39 = vadd.f32 %v3444_v20, %v3026_v53  ;;  %v2054_v36 = vsel %vm2051_vm14, %v2053_v3, %v2049_v29  ;;  %v2669_v30 = vadd.f32 1.1283791, %v2668_v34  ;;  %v2682_v48 = vmul.f32 %v3395_v5, %v5660_v17 }
 0x29f   : > { %v2055_v37 = vmul.f32 %v2054_v36, %v2030_v62  ;;  %v2066_v21 = vmul.f32 %v2065_v50, %v5611_v19  ;;  %v5689_v10 = vadd.f32 1.0, %v2079_v63  ;;  %v2703_v15 = vadd.f32 0.0036580483, %v2702_v26 }
 0x2a0   : > { %3090 = vst.msk [vmem:[%s4754_s25 + $0xc0] sm:$0xff] %vm311_vm0, %v3058_v39  ;;  %v2714_v40 = vadd.f32 0.014752088, %v2713_v11  ;;  %v2683_v59 = vsub.f32 1.0, %v2682_v48  ;;  %v2101_v25 = vadd.f32 0.00028619796, %v2100_v27  ;;  %vm2687_vm15 = vweird.f32 %v3395_v5 }
 0x2a1   : > { %v3252_v1 = vclamps-f32 %v2055_v37, 1.0  ;;  %v2111_v9 = vmul.f32 3.8918573e-05, %v5677_v43  ;;  %v2690_v22 = vand.u32 2147483647, %v5660_v17  ;;  %v2692_v4 = vand.u32 2147483648, %v5660_v17 }
 0x2a2   : > { %3396 = vrcp.f32 %v5689_v10  ;;  %v2684_v62 = vmul.f32 %v3395_v5, %v2683_v59  ;;  %v2704_v57 = vmul.f32 %v2703_v15, %v5662_v2  ;;  %v2715_v38 = vmul.f32 %v2714_v40, %v5662_v2  ;;  %v3445_v39 = vld [vmem:[%s3519_s27 + $0x48] sm:$0xff] }
 0x2a3   : > { %v2947_v61 = vadd.f32 1.0, %v3252_v1  ;;  %v2670_v14 = vmul.f32 %v2669_v30, %v5576_v46  ;;  %v2067_v0 = vadd.f32 0.18741608, %v2066_v21  ;;  %v2102_v31 = vmul.f32 %v2101_v25, %v5677_v43 }
 0x2a4   : > { %v2112_v52 = vadd.f32 0.001143296, %v2111_v9  ;;  %v2685_v42 = vadd.f32 %v3395_v5, %v2684_v62  ;;  %vm2686_vm1 = vweird.f32 %v5660_v17  ;;  %v2716_v34 = vadd.f32 0.112945676, %v2715_v38 }
 0x2a5   : > { %v2979_v54 = vmul.f32 %v2947_v61, %v1603_v18  ;;  %vm2688_vm2 = vmor %vm2686_vm1, %vm2687_vm15  ;;  %v2693_v49 = vor.u32 1.1754944e-38, %v2692_v4  ;;  %v2705_v28 = vadd.f32 0.05243302, %v2704_v57  ;;  %v2103_v56 = vadd.f32 0.0036580483, %v2102_v31  ;;  %v6234_v57 = vld [vmem:[#allocation10_spill] sm:$0xff] }
 0x2a6   : > { %v2113_v53 = vmul.f32 %v2112_v52, %v5677_v43  ;;  %v2689_v46 = vsel %vm2688_vm2, %v3395_v5, %v2685_v42  ;;  %vm2691_vm6 = vcmp.eq.f32.partialorder %v2690_v22, 8.507059e+37  ;;  %v2717_v44 = vmul.f32 %v2716_v34, %v5662_v2  ;;  %v1331_v34 = vpop.f32.mrf.mxu2 }
 0x2a7   : > { %v3011_v50 = vmul.f32 %v2979_v54, %v6233_v12  ;;  %v2694_v6 = vsel %vm2691_vm6, %v2693_v49, %v2689_v46  ;;  %v2068_v17 = vmul.f32 %v2067_v0, %v5611_v19  ;;  %v2104_v13 = vmul.f32 %v2103_v56, %v5677_v43  ;;  %v1543_v49 = vpop.f32.mrf.mxu3  ;;  %v1498_v46 = vpop.f32.mrf.mxu1 }
 0x2a8   : > { %v3397_v3 = vpop.eup %3396  ;;  %v2114_v20 = vadd.f32 0.014752088, %v2113_v53  ;;  %v2695_v63 = vmul.f32 %v2694_v6, %v2670_v14  ;;  %v2706_v26 = vmul.f32 %v2705_v28, %v5662_v2  ;;  %v2718_v11 = vadd.f32 0.4994258, %v2717_v44  ;;  %v3446_v28 = vld [vmem:[%s3519_s27 + $0xc8] sm:$0xff] }
 0x2a9   : > { %v3043_v29 = vadd.f32 %v3445_v39, %v3011_v50  ;;  %v2082_v36 = vmul.f32 %v3397_v3, %v5689_v10  ;;  %v2105_v5 = vadd.f32 0.05243302, %v2104_v13  ;;  %v1619_v18 = vmul.f32 0.5, %v5561_v23  ;;  %v1286_v50 = vpop.f32.mrf.mxu0 }
 0x2aa   : > { %v2115_v27 = vmul.f32 %v2114_v20, %v5677_v43  ;;  %v3268_v37 = vclamps-f32 %v2695_v63, 1.0  ;;  %v2069_v30 = vadd.f32 1.1283791, %v2068_v17  ;;  %v2092_v48 = vand.u32 2147483648, %v5689_v10 }
 0x2ab   : > { %3075 = vst.msk [vmem:[%s4754_s25 + $0x48] sm:$0xff] %vm311_vm0, %v3043_v29  ;;  %v2083_v19 = vsub.f32 1.0, %v2082_v36  ;;  %v2719_v21 = vmul.f32 %v2718_v11, %v5662_v2  ;;  %vm2087_vm12 = vweird.f32 %v3397_v3  ;;  %v2090_v59 = vand.u32 2147483647, %v5689_v10 }
 0x2ac   : > { %v2116_v15 = vadd.f32 0.112945676, %v2115_v27  ;;  %v2963_v40 = vadd.f32 1.0, %v3268_v37  ;;  %v2707_v25 = vadd.f32 0.18741608, %v2706_v26  ;;  %v2106_v22 = vmul.f32 %v2105_v5, %v5677_v43 }
 0x2ad   : > { %v2084_v1 = vmul.f32 %v3397_v3, %v2083_v19  ;;  %v5716_v9 = vadd.f32 1.0, %v2719_v21  ;;  %vm2086_vm7 = vweird.f32 %v5689_v10  ;;  %v2093_v62 = vor.u32 1.1754944e-38, %v2092_v48  ;;  %v6235_v48 = vld [vmem:[#allocation12_spill] sm:$0xff] }
 0x2ae   : > { %v2117_v23 = vmul.f32 %v2116_v15, %v5677_v43  ;;  %v2995_v4 = vmul.f32 %v2963_v40, %v1619_v18  ;;  %vm2088_vm8 = vmor %vm2086_vm7, %vm2087_vm12  ;;  %v2070_v14 = vmul.f32 %v2069_v30, %v5597_v47  ;;  %vm2091_vm3 = vcmp.eq.f32.partialorder %v2090_v59, 8.507059e+37  ;;  %v1334_v19 = vpop.f32.mrf.mxu2 }
 0x2af   : > { %v2085_v61 = vadd.f32 %v3397_v3, %v2084_v1  ;;  %3398 = vrcp.f32 %v5716_v9  ;;  %v2708_v52 = vmul.f32 %v2707_v25, %v5662_v2  ;;  %v2107_v54 = vadd.f32 0.18741608, %v2106_v22  ;;  %v1546_v30 = vpop.f32.mrf.mxu3  ;;  %v3447_v25 = vld [vmem:[%s3519_s27 + $0x50] sm:$0xff] }
 0x2b0   : > { %v3027_v38 = vmul.f32 %v2995_v4, %v6234_v57  ;;  %v2118_v42 = vadd.f32 0.4994258, %v2117_v23  ;;  %v1544_v12 = vadd.f32 %v1543_v49, %v1331_v34  ;;  %v1499_v44 = vadd.f32 %v1498_v46, %v1286_v50 }
 0x2b1   : > { %v2089_v0 = vsel %vm2088_vm8, %v3397_v3, %v2085_v61  ;;  %v2709_v6 = vadd.f32 1.1283791, %v2708_v52  ;;  %v2108_v2 = vmul.f32 %v2107_v54, %v5677_v43  ;;  %v1604_v20 = vmul.f32 0.5, %v5581_v24 }
 0x2b2   : > { %v2094_v31 = vsel %vm2091_vm3, %v2093_v62, %v2089_v0  ;;  %v3059_v10 = vadd.f32 %v3446_v28, %v3027_v38  ;;  %v2119_v53 = vmul.f32 %v2118_v42, %v5677_v43  ;;  %v5733_v13 = vadd.f32 %v5631_v58, %v1544_v12 }
 0x2b3   : > { %v2095_v56 = vmul.f32 %v2094_v31, %v2070_v14  ;;  %v5738_v63 = vadd.f32 %v5631_v58, %v1499_v44  ;;  %v2730_v36 = vand.u32 2147483647, %v5716_v9  ;;  %v2732_v26 = vand.u32 2147483648, %v5716_v9 }
 0x2b4   : > { %3091 = vst.msk [vmem:[%s4754_s25 + $0xc8] sm:$0xff] %vm311_vm0, %v3059_v10  ;;  %v5730_v17 = vadd.f32 1.0, %v2119_v53  ;;  %v5744_v11 = vmul.f32 0.5, %v5634_v33  ;;  %v5747_v24 = vmul.f32 0.70710677, %v5733_v13  ;;  %v2710_v27 = vmul.f32 %v2709_v6, %v5646_v16 }
 0x2b5   : > { %v3253_v47 = vclamps-f32 %v2095_v56, 1.0  ;;  %v3399_v3 = vpop.eup %3398  ;;  %v2109_v18 = vadd.f32 1.1283791, %v2108_v2  ;;  %v5751_v37 = vmul.f32 0.70710677, %v5738_v63  ;;  %v1547_v40 = vadd.f32 %v1546_v30, %v1334_v19 }
 0x2b6   : > { %v2722_v29 = vmul.f32 %v3399_v3, %v5716_v9  ;;  %3400 = vrcp.f32 %v5730_v17  ;;  %vm2727_vm9 = vweird.f32 %v3399_v3  ;;  %v2738_v33 = vmul.f32 %v5747_v24, %v5747_v24 }
 0x2b7   : > { %v2948_v39 = vadd.f32 1.0, %v3253_v47  ;;  %vm2726_vm13 = vweird.f32 %v5716_v9  ;;  %vm5757_vm10 = vcmp.eq.f32.partialorder %v2730_v36, 8.507059e+37  ;;  %v2733_v16 = vor.u32 1.1754944e-38, %v2732_v26  ;;  %v1501_v36 = vpop.f32.mrf.mxu1 }
 0x2b8   : > { %v2723_v5 = vsub.f32 1.0, %v2722_v29  ;;  %v2138_v59 = vmul.f32 %v5751_v37, %v5751_v37  ;;  %v2130_v4 = vand.u32 2147483647, %v5730_v17  ;;  %v5765_v61 = vmin.f32 %v2738_v33, 16.0  ;;  %vm2728_vm11 = vmor %vm2726_vm13, %vm2727_vm9  ;;  %v1289_v29 = vpop.f32.mrf.mxu0 }
 0x2b9   : > { %v2980_v43 = vmul.f32 %v2948_v39, %v1604_v20  ;;  %v2110_v9 = vmul.f32 %v2109_v18, %v5656_v32  ;;  %vm2126_vm5 = vweird.f32 %v5730_v17  ;;  %v2132_v57 = vand.u32 2147483648, %v5730_v17 }
 0x2ba   : > { %v2724_v15 = vmul.f32 %v3399_v3, %v2723_v5  ;;  %v5771_v38 = vmin.f32 %v2138_v59, 16.0  ;;  %v2740_v31 = vmul.f32 2.1237322e-06, %v5765_v61  ;;  %v5778_v52 = vadd.f32 %v5631_v58, %v1547_v40 }
 0x2bb   : > { %v3012_v21 = vmul.f32 %v2980_v43, %v6235_v48  ;;  %v2751_v32 = vmul.f32 3.8918573e-05, %v5765_v61  ;;  %vm5785_vm4 = vcmp.eq.f32.partialorder %v2130_v4, 8.507059e+37  ;;  %v2133_v6 = vor.u32 1.1754944e-38, %v2132_v57 }
 0x2bc   : > { %v2725_v23 = vadd.f32 %v3399_v3, %v2724_v15  ;;  %v3401_v62 = vpop.eup %3400  ;;  %v2140_v42 = vmul.f32 2.1237322e-06, %v5771_v38  ;;  %v2151_v34 = vmul.f32 3.8918573e-05, %v5771_v38  ;;  %v2741_v56 = vadd.f32 0.00028619796, %v2740_v31 }
 0x2bd   : > { %v3044_v22 = vadd.f32 %v3447_v25, %v3012_v21  ;;  %v2122_v0 = vmul.f32 %v3401_v62, %v5730_v17  ;;  %vm2127_vm14 = vweird.f32 %v3401_v62  ;;  %v2752_v53 = vadd.f32 0.001143296, %v2751_v32  ;;  %v6240_v25 = vld [vmem:[#allocation13_spill] sm:$0xff]  ;;  %v3448_v31 = vld [vmem:[%s3519_s27 + $0xd0] sm:$0xff] }
 0x2be   : > { %v2729_v14 = vsel %vm2728_vm11, %v3399_v3, %v2725_v23  ;;  %v2141_v12 = vadd.f32 0.00028619796, %v2140_v42  ;;  %v2152_v50 = vadd.f32 0.001143296, %v2151_v34  ;;  %v2742_v44 = vmul.f32 %v2741_v56, %v5765_v61  ;;  %vm2128_vm15 = vmor %vm2126_vm5, %vm2127_vm14 }
 0x2bf   : > { %3076 = vst.msk [vmem:[%s4754_s25 + $0x50] sm:$0xff] %vm311_vm0, %v3044_v22  ;;  %v2734_v54 = vsel %vm5757_vm10, %v2733_v16, %v2729_v14  ;;  %v2123_v28 = vsub.f32 1.0, %v2122_v0  ;;  %v5791_v3 = vmul.f32 0.70710677, %v5778_v52  ;;  %v2753_v2 = vmul.f32 %v2752_v53, %v5765_v61 }
 0x2c0   : > { %v2735_v49 = vmul.f32 %v2734_v54, %v2710_v27  ;;  %v2142_v20 = vmul.f32 %v2141_v12, %v5771_v38  ;;  %v2153_v39 = vmul.f32 %v2152_v50, %v5771_v38  ;;  %v2743_v5 = vadd.f32 0.0036580483, %v2742_v44 }
 0x2c1   : > { %v2124_v47 = vmul.f32 %v3401_v62, %v2123_v28  ;;  %v2778_v27 = vmul.f32 %v5791_v3, %v5791_v3  ;;  %v2754_v18 = vadd.f32 0.014752088, %v2753_v2  ;;  %v1502_v48 = vadd.f32 %v1501_v36, %v1289_v29 }
 0x2c2   : > { %v3269_v46 = vclamps-f32 %v2735_v49, 1.0  ;;  %v2143_v19 = vadd.f32 0.0036580483, %v2142_v20  ;;  %v2154_v30 = vadd.f32 0.014752088, %v2153_v39  ;;  %v2744_v33 = vmul.f32 %v2743_v5, %v5765_v61  ;;  %v6241_v5 = vld [vmem:[#allocation14_spill] sm:$0xff] }
 0x2c3   : > { %v2125_v43 = vadd.f32 %v3401_v62, %v2124_v47  ;;  %v5803_v40 = vmin.f32 %v2778_v27, 16.0  ;;  %v2755_v16 = vmul.f32 %v2754_v18, %v5765_v61  ;;  %v5813_v0 = vadd.f32 %v5631_v58, %v1502_v48 }
 0x2c4   : > { %v2964_v26 = vadd.f32 1.0, %v3269_v46  ;;  %v2144_v17 = vmul.f32 %v2143_v19, %v5771_v38  ;;  %v2155_v59 = vmul.f32 %v2154_v30, %v5771_v38  ;;  %v1605_v56 = vmul.f32 0.5, %v5649_v41  ;;  %v1292_v41 = vpop.f32.mrf.mxu0 }
 0x2c5   : > { %v2129_v15 = vsel %vm2128_vm15, %v3401_v62, %v2125_v43  ;;  %v2780_v4 = vmul.f32 2.1237322e-06, %v5803_v40  ;;  %v2756_v62 = vadd.f32 0.112945676, %v2755_v16  ;;  %v2791_v10 = vmul.f32 3.8918573e-05, %v5803_v40  ;;  %v1504_v43 = vpop.f32.mrf.mxu1 }
 0x2c6   : > { %v2996_v21 = vmul.f32 %v2964_v26, %v5744_v11  ;;  %v2134_v1 = vsel %vm5785_vm4, %v2133_v6, %v2129_v15  ;;  %v2745_v11 = vadd.f32 0.05243302, %v2744_v33  ;;  %v2145_v57 = vadd.f32 0.05243302, %v2144_v17 }
 0x2c7   : > { %v2135_v23 = vmul.f32 %v2134_v1, %v2110_v9  ;;  %v2156_v14 = vadd.f32 0.112945676, %v2155_v59  ;;  %v2781_v34 = vadd.f32 0.00028619796, %v2780_v4  ;;  %v2757_v49 = vmul.f32 %v2756_v62, %v5765_v61  ;;  %v1337_v59 = vpop.f32.mrf.mxu2 }
 0x2c8   : > { %v3028_v22 = vmul.f32 %v2996_v21, %v6240_v25  ;;  %v2746_v42 = vmul.f32 %v2745_v11, %v5765_v61  ;;  %v2146_v9 = vmul.f32 %v2145_v57, %v5771_v38  ;;  %v2792_v20 = vadd.f32 0.001143296, %v2791_v10  ;;  %v3449_v21 = vld [vmem:[%s3519_s27 + $0x58] sm:$0xff]  ;;  %v1549_v25 = vpop.f32.mrf.mxu3 }
 0x2c9   : > { %v3254_v32 = vclamps-f32 %v2135_v23, 1.0  ;;  %v2157_v28 = vmul.f32 %v2156_v14, %v5771_v38  ;;  %v2782_v50 = vmul.f32 %v2781_v34, %v5803_v40  ;;  %v2758_v46 = vadd.f32 0.4994258, %v2757_v49 }
 0x2ca   : > { %v3060_v54 = vadd.f32 %v3448_v31, %v3028_v22  ;;  %v2747_v12 = vadd.f32 0.18741608, %v2746_v42  ;;  %v2147_v47 = vadd.f32 0.18741608, %v2146_v9  ;;  %v5829_v26 = vmul.f32 0.70710677, %v5813_v0 }
 0x2cb   : > { %v2949_v53 = vadd.f32 1.0, %v3254_v32  ;;  %v2158_v44 = vadd.f32 0.4994258, %v2157_v28  ;;  %v2783_v2 = vadd.f32 0.0036580483, %v2782_v50  ;;  %v2759_v29 = vmul.f32 %v2758_v46, %v5765_v61 }
 0x2cc   : > { %3092 = vst.msk [vmem:[%s4754_s25 + $0xd0] sm:$0xff] %vm311_vm0, %v3060_v54  ;;  %v2748_v39 = vmul.f32 %v2747_v12, %v5765_v61  ;;  %v2148_v18 = vmul.f32 %v2147_v47, %v5771_v38  ;;  %v2793_v19 = vmul.f32 %v2792_v20, %v5803_v40  ;;  %v2178_v1 = vmul.f32 %v5829_v26, %v5829_v26 }
 0x2cd   : > { %v2981_v6 = vmul.f32 %v2949_v53, %v1605_v56  ;;  %v2159_v36 = vmul.f32 %v2158_v44, %v5771_v38  ;;  %v5834_v30 = vadd.f32 1.0, %v2759_v29  ;;  %v2784_v61 = vmul.f32 %v2783_v2, %v5803_v40 }
 0x2ce   : > { %v2794_v33 = vadd.f32 0.014752088, %v2793_v19  ;;  %v1505_v16 = vadd.f32 %v1504_v43, %v1292_v41  ;;  %v2749_v17 = vadd.f32 1.1283791, %v2748_v39  ;;  %v2149_v38 = vadd.f32 1.1283791, %v2148_v18 }
 0x2cf   : > { %v3013_v27 = vmul.f32 %v2981_v6, %v6241_v5  ;;  %v5836_v48 = vadd.f32 1.0, %v2159_v36  ;;  %3402 = vrcp.f32 %v5834_v30  ;;  %v2770_v22 = vand.u32 2147483647, %v5834_v30 }
 0x2d0   : > { %v2785_v23 = vadd.f32 0.05243302, %v2784_v61  ;;  %v2772_v11 = vand.u32 2147483648, %v5834_v30  ;;  %v2795_v4 = vmul.f32 %v2794_v33, %v5803_v40  ;;  %v5849_v62 = vmin.f32 %v2178_v1, 16.0 }
 0x2d1   : > { %v3045_v15 = vadd.f32 %v3449_v21, %v3013_v27  ;;  %3404 = vrcp.f32 %v5836_v48  ;;  %v5852_v57 = vadd.f32 %v5631_v58, %v1505_v16  ;;  %v2750_v14 = vmul.f32 %v2749_v17, %v5747_v24 }
 0x2d2   : > { %v1550_v31 = vadd.f32 %v1549_v25, %v1337_v59  ;;  %vm2766_vm1 = vweird.f32 %v5834_v30  ;;  %v2150_v54 = vmul.f32 %v2149_v38, %v5751_v37  ;;  %v2796_v32 = vadd.f32 0.112945676, %v2795_v4 }
 0x2d3   : > { %3077 = vst.msk [vmem:[%s4754_s25 + $0x58] sm:$0xff] %vm311_vm0, %v3045_v15  ;;  %v2180_v42 = vmul.f32 2.1237322e-06, %v5849_v62  ;;  %v2191_v34 = vmul.f32 3.8918573e-05, %v5849_v62  ;;  %vm2166_vm2 = vweird.f32 %v5836_v48  ;;  %v2786_v28 = vmul.f32 %v2785_v23, %v5803_v40 }
 0x2d4   : > { %v2170_v9 = vand.u32 2147483647, %v5836_v48  ;;  %v5863_v10 = vmul.f32 0.70710677, %v5852_v57  ;;  %vm5866_vm6 = vcmp.eq.f32.partialorder %v2770_v22, 8.507059e+37  ;;  %v2773_v53 = vor.u32 1.1754944e-38, %v2772_v11 }
 0x2d5   : > { %v3403_v49 = vpop.eup %3402  ;;  %v2797_v12 = vmul.f32 %v2796_v32, %v5803_v40  ;;  %v2181_v50 = vadd.f32 0.00028619796, %v2180_v42  ;;  %v2172_v47 = vand.u32 2147483648, %v5836_v48  ;;  %v2192_v44 = vadd.f32 0.001143296, %v2191_v34 }
 0x2d6   : > { %v2762_v56 = vmul.f32 %v3403_v49, %v5834_v30  ;;  %v5874_v6 = vadd.f32 %v5631_v58, %v1550_v31  ;;  %v2218_v29 = vmul.f32 %v5863_v10, %v5863_v10  ;;  %vm2767_vm12 = vweird.f32 %v3403_v49 }
 0x2d7   : > { %v3405_v24 = vpop.eup %3404  ;;  %v2798_v20 = vadd.f32 0.4994258, %v2797_v12  ;;  %v2182_v39 = vmul.f32 %v2181_v50, %v5849_v62  ;;  %v2787_v41 = vadd.f32 0.18741608, %v2786_v28  ;;  %v2193_v43 = vmul.f32 %v2192_v44, %v5849_v62  ;;  %vm2768_vm3 = vmor %vm2766_vm1, %vm2767_vm12 }
 0x2d8   : > { %v2162_v46 = vmul.f32 %v3405_v24, %v5836_v48  ;;  %v2763_v2 = vsub.f32 1.0, %v2762_v56  ;;  %v5881_v19 = vmin.f32 %v2218_v29, 16.0  ;;  %vm2167_vm7 = vweird.f32 %v3405_v24  ;;  %v1552_v29 = vpop.f32.mrf.mxu3 }
 0x2d9   : > { %v2799_v27 = vmul.f32 %v2798_v20, %v5803_v40  ;;  %v2183_v18 = vadd.f32 0.0036580483, %v2182_v39  ;;  %v2194_v21 = vadd.f32 0.014752088, %v2193_v43  ;;  %v5884_v15 = vmul.f32 0.70710677, %v5874_v6  ;;  %vm2168_vm9 = vmor %vm2166_vm2, %vm2167_vm7  ;;  %v1340_v39 = vpop.f32.mrf.mxu2 }
 0x2da   : > { %v2163_v36 = vsub.f32 1.0, %v2162_v46  ;;  %v2764_v5 = vmul.f32 %v3403_v49, %v2763_v2  ;;  %vm5886_vm8 = vcmp.eq.f32.partialorder %v2170_v9, 8.507059e+37  ;;  %v2173_v59 = vor.u32 1.1754944e-38, %v2172_v47 }
 0x2db   : > { %v5890_v16 = vadd.f32 1.0, %v2799_v27  ;;  %v2184_v17 = vmul.f32 %v2183_v18, %v5849_v62  ;;  %v2195_v25 = vmul.f32 %v2194_v21, %v5849_v62  ;;  %v2220_v22 = vmul.f32 2.1237322e-06, %v5881_v19 }
 0x2dc   : > { %v2164_v61 = vmul.f32 %v3405_v24, %v2163_v36  ;;  %v2765_v33 = vadd.f32 %v3403_v49, %v2764_v5  ;;  %v2231_v11 = vmul.f32 3.8918573e-05, %v5881_v19  ;;  %v2818_v4 = vmul.f32 %v5884_v15, %v5884_v15 }
 0x2dd   : > { %3406 = vrcp.f32 %v5890_v16  ;;  %v2788_v32 = vmul.f32 %v2787_v41, %v5803_v40  ;;  %v2185_v42 = vadd.f32 0.05243302, %v2184_v17  ;;  %v1621_v34 = vmul.f32 0.5, %v5733_v13 }
 0x2de   : > { %v2165_v38 = vadd.f32 %v3405_v24, %v2164_v61  ;;  %v2769_v23 = vsel %vm2768_vm3, %v3403_v49, %v2765_v33  ;;  %v2196_v9 = vadd.f32 0.112945676, %v2195_v25  ;;  %v1606_v28 = vmul.f32 0.5, %v5738_v63 }
 0x2df   : > { %v2774_v30 = vsel %vm5866_vm6, %v2773_v53, %v2769_v23  ;;  %v2186_v12 = vmul.f32 %v2185_v42, %v5849_v62  ;;  %v2221_v50 = vadd.f32 0.00028619796, %v2220_v22  ;;  %v5913_v53 = vmin.f32 %v2818_v4, 16.0  ;;  %v6247_v4 = vld [vmem:[#allocation18_spill] sm:$0xff]  ;;  %v3450_v42 = vld [vmem:[%s3519_s27 + $0xd8] sm:$0xff] }
 0x2e0   : > { %v2169_v31 = vsel %vm2168_vm9, %v3405_v24, %v2165_v38  ;;  %v2775_v49 = vmul.f32 %v2774_v30, %v2750_v14  ;;  %v2197_v37 = vmul.f32 %v2196_v9, %v5849_v62  ;;  %v2232_v24 = vadd.f32 0.001143296, %v2231_v11  ;;  %v3451_v9 = vld [vmem:[%s3519_s27 + $0x60] sm:$0xff] }
 0x2e1   : > { %v2174_v48 = vsel %vm5886_vm8, %v2173_v59, %v2169_v31  ;;  %v2789_v47 = vadd.f32 1.1283791, %v2788_v32  ;;  %v2810_v13 = vand.u32 2147483647, %v5890_v16  ;;  %v2222_v14 = vmul.f32 %v2221_v50, %v5881_v19  ;;  %v6246_v59 = vld [vmem:[#allocation16_spill] sm:$0xff] }
 0x2e2   : > { %v2175_v56 = vmul.f32 %v2174_v48, %v2150_v54  ;;  %v3270_v46 = vclamps-f32 %v2775_v49, 1.0  ;;  %v2198_v20 = vadd.f32 0.4994258, %v2197_v37  ;;  %v2233_v63 = vmul.f32 %v2232_v24, %v5881_v19 }
 0x2e3   : > { %v3407_v44 = vpop.eup %3406  ;;  %v2820_v54 = vmul.f32 2.1237322e-06, %v5913_v53  ;;  %v2812_v43 = vand.u32 2147483648, %v5890_v16  ;;  %v2187_v5 = vadd.f32 0.18741608, %v2186_v12  ;;  %v1553_v38 = vadd.f32 %v1552_v29, %v1340_v39  ;;  %v1295_v39 = vpop.f32.mrf.mxu0 }
 0x2e4   : > { %v3255_v40 = vclamps-f32 %v2175_v56, 1.0  ;;  %v2965_v2 = vadd.f32 1.0, %v3270_v46  ;;  %v2802_v41 = vmul.f32 %v3407_v44, %v5890_v16  ;;  %v2199_v18 = vmul.f32 %v2198_v20, %v5849_v62  ;;  %v1507_v29 = vpop.f32.mrf.mxu1 }
 0x2e5   : > { %v2223_v61 = vadd.f32 0.0036580483, %v2222_v14  ;;  %v2234_v21 = vadd.f32 0.014752088, %v2233_v63  ;;  %v2821_v17 = vadd.f32 0.00028619796, %v2820_v54  ;;  %vm2807_vm13 = vweird.f32 %v3407_v44 }
 0x2e6   : > { %v2950_v36 = vadd.f32 1.0, %v3255_v40  ;;  %v2997_v27 = vmul.f32 %v2965_v2, %v1621_v34  ;;  %v2803_v1 = vsub.f32 1.0, %v2802_v41  ;;  %v5923_v22 = vadd.f32 1.0, %v2199_v18 }
 0x2e7   : > { %v2224_v23 = vmul.f32 %v2223_v61, %v5881_v19  ;;  %v2235_v11 = vmul.f32 %v2234_v21, %v5881_v19  ;;  %v2822_v32 = vmul.f32 %v2821_v17, %v5913_v53  ;;  %v2790_v49 = vmul.f32 %v2789_v47, %v5791_v3 }
 0x2e8   : > { %v2982_v33 = vmul.f32 %v2950_v36, %v1606_v28  ;;  %v3029_v25 = vmul.f32 %v2997_v27, %v6246_v59  ;;  %v2804_v31 = vmul.f32 %v3407_v44, %v2803_v1  ;;  %v2188_v48 = vmul.f32 %v2187_v5, %v5849_v62 }
 0x2e9   : > { %3408 = vrcp.f32 %v5923_v22  ;;  %vm2806_vm10 = vweird.f32 %v5890_v16  ;;  %v2225_v12 = vadd.f32 0.05243302, %v2224_v23  ;;  %v2813_v50 = vor.u32 1.1754944e-38, %v2812_v43 }
 0x2ea   : > { %v3014_v30 = vmul.f32 %v2982_v33, %v6247_v4  ;;  %v3061_v34 = vadd.f32 %v3450_v42, %v3029_v25  ;;  %v2805_v56 = vadd.f32 %v3407_v44, %v2804_v31  ;;  %vm2808_vm11 = vmor %vm2806_vm10, %vm2807_vm13  ;;  %v2236_v46 = vadd.f32 0.112945676, %v2235_v11  ;;  %v1343_v31 = vpop.f32.mrf.mxu2 }
 0x2eb   : > { %v2823_v37 = vadd.f32 0.0036580483, %v2822_v32  ;;  %v5938_v24 = vadd.f32 %v5631_v58, %v1553_v38  ;;  %vm2811_vm5 = vcmp.eq.f32.partialorder %v2810_v13, 8.507059e+37  ;;  %v2226_v62 = vmul.f32 %v2225_v12, %v5881_v19 }
 0x2ec   : > { %v3046_v28 = vadd.f32 %v3451_v9, %v3014_v30  ;;  %3093 = vst.msk [vmem:[%s4754_s25 + $0xd8] sm:$0xff] %vm311_vm0, %v3061_v34  ;;  %v2809_v3 = vsel %vm2808_vm11, %v3407_v44, %v2805_v56  ;;  %v2831_v40 = vmul.f32 3.8918573e-05, %v5913_v53  ;;  %v2189_v16 = vadd.f32 1.1283791, %v2188_v48  ;;  %v6248_v34 = vld [vmem:[#allocation17_spill] sm:$0xff] }
 0x2ed   : > { %v2814_v47 = vsel %vm2811_vm5, %v2813_v50, %v2809_v3  ;;  %v2237_v14 = vmul.f32 %v2236_v46, %v5881_v19  ;;  %v2824_v20 = vmul.f32 %v2823_v37, %v5913_v53  ;;  %v5947_v54 = vmul.f32 0.70710677, %v5938_v24  ;;  %v3452_v50 = vld [vmem:[%s3519_s27 + $0xe0] sm:$0xff] }
 0x2ee   : > { %3078 = vst.msk [vmem:[%s4754_s25 + $0x60] sm:$0xff] %vm311_vm0, %v3046_v28  ;;  %v2815_v2 = vmul.f32 %v2814_v47, %v2790_v49  ;;  %v2832_v63 = vadd.f32 0.001143296, %v2831_v40  ;;  %v1622_v13 = vmul.f32 0.5, %v5778_v52  ;;  %v5951_v43 = vmul.f32 0.5, %v5813_v0 }
 0x2ef   : > { %v3409_v36 = vpop.eup %3408  ;;  %v2238_v44 = vadd.f32 0.4994258, %v2237_v14  ;;  %v2227_v27 = vadd.f32 0.18741608, %v2226_v62  ;;  %v2858_v21 = vmul.f32 %v5947_v54, %v5947_v54  ;;  %v1508_v33 = vadd.f32 %v1507_v29, %v1295_v39  ;;  %v1555_v32 = vpop.f32.mrf.mxu3 }
 0x2f0   : > { %v3271_v41 = vclamps-f32 %v2815_v2, 1.0  ;;  %v2202_v5 = vmul.f32 %v3409_v36, %v5923_v22  ;;  %v2833_v61 = vmul.f32 %v2832_v63, %v5913_v53  ;;  %v2190_v17 = vmul.f32 %v2189_v16, %v5829_v26 }
 0x2f1   : > { %v2239_v18 = vmul.f32 %v2238_v44, %v5881_v19  ;;  %v2825_v38 = vadd.f32 0.05243302, %v2824_v20  ;;  %v2212_v59 = vand.u32 2147483648, %v5923_v22  ;;  %v5962_v23 = vmin.f32 %v2858_v21, 16.0 }
 0x2f2   : > { %v2966_v1 = vadd.f32 1.0, %v3271_v41  ;;  %v2203_v52 = vsub.f32 1.0, %v2202_v5  ;;  %v2834_v25 = vadd.f32 0.014752088, %v2833_v61  ;;  %vm2207_vm4 = vweird.f32 %v3409_v36 }
 0x2f3   : > { %v5960_v0 = vadd.f32 1.0, %v2239_v18  ;;  %v2210_v30 = vand.u32 2147483647, %v5923_v22  ;;  %vm2206_vm14 = vweird.f32 %v5923_v22  ;;  %v2228_v26 = vmul.f32 %v2227_v27, %v5881_v19 }
 0x2f4   : > { %v2998_v11 = vmul.f32 %v2966_v1, %v1622_v13  ;;  %v2204_v4 = vmul.f32 %v3409_v36, %v2203_v52  ;;  %v5969_v42 = vadd.f32 %v5631_v58, %v1508_v33  ;;  %v2826_v9 = vmul.f32 %v2825_v38, %v5913_v53  ;;  %vm2208_vm15 = vmor %vm2206_vm14, %vm2207_vm4 }
 0x2f5   : > { %3410 = vrcp.f32 %v5960_v0  ;;  %v2835_v28 = vmul.f32 %v2834_v25, %v5913_v53  ;;  %v2213_v56 = vor.u32 1.1754944e-38, %v2212_v59  ;;  %v2860_v12 = vmul.f32 2.1237322e-06, %v5962_v23 }
 0x2f6   : > { %v3030_v49 = vmul.f32 %v2998_v11, %v6248_v34  ;;  %v2205_v48 = vadd.f32 %v3409_v36, %v2204_v4  ;;  %v2871_v22 = vmul.f32 3.8918573e-05, %v5962_v23  ;;  %v1556_v19 = vadd.f32 %v1555_v32, %v1343_v31 }
 0x2f7   : > { %vm2211_vm1 = vcmp.eq.f32.partialorder %v2210_v30, 8.507059e+37  ;;  %v2836_v3 = vadd.f32 0.112945676, %v2835_v28  ;;  %v2861_v40 = vadd.f32 0.00028619796, %v2860_v12  ;;  %v2252_v61 = vand.u32 2147483648, %v5960_v0 }
 0x2f8   : > { %v3062_v46 = vadd.f32 %v3452_v50, %v3030_v49  ;;  %v2209_v37 = vsel %vm2208_vm15, %v3409_v36, %v2205_v48  ;;  %v2872_v47 = vadd.f32 0.001143296, %v2871_v22  ;;  %v5978_v16 = vmul.f32 0.70710677, %v5969_v42  ;;  %v1510_v48 = vpop.f32.mrf.mxu1 }
 0x2f9   : > { %v2214_v62 = vsel %vm2211_vm1, %v2213_v56, %v2209_v37  ;;  %v2229_v2 = vadd.f32 1.1283791, %v2228_v26  ;;  %v2827_v20 = vadd.f32 0.18741608, %v2826_v9  ;;  %v2837_v63 = vmul.f32 %v2836_v3, %v5913_v53 }
 0x2fa   : > { %3094 = vst.msk [vmem:[%s4754_s25 + $0xe0] sm:$0xff] %vm311_vm0, %v3062_v46  ;;  %v2215_v14 = vmul.f32 %v2214_v62, %v2190_v17  ;;  %v2862_v29 = vmul.f32 %v2861_v40, %v5962_v23  ;;  %v2873_v36 = vmul.f32 %v2872_v47, %v5962_v23  ;;  %v2258_v13 = vmul.f32 %v5978_v16, %v5978_v16  ;;  %v6249_v46 = vld [vmem:[#allocation15_spill] sm:$0xff] }
 0x2fb   : > { %v3411_v39 = vpop.eup %3410  ;;  %v5988_v44 = vadd.f32 %v5631_v58, %v1556_v19  ;;  %v2250_v27 = vand.u32 2147483647, %v5960_v0  ;;  %v2838_v18 = vadd.f32 0.4994258, %v2837_v63  ;;  %v2230_v26 = vmul.f32 %v2229_v2, %v5863_v10 }
 0x2fc   : > { %v3256_v41 = vclamps-f32 %v2215_v14, 1.0  ;;  %v2242_v5 = vmul.f32 %v3411_v39, %v5960_v0  ;;  %v2863_v21 = vadd.f32 0.0036580483, %v2862_v29  ;;  %v2874_v33 = vadd.f32 0.014752088, %v2873_v36 }
 0x2fd   : > { %v5993_v1 = vmin.f32 %v2258_v13, 16.0  ;;  %vm2247_vm2 = vweird.f32 %v3411_v39  ;;  %v2839_v38 = vmul.f32 %v2838_v18, %v5913_v53  ;;  %v6000_v11 = vmul.f32 0.70710677, %v5988_v44 }
 0x2fe   : > { %v2951_v17 = vadd.f32 1.0, %v3256_v41  ;;  %v2243_v52 = vsub.f32 1.0, %v2242_v5  ;;  %v2864_v58 = vmul.f32 %v2863_v21, %v5962_v23  ;;  %v2875_v59 = vmul.f32 %v2874_v33, %v5962_v23 }
 0x2ff   : > { %v2260_v25 = vmul.f32 2.1237322e-06, %v5993_v1  ;;  %v6003_v31 = vadd.f32 1.0, %v2839_v38  ;;  %v2271_v32 = vmul.f32 3.8918573e-05, %v5993_v1  ;;  %vm2246_vm6 = vweird.f32 %v5960_v0  ;;  %v3453_v0 = vld [vmem:[%s3519_s27 + $0x68] sm:$0xff] }
 0x300   : > { %v2983_v4 = vmul.f32 %v2951_v17, %v5951_v43  ;;  %v2244_v30 = vmul.f32 %v3411_v39, %v2243_v52  ;;  %v2876_v34 = vadd.f32 0.112945676, %v2875_v59  ;;  %vm2251_vm12 = vcmp.eq.f32.partialorder %v2250_v27, 8.507059e+37  ;;  %vm2248_vm7 = vmor %vm2246_vm6, %vm2247_vm2 }
 0x301   : > { %v2261_v49 = vadd.f32 0.00028619796, %v2260_v25  ;;  %3412 = vrcp.f32 %v6003_v31  ;;  %v2253_v43 = vor.u32 1.1754944e-38, %v2252_v61  ;;  %v2865_v56 = vadd.f32 0.05243302, %v2864_v58 }
 0x302   : > { %v3015_v9 = vmul.f32 %v2983_v4, %v4988_v8  ;;  %v2245_v28 = vadd.f32 %v3411_v39, %v2244_v30  ;;  %v2877_v12 = vmul.f32 %v2876_v34, %v5962_v23  ;;  %v2898_v10 = vmul.f32 %v6000_v11, %v6000_v11 }
 0x303   : > { %v2272_v50 = vadd.f32 0.001143296, %v2271_v32  ;;  %v1511_v8 = vadd.f32 %v1510_v48, %v6249_v46  ;;  %v2828_v3 = vmul.f32 %v2827_v20, %v5913_v53  ;;  %v2262_v62 = vmul.f32 %v2261_v49, %v5993_v1  ;;  %v3454_v53 = vld [vmem:[%s6125_s5] ss:$0 sm:$0xff] }
 0x304   : > { %v3047_v22 = vadd.f32 %v3453_v0, %v3015_v9  ;;  %v2249_v19 = vsel %vm2248_vm7, %v3411_v39, %v2245_v28  ;;  %v2878_v47 = vadd.f32 0.4994258, %v2877_v12  ;;  %v1608_v2 = vmul.f32 0.5, %v5852_v57 }
 0x305   : > { %v2254_v37 = vsel %vm2251_vm12, %v2253_v43, %v2249_v19  ;;  %v2273_v14 = vmul.f32 %v2272_v50, %v5993_v1  ;;  %v2866_v63 = vmul.f32 %v2865_v56, %v5962_v23  ;;  %v6023_v29 = vmin.f32 %v2898_v10, 16.0  ;;  %v3455_v10 = vld [vmem:[%s3519_s27 + $0x70] sm:$0xff] }
 0x306   : > { %3079 = vst.msk [vmem:[%s4754_s25 + $0x68] sm:$0xff] %vm311_vm0, %v3047_v22  ;;  %v2255_v40 = vmul.f32 %v2254_v37, %v2230_v26  ;;  %v2879_v13 = vmul.f32 %v2878_v47, %v5962_v23  ;;  %v6029_v20 = vadd.f32 %v3454_v53, %v1511_v8  ;;  %v2829_v5 = vadd.f32 1.1283791, %v2828_v3 }
 0x307   : > { %v3413_v39 = vpop.eup %3412  ;;  %v2274_v41 = vadd.f32 0.014752088, %v2273_v14  ;;  %v2263_v18 = vadd.f32 0.0036580483, %v2262_v62  ;;  %v2900_v57 = vmul.f32 2.1237322e-06, %v6023_v29  ;;  %vm2846_vm3 = vweird.f32 %v6003_v31 }
 0x308   : > { %v3257_v36 = vclamps-f32 %v2255_v40, 1.0  ;;  %v2842_v27 = vmul.f32 %v3413_v39, %v6003_v31  ;;  %v2850_v21 = vand.u32 2147483647, %v6003_v31  ;;  %v6034_v33 = vadd.f32 1.0, %v2879_v13 }
 0x309   : > { %v2275_v17 = vmul.f32 %v2274_v41, %v5993_v1  ;;  %v2852_v38 = vand.u32 2147483648, %v6003_v31  ;;  %v2867_v58 = vadd.f32 0.18741608, %v2866_v63  ;;  %v2911_v59 = vmul.f32 3.8918573e-05, %v6023_v29 }
 0x30a   : > { %v2952_v61 = vadd.f32 1.0, %v3257_v36  ;;  %v2843_v52 = vsub.f32 1.0, %v2842_v27  ;;  %3414 = vrcp.f32 %v6034_v33  ;;  %v2901_v4 = vadd.f32 0.00028619796, %v2900_v57 }
 0x30b   : > { %v6041_v30 = vmul.f32 0.70710677, %v6029_v20  ;;  %vm2847_vm8 = vweird.f32 %v3413_v39  ;;  %v2264_v26 = vmul.f32 %v2263_v18, %v5993_v1  ;;  %v2276_v34 = vadd.f32 0.112945676, %v2275_v17 }
 0x30c   : > { %v2984_v25 = vmul.f32 %v2952_v61, %v1608_v2  ;;  %v2844_v32 = vmul.f32 %v3413_v39, %v2843_v52  ;;  %v2830_v48 = vmul.f32 %v2829_v5, %v5884_v15  ;;  %v2912_v9 = vadd.f32 0.001143296, %v2911_v59  ;;  %vm2848_vm9 = vmor %vm2846_vm3, %vm2847_vm8 }
 0x30d   : > { %v2853_v43 = vor.u32 1.1754944e-38, %v2852_v38  ;;  %v2868_v56 = vmul.f32 %v2867_v58, %v5962_v23  ;;  %v2277_v12 = vmul.f32 %v2276_v34, %v5993_v1  ;;  %v2902_v22 = vmul.f32 %v2901_v4, %v6023_v29 }
 0x30e   : > { %v3016_v49 = vmul.f32 %v2984_v25, %v5065_v51  ;;  %v2845_v28 = vadd.f32 %v3413_v39, %v2844_v32  ;;  %v2913_v19 = vmul.f32 %v2912_v9, %v6023_v29  ;;  %v2298_v51 = vmul.f32 %v6041_v30, %v6041_v30 }
 0x30f   : > { %vm2851_vm13 = vcmp.eq.f32.partialorder %v2850_v21, 8.507059e+37  ;;  %v2265_v31 = vadd.f32 0.05243302, %v2264_v26  ;;  %v2278_v50 = vadd.f32 0.4994258, %v2277_v12  ;;  %v1623_v23 = vmul.f32 0.5, %v5874_v6 }
 0x310   : > { %v3048_v0 = vadd.f32 %v3455_v10, %v3016_v49  ;;  %v2849_v15 = vsel %vm2848_vm9, %v3413_v39, %v2845_v28  ;;  %v3415_v46 = vpop.eup %3414  ;;  %v2914_v37 = vadd.f32 0.014752088, %v2913_v19  ;;  %v6057_v3 = vmin.f32 %v2298_v51, 16.0 }
 0x311   : > { %v2854_v8 = vsel %vm2851_vm13, %v2853_v43, %v2849_v15  ;;  %v2869_v40 = vadd.f32 1.1283791, %v2868_v56  ;;  %v2882_v47 = vmul.f32 %v3415_v46, %v6034_v33  ;;  %v2890_v14 = vand.u32 2147483647, %v6034_v33  ;;  %v3456_v56 = vld [vmem:[%s3519_s27 + $0xe8] sm:$0xff] }
 0x312   : > { %3080 = vst.msk [vmem:[%s4754_s25 + $0x70] sm:$0xff] %vm311_vm0, %v3048_v0  ;;  %v2855_v62 = vmul.f32 %v2854_v8, %v2830_v48  ;;  %v2279_v2 = vmul.f32 %v2278_v50, %v5993_v1  ;;  %v2903_v63 = vadd.f32 0.0036580483, %v2902_v22  ;;  %v2915_v39 = vmul.f32 %v2914_v37, %v6023_v29 }
 0x313   : > { %v2300_v36 = vmul.f32 2.1237322e-06, %v6057_v3  ;;  %v2883_v41 = vsub.f32 1.0, %v2882_v47  ;;  %v2266_v6 = vmul.f32 %v2265_v31, %v5993_v1  ;;  %v2311_v53 = vmul.f32 3.8918573e-05, %v6057_v3 }
 0x314   : > { %v3272_v13 = vclamps-f32 %v2855_v62, 1.0  ;;  %v2892_v5 = vand.u32 2147483648, %v6034_v33  ;;  %v6067_v27 = vadd.f32 1.0, %v2279_v2  ;;  %v2916_v18 = vadd.f32 0.112945676, %v2915_v39 }
 0x315   : > { %v2301_v57 = vadd.f32 0.00028619796, %v2300_v36  ;;  %v2884_v21 = vmul.f32 %v3415_v46, %v2883_v41  ;;  %vm2887_vm10 = vweird.f32 %v3415_v46  ;;  %v2312_v17 = vadd.f32 0.001143296, %v2311_v53 }
 0x316   : > { %v2967_v61 = vadd.f32 1.0, %v3272_v13  ;;  %vm2886_vm11 = vweird.f32 %v6034_v33  ;;  %3416 = vrcp.f32 %v6067_v27  ;;  %v2904_v52 = vmul.f32 %v2903_v63, %v6023_v29 }
 0x317   : > { %v2885_v58 = vadd.f32 %v3415_v46, %v2884_v21  ;;  %v2267_v59 = vadd.f32 0.18741608, %v2266_v6  ;;  %v2917_v25 = vmul.f32 %v2916_v18, %v6023_v29  ;;  %v2870_v4 = vmul.f32 %v2869_v40, %v5947_v54  ;;  %vm2888_vm5 = vmor %vm2886_vm11, %vm2887_vm10 }
 0x318   : > { %v2999_v38 = vmul.f32 %v2967_v61, %v1623_v23  ;;  %v2893_v32 = vor.u32 1.1754944e-38, %v2892_v5  ;;  %v2302_v26 = vmul.f32 %v2301_v57, %v6057_v3  ;;  %v2313_v34 = vmul.f32 %v2312_v17, %v6057_v3  ;;  %v3457_v5 = vld [vmem:[%s3519_s27 + $0xf0] sm:$0xff] }
 0x319   : > { %v2889_v49 = vsel %vm2888_vm5, %v3415_v46, %v2885_v58  ;;  %vm2891_vm4 = vcmp.eq.f32.partialorder %v2890_v14, 8.507059e+37  ;;  %v2918_v48 = vadd.f32 0.4994258, %v2917_v25  ;;  %v2905_v28 = vadd.f32 0.05243302, %v2904_v52 }
 0x31a   : > { %v3031_v33 = vmul.f32 %v2999_v38, %v5113_v60  ;;  %v2894_v9 = vsel %vm2891_vm4, %v2893_v32, %v2889_v49  ;;  %v2314_v43 = vadd.f32 0.014752088, %v2313_v34  ;;  %v2268_v54 = vmul.f32 %v2267_v59, %v5993_v1 }
 0x31b   : > { %v2895_v10 = vmul.f32 %v2894_v9, %v2870_v4  ;;  %v2919_v0 = vmul.f32 %v2918_v48, %v6023_v29  ;;  %v2303_v19 = vadd.f32 0.0036580483, %v2302_v26  ;;  %v2906_v31 = vmul.f32 %v2905_v28, %v6023_v29 }
 0x31c   : > { %v3063_v12 = vadd.f32 %v3456_v56, %v3031_v33  ;;  %v3417_v22 = vpop.eup %3416  ;;  %v2315_v51 = vmul.f32 %v2314_v43, %v6057_v3  ;;  %v1624_v23 = vmul.f32 0.5, %v5938_v24  ;;  %v2269_v37 = vadd.f32 1.1283791, %v2268_v54  ;;  %v3458_v54 = vld [vmem:[%s3519_s27 + $0x78] sm:$0xff] }
 0x31d   : > { %v3273_v60 = vclamps-f32 %v2895_v10, 1.0  ;;  %v2282_v15 = vmul.f32 %v3417_v22, %v6067_v27  ;;  %v2920_v50 = vadd.f32 1.0, %v2919_v0  ;;  %v2290_v62 = vand.u32 2147483647, %v6067_v27 }
 0x31e   : > { %3095 = vst.msk [vmem:[%s4754_s25 + $0xe8] sm:$0xff] %vm311_vm0, %v3063_v12  ;;  %v2316_v46 = vadd.f32 0.112945676, %v2315_v51  ;;  %v2292_v40 = vand.u32 2147483648, %v6067_v27  ;;  %v2304_v47 = vmul.f32 %v2303_v19, %v6057_v3  ;;  %vm2287_vm14 = vweird.f32 %v3417_v22 }
 0x31f   : > { %v2968_v8 = vadd.f32 1.0, %v3273_v60  ;;  %v2283_v1 = vsub.f32 1.0, %v2282_v15  ;;  %3418 = vrcp.f32 %v2920_v50  ;;  %v2907_v39 = vadd.f32 0.18741608, %v2906_v31 }
 0x320   : > { %v2317_v63 = vmul.f32 %v2316_v46, %v6057_v3  ;;  %vm2286_vm15 = vweird.f32 %v6067_v27  ;;  %v2270_v41 = vmul.f32 %v2269_v37, %v5978_v16  ;;  %v2293_v6 = vor.u32 1.1754944e-38, %v2292_v40  ;;  %v3459_v40 = vld [vmem:[%s3519_s27 + $0xf8] sm:$0xff] }
 0x321   : > { %v3000_v14 = vmul.f32 %v2968_v8, %v1624_v23  ;;  %v2284_v2 = vmul.f32 %v3417_v22, %v2283_v1  ;;  %vm2288_vm1 = vmor %vm2286_vm15, %vm2287_vm14  ;;  %v2305_v53 = vadd.f32 0.05243302, %v2304_v47  ;;  %vm2291_vm2 = vcmp.eq.f32.partialorder %v2290_v62, 8.507059e+37 }
 0x322   : > { %v2318_v13 = vadd.f32 0.4994258, %v2317_v63  ;;  %v1609_v25 = vmul.f32 0.5, %v5969_v42  ;;  %v2932_v32 = vand.u32 2147483648, %v2920_v50  ;;  %v2930_v33 = vand.u32 2147483647, %v2920_v50 }
 0x323   : > { %v3032_v36 = vmul.f32 %v3000_v14, %v5366_v35  ;;  %v2285_v24 = vadd.f32 %v3417_v22, %v2284_v2  ;;  %v2908_v35 = vmul.f32 %v2907_v39, %v6023_v29  ;;  %v2306_v38 = vmul.f32 %v2305_v53, %v6057_v3 }
 0x324   : > { %v2319_v61 = vmul.f32 %v2318_v13, %v6057_v3  ;;  %vm2926_vm12 = vweird.f32 %v2920_v50  ;;  %v2933_v9 = vor.u32 1.1754944e-38, %v2932_v32  ;;  %vm2931_vm8 = vcmp.eq.f32.partialorder %v2930_v33, 8.507059e+37  ;;  %v3460_v13 = vld [vmem:[%s3519_s27 + $0x80] sm:$0xff] }
 0x325   : > { %v3064_v18 = vadd.f32 %v3457_v5, %v3032_v36  ;;  %v2289_v57 = vsel %vm2288_vm1, %v3417_v22, %v2285_v24  ;;  %v3419_v21 = vpop.eup %3418  ;;  %v2909_v4 = vadd.f32 1.1283791, %v2908_v35  ;;  %v2307_v29 = vadd.f32 0.18741608, %v2306_v38 }
 0x326   : > { %v2294_v17 = vsel %vm2291_vm2, %v2293_v6, %v2289_v57  ;;  %v2922_v27 = vmul.f32 %v3419_v21, %v2920_v50  ;;  %v2320_v16 = vadd.f32 1.0, %v2319_v61  ;;  %vm2927_vm6 = vweird.f32 %v3419_v21 }
 0x327   : > { %3096 = vst.msk [vmem:[%s4754_s25 + $0xf0] sm:$0xff] %vm311_vm0, %v3064_v18  ;;  %v2295_v52 = vmul.f32 %v2294_v17, %v2270_v41  ;;  %vm2928_vm7 = vmor %vm2926_vm12, %vm2927_vm6  ;;  %v2910_v43 = vmul.f32 %v2909_v4, %v6000_v11  ;;  %v2308_v10 = vmul.f32 %v2307_v29, %v6057_v3  ;;  %v1625_v15 = vmul.f32 0.5, %v5988_v44 }
 0x328   : > { %v2923_v59 = vsub.f32 1.0, %v2922_v27  ;;  %3420 = vrcp.f32 %v2320_v16  ;;  %v2330_v46 = vand.u32 2147483647, %v2320_v16  ;;  %vm2326_vm9 = vweird.f32 %v2320_v16 }
 0x329   : > { %v3258_v58 = vclamps-f32 %v2295_v52, 1.0  ;;  %v2309_v31 = vadd.f32 1.1283791, %v2308_v10  ;;  %v1610_v63 = vmul.f32 0.5, %v6029_v20 }
 0x32a   : > { %v2924_v34 = vmul.f32 %v3419_v21, %v2923_v59  ;;  %vm2331_vm10 = vcmp.eq.f32.partialorder %v2330_v46, 8.507059e+37 }
 0x32b   : > { %v2953_v26 = vadd.f32 1.0, %v3258_v58  ;;  %v2310_v1 = vmul.f32 %v2309_v31, %v6041_v30 }
 0x32c   : > { %v2925_v48 = vadd.f32 %v3419_v21, %v2924_v34 }
 0x32d   : > { %v2985_v49 = vmul.f32 %v2953_v26, %v1609_v25 }
 0x32e   : > { %v2929_v42 = vsel %vm2928_vm7, %v3419_v21, %v2925_v48  ;;  %v3421_v56 = vpop.eup %3420 }
 0x32f   : > { %v3017_v28 = vmul.f32 %v2985_v49, %v5468_v45  ;;  %v2934_v12 = vsel %vm2931_vm8, %v2933_v9, %v2929_v42  ;;  %v2322_v19 = vmul.f32 %v3421_v56, %v2320_v16  ;;  %v2332_v45 = vand.u32 2147483648, %v2320_v16 }
 0x330   : > { %v2935_v22 = vmul.f32 %v2934_v12, %v2910_v43  ;;  %vm2327_vm3 = vweird.f32 %v3421_v56 }
 0x331   : > { %v3049_v0 = vadd.f32 %v3458_v54, %v3017_v28  ;;  %v2323_v60 = vsub.f32 1.0, %v2322_v19  ;;  %vm2328_vm13 = vmor %vm2326_vm9, %vm2327_vm3  ;;  %v2333_v8 = vor.u32 1.1754944e-38, %v2332_v45 }
 0x332   : > { %v3274_v51 = vclamps-f32 %v2935_v22, 1.0 }
 0x333   : > { %3081 = vst.msk [vmem:[%s4754_s25 + $0x78] sm:$0xff] %vm311_vm0, %v3049_v0  ;;  %v2324_v50 = vmul.f32 %v3421_v56, %v2323_v60 }
 0x334   : > { %v2969_v11 = vadd.f32 1.0, %v3274_v51 }
 0x335   : > { %v2325_v3 = vadd.f32 %v3421_v56, %v2324_v50 }
 0x336   : > { %v3001_v23 = vmul.f32 %v2969_v11, %v1625_v15 }
 0x337   : > { %v2329_v44 = vsel %vm2328_vm13, %v3421_v56, %v2325_v3 }
 0x338   : > { %v3033_v37 = vmul.f32 %v3001_v23, %v5500_v7  ;;  %v2334_v62 = vsel %vm2331_vm10, %v2333_v8, %v2329_v44 }
 0x339   : > { %v2335_v14 = vmul.f32 %v2334_v62, %v2310_v1 }
 0x33a   : > { %v3065_v47 = vadd.f32 %v3459_v40, %v3033_v37 }
 0x33b   : > { %v3259_v2 = vclamps-f32 %v2335_v14, 1.0 }
 0x33c   : > { %3097 = vst.msk [vmem:[%s4754_s25 + $0xf8] sm:$0xff] %vm311_vm0, %v3065_v47 }
 0x33d   : > { %v2954_v39 = vadd.f32 1.0, %v3259_v2 }
 0x33f   : > { %v2986_v36 = vmul.f32 %v2954_v39, %v1610_v63 }
 0x341   : > { %v3018_v24 = vmul.f32 %v2986_v36, %v5557_v55 }
 0x343   : > { %v3050_v7 = vadd.f32 %v3460_v13, %v3018_v24 }
 0x345   : > { %3082 = vst.msk [vmem:[%s4754_s25 + $0x80] sm:$0xff] %vm311_vm0, %v3050_v7 }
 0x346 PF: > { %s16_s21 = sadd.s32 1, %s3467_s21  }
 0x347   : > { %p13_p4 = scmp.ge.s32.totalorder %s16_s21, 4  }
 0x349   :  { %15 = sbr.rel (!%p13_p4) target bundleno = 1 (0x1), region = 77 }

// kernel: safm_block_forward.3
= control target key start
LH: loop header
LB: loop body
LE: loop exit
PB: predicated region body
PF: predicated region fallthrough
CT: control target
= control target key end

     0   :  { %s4177_s30 = smov 0   ;;  %s4179_s10 = smov 0   ;;  %s6306_s0 = inlined_call_operand.vmem [shape: f32[512,16], index: 0, kind: input, shape index: {}, may-alias: {0,1,2}]   ;;  %s6307_s1 = inlined_call_operand.vmem [shape: f32[512,16], index: 1, kind: input, shape index: {}, may-alias: {0,1,2}]   ;;  %s6308_s2 = inlined_call_operand.vmem [shape: f32[512,16], index: 2, kind: input, shape index: {}, may-alias: {0,1,2}]   ;;  %s6309_s3 = inlined_call_operand.vmem [shape: f32[1,16], index: 3, kind: input, shape index: {}]   ;;  %s6310_s4 = inlined_call_operand.vmem [shape: f32[1,16], index: 4, kind: input, shape index: {}]   ;;  %s6311_s5 = inlined_call_operand.vmem [shape: f32[144,32], index: 5, kind: input, shape index: {}]   ;;  %s6312_s6 = inlined_call_operand.vmem [shape: f32[1,32], index: 6, kind: input, shape index: {}]   ;;  %s6313_s7 = inlined_call_operand.vmem [shape: f32[32,16], index: 7, kind: input, shape index: {}]   ;;  %s6314_s8 = inlined_call_operand.vmem [shape: f32[1,16], index: 8, kind: input, shape index: {}]   ;;  %s6315_s9 = inlined_call_operand.vmem [shape: f32[512,16], index: 9, kind: output, shape index: {}]  }
   0x1   :  { %s4181_s11 = smov 0   ;;  %s4183_s12 = smov 0  }
   0x2   :  { %s4185_s13 = smov 0  }
   0x3 LB: > { %s28_s14 = sadd.s32 1, %s4116_s11  ;;  %s31_s15 = sadd.s32 1, %s4120_s12  ;;  %s4124_s13 = sphi %s4185_s13, %s19_s13   ;;  %s4120_s12 = sphi %s4183_s12, %s6437_s12   ;;  %s4116_s11 = sphi %s4181_s11, %s6436_s11   ;;  %s4112_s10 = sphi %s4179_s10, %s6435_s10   ;;  %s4108_s30 = sphi %s4177_s30, %s6434_s30  }
   0x4   : > { %p29_p0 = scmp.ge.s32.totalorder %s28_s14, 2  ;;  %p3751_p1 = scmp.ge.s32.totalorder %s4124_s13, 1 }
   0x5   : > { %p382_p2 = scmp.lt.s32.totalorder %s4124_s13, 5 }
   0x6   : > { %s6439_s14 = smov (%p29_p0, %s28_s14), 0  ;;  %s6441_s15 = smov (!%p29_p0, %s31_s15), %s4120_s12 }
   0x7   : > { %p383_p3 = pnand %p3751_p1, %p382_p2  ;;  %p33_p4 = scmp.ge.s32.totalorder %s6441_s15, 2 }
   0x9   : > { %s6443_s15 = smov (%p33_p4, %s6441_s15), 0  ;;  %386 = sbr.rel (%p383_p3) target bundleno = 1064 (0x428), region = 56 }
   0xe   : > { %s3752_s16 = sshll.u32 %s4112_s10, 1  ;;  %s3756_s18 = sshll.u32 %s4108_s30, 3  ;;  %vm526_vm0 = vcmask 130048   ;;  %v4126_v26 = vmov 16.0  }
   0xf   : > { %s445_s17 = sadd.s32 %s4108_s30, %s3752_s16  ;;  %s3757_s20 = sadd.s32 4294967295, %s3756_s18  ;;  %3994 = vrcp.f32 %v4126_v26 }
  0x10   : > { %s3753_s19 = sshll.u32 %s445_s17, 4  ;;  %p457_p6 = scmp.gt.s32.totalorder %s3757_s20, 0 }
  0x11   : > { %p447_p5 = scmp.lt.s32.totalorder %s3753_s19, 63  ;;  %s3755_s21 = sshll.u32 %s4112_s10, 4 }
  0x12   : > { %s6447_s20 = smov (!%p457_p6, %s3757_s20), 0  ;;  %p500_p10 = scmp.gt.s32.totalorder %s4108_s30, 0 }
  0x13   : > { %s6445_s19 = smov (!%p447_p5, %s3753_s19), 63  ;;  %s459_s26 = sadd.s32 %s3755_s21, %s6447_s20 }
  0x14   : > { %s3754_s22 = sshll.u32 %s6445_s19, 3  ;;  %s3758_s27 = sshll.u32 %s459_s26, 1 }
  0x15   : > { %s4225_s25 = scalar_lea.vmem %s6306_s0, %s3754_s22  ;;  %p461_p7 = scmp.lt.s32.totalorder %s3758_s27, 63  ;;  %v3995_v27 = vpop.eup %3994 }
  0x16   : > { %v513_v0 = vld [vmem:[%s4225_s25 + $0x28] sm:$0xff]  ;;  %v4232_v2 = vld [vmem:[%s4225_s25 + $0x40] sm:$0xff]  ;;  %v514_v4 = vld [vmem:[%s4225_s25 + $0x30] sm:$0xff]  ;;  %v534_v28 = vmul.f32 16.0, %v3995_v27  ;;  %vm538_vm1 = vweird.f32 %v3995_v27  ;;  %s474_s20 = sadd.s32 8, %s3756_s18  ;;  %p503_p11 = scmp.lt.s32.totalorder %s4108_s30, 1 }
  0x17   : > { %v608_v1 = vsel %vm526_vm0, %v513_v0, 0.0  ;;  %v617_v3 = vsel %vm526_vm0, %v4232_v2, 0.0  ;;  %s6449_s27 = smov (!%p461_p7, %s3758_s27), 63  ;;  %v611_v5 = vsel %vm526_vm0, %v514_v4, 0.0  ;;  %v515_v10 = vld [vmem:[%s4225_s25 + $0x38] sm:$0xff]  ;;  %v4248_v11 = vld [vmem:[%s4225_s25 + $0x48] sm:$0xff] }
  0x18   : > { %609 = vadd.xlane.f32.xlu0 %v608_v1  ;;  %618 = vadd.xlane.f32.xlu2 %v617_v3  ;;  %s3759_s28 = sshll.u32 %s6449_s27, 3  ;;  %v4251_v12 = vld [vmem:[%s4225_s25 + $0x50] sm:$0xff]  ;;  %v614_v13 = vsel %vm526_vm0, %v515_v10, 0.0  ;;  %v620_v14 = vsel %vm526_vm0, %v4248_v11, 0.0  ;;  %v4259_v16 = vld [vmem:[%s4225_s25] sm:$0xff]  ;;  %v4262_v17 = vld [vmem:[%s4225_s25 + $0x8] sm:$0xff] }
  0x19   : > { %s464_s17 = scalar_lea.vmem %s6307_s1, %s3759_s28  ;;  %v623_v15 = vsel %vm526_vm0, %v4251_v12, 0.0  ;;  %v4265_v18 = vld [vmem:[%s4225_s25 + $0x10] sm:$0xff]  ;;  %v593_v19 = vsel %vm526_vm0, %v4259_v16, 0.0  ;;  %v596_v20 = vsel %vm526_vm0, %v4262_v17, 0.0  ;;  %v4274_v22 = vld [vmem:[%s4225_s25 + $0x58] sm:$0xff]  ;;  %v4277_v23 = vld [vmem:[%s4225_s25 + $0x60] sm:$0xff] }
  0x1a   : > { %v524_v6 = vld [vmem:[%s464_s17] sm:$0xff]  ;;  %v4241_v7 = vld [vmem:[%s464_s17 + $0x8] sm:$0xff]  ;;  %v599_v21 = vsel %vm526_vm0, %v4265_v18, 0.0  ;;  %v626_v24 = vsel %vm526_vm0, %v4274_v22, 0.0  ;;  %v629_v25 = vsel %vm526_vm0, %v4277_v23, 0.0  ;;  %v535_v29 = vsub.f32 1.0, %v534_v28 }
  0x1b   : > { %v527_v8 = vsel %vm526_vm0, %v524_v6, 0.0  ;;  %v530_v9 = vsel %vm526_vm0, %v4241_v7, 0.0  ;;  %v4294_v44 = vld [vmem:[%s4225_s25 + $0x18] sm:$0xff]  ;;  %v4309_v54 = vld [vmem:[%s4225_s25 + $0x68] sm:$0xff]  ;;  %p475_p8 = scmp.lt.s32.totalorder %s474_s20, 15 }
  0x1c   : > { %528 = vadd.xlane.f32.xlu1 %v527_v8  ;;  %v536_v30 = vmul.f32 %v3995_v27, %v535_v29  ;;  %v602_v46 = vsel %vm526_vm0, %v4294_v44, 0.0  ;;  %v632_v61 = vsel %vm526_vm0, %v4309_v54, 0.0  ;;  %s4445_s10 = scalar_select %p500_p10, 1, 0 }
  0x1d   : > { %s6451_s20 = smov (!%p475_p8, %s474_s20), 15 }
  0x1e   : > { %v537_v31 = vadd.f32 %v3995_v27, %v536_v30  ;;  %s477_s23 = sadd.s32 %s3755_s21, %s6451_s20  ;;  %s502_s28 = scvt.s32.f32 %s4445_s10 }
  0x1f   : > { %s3762_s24 = sshll.u32 %s477_s23, 1 }
  0x20   : > { %612 = vadd.xlane.f32.xlu0 %v611_v5  ;;  %531 = vadd.xlane.f32.xlu2 %v530_v9  ;;  %v4283_v32 = vsel %vm538_vm1, %v3995_v27, %v537_v31  ;;  %p479_p9 = scmp.lt.s32.totalorder %s3762_s24, 63 }
  0x21   : > { %s504_s21 = scalar_select %p503_p11, 1, 0 }
  0x22   : > { %s6453_s24 = smov (!%p479_p9, %s3762_s24), 63 }
  0x23   : > { %s3763_s29 = sshll.u32 %s6453_s24, 3  ;;  %s505_s30 = scvt.s32.f32 %s504_s21 }
  0x24   : > { %615 = vadd.xlane.f32.xlu1 %v614_v13  ;;  %s4465_s27 = scalar_lea.vmem %s6308_s2, %s3763_s29 }
  0x28   : > { %621 = vadd.xlane.f32.xlu0 %v620_v14  ;;  %624 = vadd.xlane.f32.xlu2 %v623_v15 }
  0x2c   : > { %594 = vadd.xlane.f32.xlu1 %v593_v19 }
  0x30   : > { %597 = vadd.xlane.f32.xlu0 %v596_v20  ;;  %600 = vadd.xlane.f32.xlu2 %v599_v21 }
  0x34   : > { %627 = vadd.xlane.f32.xlu1 %v626_v24 }
  0x38   : > { %630 = vadd.xlane.f32.xlu2 %v629_v25 }
  0x8b   : > { %v610_v33 = vpop.xlane.xlu0 %609  ;;  %v619_v35 = vpop.xlane.xlu2 %618 }
  0x8c   : > { %v646_v34 = vmul.f32 %v610_v33, %v4283_v32  ;;  %v649_v52 = vmul.f32 %v619_v35, %v4283_v32 }
  0x8e   : > { %v4286_v36 = vsub.f32 %v513_v0, %v646_v34  ;;  %v4316_v58 = vsub.f32 %v4232_v2, %v649_v52 }
  0x8f   : > { %v529_v39 = vpop.xlane.xlu1 %528 }
  0x90   : > { %v678_v37 = vmul.f32 %v4286_v36, %v4286_v36  ;;  %v540_v43 = vmul.f32 %v4283_v32, %v529_v39  ;;  %v681_v2 = vmul.f32 %v4316_v58, %v4316_v58 }
  0x92   : > { %v704_v38 = vsel %vm526_vm0, %v678_v37, 0.0  ;;  %v4302_v48 = vsub.f32 %v524_v6, %v540_v43  ;;  %v713_v8 = vsel %vm526_vm0, %v681_v2, 0.0 }
  0x93   : > { %v613_v40 = vpop.xlane.xlu0 %612  ;;  %705 = vadd.xlane.f32.xlu0 %v704_v38  ;;  %v532_v42 = vpop.xlane.xlu2 %531 }
  0x94   : > { %v647_v41 = vmul.f32 %v613_v40, %v4283_v32  ;;  %v541_v53 = vmul.f32 %v4283_v32, %v532_v42  ;;  %v544_v55 = vmul.f32 %v4302_v48, %v4302_v48 }
  0x96   : > { %v4296_v45 = vsub.f32 %v514_v4, %v647_v41  ;;  %v4321_v60 = vsub.f32 %v4241_v7, %v541_v53  ;;  %v546_v63 = vsel %vm526_vm0, %v544_v55, 0.0  ;;  %v4335_v7 = vld [vmem:[%s4225_s25 + $0x20] sm:$0xff] }
  0x97   : > { %v616_v50 = vpop.xlane.xlu1 %615  ;;  %v605_v19 = vsel %vm526_vm0, %v4335_v7, 0.0 }
  0x98   : > { %v679_v47 = vmul.f32 %v4296_v45, %v4296_v45  ;;  %v648_v51 = vmul.f32 %v616_v50, %v4283_v32  ;;  %v545_v5 = vmul.f32 %v4321_v60, %v4321_v60 }
  0x9a   : > { %v707_v49 = vsel %vm526_vm0, %v679_v47, 0.0  ;;  %v4313_v56 = vsub.f32 %v515_v10, %v648_v51  ;;  %v549_v13 = vsel %vm526_vm0, %v545_v5, 0.0 }
  0x9b   : > { %603 = vadd.xlane.f32.xlu0 %v602_v46  ;;  %708 = vadd.xlane.f32.xlu1 %v707_v49  ;;  %v625_v57 = vpop.xlane.xlu2 %624  ;;  %v622_v62 = vpop.xlane.xlu0 %621 }
  0x9c   : > { %v680_v59 = vmul.f32 %v4313_v56, %v4313_v56  ;;  %v651_v4 = vmul.f32 %v625_v57, %v4283_v32  ;;  %v650_v6 = vmul.f32 %v622_v62, %v4283_v32 }
  0x9e   : > { %v710_v0 = vsel %vm526_vm0, %v680_v59, 0.0  ;;  %v4342_v10 = vsub.f32 %v4251_v12, %v651_v4  ;;  %v4346_v15 = vsub.f32 %v4248_v11, %v650_v6  ;;  %v1292_v4 = vld [vmem:[%s6311_s5 + $0x18] sm:$0xff] }
  0x9f   : > { %711 = vadd.xlane.f32.xlu2 %v710_v0  ;;  %v595_v1 = vpop.xlane.xlu1 %594  ;;  %3947 = vmatpush.msra.mxu3 %v1292_v4 }
  0xa0   : > { %v641_v3 = vmul.f32 %v595_v1, %v4283_v32  ;;  %v683_v25 = vmul.f32 %v4342_v10, %v4342_v10  ;;  %v682_v26 = vmul.f32 %v4346_v15, %v4346_v15  ;;  %1583 = vmatpush.msra.mxu1 %v1292_v4 }
  0xa2   : > { %v4339_v9 = vsub.f32 %v4259_v16, %v641_v3  ;;  %v719_v30 = vsel %vm526_vm0, %v683_v25, 0.0  ;;  %v716_v33 = vsel %vm526_vm0, %v682_v26, 0.0 }
  0xa3   : > { %633 = vadd.xlane.f32.xlu0 %v632_v61  ;;  %547 = vadd.xlane.f32.xlu1 %v546_v63  ;;  %v601_v14 = vpop.xlane.xlu2 %600  ;;  %v598_v20 = vpop.xlane.xlu0 %597 }
  0xa4   : > { %v673_v16 = vmul.f32 %v4339_v9, %v4339_v9  ;;  %v643_v24 = vmul.f32 %v601_v14, %v4283_v32  ;;  %v642_v11 = vmul.f32 %v598_v20, %v4283_v32  ;;  %v1048_v14 = vlaneseq }
  0xa6   : > { %v689_v27 = vsel %vm526_vm0, %v673_v16, 0.0  ;;  %v4364_v29 = vsub.f32 %v4265_v18, %v643_v24  ;;  %v4368_v31 = vsub.f32 %v4262_v17, %v642_v11  ;;  %v1291_v16 = vld [vmem:[%s6311_s5 + $0x10] sm:$0xff]  ;;  %v4439_v11 = vld [vmem:[%s6309_s3] ss:$0 sm:$0xff] }
  0xa7   : > { %714 = vadd.xlane.f32.xlu2 %v713_v8  ;;  %v628_v21 = vpop.xlane.xlu1 %627  ;;  %v4413_v8 = vld [vmem:[%s4225_s25 + $0x70] sm:$0xff]  ;;  %3948 = vmatpush.msra.mxu3 %v1291_v16 }
  0xa8   : > { %v652_v12 = vmul.f32 %v628_v21, %v4283_v32  ;;  %v674_v37 = vmul.f32 %v4368_v31, %v4368_v31  ;;  %1584 = vmatpush.msra.mxu1 %v1291_v16 }
  0xaa   : > { %v4361_v28 = vsub.f32 %v4274_v22, %v652_v12  ;;  %v675_v22 = vmul.f32 %v4364_v29, %v4364_v29  ;;  %v692_v40 = vsel %vm526_vm0, %v674_v37, 0.0 }
  0xab   : > { %550 = vadd.xlane.f32.xlu0 %v549_v13  ;;  %606 = vadd.xlane.f32.xlu1 %v605_v19  ;;  %v631_v34 = vpop.xlane.xlu2 %630  ;;  %v1290_v13 = vld [vmem:[%s6311_s5 + $0x8] sm:$0xff] }
  0xac   : > { %v684_v35 = vmul.f32 %v4361_v28, %v4361_v28  ;;  %v653_v18 = vmul.f32 %v631_v34, %v4283_v32  ;;  %v695_v38 = vsel %vm526_vm0, %v675_v22, 0.0  ;;  %3945 = vmatpush.msra.mxu2 %v1290_v13  ;;  %1438 = vmatpush.msra.mxu0 %v1290_v13  ;;  %v4453_v34 = vshrl.u32 %v1048_v14, 7 }
  0xae   : > { %v722_v17 = vsel %vm526_vm0, %v684_v35, 0.0  ;;  %v4381_v39 = vsub.f32 %v4277_v23, %v653_v18  ;;  %v4458_v35 = vld [vmem:[%s6310_s4] ss:$0 sm:$0xff] }
  0xaf   : > { %690 = vadd.xlane.f32.xlu2 %v689_v27  ;;  %v635_v27 = vsel %vm526_vm0, %v4413_v8, 0.0 }
  0xb0   : > { %v685_v41 = vmul.f32 %v4381_v39, %v4381_v39 }
  0xb2   : > { %v725_v42 = vsel %vm526_vm0, %v685_v41, 0.0 }
  0xb3   : > { %720 = vadd.xlane.f32.xlu0 %v719_v30  ;;  %717 = vadd.xlane.f32.xlu1 %v716_v33 }
  0xb7   : > { %723 = vadd.xlane.f32.xlu2 %v722_v17 }
  0xbb   : > { %696 = vadd.xlane.f32.xlu0 %v695_v38  ;;  %693 = vadd.xlane.f32.xlu1 %v692_v40  ;;  %v4468_v40 = vld [vmem:[%s4225_s25 + $0x78] sm:$0xff] }
  0xc3   : > { %726 = vadd.xlane.f32.xlu1 %v725_v42 }
 0x106   : > { %v706_v43 = vpop.xlane.xlu0 %705 }
 0x107   : > { %v742_v46 = vmul.f32 %v706_v43, %v4283_v32 }
 0x109   : > { %v758_v23 = vadd.f32 1e-06, %v742_v46 }
 0x10b   : > { %3996 = vrsqrt.f32 %v758_v23  ;;  %vm825_vm3 = vweird.f32 %v758_v23 }
 0x10e   : > { %v604_v47 = vpop.xlane.xlu0 %603  ;;  %v709_v49 = vpop.xlane.xlu1 %708 }
 0x10f   : > { %v644_v50 = vmul.f32 %v604_v47, %v4283_v32  ;;  %v743_v51 = vmul.f32 %v709_v49, %v4283_v32  ;;  %v4477_v47 = vld [vmem:[%s4465_s27] sm:$0xff]  ;;  %v4480_v49 = vadd.s32 64, %v4453_v34 }
 0x111   : > { %v3997_v52 = vpop.eup %3996  ;;  %v4395_v53 = vsub.f32 %v4294_v44, %v644_v50  ;;  %v4397_v55 = vadd.f32 1e-06, %v743_v51 }
 0x112   : > { %v820_v57 = vmul.f32 %v3997_v52, %v758_v23  ;;  %v712_v0 = vpop.xlane.xlu2 %711  ;;  %vm826_vm2 = vweird.f32 %v3997_v52 }
 0x113   : > { %3998 = vrsqrt.f32 %v4397_v55  ;;  %v676_v59 = vmul.f32 %v4395_v53, %v4395_v53  ;;  %v744_v44 = vmul.f32 %v712_v0, %v4283_v32  ;;  %vm827_vm4 = vmor %vm825_vm3, %vm826_vm2  ;;  %vm835_vm6 = vweird.f32 %v4397_v55 }
 0x114   : > { %v821_v61 = vmul.f32 %v3997_v52, %v820_v57 }
 0x115   : > { %v698_v62 = vsel %vm526_vm0, %v676_v59, 0.0  ;;  %v4420_v20 = vadd.f32 1e-06, %v744_v44  ;;  %v638_v59 = vsel %vm526_vm0, %v4468_v40, 0.0 }
 0x116   : > { %v822_v63 = vmul.f32 0.5, %v821_v61  ;;  %v634_v1 = vpop.xlane.xlu0 %633  ;;  %699 = vadd.xlane.f32.xlu2 %v698_v62  ;;  %v548_v3 = vpop.xlane.xlu1 %547 }
 0x117   : > { %v654_v2 = vmul.f32 %v634_v1, %v4283_v32  ;;  %v552_v6 = vmul.f32 %v548_v3, %v4283_v32  ;;  %4000 = vrsqrt.f32 %v4420_v20  ;;  %v4503_v1 = vstv %s502_s28  ;;  %s6218_s28 = scalar_lea.vmem %s6315_s9, %s3754_s22 }
 0x118   : > { %v823_v5 = vsub.f32 1.5, %v822_v63  ;;  %v1125_v3 = vand.u32 15, %v4480_v49  ;;  %vm845_vm8 = vweird.f32 %v4420_v20 }
 0x119   : > { %v4418_v19 = vpop.eup %3998  ;;  %v4423_v21 = vsub.f32 %v4309_v54, %v654_v2  ;;  %v4430_v25 = vadd.f32 1e-06, %v552_v6  ;;  %v1289_v54 = vld [vmem:[%s6311_s5] sm:$0xff] }
 0x11a   : > { %v824_v12 = vmul.f32 %v3997_v52, %v823_v5  ;;  %v830_v24 = vmul.f32 %v4418_v19, %v4397_v55  ;;  %3946 = vmatpush.msra.mxu2 %v1289_v54  ;;  %1439 = vmatpush.msra.mxu0 %v1289_v54  ;;  %v715_v17 = vpop.xlane.xlu2 %714  ;;  %vm836_vm5 = vweird.f32 %v4418_v19  ;;  %v995_v55 = vsel %vm526_vm0, %v4477_v47, 0.0 }
 0x11b   : > { %v686_v26 = vmul.f32 %v4423_v21, %v4423_v21  ;;  %4002 = vrsqrt.f32 %v4430_v25  ;;  %vm837_vm7 = vmor %vm835_vm6, %vm836_vm5  ;;  %vm562_vm10 = vweird.f32 %v4430_v25  ;;  %vm4573_vm2 = vcmp.ne.s32.totalorder %v1125_v3, 0 }
 0x11c   : > { %v828_v30 = vsel %vm827_vm4, %v3997_v52, %v824_v12  ;;  %v831_v33 = vmul.f32 %v4418_v19, %v830_v24 }
 0x11d   : > { %v934_v22 = vmul.f32 %v828_v30, %v4286_v36  ;;  %v728_v18 = vsel %vm526_vm0, %v686_v26, 0.0  ;;  %v745_v36 = vmul.f32 %v715_v17, %v4283_v32  ;;  %v4482_v50 = vpop.eup %4000 }
 0x11e   : > { %v832_v37 = vmul.f32 0.5, %v831_v33  ;;  %729 = vadd.xlane.f32.xlu0 %v728_v18  ;;  %v551_v38 = vpop.xlane.xlu0 %550  ;;  %636 = vadd.xlane.f32.xlu2 %v635_v27  ;;  %v607_v43 = vpop.xlane.xlu1 %606  ;;  %v840_v63 = vmul.f32 %v4482_v50, %v4420_v20  ;;  %vm846_vm9 = vweird.f32 %v4482_v50 }
 0x11f   : > { %v950_v41 = vmul.f32 %v4439_v11, %v934_v22  ;;  %v553_v42 = vmul.f32 %v551_v38, %v4283_v32  ;;  %v645_v23 = vmul.f32 %v607_v43, %v4283_v32  ;;  %v4485_v52 = vadd.f32 1e-06, %v745_v36  ;;  %vm4535_vm13 = vmor %vm845_vm8, %vm846_vm9 }
 0x120   : > { %v833_v46 = vsub.f32 1.5, %v832_v37 }
 0x121   : > { %v966_v51 = vadd.f32 %v4458_v35, %v950_v41  ;;  %v4487_v57 = vadd.f32 1e-06, %v553_v42  ;;  %v4491_v61 = vpop.eup %4002  ;;  %v4498_v0 = vsub.f32 %v4335_v7, %v645_v23  ;;  %4004 = vrsqrt.f32 %v4485_v52 }
 0x122   : > { %v834_v62 = vmul.f32 %v4418_v19, %v833_v46  ;;  %v557_v44 = vmul.f32 %v4491_v61, %v4430_v25  ;;  %v841_v7 = vmul.f32 %v4482_v50, %v840_v63  ;;  %vm563_vm11 = vweird.f32 %v4491_v61  ;;  %v691_v14 = vpop.xlane.xlu2 %690 }
 0x123   : > { %982 = vst.msk [vmem:[#allocation2 + $0x40] sm:$0xff] %vm526_vm0, %v966_v51  ;;  %4006 = vrsqrt.f32 %v4487_v57  ;;  %v677_v6 = vmul.f32 %v4498_v0, %v4498_v0  ;;  %v737_v12 = vmul.f32 %v691_v14, %v4283_v32  ;;  %vm855_vm12 = vweird.f32 %v4485_v52  ;;  %vm564_vm15 = vmor %vm562_vm10, %vm563_vm11 }
 0x124   : > { %v838_v2 = vsel %vm837_vm7, %v4418_v19, %v834_v62  ;;  %v558_v5 = vmul.f32 %v4491_v61, %v557_v44  ;;  %v842_v13 = vmul.f32 0.5, %v841_v7  ;;  %vm572_vm14 = vweird.f32 %v4487_v57 }
 0x125   : > { %v935_v4 = vmul.f32 %v838_v2, %v4296_v45  ;;  %v701_v27 = vsel %vm526_vm0, %v677_v6, 0.0  ;;  %v4539_v17 = vadd.f32 1e-06, %v737_v12  ;;  %v1069_v23 = vand.u32 15, %v4453_v34 }
 0x126   : > { %639 = vadd.xlane.f32.xlu0 %v638_v59  ;;  %v721_v19 = vpop.xlane.xlu0 %720  ;;  %v559_v45 = vmul.f32 0.5, %v558_v5  ;;  %v718_v54 = vpop.xlane.xlu1 %717  ;;  %v843_v26 = vsub.f32 1.5, %v842_v13  ;;  %702 = vadd.xlane.f32.xlu1 %v701_v27  ;;  %v4567_v59 = vadd.s32 80, %v4453_v34  ;;  %v6328_v44 = vmov 0 }
 0x127   : > { %v951_v16 = vmul.f32 %v4439_v11, %v935_v4  ;;  %v747_v24 = vmul.f32 %v721_v19, %v4283_v32  ;;  %v746_v30 = vmul.f32 %v718_v54, %v4283_v32  ;;  %v4528_v33 = vpop.eup %4004  ;;  %4008 = vrsqrt.f32 %v4539_v17 }
 0x128   : > { %v560_v37 = vsub.f32 1.5, %v559_v45  ;;  %v844_v36 = vmul.f32 %v4482_v50, %v843_v26  ;;  %v850_v42 = vmul.f32 %v4528_v33, %v4485_v52  ;;  %vm856_vm1 = vweird.f32 %v4528_v33 }
 0x129   : > { %v967_v22 = vadd.f32 %v4458_v35, %v951_v16  ;;  %v4541_v38 = vadd.f32 1e-06, %v747_v24  ;;  %v4543_v41 = vpop.eup %4006  ;;  %v4549_v20 = vadd.f32 1e-06, %v746_v30  ;;  %v6329_v44 = vsel %vm4573_vm2, 4294967295, %v6328_v44  ;;  %vm4593_vm6 = vmor %vm855_vm12, %vm856_vm1 }
 0x12a   : > { %v561_v43 = vmul.f32 %v4491_v61, %v560_v37  ;;  %v567_v46 = vmul.f32 %v4543_v41, %v4487_v57  ;;  %v848_v49 = vsel %vm4535_vm13, %v4482_v50, %v844_v36  ;;  %v851_v51 = vmul.f32 %v4528_v33, %v850_v42  ;;  %v724_v7 = vpop.xlane.xlu2 %723 }
 0x12b   : > { %983 = vst.msk [vmem:[#allocation2 + $0x48] sm:$0xff] %vm526_vm0, %v967_v22  ;;  %4010 = vrsqrt.f32 %v4541_v38  ;;  %v936_v62 = vmul.f32 %v848_v49, %v4313_v56  ;;  %vm573_vm3 = vweird.f32 %v4543_v41  ;;  %v748_v5 = vmul.f32 %v724_v7, %v4283_v32 }
 0x12c   : > { %v565_v63 = vsel %vm564_vm15, %v4491_v61, %v561_v43  ;;  %v568_v50 = vmul.f32 %v4543_v41, %v567_v46  ;;  %v852_v2 = vmul.f32 0.5, %v851_v51  ;;  %4012 = vrsqrt.f32 %v4549_v20  ;;  %vm4608_vm8 = vmor %vm572_vm14, %vm573_vm3 }
 0x12d   : > { %v576_v25 = vmul.f32 %v565_v63, %v4302_v48  ;;  %v952_v61 = vmul.f32 %v4439_v11, %v936_v62  ;;  %vm775_vm4 = vweird.f32 %v4539_v17  ;;  %vm875_vm5 = vweird.f32 %v4541_v38  ;;  %v4586_v48 = vpop.eup %4008 }
 0x12e   : > { %996 = vadd.xlane.f32.xlu0 %v995_v55  ;;  %v697_v56 = vpop.xlane.xlu0 %696  ;;  %v569_v4 = vmul.f32 0.5, %v568_v50  ;;  %v694_v6 = vpop.xlane.xlu1 %693  ;;  %v853_v14 = vsub.f32 1.5, %v852_v2  ;;  %vm865_vm7 = vweird.f32 %v4549_v20  ;;  %v4598_v45 = vadd.f32 1e-06, %v748_v5 }
 0x12f   : > { %v739_v3 = vmul.f32 %v697_v56, %v4283_v32  ;;  %v581_v13 = vmul.f32 %v4439_v11, %v576_v25  ;;  %v968_v55 = vadd.f32 %v4458_v35, %v952_v61  ;;  %v770_v26 = vmul.f32 %v4586_v48, %v4539_v17 }
 0x130   : > { %v570_v16 = vsub.f32 1.5, %v569_v4  ;;  %v854_v54 = vmul.f32 %v4528_v33, %v853_v14  ;;  %4014 = vrsqrt.f32 %v4598_v45  ;;  %v738_v57 = vmul.f32 %v694_v6, %v4283_v32 }
 0x131   : > { %v4600_v12 = vpop.eup %4010  ;;  %v586_v24 = vadd.f32 %v4458_v35, %v581_v13  ;;  %v4614_v27 = vadd.f32 1e-06, %v739_v3  ;;  %984 = vst.msk [vmem:[#allocation2 + $0x50] sm:$0xff] %vm526_vm0, %v968_v55  ;;  %v771_v43 = vmul.f32 %v4586_v48, %v770_v26  ;;  %vm776_vm9 = vweird.f32 %v4586_v48 }
 0x132   : > { %v4616_v30 = vld [vmem:[#allocation2 + $0x48] sm:$0xff]  ;;  %v571_v22 = vmul.f32 %v4543_v41, %v570_v16  ;;  %v870_v18 = vmul.f32 %v4600_v12, %v4541_v38  ;;  %v4626_v37 = vpop.eup %4012  ;;  %v858_v42 = vsel %vm4593_vm6, %v4528_v33, %v854_v54  ;;  %vm876_vm10 = vweird.f32 %v4600_v12  ;;  %vm4663_vm12 = vmor %vm775_vm4, %vm776_vm9 }
 0x133   : > { %3791 = vmatmul.msk.f32.vlgmr.msra.gmra.mxu3 %vm526_vm0, %v4616_v30  ;;  %v589_v36 = vmul.f32 %v4503_v1, %v586_v24  ;;  %v937_v46 = vmul.f32 %v858_v42, %v4316_v58  ;;  %v860_v62 = vmul.f32 %v4626_v37, %v4549_v20  ;;  %v4641_v63 = vld [vmem:[#allocation2 + $0x47] sm:$0xff]  ;;  %v772_v50 = vmul.f32 0.5, %v771_v43  ;;  %vm4675_vm13 = vmor %vm875_vm5, %vm876_vm10 }
 0x134   : > { %v575_v49 = vsel %vm4608_vm8, %v4543_v41, %v571_v22  ;;  %v871_v51 = vmul.f32 %v4600_v12, %v870_v18  ;;  %4016 = vrsqrt.f32 %v4614_v27  ;;  %vm866_vm11 = vweird.f32 %v4626_v37 }
 0x135   : > { %591 = vst.msk [vmem:[#allocation2 + $0x8] sm:$0xff] %vm526_vm0, %v589_v36  ;;  %v577_v33 = vmul.f32 %v575_v49, %v4321_v60  ;;  %v953_v58 = vmul.f32 %v4439_v11, %v937_v46  ;;  %v861_v41 = vmul.f32 %v4626_v37, %v860_v62  ;;  %v773_v56 = vsub.f32 1.5, %v772_v50  ;;  %vm4705_vm1 = vmor %vm865_vm7, %vm866_vm11 }
 0x136   : > { %v872_v25 = vmul.f32 0.5, %v871_v51  ;;  %v727_v2 = vpop.xlane.xlu1 %726  ;;  %v4651_v61 = vadd.f32 1e-06, %v738_v57  ;;  %v1368_v60 = vsel %vm4573_vm2, %v4641_v63, 0.0  ;;  %v4656_v4 = vpop.eup %4014  ;;  %vm4685_vm14 = vcmp.ne.s32.totalorder %v1069_v23, 0 }
 0x137   : > { %v582_v7 = vmul.f32 %v4439_v11, %v577_v33  ;;  %v969_v5 = vadd.f32 %v4458_v35, %v953_v58  ;;  %v862_v13 = vmul.f32 0.5, %v861_v41  ;;  %3775 = vmatmul.msk.f32.vlgmr.msra.gmra.mxu2 %vm526_vm0, %v1368_v60  ;;  %v749_v14 = vmul.f32 %v727_v2, %v4283_v32 }
 0x138   : > { %v873_v6 = vsub.f32 1.5, %v872_v25  ;;  %v774_v19 = vmul.f32 %v4586_v48, %v773_v56  ;;  %v880_v16 = vmul.f32 %v4656_v4, %v4598_v45  ;;  %v4681_v24 = vld [vmem:[#allocation2 + $0x50] sm:$0xff]  ;;  %vm885_vm15 = vweird.f32 %v4598_v45 }
 0x139   : > { %v587_v55 = vadd.f32 %v4458_v35, %v582_v7  ;;  %985 = vst.msk [vmem:[#allocation2 + $0x58] sm:$0xff] %vm526_vm0, %v969_v5  ;;  %v863_v38 = vsub.f32 1.5, %v862_v13  ;;  %4018 = vrsqrt.f32 %v4651_v61  ;;  %v4710_v36 = vadd.f32 1e-06, %v749_v14  ;;  %v4732_v25 = vld [vmem:[#allocation2 + $0x4f] sm:$0xff] }
 0x13a   : > { %v874_v52 = vmul.f32 %v4600_v12, %v873_v6  ;;  %v4695_v26 = vpop.eup %4016  ;;  %v778_v23 = vsel %vm4663_vm12, %v4586_v48, %v774_v19  ;;  %v881_v57 = vmul.f32 %v4656_v4, %v880_v16  ;;  %vm886_vm3 = vweird.f32 %v4656_v4 }
 0x13b   : > { %3792 = vmatmul.msk.f32.gmra.mxu3 %vm526_vm0, %v4681_v24  ;;  %v590_v22 = vmul.f32 %v4503_v1, %v587_v55  ;;  %v929_v42 = vmul.f32 %v778_v23, %v4339_v9  ;;  %v864_v48 = vmul.f32 %v4626_v37, %v863_v38  ;;  %v790_v43 = vmul.f32 %v4695_v26, %v4614_v27  ;;  %vm4741_vm4 = vmor %vm885_vm15, %vm886_vm3 }
 0x13c   : > { %v878_v1 = vsel %vm4675_vm13, %v4600_v12, %v874_v52  ;;  %v1505_v20 = vld [vmem:[#allocation2 + $0x8] sm:$0xff]  ;;  %v882_v51 = vmul.f32 0.5, %v881_v57  ;;  %4020 = vrsqrt.f32 %v4710_v36  ;;  %v1139_v33 = vand.u32 15, %v4567_v59 }
 0x13d   : > { %v1312_v46 = vld [vmem:[#allocation2 + $0x7] sm:$0xff]  ;;  %592 = vst.msk [vmem:[#allocation2 + $0x10] sm:$0xff] %vm526_vm0, %v590_v22  ;;  %v939_v49 = vmul.f32 %v878_v1, %v4342_v10  ;;  %3783 = vmatmul.msk.f32.vlgmr.msra.gmra.mxu1 %vm526_vm0, %v1505_v20  ;;  %v945_v9 = vmul.f32 %v4439_v11, %v929_v42  ;;  %v868_v12 = vsel %vm4705_vm1, %v4626_v37, %v864_v48  ;;  %vm795_vm5 = vweird.f32 %v4614_v27 }
 0x13e   : > { %v791_v62 = vmul.f32 %v4695_v26, %v790_v43  ;;  %v938_v10 = vmul.f32 %v868_v12, %v4346_v15  ;;  %v883_v58 = vsub.f32 1.5, %v882_v51  ;;  %v1360_v41 = vsel %vm4685_vm14, %v1312_v46, 0.0 }
 0x13f   : > { %v955_v50 = vmul.f32 %v4439_v11, %v939_v49  ;;  %v4736_v2 = vpop.eup %4018  ;;  %v961_v7 = vadd.f32 %v4458_v35, %v945_v9  ;;  %vm796_vm6 = vweird.f32 %v4695_v26  ;;  %3776 = vmatmul.msk.f32.gmra.mxu2 %vm526_vm0, %v4732_v25  ;;  %3767 = vmatmul.msk.f32.vlgmr.msra.gmra.mxu0 %vm526_vm0, %v1360_v41  ;;  %vm4776_vm8 = vcmp.ne.s32.totalorder %v1139_v33, 0  ;;  %v1296_v49 = vld [vmem:[%s6311_s5 + $0x38] sm:$0xff] }
 0x140   : > { %v792_v59 = vmul.f32 0.5, %v791_v62  ;;  %v954_v56 = vmul.f32 %v4439_v11, %v938_v10  ;;  %v884_v45 = vmul.f32 %v4656_v4, %v883_v58  ;;  %v780_v60 = vmul.f32 %v4736_v2, %v4651_v61  ;;  %v4755_v5 = vld [vmem:[#allocation2 + $0x58] sm:$0xff]  ;;  %vm4771_vm7 = vmor %vm795_vm5, %vm796_vm6  ;;  %1937 = vmatpush.msrb.mxu3 %v1296_v49 }
 0x141   : > { %v971_v15 = vadd.f32 %v4458_v35, %v955_v50  ;;  %977 = vst.msk [vmem:[#allocation2 + $0x18] sm:$0xff] %vm526_vm0, %v961_v7  ;;  %v6346_v17 = vmov 0  ;;  %v4784_v38 = vld [vmem:[#allocation2 + $0x57] sm:$0xff]  ;;  %v1051_v22 = vadd.s32 16, %v4453_v34  ;;  %vm785_vm9 = vweird.f32 %v4651_v61 }
 0x142   : > { %v793_v3 = vsub.f32 1.5, %v792_v59  ;;  %v4760_v6 = vpop.eup %4020  ;;  %v970_v13 = vadd.f32 %v4458_v35, %v954_v56  ;;  %v888_v14 = vsel %vm4741_vm4, %v4656_v4, %v884_v45  ;;  %v781_v19 = vmul.f32 %v4736_v2, %v780_v60 }
 0x143   : > { %3793 = vmatmul.msk.f32.gmra.mxu3 %vm526_vm0, %v4755_v5  ;;  %987 = vst.msk [vmem:[#allocation2 + $0x68] sm:$0xff] %vm526_vm0, %v971_v15  ;;  %v6347_v17 = vsel %vm4776_vm8, 4294967295, %v6346_v17  ;;  %v940_v16 = vmul.f32 %v888_v14, %v4361_v28  ;;  %v890_v4 = vmul.f32 %v4760_v6, %v4710_v36  ;;  %vm786_vm10 = vweird.f32 %v4736_v2 }
 0x144   : > { %v794_v52 = vmul.f32 %v4695_v26, %v793_v3  ;;  %v1506_v27 = vld [vmem:[#allocation2 + $0x10] sm:$0xff]  ;;  %986 = vst.msk [vmem:[#allocation2 + $0x60] sm:$0xff] %vm526_vm0, %v970_v13  ;;  %v782_v23 = vmul.f32 0.5, %v781_v19  ;;  %vm895_vm11 = vweird.f32 %v4710_v36  ;;  %v1370_v61 = vsel %vm4776_vm8, %v4784_v38, 0.0  ;;  %vm4802_vm12 = vmor %vm785_vm9, %vm786_vm10 }
 0x145   : > { %3784 = vmatmul.msk.f32.gmra.mxu1 %vm526_vm0, %v1506_v27  ;;  %v1313_v28 = vld [vmem:[#allocation2 + $0xf] sm:$0xff]  ;;  %v956_v18 = vmul.f32 %v4439_v11, %v940_v16  ;;  %v891_v42 = vmul.f32 %v4760_v6, %v890_v4  ;;  %vm896_vm13 = vweird.f32 %v4760_v6  ;;  %v1056_v50 = vadd.s32 56, %v4453_v34 }
 0x146   : > { %v798_v57 = vsel %vm4771_vm7, %v4695_v26, %v794_v52  ;;  %v783_v48 = vsub.f32 1.5, %v782_v23  ;;  %v1294_v26 = vld [vmem:[%s6311_s5 + $0x28] sm:$0xff]  ;;  %vm4832_vm15 = vmor %vm895_vm11, %vm896_vm13  ;;  %v1867_v36 = vsel %vm4573_vm2, %v4784_v38, 0.0 }
 0x147   : > { %v931_v1 = vmul.f32 %v798_v57, %v4364_v29  ;;  %v972_v43 = vadd.f32 %v4458_v35, %v956_v18  ;;  %v892_v46 = vmul.f32 0.5, %v891_v42  ;;  %3777 = vmatmul.msk.f32.gmra.mxu2 %vm526_vm0, %v1370_v61  ;;  %3768 = vmatmul.msk.f32.gmra.mxu0 %vm526_vm0, %v1313_v28  ;;  %v1083_v29 = vand.u32 15, %v1051_v22 }
 0x148   : > { %v784_v9 = vmul.f32 %v4736_v2, %v783_v48  ;;  %v4817_v12 = vld [vmem:[#allocation2 + $0x17] sm:$0xff]  ;;  %1776 = vmatpush.msrb.mxu2 %v1294_v26  ;;  %v1118_v13 = vand.u32 15, %v1056_v50  ;;  %v6356_v28 = vmov 0  ;;  %v1058_v18 = vadd.s32 72, %v4453_v34 }
 0x149   : > { %v947_v51 = vmul.f32 %v4439_v11, %v931_v1  ;;  %988 = vst.msk [vmem:[#allocation2 + $0x70] sm:$0xff] %vm526_vm0, %v972_v43  ;;  %v893_v62 = vsub.f32 1.5, %v892_v46  ;;  %v1859_v33 = vsel %vm4685_vm14, %v4817_v12, 0.0  ;;  %v4840_v15 = vld [vmem:[#allocation2 + $0x18] sm:$0xff]  ;;  %vm4842_vm1 = vcmp.ne.s32.totalorder %v1083_v29, 0 }
 0x14a   : > { %v788_v58 = vsel %vm4802_vm12, %v4736_v2, %v784_v9  ;;  %v1061_v2 = vadd.s32 96, %v4453_v34  ;;  %v1362_v19 = vsel %vm4842_vm1, %v4817_v12, 0.0  ;;  %vm4878_vm3 = vcmp.ne.s32.totalorder %v1118_v13, 15  ;;  %v4886_v23 = vld [vmem:[#allocation2 + $0x68] sm:$0xff]  ;;  %v3484_v50 = vld [vmem:[%s6313_s7 + $0x18] sm:$0xff] }
 0x14b   : > { %v963_v10 = vadd.f32 %v4458_v35, %v947_v51  ;;  %v930_v7 = vmul.f32 %v788_v58, %v4368_v31  ;;  %v894_v37 = vmul.f32 %v4760_v6, %v893_v62  ;;  %v4838_v59 = vld [vmem:[#allocation2 + $0x60] sm:$0xff]  ;;  %v1053_v42 = vadd.s32 32, %v4453_v34 }
 0x14c   : > { %v4847_v45 = vld [vmem:[#allocation2 + $0x67] sm:$0xff]  ;;  %3794 = vmatmul.msk.f32.gmra.mxu3 %vm526_vm0, %v4838_v59  ;;  %v4852_v31 = vld [vmem:[#allocation2 + $0x5f] sm:$0xff]  ;;  %v1153_v52 = vand.u32 15, %v1061_v2  ;;  %v1132_v43 = vand.u32 15, %v1058_v18  ;;  %v1063_v26 = vadd.s32 112, %v4453_v34  ;;  %v6358_v51 = vmov 0 }
 0x14d   : > { %979 = vst.msk [vmem:[#allocation2 + $0x28] sm:$0xff] %vm526_vm0, %v963_v10  ;;  %3785 = vmatmul.msk.f32.gmra.mxu1 %vm526_vm0, %v4840_v15  ;;  %v946_v60 = vmul.f32 %v4439_v11, %v930_v7  ;;  %v898_v3 = vsel %vm4832_vm15, %v4760_v6, %v894_v37  ;;  %v1869_v14 = vsel %vm4776_vm8, %v4847_v45, 0.0  ;;  %v4874_v6 = vld [vmem:[#allocation2 + $0x61] sm:$0xff]  ;;  %v1097_v29 = vand.u32 15, %v1053_v42 }
 0x14e   : > { %v941_v55 = vmul.f32 %v898_v3, %v4381_v39  ;;  %v6354_v39 = vmov 0  ;;  %vm4888_vm4 = vcmp.ne.s32.totalorder %v1153_v52, 0  ;;  %vm4921_vm5 = vcmp.ne.s32.totalorder %v1132_v43, 15  ;;  %v1298_v3 = vld [vmem:[%s6311_s5 + $0x48] sm:$0xff] }
 0x14f   : > { %v962_v16 = vadd.f32 %v4458_v35, %v946_v60  ;;  %3778 = vmatmul.msk.f32.gmra.mxu2 %vm526_vm0, %v4852_v31  ;;  %3769 = vmatmul.msk.f32.gmra.mxu0 %vm526_vm0, %v1362_v19  ;;  %v6355_v39 = vsel %vm4878_vm3, 4294967295, %v6354_v39  ;;  %v6357_v28 = vsel %vm4888_vm4, 4294967295, %v6356_v28  ;;  %v1372_v57 = vsel %vm4888_vm4, %v4847_v45, 0.0 }
 0x150   : > { %v957_v4 = vmul.f32 %v4439_v11, %v941_v55  ;;  %v4914_v46 = vld [vmem:[#allocation2 + $0x70] sm:$0xff]  ;;  %v6359_v51 = vsel %vm4921_vm5, 4294967295, %v6358_v51  ;;  %vm4932_vm6 = vcmp.ne.s32.totalorder %v1097_v29, 0  ;;  %v1167_v10 = vand.u32 15, %v1063_v26  ;;  %2082 = vmatpush.msrb.mxu0 %v1298_v3  ;;  %v1293_v3 = vld [vmem:[%s6311_s5 + $0x20] sm:$0xff] }
 0x151   : > { %978 = vst.msk [vmem:[#allocation2 + $0x20] sm:$0xff] %vm526_vm0, %v962_v16  ;;  %v4928_v62 = vld [vmem:[#allocation2 + $0x6f] sm:$0xff]  ;;  %1777 = vmatpush.msrb.mxu2 %v1293_v3 }
 0x152   : > { %v973_v27 = vadd.f32 %v4458_v35, %v957_v4  ;;  %6360 = vst [vmem:[#allocation3_spill] sm:$0xff] %v6359_v51  ;;  %vm4946_vm7 = vcmp.ne.s32.totalorder %v1167_v10, 0 }
 0x154   : > { %989 = vst.msk [vmem:[#allocation2 + $0x78] sm:$0xff] %vm526_vm0, %v973_v27  ;;  %3795 = vmatmul.msk.f32.gmra.mxu3 %vm526_vm0, %v4886_v23  ;;  %v4936_v58 = vld [vmem:[#allocation2 + $0x28] sm:$0xff] }
 0x157   : > { %3779 = vmatmul.msk.f32.gmra.mxu2 %vm526_vm0, %v1372_v57 }
 0x158   : > { %v4901_v1 = vld [vmem:[#allocation2 + $0x27] sm:$0xff]  ;;  %v4905_v61 = vld [vmem:[#allocation2 + $0x1f] sm:$0xff] }
 0x159   : > { %v4903_v48 = vld [vmem:[#allocation2 + $0x20] sm:$0xff]  ;;  %3770 = vmatmul.msk.f32.gmra.mxu0 %vm526_vm0, %v4905_v61  ;;  %v1364_v41 = vsel %vm4932_vm6, %v4901_v1, 0.0 }
 0x15a   : > { %3786 = vmatmul.msk.f32.gmra.mxu1 %vm526_vm0, %v4903_v48 }
 0x15b   : > { %v4917_v49 = vld [vmem:[#allocation2 + $0x71] sm:$0xff] }
 0x15c   : > { %3796 = vmatmul.msk.f32.gmra.mxu3 %vm526_vm0, %v4914_v46  ;;  %v4944_v7 = vld [vmem:[#allocation2 + $0x78] sm:$0xff] }
 0x15d   : > { %v4950_v2 = vld [vmem:[#allocation2 + $0x77] sm:$0xff] }
 0x15e   : > { %v1374_v60 = vsel %vm4946_vm7, %v4950_v2, 0.0 }
 0x15f   : > { %3780 = vmatmul.msk.f32.gmra.mxu2 %vm526_vm0, %v4928_v62 }
 0x161   : > { %3771 = vmatmul.msk.f32.gmra.mxu0 %vm526_vm0, %v1364_v41 }
 0x162   : > { %3787 = vmatmul.msk.f32.gmra.mxu1 %vm526_vm0, %v4936_v58 }
 0x164   : > { %3797 = vmatmul.msk.f32.gmra.mxu3 %vm526_vm0, %v4944_v7 }
 0x167   : > { %3781 = vmatmul.msk.f32.gmra.mxu2 %vm526_vm0, %v1374_v60 }
 0x189   : > { %v700_v13 = vpop.xlane.xlu2 %699 }
 0x18a   : > { %v740_v55 = vmul.f32 %v700_v13, %v4283_v32  ;;  %v1297_v13 = vld [vmem:[%s6311_s5 + $0x40] sm:$0xff] }
 0x18b   : > { %2083 = vmatpush.msrb.mxu0 %v1297_v13 }
 0x18c   : > { %v756_v19 = vadd.f32 1e-06, %v740_v55 }
 0x18e   : > { %4022 = vrsqrt.f32 %v756_v19  ;;  %vm805_vm10 = vweird.f32 %v756_v19 }
 0x191   : > { %v730_v16 = vpop.xlane.xlu0 %729  ;;  %v637_v52 = vpop.xlane.xlu2 %636 }
 0x192   : > { %v750_v4 = vmul.f32 %v730_v16, %v4283_v32  ;;  %v655_v27 = vmul.f32 %v637_v52, %v4283_v32  ;;  %v4981_v52 = vld [vmem:[%s4465_s27 + $0x8] sm:$0xff] }
 0x194   : > { %v4023_v18 = vpop.eup %4022  ;;  %v766_v57 = vadd.f32 1e-06, %v750_v4  ;;  %v4965_v42 = vsub.f32 %v4413_v8, %v655_v27  ;;  %v1295_v8 = vld [vmem:[%s6311_s5 + $0x30] sm:$0xff] }
 0x195   : > { %v800_v43 = vmul.f32 %v4023_v18, %v756_v19  ;;  %1938 = vmatpush.msrb.mxu3 %v1295_v8  ;;  %vm806_vm9 = vweird.f32 %v4023_v18 }
 0x196   : > { %4024 = vrsqrt.f32 %v766_v57  ;;  %v687_v29 = vmul.f32 %v4965_v42, %v4965_v42  ;;  %vm807_vm11 = vmor %vm805_vm10, %vm806_vm9  ;;  %vm905_vm12 = vweird.f32 %v766_v57 }
 0x197   : > { %v801_v26 = vmul.f32 %v4023_v18, %v800_v43 }
 0x198   : > { %v731_v10 = vsel %vm526_vm0, %v687_v29, 0.0 }
 0x199   : > { %v802_v41 = vmul.f32 0.5, %v801_v26  ;;  %v640_v60 = vpop.xlane.xlu0 %639  ;;  %732 = vadd.xlane.f32.xlu1 %v731_v10  ;;  %v703_v43 = vpop.xlane.xlu1 %702 }
 0x19a   : > { %v656_v55 = vmul.f32 %v640_v60, %v4283_v32  ;;  %v741_v10 = vmul.f32 %v703_v43, %v4283_v32 }
 0x19b   : > { %v803_v16 = vsub.f32 1.5, %v802_v41  ;;  %v998_v41 = vsel %vm526_vm0, %v4981_v52, 0.0 }
 0x19c   : > { %v4025_v4 = vpop.eup %4024  ;;  %v4984_v27 = vsub.f32 %v4468_v40, %v656_v55  ;;  %v757_v13 = vadd.f32 1e-06, %v741_v10 }
 0x19d   : > { %v804_v29 = vmul.f32 %v4023_v18, %v803_v16  ;;  %v900_v26 = vmul.f32 %v4025_v4, %v766_v57  ;;  %vm906_vm13 = vweird.f32 %v4025_v4 }
 0x19e   : > { %v688_v60 = vmul.f32 %v4984_v27, %v4984_v27  ;;  %4026 = vrsqrt.f32 %v757_v13  ;;  %vm907_vm15 = vmor %vm905_vm12, %vm906_vm13  ;;  %vm815_vm10 = vweird.f32 %v757_v13 }
 0x19f   : > { %v808_v3 = vsel %vm807_vm11, %v4023_v18, %v804_v29  ;;  %v901_v8 = vmul.f32 %v4025_v4, %v900_v26 }
 0x1a0   : > { %v932_v9 = vmul.f32 %v808_v3, %v4395_v53  ;;  %v734_v40 = vsel %vm526_vm0, %v688_v60, 0.0 }
 0x1a1   : > { %v902_v55 = vmul.f32 0.5, %v901_v8  ;;  %v997_v19 = vpop.xlane.xlu0 %996  ;;  %735 = vadd.xlane.f32.xlu2 %v734_v40  ;;  %999 = vadd.xlane.f32.xlu1 %v998_v41 }
 0x1a2   : > { %v948_v16 = vmul.f32 %v4439_v11, %v932_v9  ;;  %v1001_v43 = vmul.f32 %v997_v19, %v4283_v32  ;;  %v1302_v9 = vld [vmem:[%s6311_s5 + $0x68] sm:$0xff]  ;;  %v1304_v19 = vld [vmem:[%s6311_s5 + $0x78] sm:$0xff] }
 0x1a3   : > { %v903_v22 = vsub.f32 1.5, %v902_v55  ;;  %2404 = vmatpush.msra.mxu2 %v1302_v9  ;;  %2549 = vmatpush.msra.mxu3 %v1304_v19 }
 0x1a4   : > { %v964_v18 = vadd.f32 %v4458_v35, %v948_v16  ;;  %v4997_v29 = vsub.f32 %v4477_v47, %v1001_v43  ;;  %v4027_v10 = vpop.eup %4026  ;;  %v1300_v16 = vld [vmem:[%s6311_s5 + $0x58] sm:$0xff]  ;;  %v1299_v43 = vld [vmem:[%s6311_s5 + $0x50] sm:$0xff] }
 0x1a5   : > { %v904_v53 = vmul.f32 %v4025_v4, %v903_v22  ;;  %v810_v41 = vmul.f32 %v4027_v10, %v757_v13  ;;  %vm816_vm9 = vweird.f32 %v4027_v10  ;;  %2243 = vmatpush.msrb.mxu1 %v1300_v16 }
 0x1a6   : > { %980 = vst.msk [vmem:[#allocation2 + $0x30] sm:$0xff] %vm526_vm0, %v964_v18  ;;  %v1005_v26 = vmul.f32 %v4997_v29, %v4997_v29  ;;  %vm817_vm11 = vmor %vm815_vm10, %vm816_vm9 }
 0x1a7   : > { %v908_v60 = vsel %vm907_vm15, %v4025_v4, %v904_v53  ;;  %v811_v22 = vmul.f32 %v4027_v10, %v810_v41  ;;  %2244 = vmatpush.msrb.mxu1 %v1299_v43  ;;  %v1306_v41 = vld [vmem:[%s6311_s5 + $0x88] sm:$0xff]  ;;  %v1052_v43 = vadd.s32 24, %v4453_v34 }
 0x1a8   : > { %v942_v57 = vmul.f32 %v908_v60, %v4423_v21  ;;  %v1007_v3 = vsel %vm526_vm0, %v1005_v26, 0.0  ;;  %2710 = vmatpush.msra.mxu0 %v1306_v41 }
 0x1a9   : > { %1008 = vadd.xlane.f32.xlu2 %v1007_v3  ;;  %v812_v40 = vmul.f32 0.5, %v811_v22  ;;  %v1650_v3 = vld [vmem:[#allocation2 + $0x9] sm:$0xff]  ;;  %3550 = vmatpush.msra.mxu1 %v3484_v50 }
 0x1aa   : > { %v958_v47 = vmul.f32 %v4439_v11, %v942_v57 }
 0x1ab   : > { %v813_v21 = vsub.f32 1.5, %v812_v40 }
 0x1ac   : > { %v974_v8 = vadd.f32 %v4458_v35, %v958_v47 }
 0x1ad   : > { %v5009_v55 = vld [vmem:[#allocation2 + $0x2f] sm:$0xff]  ;;  %v814_v18 = vmul.f32 %v4027_v10, %v813_v21  ;;  %v5073_v21 = vld [vmem:[#allocation2 + $0x40] sm:$0xff] }
 0x1ae   : > { %v5011_v4 = vld [vmem:[#allocation2 + $0x30] sm:$0xff]  ;;  %990 = vst.msk [vmem:[#allocation2 + $0x80] sm:$0xff] %vm526_vm0, %v974_v8  ;;  %3772 = vmatmul.msk.f32.gmra.mxu0 %vm526_vm0, %v5009_v55 }
 0x1af   : > { %3788 = vmatmul.msk.f32.gmra.mxu1 %vm526_vm0, %v5011_v4  ;;  %v818_v53 = vsel %vm817_vm11, %v4027_v10, %v814_v18  ;;  %v1652_v18 = vld [vmem:[#allocation2 + $0x19] sm:$0xff] }
 0x1b0   : > { %v933_v26 = vmul.f32 %v818_v53, %v4498_v0  ;;  %v1055_v0 = vadd.s32 48, %v4453_v34  ;;  %v1861_v53 = vsel %vm4842_vm1, %v4901_v1, 0.0 }
 0x1b2   : > { %v949_v60 = vmul.f32 %v4439_v11, %v933_v26  ;;  %v1050_v11 = vadd.s32 8, %v4453_v34  ;;  %v1111_v10 = vand.u32 15, %v1055_v0  ;;  %v1653_v26 = vld [vmem:[#allocation2 + $0x21] sm:$0xff]  ;;  %v5105_v0 = vld [vmem:[#allocation2 + $0x29] sm:$0xff] }
 0x1b4   : > { %v965_v13 = vadd.f32 %v4458_v35, %v949_v60  ;;  %v1076_v47 = vand.u32 15, %v1050_v11  ;;  %vm5052_vm12 = vcmp.ne.s32.totalorder %v1111_v10, 0  ;;  %v2317_v35 = vld [vmem:[#allocation2 + $0x5f] sm:$0xff] }
 0x1b5   : > { %v5029_v9 = vld [vmem:[#allocation2 + $0x7f] sm:$0xff] }
 0x1b6   : > { %v5031_v57 = vld [vmem:[#allocation2 + $0x80] sm:$0xff]  ;;  %3782 = vmatmul.msk.f32.gmra.mxu2 %vm526_vm0, %v5029_v9  ;;  %981 = vst.msk [vmem:[#allocation2 + $0x38] sm:$0xff] %vm526_vm0, %v965_v13  ;;  %vm5064_vm13 = vcmp.ne.s32.totalorder %v1076_v47, 15 }
 0x1b7   : > { %3798 = vmatmul.msk.f32.gmra.mxu3 %vm526_vm0, %v5031_v57  ;;  %v2166_v13 = vsel %vm5064_vm13, %v1653_v26, 0.0 }
 0x1bc   : > { %v5196_v38 = vpop.f32.mrf.mxu0 }
 0x1bd   : > { %v5050_v22 = vld [vmem:[#allocation2 + $0x38] sm:$0xff] }
 0x1be   : > { %3799 = vmatmul.msk.f32.vlgmr.msrb.gmra.mxu2 %vm526_vm0, %v1650_v3  ;;  %v5056_v8 = vld [vmem:[#allocation2 + $0x37] sm:$0xff]  ;;  %3789 = vmatmul.msk.f32.gmra.mxu1 %vm526_vm0, %v5050_v22  ;;  %v5077_v16 = vld [vmem:[#allocation2 + $0x3f] sm:$0xff] }
 0x1bf   : > { %3815 = vmatmul.msk.f32.vlgmr.msrb.gmra.mxu3 %vm526_vm0, %v1859_v33  ;;  %v1366_v40 = vsel %vm5052_vm12, %v5056_v8, 0.0  ;;  %v1651_v33 = vld [vmem:[#allocation2 + $0x11] sm:$0xff]  ;;  %v1863_v11 = vsel %vm4932_vm6, %v5056_v8, 0.0  ;;  %v1301_v3 = vld [vmem:[%s6311_s5 + $0x60] sm:$0xff] }
 0x1c0   : > { %3773 = vmatmul.msk.f32.gmra.mxu0 %vm526_vm0, %v1366_v40  ;;  %v1699_v19 = vsel %vm5064_vm13, %v1651_v33, 0.0  ;;  %2405 = vmatpush.msra.mxu2 %v1301_v3 }
 0x1c6   : > { %3800 = vmatmul.msk.f32.gmra.mxu2 %vm526_vm0, %v1699_v19  ;;  %3790 = vmatmul.msk.f32.gmra.mxu1 %vm526_vm0, %v5073_v21  ;;  %v1303_v19 = vld [vmem:[%s6311_s5 + $0x70] sm:$0xff] }
 0x1c7   : > { %3816 = vmatmul.msk.f32.gmra.mxu3 %vm526_vm0, %v4905_v61  ;;  %v1090_v61 = vand.u32 15, %v1052_v43  ;;  %v5141_v43 = vld [vmem:[#allocation2 + $0x39] sm:$0xff] }
 0x1c8   : > { %3774 = vmatmul.msk.f32.gmra.mxu0 %vm526_vm0, %v5077_v16  ;;  %2550 = vmatpush.msra.mxu3 %v1303_v19 }
 0x1c9   : > { %vm5090_vm15 = vcmp.ne.s32.totalorder %v1090_v61, 15  ;;  %v5155_v61 = vpop.f32.mrf.mxu3 }
 0x1ca   : > { %v1701_v41 = vsel %vm5090_vm15, %v1653_v26, 0.0  ;;  %v5157_v26 = vpop.f32.mrf.mxu2 }
 0x1ce   : > { %3801 = vmatmul.msk.f32.gmra.mxu2 %vm526_vm0, %v1652_v18  ;;  %3847 = vmatmul.msk.f32.vlgmr.msrb.gmra.mxu1 %vm526_vm0, %v1652_v18  ;;  %v1865_v18 = vsel %vm5052_vm12, %v4641_v63, 0.0 }
 0x1cf   : > { %3817 = vmatmul.msk.f32.gmra.mxu3 %vm526_vm0, %v1861_v53  ;;  %v5153_v53 = vld [vmem:[#allocation2 + $0x41] sm:$0xff] }
 0x1d0   : > { %3831 = vmatmul.msk.f32.vlgmr.msrb.gmra.mxu0 %vm526_vm0, %v4840_v15  ;;  %v1054_v15 = vadd.s32 40, %v4453_v34  ;;  %v1705_v63 = vsel %vm4878_vm3, %v5153_v53, 0.0 }
 0x1d2   : > { %v1104_v10 = vand.u32 15, %v1054_v15  ;;  %v5182_v15 = vpop.f32.mrf.mxu2 }
 0x1d4   : > { %vm5122_vm9 = vcmp.ne.s32.totalorder %v1104_v10, 15 }
 0x1d6   : > { %3802 = vmatmul.msk.f32.gmra.mxu2 %vm526_vm0, %v1701_v41  ;;  %3848 = vmatmul.msk.f32.gmra.mxu1 %vm526_vm0, %v2166_v13  ;;  %v2170_v41 = vsel %vm5122_vm9, %v5153_v53, 0.0  ;;  %v5171_v13 = vld [vmem:[#allocation2 + $0x49] sm:$0xff] }
 0x1d7   : > { %3818 = vmatmul.msk.f32.gmra.mxu3 %vm526_vm0, %v5009_v55 }
 0x1d8   : > { %3832 = vmatmul.msk.f32.gmra.mxu0 %vm526_vm0, %v4903_v48  ;;  %v5117_v48 = vld [vmem:[#allocation2 + $0x31] sm:$0xff] }
 0x1d9   : > { %v1703_v40 = vsel %vm5122_vm9, %v5117_v48, 0.0  ;;  %v2168_v33 = vsel %vm5090_vm15, %v5117_v48, 0.0 }
 0x1de   : > { %3803 = vmatmul.msk.f32.gmra.mxu2 %vm526_vm0, %v5105_v0  ;;  %3849 = vmatmul.msk.f32.gmra.mxu1 %vm526_vm0, %v5105_v0 }
 0x1df   : > { %3819 = vmatmul.msk.f32.gmra.mxu3 %vm526_vm0, %v1863_v11  ;;  %v5188_v11 = vld [vmem:[#allocation2 + $0x51] sm:$0xff] }
 0x1e0   : > { %3833 = vmatmul.msk.f32.gmra.mxu0 %vm526_vm0, %v4936_v58  ;;  %v1707_v10 = vsel %vm4921_vm5, %v5188_v11, 0.0 }
 0x1e6   : > { %3804 = vmatmul.msk.f32.gmra.mxu2 %vm526_vm0, %v1703_v40  ;;  %3850 = vmatmul.msk.f32.gmra.mxu1 %vm526_vm0, %v2168_v33  ;;  %v1305_v40 = vld [vmem:[%s6311_s5 + $0x80] sm:$0xff] }
 0x1e7   : > { %3820 = vmatmul.msk.f32.gmra.mxu3 %vm526_vm0, %v5077_v16  ;;  %2711 = vmatpush.msra.mxu0 %v1305_v40 }
 0x1e8   : > { %3834 = vmatmul.msk.f32.gmra.mxu0 %vm526_vm0, %v5011_v4 }
 0x1ee   : > { %3805 = vmatmul.msk.f32.gmra.mxu2 %vm526_vm0, %v5141_v43  ;;  %3851 = vmatmul.msk.f32.gmra.mxu1 %vm526_vm0, %v5141_v43 }
 0x1ef   : > { %3821 = vmatmul.msk.f32.gmra.mxu3 %vm526_vm0, %v1865_v18  ;;  %v5213_v18 = vld [vmem:[#allocation2 + $0x59] sm:$0xff] }
 0x1f0   : > { %3835 = vmatmul.msk.f32.gmra.mxu0 %vm526_vm0, %v5050_v22 }
 0x1f6   : > { %3806 = vmatmul.msk.f32.gmra.mxu2 %vm526_vm0, %v1705_v63  ;;  %3852 = vmatmul.msk.f32.gmra.mxu1 %vm526_vm0, %v2170_v41 }
 0x1f7   : > { %3822 = vmatmul.msk.f32.gmra.mxu3 %vm526_vm0, %v4732_v25  ;;  %v5180_v25 = vpop.f32.mrf.mxu3 }
 0x1f8   : > { %3836 = vmatmul.msk.f32.gmra.mxu0 %vm526_vm0, %v5073_v21 }
 0x1fe   : > { %3807 = vmatmul.msk.f32.gmra.mxu2 %vm526_vm0, %v5171_v13  ;;  %3853 = vmatmul.msk.f32.gmra.mxu1 %vm526_vm0, %v5171_v13 }
 0x1ff   : > { %3823 = vmatmul.msk.f32.gmra.mxu3 %vm526_vm0, %v1867_v36  ;;  %v2172_v36 = vsel %vm4878_vm3, %v5188_v11, 0.0  ;;  %v5201_v3 = vpop.f32.mrf.mxu3 }
 0x200   : > { %3837 = vmatmul.msk.f32.gmra.mxu0 %vm526_vm0, %v4616_v30  ;;  %6373 = vst [vmem:[#allocation4_spill] sm:$0xff] %v5201_v3  ;;  %v5203_v30 = vpop.f32.mrf.mxu2 }
 0x206   : > { %3808 = vmatmul.msk.f32.gmra.mxu2 %vm526_vm0, %v1707_v10  ;;  %3854 = vmatmul.msk.f32.gmra.mxu1 %vm526_vm0, %v2172_v36  ;;  %v6374_v10 = vmov 0 }
 0x207   : > { %3824 = vmatmul.msk.f32.gmra.mxu3 %vm526_vm0, %v4852_v31  ;;  %v1060_v31 = vadd.s32 88, %v4453_v34  ;;  %v5232_v36 = vpop.f32.mrf.mxu3 }
 0x208   : > { %3838 = vmatmul.msk.f32.gmra.mxu0 %vm526_vm0, %v4681_v24  ;;  %v5222_v24 = vpop.f32.mrf.mxu0  ;;  %6377 = vst [vmem:[#allocation6_spill] sm:$0xff] %v5232_v36  ;;  %v5234_v45 = vpop.f32.mrf.mxu2 }
 0x209   : > { %v1146_v63 = vand.u32 15, %v1060_v31  ;;  %6378 = vst [vmem:[#allocation7_spill] sm:$0xff] %v5234_v45 }
 0x20b   : > { %vm5228_vm10 = vcmp.ne.s32.totalorder %v1146_v63, 15 }
 0x20c   : > { %v733_v33 = vpop.xlane.xlu1 %732  ;;  %v6375_v10 = vsel %vm5228_vm10, 4294967295, %v6374_v10 }
 0x20d   : > { %v751_v19 = vmul.f32 %v733_v33, %v4283_v32  ;;  %6376 = vst [vmem:[#allocation5_spill] sm:$0xff] %v6375_v10 }
 0x20e   : > { %3809 = vmatmul.msk.f32.gmra.mxu2 %vm526_vm0, %v5213_v18  ;;  %3855 = vmatmul.msk.f32.gmra.mxu1 %vm526_vm0, %v5213_v18 }
 0x20f   : > { %3825 = vmatmul.msk.f32.gmra.mxu3 %vm526_vm0, %v1869_v14  ;;  %v767_v41 = vadd.f32 1e-06, %v751_v19  ;;  %v1709_v19 = vsel %vm5228_vm10, %v4874_v6, 0.0  ;;  %v5259_v51 = vpop.f32.mrf.mxu3 }
 0x210   : > { %3839 = vmatmul.msk.f32.gmra.mxu0 %vm526_vm0, %v4755_v5  ;;  %6380 = vst [vmem:[#allocation9_spill] sm:$0xff] %v5259_v51  ;;  %v5261_v3 = vpop.f32.mrf.mxu2 }
 0x211   : > { %4028 = vrsqrt.f32 %v767_v41  ;;  %6381 = vst [vmem:[#allocation10_spill] sm:$0xff] %v5261_v3 }
 0x214   : > { %v736_v14 = vpop.xlane.xlu2 %735  ;;  %v1000_v40 = vpop.xlane.xlu1 %999 }
 0x215   : > { %v752_v31 = vmul.f32 %v736_v14, %v4283_v32  ;;  %v1002_v33 = vmul.f32 %v1000_v40, %v4283_v32  ;;  %v2174_v14 = vsel %vm4921_vm5, %v4874_v6, 0.0  ;;  %vm915_vm5 = vweird.f32 %v767_v41 }
 0x216   : > { %3810 = vmatmul.msk.f32.gmra.mxu2 %vm526_vm0, %v1709_v19  ;;  %3856 = vmatmul.msk.f32.gmra.mxu1 %vm526_vm0, %v2174_v14 }
 0x217   : > { %3826 = vmatmul.msk.f32.gmra.mxu3 %vm526_vm0, %v4928_v62  ;;  %v4029_v5 = vpop.eup %4028  ;;  %v768_v63 = vadd.f32 1e-06, %v752_v31  ;;  %v5245_v20 = vsub.f32 %v4981_v52, %v1002_v33  ;;  %v1062_v62 = vadd.s32 104, %v4453_v34  ;;  %v5256_v31 = vpop.f32.mrf.mxu0 }
 0x218   : > { %v910_v36 = vmul.f32 %v4029_v5, %v767_v41  ;;  %3840 = vmatmul.msk.f32.gmra.mxu0 %vm526_vm0, %v4838_v59  ;;  %v1871_v59 = vsel %vm4888_vm4, %v4950_v2, 0.0  ;;  %vm916_vm11 = vweird.f32 %v4029_v5  ;;  %v5286_v41 = vld [vmem:[%s6309_s3] ss:$0 sm:$0xff] }
 0x219   : > { %6379 = vst [vmem:[#allocation8_spill] sm:$0xff] %v5245_v20  ;;  %4030 = vrsqrt.f32 %v768_v63  ;;  %v1006_v40 = vmul.f32 %v5245_v20, %v5245_v20  ;;  %v5264_v20 = vld [vmem:[#allocation2 + $0x69] sm:$0xff]  ;;  %vm917_vm8 = vmor %vm915_vm5, %vm916_vm11 }
 0x21a   : > { %v911_v19 = vmul.f32 %v4029_v5, %v910_v36 }
 0x21b   : > { %v1010_v52 = vsel %vm526_vm0, %v1006_v40, 0.0  ;;  %v1160_v40 = vand.u32 15, %v1062_v62 }
 0x21c   : > { %v912_v33 = vmul.f32 0.5, %v911_v19  ;;  %v1009_v45 = vpop.xlane.xlu2 %1008  ;;  %1011 = vadd.xlane.f32.xlu0 %v1010_v52 }
 0x21d   : > { %v1013_v14 = vmul.f32 %v1009_v45, %v4283_v32  ;;  %vm5276_vm4 = vcmp.ne.s32.totalorder %v1160_v40, 15  ;;  %v5302_v40 = vld [vmem:[%s6310_s4] ss:$0 sm:$0xff] }
 0x21e   : > { %v913_v36 = vsub.f32 1.5, %v912_v33  ;;  %3811 = vmatmul.msk.f32.gmra.mxu2 %vm526_vm0, %v5264_v20  ;;  %3857 = vmatmul.msk.f32.gmra.mxu1 %vm526_vm0, %v5264_v20  ;;  %v6382_v33 = vmov 0 }
 0x21f   : > { %3827 = vmatmul.msk.f32.gmra.mxu3 %vm526_vm0, %v1871_v59  ;;  %v4031_v19 = vpop.eup %4030  ;;  %v1015_v52 = vadd.f32 1e-06, %v1013_v14  ;;  %v6383_v33 = vsel %vm5276_vm4, 4294967295, %v6382_v33  ;;  %v5281_v59 = vpop.f32.mrf.mxu0 }
 0x220   : > { %v914_v51 = vmul.f32 %v4029_v5, %v913_v36  ;;  %v920_v3 = vmul.f32 %v4031_v19, %v768_v63  ;;  %3841 = vmatmul.msk.f32.gmra.mxu0 %vm526_vm0, %v4886_v23  ;;  %6384 = vst [vmem:[#allocation11_spill] sm:$0xff] %v6383_v33  ;;  %v1711_v23 = vsel %vm5276_vm4, %v4917_v49, 0.0  ;;  %vm926_vm5 = vweird.f32 %v4031_v19  ;;  %v5297_v36 = vpop.f32.mrf.mxu2 }
 0x221   : > { %4032 = vrsqrt.f32 %v1015_v52  ;;  %6386 = vst [vmem:[#allocation13_spill] sm:$0xff] %v5297_v36  ;;  %vm1023_vm3 = vweird.f32 %v1015_v52  ;;  %v5316_v36 = vld [vmem:[#allocation2 + $0x79] sm:$0xff] }
 0x222   : > { %v918_v45 = vsel %vm917_vm8, %v4029_v5, %v914_v51  ;;  %v921_v2 = vmul.f32 %v4031_v19, %v920_v3  ;;  %vm925_vm8 = vweird.f32 %v768_v63  ;;  %v5295_v5 = vpop.f32.mrf.mxu3 }
 0x223   : > { %v943_v62 = vmul.f32 %v918_v45, %v4965_v42  ;;  %6385 = vst [vmem:[#allocation12_spill] sm:$0xff] %v5295_v5  ;;  %vm927_vm11 = vmor %vm925_vm8, %vm926_vm5  ;;  %v1064_v5 = vadd.s32 120, %v4453_v34 }
 0x224   : > { %v922_v14 = vmul.f32 0.5, %v921_v2 }
 0x225   : > { %v959_v51 = vmul.f32 %v5286_v41, %v943_v62  ;;  %v2176_v62 = vsel %vm5228_vm10, %v4917_v49, 0.0 }
 0x226   : > { %v923_v3 = vsub.f32 1.5, %v922_v14  ;;  %3812 = vmatmul.msk.f32.gmra.mxu2 %vm526_vm0, %v1711_v23  ;;  %3858 = vmatmul.msk.f32.gmra.mxu1 %vm526_vm0, %v2176_v62 }
 0x227   : > { %3828 = vmatmul.msk.f32.gmra.mxu3 %vm526_vm0, %v5029_v9  ;;  %v4033_v42 = vpop.eup %4032  ;;  %v975_v45 = vadd.f32 %v5302_v40, %v959_v51 }
 0x228   : > { %v924_v63 = vmul.f32 %v4031_v19, %v923_v3  ;;  %v1018_v2 = vmul.f32 %v4033_v42, %v1015_v52  ;;  %3842 = vmatmul.msk.f32.gmra.mxu0 %vm526_vm0, %v4914_v46  ;;  %vm1024_vm2 = vweird.f32 %v4033_v42 }
 0x229   : > { %991 = vst.msk [vmem:[#allocation2 + $0x88] sm:$0xff] %vm526_vm0, %v975_v45  ;;  %vm1025_vm8 = vmor %vm1023_vm3, %vm1024_vm2  ;;  %vm6398_vm3 = vnez %v6347_v17 }
 0x22a   : > { %v928_v14 = vsel %vm927_vm11, %v4031_v19, %v924_v63  ;;  %v1019_v23 = vmul.f32 %v4033_v42, %v1018_v2  ;;  %v1174_v19 = vand.u32 15, %v1064_v5  ;;  %v5320_v63 = vpop.f32.mrf.mxu0  ;;  %v5325_v52 = vpop.f32.mrf.mxu3 }
 0x22b   : > { %v944_v51 = vmul.f32 %v928_v14, %v4984_v27  ;;  %6387 = vst [vmem:[#allocation14_spill] sm:$0xff] %v5325_v52  ;;  %v5327_v2 = vpop.f32.mrf.mxu2 }
 0x22c   : > { %v1020_v3 = vmul.f32 0.5, %v1019_v23  ;;  %6388 = vst [vmem:[#allocation15_spill] sm:$0xff] %v5327_v2  ;;  %vm5338_vm2 = vcmp.ne.s32.totalorder %v1174_v19, 15 }
 0x22d   : > { %v960_v10 = vmul.f32 %v5286_v41, %v944_v51  ;;  %v1586_v51 = vpop.f32.mrf.mxu1 }
 0x22e   : > { %v1021_v45 = vsub.f32 1.5, %v1020_v3  ;;  %3813 = vmatmul.msk.f32.gmra.mxu2 %vm526_vm0, %v5316_v36  ;;  %3859 = vmatmul.msk.f32.gmra.mxu1 %vm526_vm0, %v5316_v36 }
 0x22f   : > { %v976_v46 = vadd.f32 %v5302_v40, %v960_v10  ;;  %v6389_v10 = vmov 0 }
 0x230   : > { %v1022_v34 = vmul.f32 %v4033_v42, %v1021_v45  ;;  %v5323_v27 = vld [vmem:[#allocation2 + $0x87] sm:$0xff]  ;;  %3843 = vmatmul.msk.f32.gmra.mxu0 %vm526_vm0, %v4944_v7  ;;  %v6390_v10 = vsel %vm5338_vm2, 4294967295, %v6389_v10  ;;  %v5349_v45 = vstv %s505_s30 }
 0x231   : > { %992 = vst.msk [vmem:[#allocation2 + $0x90] sm:$0xff] %vm526_vm0, %v976_v46  ;;  %v1873_v5 = vsel %vm4946_vm7, %v5323_v27, 0.0  ;;  %v5342_v14 = vld [vmem:[#allocation2 + $0x81] sm:$0xff]  ;;  %v5358_v46 = vld [vmem:[%s6312_s6] ss:$0 sm:$0xff] }
 0x232   : > { %v1026_v62 = vsel %vm1025_vm8, %v4033_v42, %v1022_v34  ;;  %3829 = vmatmul.msk.f32.gmra.mxu3 %vm526_vm0, %v1873_v5  ;;  %6391 = vst [vmem:[#allocation16_spill] sm:$0xff] %v6390_v10  ;;  %v1713_v42 = vsel %vm5338_vm2, %v5342_v14, 0.0  ;;  %v5353_v19 = vpop.f32.mrf.mxu0 }
 0x233   : > { %v1037_v23 = vmul.f32 %v1026_v62, %v4997_v29  ;;  %v2178_v29 = vsel %vm5276_vm4, %v5342_v14, 0.0 }
 0x235   : > { %v1039_v3 = vmul.f32 %v5286_v41, %v1037_v23 }
 0x236   : > { %3814 = vmatmul.msk.f32.gmra.mxu2 %vm526_vm0, %v1713_v42  ;;  %3860 = vmatmul.msk.f32.gmra.mxu1 %vm526_vm0, %v2178_v29  ;;  %v1489_v42 = vadd.f32 %v5358_v46, %v5196_v38  ;;  %v6393_v29 = vsel %vm4685_vm14, %v4901_v1, 0.0  ;;  %v1490_v1 = vadd.f32 %v5358_v46, %v5222_v24  ;;  %vm6395_vm14 = vnez %v6329_v44 }
 0x237   : > { %v1041_v7 = vadd.f32 %v5302_v40, %v1039_v3 }
 0x238   : > { %v5363_v34 = vld [vmem:[#allocation2 + $0x8f] sm:$0xff]  ;;  %3844 = vmatmul.msk.f32.gmra.mxu0 %vm526_vm0, %v5031_v57  ;;  %v1634_v2 = vadd.f32 %v1586_v51, %v1489_v42 }
 0x239   : > { %v1044_v5 = vmul.f32 %v5349_v45, %v1041_v7  ;;  %v1486_v62 = vpop.f32.mrf.mxu2  ;;  %v1589_v7 = vpop.f32.mrf.mxu1 }
 0x23a   : > { %v1631_v23 = vpop.f32.mrf.mxu3  ;;  %v1504_v3 = vadd.f32 %v5358_v46, %v1486_v62  ;;  %3830 = vmatmul.msk.f32.gmra.mxu3 %vm526_vm0, %v5363_v34  ;;  %v5384_v62 = vld [vmem:[#allocation2 + $0x89] sm:$0xff] }
 0x23b   : > { %1046 = vst.msk [vmem:[#allocation2 + $0x98] sm:$0xff] %vm526_vm0, %v1044_v5  ;;  %v5388_v5 = vld [vmem:[#allocation2 + $0x88] sm:$0xff] }
 0x23c   : > { %v5375_v33 = vadd.f32 %v1631_v23, %v1504_v3 }
 0x23d   : > { %v5382_v52 = vpop.f32.mrf.mxu0 }
 0x23e   : > { %6392 = vst [vmem:[#allocation17_spill] sm:$0xff] %v5375_v33  ;;  %3863 = vmatmul.msk.f32.vlgmr.msra.gmra.mxu2 %vm526_vm0, %v6393_v29  ;;  %3861 = vmatmul.msk.f32.gmra.mxu1 %vm526_vm0, %v5384_v62 }
 0x240   : > { %3845 = vmatmul.msk.f32.gmra.mxu0 %vm526_vm0, %v5388_v5 }
 0x241   : > { %v1779_v38 = vpop.f32.mrf.mxu2  ;;  %v1592_v29 = vpop.f32.mrf.mxu1 }
 0x242   : > { %v1940_v23 = vpop.f32.mrf.mxu3  ;;  %v1827_v54 = vadd.f32 %v1779_v38, %v1634_v2  ;;  %3879 = vmatmul.msk.f32.vlgmr.msra.gmra.mxu3 %vm526_vm0, %v4936_v58  ;;  %v5398_v51 = vld [vmem:[#allocation2 + $0x91] sm:$0xff]  ;;  %v1635_v38 = vadd.f32 %v1589_v7, %v1490_v1  ;;  %v2328_v7 = vsel %vm4842_vm1, %v5056_v8, 0.0  ;;  %vm6396_vm1 = vnez %v6355_v39 }
 0x243   : > { %v2180_v2 = vsel %vm5338_vm2, %v5398_v51, 0.0  ;;  %v5408_v58 = vld [vmem:[#allocation2 + $0x90] sm:$0xff] }
 0x244   : > { %v5396_v3 = vadd.f32 %v1940_v23, %v1827_v54  ;;  %v3483_v39 = vld [vmem:[%s6313_s7 + $0x10] sm:$0xff] }
 0x245   : > { %v5402_v42 = vpop.f32.mrf.mxu0  ;;  %3551 = vmatpush.msra.mxu1 %v3483_v39 }
 0x246   : > { %6394 = vst [vmem:[#allocation18_spill] sm:$0xff] %v5396_v3  ;;  %3864 = vmatmul.msk.f32.gmra.mxu2 %vm526_vm0, %v5009_v55  ;;  %3862 = vmatmul.msk.f32.gmra.mxu1 %vm526_vm0, %v2180_v2  ;;  %v1491_v55 = vadd.f32 %v5358_v46, %v5256_v31 }
 0x248   : > { %3846 = vmatmul.msk.f32.gmra.mxu0 %vm526_vm0, %v5408_v58  ;;  %v1636_v2 = vadd.f32 %v1592_v29, %v1491_v55 }
 0x249   : > { %v1782_v24 = vpop.f32.mrf.mxu2  ;;  %v1595_v31 = vpop.f32.mrf.mxu1 }
 0x24a   : > { %v1943_v23 = vpop.f32.mrf.mxu3  ;;  %v1828_v54 = vadd.f32 %v1782_v24, %v1635_v38  ;;  %3880 = vmatmul.msk.f32.gmra.mxu3 %vm526_vm0, %v5011_v4  ;;  %v1492_v38 = vadd.f32 %v5358_v46, %v5281_v59  ;;  %v1493_v59 = vadd.f32 %v5358_v46, %v5320_v63  ;;  %v1494_v63 = vadd.f32 %v5358_v46, %v5353_v19 }
 0x24c   : > { %v5416_v3 = vadd.f32 %v1943_v23, %v1828_v54  ;;  %v1637_v29 = vadd.f32 %v1595_v31, %v1492_v38  ;;  %v2315_v38 = vld [vmem:[#allocation2 + $0x4f] sm:$0xff] }
 0x24d   : > { %v5422_v1 = vpop.f32.mrf.mxu0 }
 0x24e   : > { %3865 = vmatmul.msk.f32.gmra.mxu2 %vm526_vm0, %v2328_v7 }
 0x250   : > { %3895 = vmatmul.msk.f32.vlgmr.msra.gmra.mxu0 %vm526_vm0, %v5105_v0  ;;  %v2633_v0 = vsel %vm5064_vm13, %v5117_v48, 0.0 }
 0x251   : > { %v1785_v10 = vpop.f32.mrf.mxu2  ;;  %v1598_v23 = vpop.f32.mrf.mxu1 }
 0x252   : > { %v1946_v33 = vpop.f32.mrf.mxu3  ;;  %v1829_v4 = vadd.f32 %v1785_v10, %v1636_v2  ;;  %3881 = vmatmul.msk.f32.gmra.mxu3 %vm526_vm0, %v5050_v22  ;;  %v1638_v48 = vadd.f32 %v1598_v23, %v1493_v59  ;;  %v2475_v2 = vld [vmem:[#allocation2 + $0x48] sm:$0xff]  ;;  %v1495_v59 = vadd.f32 %v5358_v46, %v5382_v52  ;;  %v1496_v52 = vadd.f32 %v5358_v46, %v5402_v42 }
 0x253   : > { %v2318_v42 = vld [vmem:[#allocation2 + $0x67] sm:$0xff] }
 0x254   : > { %v5430_v56 = vadd.f32 %v1946_v33, %v1829_v4  ;;  %v2314_v33 = vld [vmem:[#allocation2 + $0x47] sm:$0xff] }
 0x255   : > { %v5434_v8 = vpop.f32.mrf.mxu0  ;;  %v2330_v54 = vsel %vm4932_vm6, %v2314_v33, 0.0  ;;  %v2316_v33 = vld [vmem:[#allocation2 + $0x57] sm:$0xff] }
 0x256   : > { %3866 = vmatmul.msk.f32.gmra.mxu2 %vm526_vm0, %v5077_v16 }
 0x258   : > { %3896 = vmatmul.msk.f32.gmra.mxu0 %vm526_vm0, %v2633_v0  ;;  %v2635_v0 = vsel %vm5090_vm15, %v5153_v53, 0.0 }
 0x259   : > { %v1788_v10 = vpop.f32.mrf.mxu2  ;;  %v1601_v31 = vpop.f32.mrf.mxu1 }
 0x25a   : > { %v1949_v24 = vpop.f32.mrf.mxu3  ;;  %v1830_v22 = vadd.f32 %v1788_v10, %v1637_v29  ;;  %3882 = vmatmul.msk.f32.gmra.mxu3 %vm526_vm0, %v5073_v21 }
 0x25c   : > { %v5444_v16 = vadd.f32 %v1949_v24, %v1830_v22  ;;  %v2476_v24 = vld [vmem:[#allocation2 + $0x50] sm:$0xff] }
 0x25d   : > { %v5449_v12 = vpop.f32.mrf.mxu0 }
 0x25e   : > { %3867 = vmatmul.msk.f32.gmra.mxu2 %vm526_vm0, %v2330_v54 }
 0x260   : > { %3897 = vmatmul.msk.f32.gmra.mxu0 %vm526_vm0, %v5141_v43  ;;  %v1639_v43 = vadd.f32 %v1601_v31, %v1494_v63 }
 0x261   : > { %v1791_v55 = vpop.f32.mrf.mxu2  ;;  %v1604_v54 = vpop.f32.mrf.mxu1 }
 0x262   : > { %v1952_v7 = vpop.f32.mrf.mxu3  ;;  %v1831_v21 = vadd.f32 %v1791_v55, %v1638_v48  ;;  %3883 = vmatmul.msk.f32.gmra.mxu3 %vm526_vm0, %v2475_v2  ;;  %v2332_v48 = vsel %vm5052_vm12, %v2316_v33, 0.0  ;;  %v1640_v53 = vadd.f32 %v1604_v54, %v1495_v59  ;;  %v2477_v2 = vld [vmem:[#allocation2 + $0x58] sm:$0xff]  ;;  %v2334_v33 = vsel %vm6395_vm14, %v2318_v42, 0.0 }
 0x263   : > { %vm6406_vm12 = vnez %v6357_v28  ;;  %v3482_v28 = vld [vmem:[%s6313_s7 + $0x8] sm:$0xff] }
 0x264   : > { %v5456_v4 = vadd.f32 %v1952_v7, %v1831_v21  ;;  %v2338_v39 = vsel %vm6406_vm12, %v5323_v27, 0.0  ;;  %3552 = vmatpush.msra.mxu1 %v3482_v28 }
 0x265   : > { %v5462_v29 = vpop.f32.mrf.mxu0 }
 0x266   : > { %3868 = vmatmul.msk.f32.gmra.mxu2 %vm526_vm0, %v2315_v38 }
 0x268   : > { %3898 = vmatmul.msk.f32.gmra.mxu0 %vm526_vm0, %v2635_v0 }
 0x269   : > { %v1794_v10 = vpop.f32.mrf.mxu2  ;;  %v1607_v50 = vpop.f32.mrf.mxu1 }
 0x26a   : > { %v1955_v19 = vpop.f32.mrf.mxu3  ;;  %v1832_v22 = vadd.f32 %v1794_v10, %v1639_v43  ;;  %3884 = vmatmul.msk.f32.gmra.mxu3 %vm526_vm0, %v2476_v24  ;;  %v1641_v38 = vadd.f32 %v1607_v50, %v1496_v52  ;;  %v2637_v43 = vsel %vm5122_vm9, %v5188_v11, 0.0  ;;  %v2478_v10 = vld [vmem:[#allocation2 + $0x60] sm:$0xff]  ;;  %v1497_v24 = vadd.f32 %v5358_v46, %v5157_v26  ;;  %v2320_v50 = vld [vmem:[#allocation2 + $0x77] sm:$0xff] }
 0x26b   : > { %v1498_v26 = vadd.f32 %v5358_v46, %v5182_v15 }
 0x26c   : > { %v5471_v23 = vadd.f32 %v1955_v19, %v1832_v22  ;;  %v1642_v11 = vadd.f32 %v5155_v61, %v1497_v24 }
 0x26d   : > { %v5476_v60 = vpop.f32.mrf.mxu0  ;;  %v1643_v61 = vadd.f32 %v5180_v25, %v1498_v26  ;;  %v2336_v25 = vsel %vm6398_vm3, %v2320_v50, 0.0 }
 0x26e   : > { %3869 = vmatmul.msk.f32.gmra.mxu2 %vm526_vm0, %v2332_v48  ;;  %v2479_v48 = vld [vmem:[#allocation2 + $0x68] sm:$0xff] }
 0x270   : > { %3899 = vmatmul.msk.f32.gmra.mxu0 %vm526_vm0, %v5171_v13 }
 0x271   : > { %v1797_v55 = vpop.f32.mrf.mxu2 }
 0x272   : > { %v1958_v7 = vpop.f32.mrf.mxu3  ;;  %v1833_v21 = vadd.f32 %v1797_v55, %v1640_v53  ;;  %3885 = vmatmul.msk.f32.gmra.mxu3 %vm526_vm0, %v2477_v2  ;;  %v2319_v55 = vld [vmem:[#allocation2 + $0x6f] sm:$0xff]  ;;  %v5511_v2 = vpop.f32.mrf.mxu1 }
 0x274   : > { %v5483_v63 = vadd.f32 %v1958_v7, %v1833_v21 }
 0x275   : > { %v5486_v31 = vpop.f32.mrf.mxu0 }
 0x276   : > { %3870 = vmatmul.msk.f32.gmra.mxu2 %vm526_vm0, %v2317_v35  ;;  %v2480_v35 = vld [vmem:[#allocation2 + $0x70] sm:$0xff] }
 0x278   : > { %3900 = vmatmul.msk.f32.gmra.mxu0 %vm526_vm0, %v2637_v43 }
 0x279   : > { %v1800_v13 = vpop.f32.mrf.mxu2 }
 0x27a   : > { %v1961_v0 = vpop.f32.mrf.mxu3  ;;  %v1834_v19 = vadd.f32 %v1800_v13, %v1641_v38  ;;  %3886 = vmatmul.msk.f32.gmra.mxu3 %vm526_vm0, %v2478_v10  ;;  %v1499_v38 = vadd.f32 %v5358_v46, %v5203_v30  ;;  %v5532_v17 = vpop.f32.mrf.mxu1 }
 0x27c   : > { %v5495_v22 = vadd.f32 %v1961_v0, %v1834_v19  ;;  %v6399_v19 = vld [vmem:[#allocation4_spill] sm:$0xff] }
 0x27d   : > { %v5500_v47 = vpop.f32.mrf.mxu0  ;;  %v1644_v42 = vadd.f32 %v6399_v19, %v1499_v38 }
 0x27e   : > { %3871 = vmatmul.msk.f32.gmra.mxu2 %vm526_vm0, %v2334_v33  ;;  %v2481_v33 = vld [vmem:[#allocation2 + $0x78] sm:$0xff] }
 0x280   : > { %3901 = vmatmul.msk.f32.gmra.mxu0 %vm526_vm0, %v5213_v18  ;;  %v6397_v18 = vsel %vm6396_vm1, %v4874_v6, 0.0 }
 0x281   : > { %v1803_v59 = vpop.f32.mrf.mxu2 }
 0x282   : > { %v1964_v54 = vpop.f32.mrf.mxu3  ;;  %v1835_v53 = vadd.f32 %v1803_v59, %v1642_v11  ;;  %3887 = vmatmul.msk.f32.gmra.mxu3 %vm526_vm0, %v2479_v48  ;;  %v5553_v38 = vpop.f32.mrf.mxu1 }
 0x284   : > { %v1996_v44 = vadd.f32 %v1964_v54, %v1835_v53  ;;  %v6400_v54 = vld [vmem:[#allocation7_spill] sm:$0xff] }
 0x285   : > { %v5509_v7 = vpop.f32.mrf.mxu0  ;;  %v1500_v48 = vadd.f32 %v5358_v46, %v6400_v54 }
 0x286   : > { %3872 = vmatmul.msk.f32.gmra.mxu2 %vm526_vm0, %v2319_v55 }
 0x288   : > { %3902 = vmatmul.msk.f32.gmra.mxu0 %vm526_vm0, %v6397_v18 }
 0x289   : > { %v1806_v21 = vpop.f32.mrf.mxu2 }
 0x28a   : > { %v1967_v52 = vpop.f32.mrf.mxu3  ;;  %v1836_v15 = vadd.f32 %v1806_v21, %v1643_v61  ;;  %3888 = vmatmul.msk.f32.gmra.mxu3 %vm526_vm0, %v2480_v35 }
 0x28c   : > { %v1997_v43 = vadd.f32 %v1967_v52, %v1836_v15  ;;  %v6402_v52 = vld [vmem:[#allocation3_spill] sm:$0xff] }
 0x28d   : > { %v2109_v6 = vpop.f32.mrf.mxu0  ;;  %vm6403_vm6 = vnez %v6402_v52  ;;  %v2643_v52 = vsel %vm5228_vm10, %v5342_v14, 0.0 }
 0x28e   : > { %3873 = vmatmul.msk.f32.gmra.mxu2 %vm526_vm0, %v2336_v25  ;;  %v5528_v0 = vadd.f32 %v2109_v6, %v1996_v44  ;;  %v6401_v44 = vld [vmem:[#allocation6_spill] sm:$0xff]  ;;  %v6404_v35 = vsel %vm6403_vm6, %v4917_v49, 0.0 }
 0x28f   : > { %v1012_v13 = vpop.xlane.xlu0 %1011  ;;  %v1645_v55 = vadd.f32 %v6401_v44, %v1500_v48  ;;  %v5571_v48 = vpop.f32.mrf.mxu1 }
 0x290   : > { %v1014_v10 = vmul.f32 %v1012_v13, %v4283_v32  ;;  %3903 = vmatmul.msk.f32.gmra.mxu0 %vm526_vm0, %v5264_v20 }
 0x291   : > { %v1809_v30 = vpop.f32.mrf.mxu2 }
 0x292   : > { %v1970_v24 = vpop.f32.mrf.mxu3  ;;  %v1016_v11 = vadd.f32 1e-06, %v1014_v10  ;;  %v1837_v59 = vadd.f32 %v1809_v30, %v1644_v42  ;;  %3889 = vmatmul.msk.f32.gmra.mxu3 %vm526_vm0, %v2481_v33  ;;  %v6407_v10 = vld [vmem:[#allocation9_spill] sm:$0xff] }
 0x293   : > { %v6408_v33 = vld [vmem:[#allocation13_spill] sm:$0xff] }
 0x294   : > { %4034 = vrsqrt.f32 %v1016_v11  ;;  %v1998_v53 = vadd.f32 %v1970_v24, %v1837_v59  ;;  %vm1033_vm13 = vweird.f32 %v1016_v11  ;;  %v1502_v59 = vadd.f32 %v5358_v46, %v6408_v33  ;;  %v6415_v33 = vld [vmem:[#allocation17_spill] sm:$0xff] }
 0x295   : > { %v2112_v32 = vpop.f32.mrf.mxu0 }
 0x296   : > { %3874 = vmatmul.msk.f32.gmra.mxu2 %vm526_vm0, %v5029_v9  ;;  %v5541_v26 = vadd.f32 %v2112_v32, %v1997_v43  ;;  %v6405_v9 = vld [vmem:[#allocation10_spill] sm:$0xff] }
 0x297   : > { %v1501_v50 = vadd.f32 %v5358_v46, %v6405_v9 }
 0x298   : > { %3904 = vmatmul.msk.f32.gmra.mxu0 %vm526_vm0, %v6404_v35 }
 0x299   : > { %v1812_v61 = vpop.f32.mrf.mxu2 }
 0x29a   : > { %v1973_v21 = vpop.f32.mrf.mxu3  ;;  %v4035_v20 = vpop.eup %4034  ;;  %v1838_v18 = vadd.f32 %v1812_v61, %v1645_v55  ;;  %3890 = vmatmul.msk.f32.gmra.mxu3 %vm526_vm0, %v5031_v57  ;;  %v1646_v57 = vadd.f32 %v6407_v10, %v1501_v50  ;;  %v6410_v55 = vld [vmem:[#allocation12_spill] sm:$0xff] }
 0x29b   : > { %v1028_v15 = vmul.f32 %v4035_v20, %v1016_v11  ;;  %vm1034_vm15 = vweird.f32 %v4035_v20  ;;  %v1647_v61 = vadd.f32 %v6410_v55, %v1502_v59 }
 0x29c   : > { %v1999_v43 = vadd.f32 %v1973_v21, %v1838_v18  ;;  %vm1035_vm9 = vmor %vm1033_vm13, %vm1034_vm15  ;;  %vm3489_vm13 = vcmask 261120  }
 0x29d   : > { %v1029_v25 = vmul.f32 %v4035_v20, %v1028_v15  ;;  %v2115_v6 = vpop.f32.mrf.mxu0 }
 0x29e   : > { %3875 = vmatmul.msk.f32.gmra.mxu2 %vm526_vm0, %v2338_v39  ;;  %v5559_v13 = vadd.f32 %v2115_v6, %v1998_v53  ;;  %v6409_v53 = vld [vmem:[#allocation8_spill] sm:$0xff] }
 0x29f   : > { %v1030_v49 = vmul.f32 0.5, %v1029_v25  ;;  %v5594_v25 = vpop.f32.mrf.mxu1 }
 0x2a0   : > { %3905 = vmatmul.msk.f32.gmra.mxu0 %vm526_vm0, %v5316_v36 }
 0x2a1   : > { %v1031_v19 = vsub.f32 1.5, %v1030_v49  ;;  %v1815_v42 = vpop.f32.mrf.mxu2  ;;  %v2485_v49 = vld [vmem:[#allocation2 + $0x98] sm:$0xff] }
 0x2a2   : > { %v1976_v30 = vpop.f32.mrf.mxu3  ;;  %v1839_v24 = vadd.f32 %v1815_v42, %v1646_v57  ;;  %3891 = vmatmul.msk.f32.gmra.mxu3 %vm526_vm0, %v5388_v5 }
 0x2a3   : > { %v1032_v27 = vmul.f32 %v4035_v20, %v1031_v19 }
 0x2a4   : > { %v2000_v11 = vadd.f32 %v1976_v30, %v1839_v24  ;;  %v2645_v24 = vsel %vm5276_vm4, %v5398_v51, 0.0 }
 0x2a5   : > { %v1036_v54 = vsel %vm1035_vm9, %v4035_v20, %v1032_v27  ;;  %v2118_v5 = vpop.f32.mrf.mxu0 }
 0x2a6   : > { %v1038_v36 = vmul.f32 %v1036_v54, %v6409_v53  ;;  %3876 = vmatmul.msk.f32.gmra.mxu2 %vm526_vm0, %v5363_v34  ;;  %v5577_v44 = vadd.f32 %v2118_v5, %v1999_v43  ;;  %v2324_v34 = vld [vmem:[#allocation2 + $0x97] sm:$0xff] }
 0x2a7   : > { %v2340_v50 = vsel %vm4946_vm7, %v2324_v34, 0.0  ;;  %v6412_v43 = vld [vmem:[#allocation15_spill] sm:$0xff] }
 0x2a8   : > { %v1040_v32 = vmul.f32 %v5286_v41, %v1038_v36  ;;  %3906 = vmatmul.msk.f32.gmra.mxu0 %vm526_vm0, %v2643_v52  ;;  %v1503_v14 = vadd.f32 %v5358_v46, %v6412_v43 }
 0x2a9   : > { %v1818_v35 = vpop.f32.mrf.mxu2 }
 0x2aa   : > { %v1042_v20 = vadd.f32 %v5302_v40, %v1040_v32  ;;  %v1840_v18 = vadd.f32 %v1818_v35, %v1647_v61  ;;  %3892 = vmatmul.msk.f32.gmra.mxu3 %vm526_vm0, %v5408_v58  ;;  %v1979_v15 = vpop.f32.mrf.mxu3  ;;  %v6416_v61 = vld [vmem:[#allocation18_spill] sm:$0xff] }
 0x2ab   : > { %v2133_v21 = vadd.f32 %v5422_v1, %v6416_v61 }
 0x2ac   : > { %v1045_v41 = vmul.f32 %v5349_v45, %v1042_v20  ;;  %v2001_v9 = vadd.f32 %v1979_v15, %v1840_v18  ;;  %v6413_v45 = vld [vmem:[#allocation14_spill] sm:$0xff] }
 0x2ad   : > { %v2121_v40 = vpop.f32.mrf.mxu0  ;;  %v1648_v37 = vadd.f32 %v6413_v45, %v1503_v14  ;;  %v2294_v15 = vadd.f32 %v5511_v2, %v2133_v21 }
 0x2ae   : > { %1047 = vst.msk [vmem:[#allocation2 + $0xa0] sm:$0xff] %vm526_vm0, %v1045_v41  ;;  %3877 = vmatmul.msk.f32.gmra.mxu2 %vm526_vm0, %v2340_v50  ;;  %v5596_v39 = vadd.f32 %v2121_v40, %v2000_v11  ;;  %v2134_v50 = vadd.f32 %v5434_v8, %v5416_v3  ;;  %v2135_v3 = vadd.f32 %v5449_v12, %v5430_v56 }
 0x2b0   : > { %3907 = vmatmul.msk.f32.gmra.mxu0 %vm526_vm0, %v5384_v62  ;;  %v5608_v62 = vpop.f32.mrf.mxu1 }
 0x2b1   : > { %v1821_v58 = vpop.f32.mrf.mxu2 }
 0x2b2   : > { %3893 = vmatmul.msk.f32.gmra.mxu3 %vm526_vm0, %v2485_v49  ;;  %v1841_v6 = vadd.f32 %v1821_v58, %v1648_v37  ;;  %v2295_v49 = vadd.f32 %v5532_v17, %v2134_v50 }
 0x2b5   : > { %v1982_v46 = vpop.f32.mrf.mxu3  ;;  %v2325_v10 = vld [vmem:[#allocation2 + $0x9f] sm:$0xff]  ;;  %v2124_v19 = vpop.f32.mrf.mxu0 }
 0x2b6   : > { %v2002_v57 = vadd.f32 %v1982_v46, %v1841_v6  ;;  %3878 = vmatmul.msk.f32.gmra.mxu2 %vm526_vm0, %v2325_v10  ;;  %v5603_v42 = vadd.f32 %v2124_v19, %v2001_v9  ;;  %v2486_v27 = vld [vmem:[#allocation2 + $0xa0] sm:$0xff] }
 0x2b7   : > { %v2630_v5 = vld [vmem:[#allocation2 + $0x99] sm:$0xff]  ;;  %v2631_v52 = vld [vmem:[#allocation2 + $0xa1] sm:$0xff] }
 0x2b8   : > { %3908 = vmatmul.msk.f32.gmra.mxu0 %vm526_vm0, %v2645_v24  ;;  %v5616_v51 = vpop.f32.mrf.mxu1  ;;  %v2647_v34 = vsel %vm5338_vm2, %v2631_v52, 0.0 }
 0x2b9   : > { %v1824_v28 = vpop.f32.mrf.mxu2 }
 0x2ba   : > { %v1842_v59 = vadd.f32 %v1824_v28, %v6415_v33  ;;  %3894 = vmatmul.msk.f32.gmra.mxu3 %vm526_vm0, %v2486_v27  ;;  %v2296_v33 = vadd.f32 %v5553_v38, %v2135_v3 }
 0x2bd   : > { %v1985_v11 = vpop.f32.mrf.mxu3  ;;  %v2127_v53 = vpop.f32.mrf.mxu0 }
 0x2be   : > { %v2003_v54 = vadd.f32 %v1985_v11, %v1842_v59  ;;  %v5613_v36 = vadd.f32 %v2127_v53, %v2002_v57  ;;  %v2136_v53 = vadd.f32 %v5462_v29, %v5444_v16 }
 0x2c0   : > { %3909 = vmatmul.msk.f32.gmra.mxu0 %vm526_vm0, %v2630_v5  ;;  %v5628_v43 = vpop.f32.mrf.mxu1  ;;  %v2297_v16 = vadd.f32 %v5571_v48, %v2136_v53 }
 0x2c1   : > { %v2407_v32 = vpop.f32.mrf.mxu2 }
 0x2c2   : > { %v2455_v9 = vadd.f32 %v2407_v32, %v2294_v15 }
 0x2c5   : > { %v2552_v55 = vpop.f32.mrf.mxu3  ;;  %v2130_v35 = vpop.f32.mrf.mxu0 }
 0x2c6   : > { %v5620_v20 = vadd.f32 %v2130_v35, %v2003_v54  ;;  %v2600_v14 = vadd.f32 %v2552_v55, %v2455_v9 }
 0x2c8   : > { %3910 = vmatmul.msk.f32.gmra.mxu0 %vm526_vm0, %v2647_v34  ;;  %v5646_v30 = vpop.f32.mrf.mxu1 }
 0x2c9   : > { %v2410_v41 = vpop.f32.mrf.mxu2 }
 0x2ca   : > { %v2456_v2 = vadd.f32 %v2410_v41, %v2295_v49  ;;  %v2137_v49 = vadd.f32 %v5476_v60, %v5456_v4  ;;  %v2139_v4 = vadd.f32 %v5500_v47, %v5483_v63 }
 0x2cd   : > { %v2713_v1 = vpop.f32.mrf.mxu0  ;;  %v2555_v40 = vpop.f32.mrf.mxu3 }
 0x2ce   : > { %v5630_v58 = vadd.f32 %v2713_v1, %v2600_v14  ;;  %v2601_v46 = vadd.f32 %v2555_v40, %v2456_v2 }
 0x2d0   : > { %v5634_v45 = vmul.f32 0.70710677, %v5630_v58  ;;  %v2273_v29 = vpop.f32.mrf.mxu1 }
 0x2d1   : > { %v2413_v6 = vpop.f32.mrf.mxu2 }
 0x2d2   : > { %v2809_v37 = vmul.f32 %v5634_v45, %v5634_v45  ;;  %v2457_v11 = vadd.f32 %v2413_v6, %v2296_v33  ;;  %v2140_v33 = vadd.f32 %v5509_v7, %v5495_v22 }
 0x2d4   : > { %v5640_v8 = vmin.f32 %v2809_v37, 16.0 }
 0x2d5   : > { %v2716_v10 = vpop.f32.mrf.mxu0  ;;  %v2558_v24 = vpop.f32.mrf.mxu3 }
 0x2d6   : > { %v2811_v57 = vmul.f32 2.1237322e-06, %v5640_v8  ;;  %v2822_v19 = vmul.f32 3.8918573e-05, %v5640_v8  ;;  %v5644_v17 = vadd.f32 %v2716_v10, %v2601_v46  ;;  %v2602_v55 = vadd.f32 %v2558_v24, %v2457_v11 }
 0x2d7   : > { %v2138_v10 = vadd.f32 %v5486_v31, %v5471_v23 }
 0x2d8   : > { %v2812_v28 = vadd.f32 0.00028619796, %v2811_v57  ;;  %v2823_v27 = vadd.f32 0.001143296, %v2822_v19  ;;  %v5650_v59 = vmul.f32 0.70710677, %v5644_v17 }
 0x2d9   : > { %v2416_v61 = vpop.f32.mrf.mxu2  ;;  %v2299_v22 = vadd.f32 %v5608_v62, %v2138_v10 }
 0x2da   : > { %v2813_v56 = vmul.f32 %v2812_v28, %v5640_v8  ;;  %v2824_v12 = vmul.f32 %v2823_v27, %v5640_v8  ;;  %v2849_v54 = vmul.f32 %v5650_v59, %v5650_v59  ;;  %v2458_v37 = vadd.f32 %v2416_v61, %v2297_v16 }
 0x2db   : > { %v5695_v61 = vadd.f32 %v5616_v51, %v2139_v4 }
 0x2dc   : > { %v2814_v5 = vadd.f32 0.0036580483, %v2813_v56  ;;  %v2825_v32 = vadd.f32 0.014752088, %v2824_v12  ;;  %v5658_v21 = vmin.f32 %v2849_v54, 16.0  ;;  %v2298_v12 = vadd.f32 %v5594_v25, %v2137_v49 }
 0x2dd   : > { %v2719_v38 = vpop.f32.mrf.mxu0  ;;  %v2561_v40 = vpop.f32.mrf.mxu3 }
 0x2de   : > { %v2815_v52 = vmul.f32 %v2814_v5, %v5640_v8  ;;  %v2826_v35 = vmul.f32 %v2825_v32, %v5640_v8  ;;  %v2763_v18 = vadd.f32 %v2719_v38, %v2602_v55  ;;  %v2851_v34 = vmul.f32 2.1237322e-06, %v5658_v21 }
 0x2df   : > { %v2862_v15 = vmul.f32 3.8918573e-05, %v5658_v21  ;;  %v2603_v19 = vadd.f32 %v2561_v40, %v2458_v37  ;;  %v5699_v38 = vadd.f32 %v5628_v43, %v2140_v33 }
 0x2e0   : > { %v2816_v41 = vadd.f32 0.05243302, %v2815_v52  ;;  %v2827_v9 = vadd.f32 0.112945676, %v2826_v35  ;;  %v2852_v50 = vadd.f32 0.00028619796, %v2851_v34  ;;  %v5703_v52 = vadd.f32 %v5646_v30, %v5528_v0  ;;  %v2276_v34 = vpop.f32.mrf.mxu1 }
 0x2e1   : > { %v2863_v14 = vadd.f32 0.001143296, %v2862_v15  ;;  %v5665_v1 = vmul.f32 0.70710677, %v2763_v18  ;;  %v2419_v11 = vpop.f32.mrf.mxu2  ;;  %v5706_v35 = vadd.f32 %v2273_v29, %v5541_v26  ;;  %v5715_v0 = vadd.f32 %v2276_v34, %v5559_v13 }
 0x2e2   : > { %v2828_v2 = vmul.f32 %v2827_v9, %v5640_v8  ;;  %v2817_v6 = vmul.f32 %v2816_v41, %v5640_v8  ;;  %v2853_v3 = vmul.f32 %v2852_v50, %v5658_v21  ;;  %v2459_v43 = vadd.f32 %v2419_v11, %v2298_v12 }
 0x2e3   : > { %v2864_v46 = vmul.f32 %v2863_v14, %v5658_v21  ;;  %v2889_v48 = vmul.f32 %v5665_v1, %v5665_v1  ;;  %v5718_v26 = vmul.f32 0.5, %v5630_v58  ;;  %v5723_v29 = vmul.f32 0.5, %v2763_v18 }
 0x2e4   : > { %v2829_v57 = vadd.f32 0.4994258, %v2828_v2  ;;  %v2854_v60 = vadd.f32 0.0036580483, %v2853_v3  ;;  %v2818_v23 = vadd.f32 0.18741608, %v2817_v6 }
 0x2e5   : > { %v2865_v24 = vadd.f32 0.014752088, %v2864_v46  ;;  %v5679_v28 = vmin.f32 %v2889_v48, 16.0  ;;  %v2722_v27 = vpop.f32.mrf.mxu0  ;;  %v2564_v9 = vpop.f32.mrf.mxu3 }
 0x2e6   : > { %v2830_v56 = vmul.f32 %v2829_v57, %v5640_v8  ;;  %v2764_v54 = vadd.f32 %v2722_v27, %v2603_v19  ;;  %v2855_v31 = vmul.f32 %v2854_v60, %v5658_v21  ;;  %v2819_v62 = vmul.f32 %v2818_v23, %v5640_v8 }
 0x2e7   : > { %v2866_v53 = vmul.f32 %v2865_v24, %v5658_v21  ;;  %v2891_v63 = vmul.f32 2.1237322e-06, %v5679_v28  ;;  %v2902_v5 = vmul.f32 3.8918573e-05, %v5679_v28  ;;  %v5721_v8 = vmul.f32 0.5, %v5644_v17 }
 0x2e8   : > { %v5688_v47 = vadd.f32 1.0, %v2830_v56  ;;  %v5691_v32 = vmul.f32 0.70710677, %v2764_v54  ;;  %v2856_v7 = vadd.f32 0.05243302, %v2855_v31  ;;  %v2604_v37 = vadd.f32 %v2564_v9, %v2459_v43 }
 0x2e9   : > { %v2867_v55 = vadd.f32 0.112945676, %v2866_v53  ;;  %v2892_v25 = vadd.f32 0.00028619796, %v2891_v63  ;;  %v2903_v16 = vadd.f32 0.001143296, %v2902_v5  ;;  %v2422_v57 = vpop.f32.mrf.mxu2 }
 0x2ea   : > { %4036 = vrcp.f32 %v5688_v47  ;;  %v2857_v15 = vmul.f32 %v2856_v7, %v5658_v21  ;;  %v2929_v50 = vmul.f32 %v5691_v32, %v5691_v32  ;;  %v2820_v6 = vadd.f32 1.1283791, %v2819_v62 }
 0x2eb   : > { %v2868_v51 = vmul.f32 %v2867_v55, %v5658_v21  ;;  %v2893_v41 = vmul.f32 %v2892_v25, %v5679_v28  ;;  %v2904_v49 = vmul.f32 %v2903_v16, %v5679_v28  ;;  %v5729_v46 = vmul.f32 0.5, %v2764_v54 }
 0x2ec   : > { %v5726_v2 = vmin.f32 %v2929_v50, 16.0  ;;  %v2858_v3 = vadd.f32 0.18741608, %v2857_v15  ;;  %v2841_v4 = vand.u32 2147483647, %v5688_v47  ;;  %v2843_v60 = vand.u32 2147483648, %v5688_v47 }
 0x2ed   : > { %v2869_v30 = vadd.f32 0.4994258, %v2868_v51  ;;  %v2725_v14 = vpop.f32.mrf.mxu0  ;;  %v2894_v40 = vadd.f32 0.0036580483, %v2893_v41  ;;  %v2905_v48 = vadd.f32 0.014752088, %v2904_v49  ;;  %v2460_v54 = vadd.f32 %v2422_v57, %v2299_v22  ;;  %v2567_v34 = vpop.f32.mrf.mxu3 }
 0x2ee   : > { %v2931_v18 = vmul.f32 2.1237322e-06, %v5726_v2  ;;  %v2942_v10 = vmul.f32 3.8918573e-05, %v5726_v2  ;;  %v5741_v23 = vadd.f32 %v2725_v14, %v2604_v37  ;;  %v2821_v31 = vmul.f32 %v2820_v6, %v5634_v45 }
 0x2ef   : > { %v2870_v13 = vmul.f32 %v2869_v30, %v5658_v21  ;;  %v2895_v17 = vmul.f32 %v2894_v40, %v5679_v28  ;;  %v2906_v33 = vmul.f32 %v2905_v48, %v5679_v28  ;;  %v2859_v53 = vmul.f32 %v2858_v3, %v5658_v21  ;;  %v3481_v21 = vld [vmem:[%s6313_s7] sm:$0xff] }
 0x2f0   : > { %v4037_v58 = vpop.eup %4036  ;;  %v2932_v56 = vadd.f32 0.00028619796, %v2931_v18  ;;  %v2943_v12 = vadd.f32 0.001143296, %v2942_v10  ;;  %vm2837_vm7 = vweird.f32 %v5688_v47  ;;  %vm5749_vm10 = vcmp.eq.f32.partialorder %v2841_v4, 8.507059e+37  ;;  %3553 = vmatpush.msra.mxu1 %v3481_v21 }
 0x2f1   : > { %v2833_v19 = vmul.f32 %v4037_v58, %v5688_v47  ;;  %v5737_v24 = vadd.f32 1.0, %v2870_v13  ;;  %v2896_v27 = vadd.f32 0.05243302, %v2895_v17  ;;  %v2907_v5 = vadd.f32 0.112945676, %v2906_v33  ;;  %v2425_v33 = vpop.f32.mrf.mxu2 }
 0x2f2   : > { %vm2838_vm4 = vweird.f32 %v4037_v58  ;;  %v2933_v55 = vmul.f32 %v2932_v56, %v5726_v2  ;;  %v2944_v25 = vmul.f32 %v2943_v12, %v5726_v2  ;;  %v2844_v62 = vor.u32 1.1754944e-38, %v2843_v60 }
 0x2f3   : > { %v2834_v11 = vsub.f32 1.0, %v2833_v19  ;;  %4038 = vrcp.f32 %v5737_v24  ;;  %v2897_v63 = vmul.f32 %v2896_v27, %v5679_v28  ;;  %v2908_v45 = vmul.f32 %v2907_v5, %v5679_v28  ;;  %vm2839_vm5 = vmor %vm2837_vm7, %vm2838_vm4 }
 0x2f4   : > { %v2934_v51 = vadd.f32 0.0036580483, %v2933_v55  ;;  %v2945_v41 = vadd.f32 0.014752088, %v2944_v25  ;;  %v5758_v9 = vmul.f32 0.70710677, %v5741_v23  ;;  %v2605_v30 = vadd.f32 %v2567_v34, %v2460_v54 }
 0x2f5   : > { %v2835_v7 = vmul.f32 %v4037_v58, %v2834_v11  ;;  %v2728_v16 = vpop.f32.mrf.mxu0  ;;  %v2860_v47 = vadd.f32 1.1283791, %v2859_v53  ;;  %v2898_v43 = vadd.f32 0.18741608, %v2897_v63  ;;  %v2909_v50 = vadd.f32 0.4994258, %v2908_v45 }
 0x2f6   : > { %v2935_v49 = vmul.f32 %v2934_v51, %v5726_v2  ;;  %v2946_v37 = vmul.f32 %v2945_v41, %v5726_v2  ;;  %v2969_v6 = vmul.f32 %v5758_v9, %v5758_v9  ;;  %v2881_v17 = vand.u32 2147483647, %v5737_v24 }
 0x2f7   : > { %v2836_v15 = vadd.f32 %v4037_v58, %v2835_v7  ;;  %v5769_v48 = vadd.f32 %v2728_v16, %v2605_v30  ;;  %v2910_v10 = vmul.f32 %v2909_v50, %v5679_v28  ;;  %v2883_v4 = vand.u32 2147483648, %v5737_v24 }
 0x2f8   : > { %v2947_v57 = vadd.f32 0.112945676, %v2946_v37  ;;  %v2899_v60 = vmul.f32 %v2898_v43, %v5679_v28  ;;  %v5774_v27 = vmin.f32 %v2969_v6, 16.0  ;;  %vm2877_vm8 = vweird.f32 %v5737_v24 }
 0x2f9   : > { %v4039_v14 = vpop.eup %4038  ;;  %v2840_v40 = vsel %vm2839_vm5, %v4037_v58, %v2836_v15  ;;  %v2936_v58 = vadd.f32 0.05243302, %v2935_v49  ;;  %v5776_v56 = vadd.f32 1.0, %v2910_v10  ;;  %vm5783_vm2 = vcmp.eq.f32.partialorder %v2881_v17, 8.507059e+37 }
 0x2fa   : > { %v2845_v3 = vsel %vm5749_vm10, %v2844_v62, %v2840_v40  ;;  %v2873_v13 = vmul.f32 %v4039_v14, %v5737_v24  ;;  %vm2878_vm11 = vweird.f32 %v4039_v14  ;;  %v2948_v11 = vmul.f32 %v2947_v57, %v5726_v2 }
 0x2fb   : > { %v2846_v18 = vmul.f32 %v2845_v3, %v2821_v31  ;;  %v2937_v12 = vmul.f32 %v2936_v58, %v5726_v2  ;;  %v2971_v53 = vmul.f32 2.1237322e-06, %v5774_v27  ;;  %v2982_v63 = vmul.f32 3.8918573e-05, %v5774_v27  ;;  %vm2879_vm14 = vmor %vm2877_vm8, %vm2878_vm11 }
 0x2fc   : > { %v2874_v19 = vsub.f32 1.0, %v2873_v13  ;;  %4040 = vrcp.f32 %v5776_v56  ;;  %v5789_v5 = vmul.f32 0.70710677, %v5769_v48  ;;  %v2884_v55 = vor.u32 1.1754944e-38, %v2883_v4 }
 0x2fd   : > { %v3911_v54 = vclamps-f32 %v2846_v18, 1.0  ;;  %v2938_v25 = vadd.f32 0.18741608, %v2937_v12  ;;  %v2949_v34 = vadd.f32 0.4994258, %v2948_v11  ;;  %v2861_v22 = vmul.f32 %v2860_v47, %v5650_v59  ;;  %v2570_v47 = vpop.f32.mrf.mxu3  ;;  %v2731_v18 = vpop.f32.mrf.mxu0 }
 0x2fe   : > { %v2875_v31 = vmul.f32 %v4039_v14, %v2874_v19  ;;  %v2900_v62 = vadd.f32 1.1283791, %v2899_v60  ;;  %v2972_v45 = vadd.f32 0.00028619796, %v2971_v53  ;;  %v2983_v24 = vadd.f32 0.001143296, %v2982_v63 }
 0x2ff   : > { %v3449_v21 = vadd.f32 1.0, %v3911_v54  ;;  %v2921_v51 = vand.u32 2147483647, %v5776_v56  ;;  %v2950_v41 = vmul.f32 %v2949_v34, %v5726_v2  ;;  %v2923_v16 = vand.u32 2147483648, %v5776_v56 }
 0x300   : > { %v2876_v7 = vadd.f32 %v4039_v14, %v2875_v31  ;;  %v2973_v43 = vmul.f32 %v2972_v45, %v5774_v27  ;;  %v2984_v50 = vmul.f32 %v2983_v24, %v5774_v27  ;;  %v3009_v59 = vmul.f32 %v5789_v5, %v5789_v5 }
 0x301   : > { %v2939_v40 = vmul.f32 %v2938_v25, %v5726_v2  ;;  %v5806_v49 = vmul.f32 0.5, %v5741_v23  ;;  %v2461_v13 = vadd.f32 %v2425_v33, %v5695_v61  ;;  %v3465_v10 = vmul.f32 %v3449_v21, %v5718_v26  ;;  %v2428_v2 = vpop.f32.mrf.mxu2 }
 0x302   : > { %v2880_v15 = vsel %vm2879_vm14, %v4039_v14, %v2876_v7  ;;  %v5803_v14 = vadd.f32 1.0, %v2950_v41  ;;  %v4041_v37 = vpop.eup %4040  ;;  %v2974_v6 = vadd.f32 0.0036580483, %v2973_v43  ;;  %v2985_v3 = vadd.f32 0.014752088, %v2984_v50 }
 0x303   : > { %v2885_v30 = vsel %vm5783_vm2, %v2884_v55, %v2880_v15  ;;  %v5809_v17 = vmin.f32 %v3009_v59, 16.0  ;;  %v2901_v58 = vmul.f32 %v2900_v62, %v5665_v1  ;;  %v2913_v57 = vmul.f32 %v4041_v37, %v5776_v56  ;;  %3927 = vmatmul.msk.f32.vlgmr.msra.gmra.mxu1 %vm3489_vm13, %v3465_v10 }
 0x304   : > { %vm2917_vm1 = vweird.f32 %v5776_v56  ;;  %v2886_v19 = vmul.f32 %v2885_v30, %v2861_v22  ;;  %vm5815_vm3 = vcmp.eq.f32.partialorder %v2921_v51, 8.507059e+37  ;;  %v2924_v4 = vor.u32 1.1754944e-38, %v2923_v16 }
 0x305   : > { %4042 = vrcp.f32 %v5803_v14  ;;  %v2914_v61 = vsub.f32 1.0, %v2913_v57  ;;  %v2940_v60 = vadd.f32 1.1283791, %v2939_v40  ;;  %v2975_v33 = vmul.f32 %v2974_v6, %v5774_v27  ;;  %v2573_v41 = vpop.f32.mrf.mxu3  ;;  %v2734_v40 = vpop.f32.mrf.mxu0 }
 0x306   : > { %v2986_v26 = vmul.f32 %v2985_v3, %v5774_v27  ;;  %v3011_v1 = vmul.f32 2.1237322e-06, %v5809_v17  ;;  %v3022_v12 = vmul.f32 3.8918573e-05, %v5809_v17  ;;  %v2606_v11 = vadd.f32 %v2570_v47, %v2461_v13 }
 0x307   : > { %v2462_v54 = vadd.f32 %v2428_v2, %v5699_v38  ;;  %v2915_v31 = vmul.f32 %v4041_v37, %v2914_v61  ;;  %vm2918_vm6 = vweird.f32 %v4041_v37  ;;  %v2976_v53 = vadd.f32 0.05243302, %v2975_v33 }
 0x308   : > { %v2987_v63 = vadd.f32 0.112945676, %v2986_v26  ;;  %v3912_v28 = vclamps-f32 %v2886_v19, 1.0  ;;  %v3012_v7 = vadd.f32 0.00028619796, %v3011_v1  ;;  %v5825_v25 = vadd.f32 %v2731_v18, %v2606_v11  ;;  %vm2919_vm12 = vmor %vm2917_vm1, %vm2918_vm6 }
 0x309   : > { %v3023_v55 = vadd.f32 0.001143296, %v3022_v12  ;;  %v2916_v34 = vadd.f32 %v4041_v37, %v2915_v31  ;;  %v2941_v22 = vmul.f32 %v2940_v60, %v5691_v32  ;;  %v2977_v62 = vmul.f32 %v2976_v53, %v5774_v27  ;;  %v2431_v12 = vpop.f32.mrf.mxu2 }
 0x30a   : > { %v2988_v45 = vmul.f32 %v2987_v63, %v5774_v27  ;;  %v2961_v38 = vand.u32 2147483647, %v5803_v14  ;;  %v3013_v21 = vmul.f32 %v3012_v7, %v5809_v17  ;;  %v5836_v51 = vmul.f32 0.70710677, %v5825_v25 }
 0x30b   : > { %v4043_v24 = vpop.eup %4042  ;;  %v3024_v15 = vmul.f32 %v3023_v55, %v5809_v17  ;;  %v2920_v16 = vsel %vm2919_vm12, %v4041_v37, %v2916_v34  ;;  %v2963_v43 = vand.u32 2147483648, %v5803_v14  ;;  %v2978_v50 = vadd.f32 0.18741608, %v2977_v62 }
 0x30c   : > { %v2953_v32 = vmul.f32 %v4043_v24, %v5803_v14  ;;  %v2925_v56 = vsel %vm5815_vm3, %v2924_v4, %v2920_v16  ;;  %v2989_v59 = vadd.f32 0.4994258, %v2988_v45  ;;  %v3014_v47 = vadd.f32 0.0036580483, %v3013_v21 }
 0x30d   : > { %v3025_v30 = vadd.f32 0.014752088, %v3024_v15  ;;  %v3450_v6 = vadd.f32 1.0, %v3912_v28  ;;  %v2926_v3 = vmul.f32 %v2925_v56, %v2901_v58  ;;  %v3049_v18 = vmul.f32 %v5836_v51, %v5836_v51  ;;  %v2576_v34 = vpop.f32.mrf.mxu3  ;;  %v2737_v16 = vpop.f32.mrf.mxu0 }
 0x30e   : > { %v2954_v13 = vsub.f32 1.0, %v2953_v32  ;;  %v2990_v37 = vmul.f32 %v2989_v59, %v5774_v27  ;;  %v3015_v57 = vmul.f32 %v3014_v47, %v5809_v17  ;;  %vm2958_vm15 = vweird.f32 %v4043_v24 }
 0x30f   : > { %v3026_v2 = vmul.f32 %v3025_v30, %v5809_v17  ;;  %v5847_v23 = vmin.f32 %v3049_v18, 16.0  ;;  %v2607_v4 = vadd.f32 %v2573_v41, %v2462_v54  ;;  %v2979_v58 = vmul.f32 %v2978_v50, %v5774_v27 }
 0x310   : > { %v2955_v19 = vmul.f32 %v4043_v24, %v2954_v13  ;;  %v5851_v61 = vadd.f32 1.0, %v2990_v37  ;;  %v3016_v60 = vadd.f32 0.05243302, %v3015_v57  ;;  %vm2957_vm9 = vweird.f32 %v5803_v14 }
 0x311   : > { %v3027_v33 = vadd.f32 0.112945676, %v3026_v2  ;;  %vm2962_vm4 = vcmp.eq.f32.partialorder %v2961_v38, 8.507059e+37  ;;  %v3051_v1 = vmul.f32 2.1237322e-06, %v5847_v23  ;;  %v3913_v11 = vclamps-f32 %v2926_v3, 1.0  ;;  %vm2959_vm7 = vmor %vm2957_vm9, %vm2958_vm15 }
 0x312   : > { %v2956_v26 = vadd.f32 %v4043_v24, %v2955_v19  ;;  %v2964_v31 = vor.u32 1.1754944e-38, %v2963_v43  ;;  %4044 = vrcp.f32 %v5851_v61  ;;  %v5856_v54 = vadd.f32 %v2734_v40, %v2607_v4  ;;  %v2434_v4 = vpop.f32.mrf.mxu2 }
 0x313   : > { %v3466_v27 = vmul.f32 %v3450_v6, %v5721_v8  ;;  %v3017_v53 = vmul.f32 %v3016_v60, %v5809_v17  ;;  %v3028_v63 = vmul.f32 %v3027_v33, %v5809_v17  ;;  %v2980_v14 = vadd.f32 1.1283791, %v2979_v58 }
 0x314   : > { %v2960_v10 = vsel %vm2959_vm7, %v4043_v24, %v2956_v26  ;;  %v3052_v7 = vadd.f32 0.00028619796, %v3051_v1  ;;  %v2463_v55 = vadd.f32 %v2431_v12, %v5703_v52  ;;  %v3062_v21 = vmul.f32 3.8918573e-05, %v5847_v23 }
 0x315   : > { %v2965_v28 = vsel %vm2962_vm4, %v2964_v31, %v2960_v10  ;;  %v3018_v45 = vadd.f32 0.18741608, %v3017_v53  ;;  %v3029_v38 = vadd.f32 0.4994258, %v3028_v63  ;;  %v3451_v15 = vadd.f32 1.0, %v3913_v11  ;;  %3928 = vmatmul.msk.f32.gmra.mxu1 %vm3489_vm13, %v3466_v27 }
 0x316   : > { %v2966_v62 = vmul.f32 %v2965_v28, %v2941_v22  ;;  %v3001_v41 = vand.u32 2147483647, %v5851_v61  ;;  %v3053_v8 = vmul.f32 %v3052_v7, %v5847_v23  ;;  %v5866_v24 = vmul.f32 0.70710677, %v5856_v54 }
 0x317   : > { %v3003_v32 = vand.u32 2147483648, %v5851_v61  ;;  %v3030_v43 = vmul.f32 %v3029_v38, %v5809_v17  ;;  %v3063_v52 = vadd.f32 0.001143296, %v3062_v21  ;;  %v2608_v50 = vadd.f32 %v2576_v34, %v2463_v55 }
 0x318   : > { %v4045_v22 = vpop.eup %4044  ;;  %v3914_v56 = vclamps-f32 %v2966_v62, 1.0  ;;  %v3019_v59 = vmul.f32 %v3018_v45, %v5809_v17  ;;  %v3054_v47 = vadd.f32 0.0036580483, %v3053_v8  ;;  %v3089_v30 = vmul.f32 %v5866_v24, %v5866_v24  ;;  %v2279_v62 = vpop.f32.mrf.mxu1 }
 0x319   : > { %v2981_v40 = vmul.f32 %v2980_v14, %v5758_v9  ;;  %v2993_v6 = vmul.f32 %v4045_v22, %v5851_v61  ;;  %vm2997_vm10 = vweird.f32 %v5851_v61  ;;  %v5877_v3 = vadd.f32 %v2737_v16, %v2608_v50  ;;  %v2579_v14 = vpop.f32.mrf.mxu3  ;;  %v2740_v8 = vpop.f32.mrf.mxu0 }
 0x31a   : > { %v5879_v13 = vadd.f32 1.0, %v3030_v43  ;;  %v3055_v18 = vmul.f32 %v3054_v47, %v5847_v23  ;;  %v3064_v37 = vmul.f32 %v3063_v52, %v5847_v23  ;;  %v5883_v57 = vmin.f32 %v3089_v30, 16.0 }
 0x31b   : > { %v3467_v17 = vmul.f32 %v3451_v15, %v5723_v29  ;;  %v2994_v2 = vsub.f32 1.0, %v2993_v6  ;;  %vm5886_vm5 = vcmp.eq.f32.partialorder %v3001_v41, 8.507059e+37  ;;  %v3004_v9 = vor.u32 1.1754944e-38, %v3003_v32 }
 0x31c   : > { %v3452_v58 = vadd.f32 1.0, %v3914_v56  ;;  %vm2998_vm11 = vweird.f32 %v4045_v22  ;;  %v3020_v60 = vadd.f32 1.1283791, %v3019_v59  ;;  %4046 = vrcp.f32 %v5879_v13 }
 0x31d   : > { %v2995_v33 = vmul.f32 %v4045_v22, %v2994_v2  ;;  %v3056_v26 = vadd.f32 0.05243302, %v3055_v18  ;;  %v3065_v1 = vadd.f32 0.014752088, %v3064_v37  ;;  %v3091_v12 = vmul.f32 2.1237322e-06, %v5883_v57  ;;  %3929 = vmatmul.msk.f32.gmra.mxu1 %vm3489_vm13, %v3467_v17  ;;  %vm2999_vm8 = vmor %vm2997_vm10, %vm2998_vm11 }
 0x31e   : > { %v3041_v11 = vand.u32 2147483647, %v5879_v13  ;;  %v3102_v29 = vmul.f32 3.8918573e-05, %v5883_v57  ;;  %v2464_v31 = vadd.f32 %v2434_v4, %v5706_v35  ;;  %v5896_v27 = vmul.f32 0.70710677, %v5877_v3 }
 0x31f   : > { %v2996_v10 = vadd.f32 %v4045_v22, %v2995_v33  ;;  %v3057_v53 = vmul.f32 %v3056_v26, %v5847_v23  ;;  %v3066_v63 = vmul.f32 %v3065_v1, %v5847_v23  ;;  %v3092_v28 = vadd.f32 0.00028619796, %v3091_v12 }
 0x320   : > { %v3468_v7 = vmul.f32 %v3452_v58, %v5729_v46  ;;  %v3021_v35 = vmul.f32 %v3020_v60, %v5789_v5  ;;  %v3103_v55 = vadd.f32 0.001143296, %v3102_v29  ;;  %v3129_v34 = vmul.f32 %v5896_v27, %v5896_v27  ;;  %v2437_v60 = vpop.f32.mrf.mxu2 }
 0x321   : > { %v3000_v45 = vsel %vm2999_vm8, %v4045_v22, %v2996_v10  ;;  %vm3037_vm2 = vweird.f32 %v5879_v13  ;;  %v3067_v38 = vadd.f32 0.112945676, %v3066_v63  ;;  %v3093_v21 = vmul.f32 %v3092_v28, %v5883_v57 }
 0x322   : > { %v4047_v15 = vpop.eup %4046  ;;  %v3005_v46 = vsel %vm5886_vm5, %v3004_v9, %v3000_v45  ;;  %v3043_v61 = vand.u32 2147483648, %v5879_v13  ;;  %v3104_v41 = vmul.f32 %v3103_v55, %v5883_v57  ;;  %v5914_v5 = vmin.f32 %v3129_v34, 16.0  ;;  %v2282_v55 = vpop.f32.mrf.mxu1 }
 0x323   : > { %v3006_v16 = vmul.f32 %v3005_v46, %v2981_v40  ;;  %v3033_v32 = vmul.f32 %v4047_v15, %v5879_v13  ;;  %vm5917_vm14 = vcmp.eq.f32.partialorder %v3041_v11, 8.507059e+37  ;;  %v3058_v52 = vadd.f32 0.18741608, %v3057_v53  ;;  %v2582_v53 = vpop.f32.mrf.mxu3 }
 0x324   : > { %v2609_v50 = vadd.f32 %v2579_v14, %v2464_v31  ;;  %v3068_v22 = vmul.f32 %v3067_v38, %v5847_v23  ;;  %v3094_v56 = vadd.f32 0.0036580483, %v3093_v21  ;;  %v3105_v59 = vadd.f32 0.014752088, %v3104_v41 }
 0x325   : > { %v3131_v47 = vmul.f32 2.1237322e-06, %v5914_v5  ;;  %v3915_v30 = vclamps-f32 %v3006_v16, 1.0  ;;  %v3034_v6 = vsub.f32 1.0, %v3033_v32  ;;  %v3142_v18 = vmul.f32 3.8918573e-05, %v5914_v5  ;;  %3930 = vmatmul.msk.f32.gmra.mxu1 %vm3489_vm13, %v3468_v7 }
 0x326   : > { %v5924_v37 = vadd.f32 %v2740_v8, %v2609_v50  ;;  %v3069_v40 = vadd.f32 0.4994258, %v3068_v22  ;;  %v3095_v17 = vmul.f32 %v3094_v56, %v5883_v57  ;;  %v3106_v2 = vmul.f32 %v3105_v59, %v5883_v57 }
 0x327   : > { %v3132_v19 = vadd.f32 0.00028619796, %v3131_v47  ;;  %v3453_v9 = vadd.f32 1.0, %v3915_v30  ;;  %v3035_v4 = vmul.f32 %v4047_v15, %v3034_v6  ;;  %vm3038_vm1 = vweird.f32 %v4047_v15 }
 0x328   : > { %v3143_v58 = vadd.f32 0.001143296, %v3142_v18  ;;  %v3070_v33 = vmul.f32 %v3069_v40, %v5847_v23  ;;  %v3096_v26 = vadd.f32 0.05243302, %v3095_v17  ;;  %v3107_v1 = vadd.f32 0.112945676, %v3106_v2  ;;  %vm3039_vm3 = vmor %vm3037_vm2, %vm3038_vm1  ;;  %v2440_v6 = vpop.f32.mrf.mxu2 }
 0x329   : > { %v3133_v12 = vmul.f32 %v3132_v19, %v5914_v5  ;;  %v3036_v11 = vadd.f32 %v4047_v15, %v3035_v4  ;;  %v3044_v29 = vor.u32 1.1754944e-38, %v3043_v61  ;;  %v3059_v31 = vmul.f32 %v3058_v52, %v5847_v23 }
 0x32a   : > { %v3144_v10 = vmul.f32 %v3143_v58, %v5914_v5  ;;  %v5935_v63 = vadd.f32 1.0, %v3070_v33  ;;  %v3097_v28 = vmul.f32 %v3096_v26, %v5883_v57  ;;  %v3108_v14 = vmul.f32 %v3107_v1, %v5883_v57 }
 0x32b   : > { %v3134_v7 = vadd.f32 0.0036580483, %v3133_v12  ;;  %v3469_v34 = vmul.f32 %v3453_v9, %v5806_v49  ;;  %v3040_v45 = vsel %vm3039_vm3, %v4047_v15, %v3036_v11  ;;  %v5941_v23 = vmul.f32 0.70710677, %v5924_v37  ;;  %v2743_v15 = vpop.f32.mrf.mxu0 }
 0x32c   : > { %v3145_v38 = vadd.f32 0.014752088, %v3144_v10  ;;  %v3045_v21 = vsel %vm5917_vm14, %v3044_v29, %v3040_v45  ;;  %4048 = vrcp.f32 %v5935_v63  ;;  %v2305_v13 = vadd.f32 %v2279_v62, %v5577_v44 }
 0x32d   : > { %v5948_v46 = vadd.f32 %v2282_v55, %v5596_v39  ;;  %v2782_v61 = vmul.f32 0.5, %v5769_v48  ;;  %v3046_v41 = vmul.f32 %v3045_v21, %v3021_v35  ;;  %v3098_v8 = vadd.f32 0.18741608, %v3097_v28  ;;  %3931 = vmatmul.msk.f32.gmra.mxu1 %vm3489_vm13, %v3469_v34 }
 0x32e   : > { %v3109_v49 = vadd.f32 0.4994258, %v3108_v14  ;;  %v3135_v16 = vmul.f32 %v3134_v7, %v5914_v5  ;;  %v3146_v32 = vmul.f32 %v3145_v38, %v5914_v5  ;;  %v2465_v43 = vadd.f32 %v2437_v60, %v5715_v0  ;;  %v5990_v7 = vpop.f32.mrf.mxu1 }
 0x32f   : > { %v3169_v52 = vmul.f32 %v5941_v23, %v5941_v23  ;;  %v3916_v50 = vclamps-f32 %v3046_v41, 1.0  ;;  %v3060_v44 = vadd.f32 1.1283791, %v3059_v31  ;;  %v3081_v39 = vand.u32 2147483647, %v5935_v63 }
 0x330   : > { %v3110_v62 = vmul.f32 %v3109_v49, %v5883_v57  ;;  %v3136_v48 = vadd.f32 0.05243302, %v3135_v16  ;;  %v3147_v35 = vadd.f32 0.112945676, %v3146_v32  ;;  %v2610_v56 = vadd.f32 %v2582_v53, %v2465_v43 }
 0x331   : > { %v5959_v22 = vmin.f32 %v3169_v52, 16.0  ;;  %v3454_v59 = vadd.f32 1.0, %v3916_v50  ;;  %v3083_v47 = vand.u32 2147483648, %v5935_v63  ;;  %v3099_v0 = vmul.f32 %v3098_v8, %v5883_v57  ;;  %v2585_v57 = vpop.f32.mrf.mxu3 }
 0x332   : > { %v5963_v30 = vadd.f32 1.0, %v3110_v62  ;;  %v4049_v18 = vpop.eup %4048  ;;  %v3137_v40 = vmul.f32 %v3136_v48, %v5914_v5  ;;  %v3148_v17 = vmul.f32 %v3147_v35, %v5914_v5  ;;  %v5970_v4 = vmul.f32 0.5, %v5825_v25 }
 0x333   : > { %v3171_v2 = vmul.f32 2.1237322e-06, %v5959_v22  ;;  %v3182_v19 = vmul.f32 3.8918573e-05, %v5959_v22  ;;  %v3470_v9 = vmul.f32 %v3454_v59, %v2782_v61  ;;  %v3073_v58 = vmul.f32 %v4049_v18, %v5935_v63 }
 0x334   : > { %v5973_v60 = vadd.f32 %v2743_v15, %v2610_v56  ;;  %v3061_v33 = vmul.f32 %v3060_v44, %v5836_v51  ;;  %vm5976_vm6 = vcmp.eq.f32.partialorder %v3081_v39, 8.507059e+37  ;;  %v5981_v1 = vmul.f32 0.5, %v5856_v54  ;;  %v2746_v54 = vpop.f32.mrf.mxu0  ;;  %v2443_v44 = vpop.f32.mrf.mxu2 }
 0x335   : > { %4050 = vrcp.f32 %v5963_v30  ;;  %v3074_v12 = vsub.f32 1.0, %v3073_v58  ;;  %v3084_v11 = vor.u32 1.1754944e-38, %v3083_v47  ;;  %v3100_v25 = vadd.f32 1.1283791, %v3099_v0  ;;  %3932 = vmatmul.msk.f32.gmra.mxu1 %vm3489_vm13, %v3470_v9 }
 0x336   : > { %v3149_v29 = vadd.f32 0.4994258, %v3148_v17  ;;  %vm3077_vm12 = vweird.f32 %v5935_v63  ;;  %v3138_v31 = vadd.f32 0.18741608, %v3137_v40  ;;  %v3172_v10 = vadd.f32 0.00028619796, %v3171_v2 }
 0x337   : > { %v3183_v53 = vadd.f32 0.001143296, %v3182_v19  ;;  %v3075_v28 = vmul.f32 %v4049_v18, %v3074_v12  ;;  %vm3078_vm15 = vweird.f32 %v4049_v18  ;;  %v5987_v14 = vmul.f32 0.70710677, %v5973_v60 }
 0x338   : > { %v3150_v51 = vmul.f32 %v3149_v29, %v5914_v5  ;;  %v3121_v55 = vand.u32 2147483647, %v5963_v30  ;;  %v3123_v34 = vand.u32 2147483648, %v5963_v30  ;;  %v3173_v45 = vmul.f32 %v3172_v10, %v5959_v22  ;;  %vm3079_vm9 = vmor %vm3077_vm12, %vm3078_vm15 }
 0x339   : > { %v3184_v38 = vmul.f32 %v3183_v53, %v5959_v22  ;;  %v3076_v21 = vadd.f32 %v4049_v18, %v3075_v28  ;;  %v3101_v61 = vmul.f32 %v3100_v25, %v5866_v24  ;;  %v2466_v8 = vadd.f32 %v2440_v6, %v2305_v13  ;;  %v2588_v56 = vpop.f32.mrf.mxu3 }
 0x33a   : > { %v5997_v41 = vadd.f32 1.0, %v3150_v51  ;;  %v3139_v15 = vmul.f32 %v3138_v31, %v5914_v5  ;;  %v3174_v16 = vadd.f32 0.0036580483, %v3173_v45  ;;  %v3209_v43 = vmul.f32 %v5987_v14, %v5987_v14 }
 0x33b   : > { %v4051_v49 = vpop.eup %4050  ;;  %v3185_v32 = vadd.f32 0.014752088, %v3184_v38  ;;  %v3080_v52 = vsel %vm3079_vm9, %v4049_v18, %v3076_v21  ;;  %vm3117_vm4 = vweird.f32 %v5963_v30  ;;  %v2611_v24 = vadd.f32 %v2585_v57, %v2466_v8 }
 0x33c   : > { %v3113_v50 = vmul.f32 %v4051_v49, %v5963_v30  ;;  %v3085_v13 = vsel %vm5976_vm6, %v3084_v11, %v3080_v52  ;;  %vm6009_vm7 = vcmp.eq.f32.partialorder %v3121_v55, 8.507059e+37  ;;  %v3124_v5 = vor.u32 1.1754944e-38, %v3123_v34  ;;  %v2749_v11 = vpop.f32.mrf.mxu0 }
 0x33d   : > { %4052 = vrcp.f32 %v5997_v41  ;;  %v3086_v39 = vmul.f32 %v3085_v13, %v3061_v33  ;;  %v3175_v48 = vmul.f32 %v3174_v16, %v5959_v22  ;;  %v6015_v35 = vadd.f32 %v2746_v54, %v2611_v24 }
 0x33e   : > { %v3114_v62 = vsub.f32 1.0, %v3113_v50  ;;  %v3140_v59 = vadd.f32 1.1283791, %v3139_v15  ;;  %v3186_v47 = vmul.f32 %v3185_v32, %v5959_v22  ;;  %v6018_v0 = vmin.f32 %v3209_v43, 16.0 }
 0x33f   : > { %v2467_v6 = vadd.f32 %v2443_v44, %v5948_v46  ;;  %v3917_v18 = vclamps-f32 %v3086_v39, 1.0  ;;  %vm3118_vm10 = vweird.f32 %v4051_v49  ;;  %v3176_v17 = vadd.f32 0.05243302, %v3175_v48  ;;  %v2288_v46 = vpop.f32.mrf.mxu1 }
 0x340   : > { %v3115_v40 = vmul.f32 %v4051_v49, %v3114_v62  ;;  %v3187_v2 = vadd.f32 0.112945676, %v3186_v47  ;;  %v3211_v19 = vmul.f32 2.1237322e-06, %v6018_v0  ;;  %v3222_v9 = vmul.f32 3.8918573e-05, %v6018_v0  ;;  %vm3119_vm5 = vmor %vm3117_vm4, %vm3118_vm10 }
 0x341   : > { %v2612_v58 = vadd.f32 %v2588_v56, %v2467_v6  ;;  %v3455_v57 = vadd.f32 1.0, %v3917_v18  ;;  %v3161_v26 = vand.u32 2147483647, %v5997_v41  ;;  %v6025_v12 = vmul.f32 0.70710677, %v6015_v35  ;;  %v2446_v6 = vpop.f32.mrf.mxu2 }
 0x342   : > { %v3116_v33 = vadd.f32 %v4051_v49, %v3115_v40  ;;  %v3177_v29 = vmul.f32 %v3176_v17, %v5959_v22  ;;  %v3188_v31 = vmul.f32 %v3187_v2, %v5959_v22  ;;  %v3212_v10 = vadd.f32 0.00028619796, %v3211_v19 }
 0x343   : > { %v4053_v25 = vpop.eup %4052  ;;  %v3223_v53 = vadd.f32 0.001143296, %v3222_v9  ;;  %v3471_v28 = vmul.f32 %v3455_v57, %v5970_v4  ;;  %v3163_v55 = vand.u32 2147483648, %v5997_v41  ;;  %v6037_v38 = vadd.f32 %v2749_v11, %v2612_v58  ;;  %v2591_v57 = vpop.f32.mrf.mxu3 }
 0x344   : > { %v3120_v51 = vsel %vm3119_vm5, %v4051_v49, %v3116_v33  ;;  %v3153_v54 = vmul.f32 %v4053_v25, %v5997_v41  ;;  %v3189_v45 = vadd.f32 0.4994258, %v3188_v31  ;;  %v3213_v30 = vmul.f32 %v3212_v10, %v6018_v0 }
 0x345   : > { %v3125_v34 = vsel %vm6009_vm7, %v3124_v5, %v3120_v51  ;;  %v3224_v15 = vmul.f32 %v3223_v53, %v6018_v0  ;;  %v3249_v4 = vmul.f32 %v6025_v12, %v6025_v12  ;;  %3933 = vmatmul.msk.f32.gmra.mxu1 %vm3489_vm13, %v3471_v28  ;;  %vm3158_vm11 = vweird.f32 %v4053_v25 }
 0x346   : > { %v3126_v21 = vmul.f32 %v3125_v34, %v3101_v61  ;;  %v3154_v8 = vsub.f32 1.0, %v3153_v54  ;;  %v3178_v49 = vadd.f32 0.18741608, %v3177_v29  ;;  %v3190_v16 = vmul.f32 %v3189_v45, %v5959_v22 }
 0x347   : > { %v3214_v32 = vadd.f32 0.0036580483, %v3213_v30  ;;  %v3225_v50 = vadd.f32 0.014752088, %v3224_v15  ;;  %v6044_v24 = vmin.f32 %v3249_v4, 16.0  ;;  %v3141_v61 = vmul.f32 %v3140_v59, %v5896_v27  ;;  %v2291_v18 = vpop.f32.mrf.mxu1 }
 0x348   : > { %v3918_v43 = vclamps-f32 %v3126_v21, 1.0  ;;  %v3155_v52 = vmul.f32 %v4053_v25, %v3154_v8  ;;  %vm3157_vm8 = vweird.f32 %v5997_v41  ;;  %v6048_v44 = vadd.f32 1.0, %v3190_v16 }
 0x349   : > { %v3215_v13 = vmul.f32 %v3214_v32, %v6018_v0  ;;  %v3226_v39 = vmul.f32 %v3225_v50, %v6018_v0  ;;  %v3251_v62 = vmul.f32 2.1237322e-06, %v6044_v24  ;;  %vm3159_vm2 = vmor %vm3157_vm8, %vm3158_vm11  ;;  %vm3162_vm14 = vcmp.eq.f32.partialorder %v3161_v26, 8.507059e+37 }
 0x34a   : > { %v3456_v63 = vadd.f32 1.0, %v3918_v43  ;;  %v3156_v5 = vadd.f32 %v4053_v25, %v3155_v52  ;;  %v3164_v48 = vor.u32 1.1754944e-38, %v3163_v55  ;;  %4054 = vrcp.f32 %v6048_v44 }
 0x34b   : > { %v6056_v27 = vmul.f32 0.70710677, %v6037_v38  ;;  %v3179_v59 = vmul.f32 %v3178_v49, %v5959_v22  ;;  %v3216_v47 = vadd.f32 0.05243302, %v3215_v13  ;;  %v3227_v17 = vadd.f32 0.112945676, %v3226_v39 }
 0x34c   : > { %v3472_v41 = vmul.f32 %v3456_v63, %v5981_v1  ;;  %v3160_v56 = vsel %vm3159_vm2, %v4053_v25, %v3156_v5  ;;  %v3252_v2 = vadd.f32 0.00028619796, %v3251_v62  ;;  %v2307_v19 = vadd.f32 %v5990_v7, %v5603_v42  ;;  %v2449_v63 = vpop.f32.mrf.mxu2 }
 0x34d   : > { %v3165_v40 = vsel %vm3162_vm14, %v3164_v48, %v3160_v56  ;;  %v3262_v58 = vmul.f32 3.8918573e-05, %v6044_v24  ;;  %v6064_v33 = vadd.f32 %v2288_v46, %v5613_v36  ;;  %v6067_v1 = vadd.f32 %v2291_v18, %v5620_v20  ;;  %v2752_v36 = vpop.f32.mrf.mxu0 }
 0x34e   : > { %v3166_v9 = vmul.f32 %v3165_v40, %v3141_v61  ;;  %3934 = vmatmul.msk.f32.gmra.mxu1 %vm3489_vm13, %v3472_v41  ;;  %v3228_v22 = vmul.f32 %v3227_v17, %v6018_v0  ;;  %v3253_v26 = vmul.f32 %v3252_v2, %v6044_v24  ;;  %v2468_v11 = vadd.f32 %v2446_v6, %v2307_v19 }
 0x34f   : > { %v3289_v42 = vmul.f32 %v6056_v27, %v6056_v27  ;;  %v3180_v25 = vadd.f32 1.1283791, %v3179_v59  ;;  %v3217_v29 = vmul.f32 %v3216_v47, %v6018_v0  ;;  %v3263_v31 = vadd.f32 0.001143296, %v3262_v58  ;;  %v2594_v59 = vpop.f32.mrf.mxu3 }
 0x350   : > { %v3919_v7 = vclamps-f32 %v3166_v9, 1.0  ;;  %v4055_v46 = vpop.eup %4054  ;;  %v2785_v20 = vmul.f32 0.5, %v5877_v3  ;;  %v3229_v10 = vadd.f32 0.4994258, %v3228_v22  ;;  %v3254_v53 = vadd.f32 0.0036580483, %v3253_v26 }
 0x351   : > { %v6076_v28 = vmin.f32 %v3289_v42, 16.0  ;;  %v3193_v54 = vmul.f32 %v4055_v46, %v6048_v44  ;;  %v3201_v55 = vand.u32 2147483647, %v6048_v44  ;;  %v2613_v34 = vadd.f32 %v2591_v57, %v2468_v11 }
 0x352   : > { %v3457_v51 = vadd.f32 1.0, %v3919_v7  ;;  %v3230_v45 = vmul.f32 %v3229_v10, %v6018_v0  ;;  %v3255_v30 = vmul.f32 %v3254_v53, %v6044_v24  ;;  %v3264_v21 = vmul.f32 %v3263_v31, %v6044_v24 }
 0x353   : > { %v3291_v8 = vmul.f32 2.1237322e-06, %v6076_v28  ;;  %v3194_v3 = vsub.f32 1.0, %v3193_v54  ;;  %v3218_v4 = vadd.f32 0.18741608, %v3217_v29  ;;  %v3203_v16 = vand.u32 2147483648, %v6048_v44 }
 0x354   : > { %v3473_v15 = vmul.f32 %v3457_v51, %v2785_v20  ;;  %v3302_v49 = vmul.f32 3.8918573e-05, %v6076_v28  ;;  %v6086_v32 = vadd.f32 1.0, %v3230_v45  ;;  %v3265_v43 = vadd.f32 0.014752088, %v3264_v21 }
 0x355   : > { %v6088_v52 = vadd.f32 %v2752_v36, %v2613_v34  ;;  %v3195_v50 = vmul.f32 %v4055_v46, %v3194_v3  ;;  %vm3198_vm1 = vweird.f32 %v4055_v46  ;;  %v3292_v61 = vadd.f32 0.00028619796, %v3291_v8  ;;  %v2452_v34 = vpop.f32.mrf.mxu2 }
 0x356   : > { %v3303_v13 = vadd.f32 0.001143296, %v3302_v49  ;;  %3935 = vmatmul.msk.f32.gmra.mxu1 %vm3489_vm13, %v3473_v15  ;;  %v2786_v5 = vmul.f32 0.5, %v5924_v37  ;;  %vm3197_vm3 = vweird.f32 %v6048_v44  ;;  %4056 = vrcp.f32 %v6086_v32 }
 0x357   : > { %v3256_v39 = vadd.f32 0.05243302, %v3255_v30  ;;  %v3196_v62 = vadd.f32 %v4055_v46, %v3195_v50  ;;  %v3219_v48 = vmul.f32 %v3218_v4, %v6018_v0  ;;  %v3266_v41 = vmul.f32 %v3265_v43, %v6044_v24  ;;  %vm3199_vm6 = vmor %vm3197_vm3, %vm3198_vm1  ;;  %v2755_v0 = vpop.f32.mrf.mxu0 }
 0x358   : > { %v3293_v56 = vmul.f32 %v3292_v61, %v6076_v28  ;;  %v3181_v47 = vmul.f32 %v3180_v25, %v5941_v23  ;;  %v3204_v6 = vor.u32 1.1754944e-38, %v3203_v16  ;;  %v3304_v37 = vmul.f32 %v3303_v13, %v6076_v28  ;;  %v2597_v16 = vpop.f32.mrf.mxu3 }
 0x359   : > { %v6101_v44 = vmul.f32 0.70710677, %v6088_v52  ;;  %v3200_v18 = vsel %vm3199_vm6, %v4055_v46, %v3196_v62  ;;  %vm3202_vm12 = vcmp.eq.f32.partialorder %v3201_v55, 8.507059e+37  ;;  %v3267_v40 = vadd.f32 0.112945676, %v3266_v41 }
 0x35a   : > { %v3294_v17 = vadd.f32 0.0036580483, %v3293_v56  ;;  %v3205_v2 = vsel %vm3202_vm12, %v3204_v6, %v3200_v18  ;;  %v3257_v19 = vmul.f32 %v3256_v39, %v6044_v24  ;;  %v3305_v9 = vadd.f32 0.014752088, %v3304_v37 }
 0x35b   : > { %v3329_v23 = vmul.f32 %v6101_v44, %v6101_v44  ;;  %v3206_v58 = vmul.f32 %v3205_v2, %v3181_v47  ;;  %v3220_v57 = vadd.f32 1.1283791, %v3219_v48  ;;  %v3268_v22 = vmul.f32 %v3267_v40, %v6044_v24 }
 0x35c   : > { %v2469_v26 = vadd.f32 %v2449_v63, %v6064_v33  ;;  %v4057_v11 = vpop.eup %4056  ;;  %v3241_v42 = vand.u32 2147483647, %v6086_v32  ;;  %v3295_v7 = vmul.f32 %v3294_v17, %v6076_v28  ;;  %v3306_v25 = vmul.f32 %v3305_v9, %v6076_v28 }
 0x35d   : > { %v6111_v29 = vmin.f32 %v3329_v23, 16.0  ;;  %v3920_v31 = vclamps-f32 %v3206_v58, 1.0  ;;  %v3233_v36 = vmul.f32 %v4057_v11, %v6086_v32  ;;  %v3243_v46 = vand.u32 2147483648, %v6086_v32 }
 0x35e   : > { %v2614_v20 = vadd.f32 %v2594_v59, %v2469_v26  ;;  %vm3237_vm15 = vweird.f32 %v6086_v32  ;;  %v3258_v10 = vadd.f32 0.18741608, %v3257_v19  ;;  %v3269_v53 = vadd.f32 0.4994258, %v3268_v22 }
 0x35f   : > { %v3307_v33 = vadd.f32 0.112945676, %v3306_v25  ;;  %v3458_v51 = vadd.f32 1.0, %v3920_v31  ;;  %v3234_v54 = vsub.f32 1.0, %v3233_v36  ;;  %v3331_v55 = vmul.f32 2.1237322e-06, %v6111_v29  ;;  %v2758_v41 = vpop.f32.mrf.mxu0 }
 0x360   : > { %v6117_v45 = vadd.f32 %v2755_v0, %v2614_v20  ;;  %v3270_v30 = vmul.f32 %v3269_v53, %v6044_v24  ;;  %v3296_v21 = vadd.f32 0.05243302, %v3295_v7  ;;  %v3342_v15 = vmul.f32 3.8918573e-05, %v6111_v29 }
 0x361   : > { %v3308_v8 = vmul.f32 %v3307_v33, %v6076_v28  ;;  %v3474_v3 = vmul.f32 %v3458_v51, %v2786_v5  ;;  %v3235_v4 = vmul.f32 %v4057_v11, %v3234_v54  ;;  %vm3238_vm9 = vweird.f32 %v4057_v11 }
 0x362   : > { %v3332_v49 = vadd.f32 0.00028619796, %v3331_v55  ;;  %v3244_v43 = vor.u32 1.1754944e-38, %v3243_v46  ;;  %v6122_v50 = vadd.f32 1.0, %v3270_v30  ;;  %v2470_v13 = vadd.f32 %v2452_v34, %v6067_v1  ;;  %vm3239_vm4 = vmor %vm3237_vm15, %vm3238_vm9 }
 0x363   : > { %v3309_v61 = vadd.f32 0.4994258, %v3308_v8  ;;  %v3236_v63 = vadd.f32 %v4057_v11, %v3235_v4  ;;  %v3259_v39 = vmul.f32 %v3258_v10, %v6044_v24  ;;  %v3343_v48 = vadd.f32 0.001143296, %v3342_v15  ;;  %3936 = vmatmul.msk.f32.gmra.mxu1 %vm3489_vm13, %v3474_v3 }
 0x364   : > { %v3333_v62 = vmul.f32 %v3332_v49, %v6111_v29  ;;  %4058 = vrcp.f32 %v6122_v50  ;;  %v3297_v5 = vmul.f32 %v3296_v21, %v6076_v28  ;;  %v6133_v56 = vmul.f32 0.70710677, %v6117_v45 }
 0x365   : > { %v2615_v1 = vadd.f32 %v2597_v16, %v2470_v13  ;;  %v3221_v59 = vmul.f32 %v3220_v57, %v5987_v14  ;;  %v3240_v24 = vsel %vm3239_vm4, %v4057_v11, %v3236_v63  ;;  %vm3242_vm7 = vcmp.eq.f32.partialorder %v3241_v42, 8.507059e+37 }
 0x366   : > { %v3310_v47 = vmul.f32 %v3309_v61, %v6076_v28  ;;  %v3245_v6 = vsel %vm3242_vm7, %v3244_v43, %v3240_v24  ;;  %v3334_v37 = vadd.f32 0.0036580483, %v3333_v62  ;;  %v3344_v18 = vmul.f32 %v3343_v48, %v6111_v29 }
 0x367   : > { %v6138_v32 = vadd.f32 %v2758_v41, %v2615_v1  ;;  %v3246_v40 = vmul.f32 %v3245_v6, %v3221_v59  ;;  %v3260_v17 = vadd.f32 1.1283791, %v3259_v39  ;;  %v3281_v2 = vand.u32 2147483647, %v6122_v50 }
 0x368   : > { %v6140_v0 = vadd.f32 1.0, %v3310_v47  ;;  %v3298_v19 = vadd.f32 0.18741608, %v3297_v5  ;;  %v3345_v9 = vadd.f32 0.014752088, %v3344_v18  ;;  %v3369_v14 = vmul.f32 %v6133_v56, %v6133_v56 }
 0x369   : > { %v2787_v23 = vmul.f32 0.5, %v5973_v60  ;;  %v3921_v58 = vclamps-f32 %v3246_v40, 1.0  ;;  %v3283_v22 = vand.u32 2147483648, %v6122_v50  ;;  %v3335_v26 = vmul.f32 %v3334_v37, %v6111_v29 }
 0x36a   : > { %4060 = vrcp.f32 %v6140_v0  ;;  %v4059_v57 = vpop.eup %4058  ;;  %v3346_v11 = vmul.f32 %v3345_v9, %v6111_v29  ;;  %v6151_v42 = vmul.f32 0.70710677, %v6138_v32  ;;  %v3261_v25 = vmul.f32 %v3260_v17, %v6025_v12 }
 0x36b   : > { %v3459_v7 = vadd.f32 1.0, %v3921_v58  ;;  %v3273_v31 = vmul.f32 %v4059_v57, %v6122_v50  ;;  %v6155_v36 = vmin.f32 %v3369_v14, 16.0  ;;  %vm3277_vm10 = vweird.f32 %v6122_v50 }
 0x36c   : > { %vm6158_vm5 = vcmp.eq.f32.partialorder %v3281_v2, 8.507059e+37  ;;  %v3299_v46 = vmul.f32 %v3298_v19, %v6076_v28  ;;  %v3347_v20 = vadd.f32 0.112945676, %v3346_v11  ;;  %v3284_v12 = vor.u32 1.1754944e-38, %v3283_v22 }
 0x36d   : > { %v3475_v10 = vmul.f32 %v3459_v7, %v2787_v23  ;;  %v3274_v53 = vsub.f32 1.0, %v3273_v31  ;;  %v3371_v33 = vmul.f32 2.1237322e-06, %v6155_v36  ;;  %v3382_v51 = vmul.f32 3.8918573e-05, %v6155_v36 }
 0x36e   : > { %v3336_v54 = vadd.f32 0.05243302, %v3335_v26  ;;  %v3348_v55 = vmul.f32 %v3347_v20, %v6111_v29  ;;  %v3409_v34 = vmul.f32 %v6151_v42, %v6151_v42  ;;  %vm3278_vm11 = vweird.f32 %v4059_v57 }
 0x36f   : > { %v3275_v21 = vmul.f32 %v4059_v57, %v3274_v53  ;;  %v3372_v8 = vadd.f32 0.00028619796, %v3371_v33  ;;  %v3383_v15 = vadd.f32 0.001143296, %v3382_v51  ;;  %3937 = vmatmul.msk.f32.gmra.mxu1 %vm3489_vm13, %v3475_v10  ;;  %v3300_v28 = vadd.f32 1.1283791, %v3299_v46  ;;  %vm3279_vm8 = vmor %vm3277_vm10, %vm3278_vm11 }
 0x370   : > { %v4061_v30 = vpop.eup %4060  ;;  %v3321_v4 = vand.u32 2147483647, %v6140_v0  ;;  %v3349_v49 = vadd.f32 0.4994258, %v3348_v55  ;;  %v6173_v13 = vmin.f32 %v3409_v34, 16.0  ;;  %v3323_v39 = vand.u32 2147483648, %v6140_v0 }
 0x371   : > { %v3313_v3 = vmul.f32 %v4061_v30, %v6140_v0  ;;  %v3276_v16 = vadd.f32 %v4059_v57, %v3275_v21  ;;  %v3373_v43 = vmul.f32 %v3372_v8, %v6155_v36  ;;  %v3384_v61 = vmul.f32 %v3383_v15, %v6155_v36 }
 0x372   : > { %v3337_v62 = vmul.f32 %v3336_v54, %v6111_v29  ;;  %v3350_v48 = vmul.f32 %v3349_v49, %v6111_v29  ;;  %vm3318_vm2 = vweird.f32 %v4061_v30  ;;  %v3411_v6 = vmul.f32 2.1237322e-06, %v6173_v13 }
 0x373   : > { %v3314_v63 = vsub.f32 1.0, %v3313_v3  ;;  %v3280_v41 = vsel %vm3279_vm8, %v4059_v57, %v3276_v16  ;;  %v3374_v5 = vadd.f32 0.0036580483, %v3373_v43  ;;  %v3385_v1 = vadd.f32 0.014752088, %v3384_v61 }
 0x374   : > { %v3285_v59 = vsel %vm6158_vm5, %v3284_v12, %v3280_v41  ;;  %v3351_v47 = vadd.f32 1.0, %v3350_v48  ;;  %v3301_v37 = vmul.f32 %v3300_v28, %v6056_v27  ;;  %vm3317_vm14 = vweird.f32 %v6140_v0 }
 0x375   : > { %v3315_v24 = vmul.f32 %v4061_v30, %v3314_v63  ;;  %v3286_v50 = vmul.f32 %v3285_v59, %v3261_v25  ;;  %v3386_v18 = vmul.f32 %v3385_v1, %v6155_v36  ;;  %v3324_v17 = vor.u32 1.1754944e-38, %v3323_v39  ;;  %vm3319_vm1 = vmor %vm3317_vm14, %vm3318_vm2 }
 0x376   : > { %4062 = vrcp.f32 %v3351_v47  ;;  %v3338_v19 = vadd.f32 0.18741608, %v3337_v62  ;;  %v3375_v9 = vmul.f32 %v3374_v5, %v6155_v36  ;;  %vm3322_vm3 = vcmp.eq.f32.partialorder %v3321_v4, 8.507059e+37 }
 0x377   : > { %v3316_v40 = vadd.f32 %v4061_v30, %v3315_v24  ;;  %v3922_v2 = vclamps-f32 %v3286_v50, 1.0  ;;  %v3387_v14 = vadd.f32 0.112945676, %v3386_v18  ;;  %v3412_v58 = vadd.f32 0.00028619796, %v3411_v6 }
 0x378   : > { %v3422_v57 = vmul.f32 3.8918573e-05, %v6173_v13  ;;  %v2788_v27 = vmul.f32 0.5, %v6015_v35  ;;  %v3339_v31 = vmul.f32 %v3338_v19, %v6111_v29  ;;  %v3376_v60 = vadd.f32 0.05243302, %v3375_v9 }
 0x379   : > { %v3320_v23 = vsel %vm3319_vm1, %v4061_v30, %v3316_v40  ;;  %v3460_v22 = vadd.f32 1.0, %v3922_v2  ;;  %v3388_v0 = vmul.f32 %v3387_v14, %v6155_v36  ;;  %v3413_v53 = vmul.f32 %v3412_v58, %v6173_v13 }
 0x37a   : > { %v3325_v26 = vsel %vm3322_vm3, %v3324_v17, %v3320_v23  ;;  %v3423_v7 = vadd.f32 0.001143296, %v3422_v57  ;;  %v2789_v55 = vmul.f32 0.5, %v6037_v38  ;;  %v3340_v34 = vadd.f32 1.1283791, %v3339_v31 }
 0x37b   : > { %v3326_v11 = vmul.f32 %v3325_v26, %v3301_v37  ;;  %v3476_v25 = vmul.f32 %v3460_v22, %v2788_v27  ;;  %v3389_v10 = vadd.f32 0.4994258, %v3388_v0  ;;  %v3377_v29 = vmul.f32 %v3376_v60, %v6155_v36  ;;  %v4070_v22 = vld [vmem:[%s4225_s25] sm:$0xff] }
 0x37c   : > { %v4063_v46 = vpop.eup %4062  ;;  %v3424_v33 = vmul.f32 %v3423_v7, %v6173_v13  ;;  %v3363_v21 = vand.u32 2147483648, %v3351_v47  ;;  %v3414_v15 = vadd.f32 0.0036580483, %v3413_v53  ;;  %v3361_v49 = vand.u32 2147483647, %v3351_v47 }
 0x37d   : > { %v3923_v20 = vclamps-f32 %v3326_v11, 1.0  ;;  %v3353_v51 = vmul.f32 %v4063_v46, %v3351_v47  ;;  %3938 = vmatmul.msk.f32.gmra.mxu1 %vm3489_vm13, %v3476_v25  ;;  %v3390_v12 = vmul.f32 %v3389_v10, %v6155_v36  ;;  %vm3358_vm6 = vweird.f32 %v4063_v46 }
 0x37e   : > { %v3425_v54 = vadd.f32 0.014752088, %v3424_v33  ;;  %vm3357_vm12 = vweird.f32 %v3351_v47  ;;  %v3378_v43 = vadd.f32 0.18741608, %v3377_v29  ;;  %v3364_v38 = vor.u32 1.1754944e-38, %v3363_v21 }
 0x37f   : > { %v3461_v35 = vadd.f32 1.0, %v3923_v20  ;;  %v3354_v30 = vsub.f32 1.0, %v3353_v51  ;;  %v3391_v8 = vadd.f32 1.0, %v3390_v12  ;;  %vm3359_vm15 = vmor %vm3357_vm12, %vm3358_vm6  ;;  %v3415_v63 = vmul.f32 %v3414_v15, %v6173_v13 }
 0x380   : > { %v3426_v28 = vmul.f32 %v3425_v54, %v6173_v13  ;;  %v3341_v39 = vmul.f32 %v3340_v34, %v6101_v44  ;;  %vm3362_vm9 = vcmp.eq.f32.partialorder %v3361_v49, 8.507059e+37  ;;  %v3379_v1 = vmul.f32 %v3378_v43, %v6155_v36  ;;  %v6207_v44 = vld [vmem:[%s6314_s8] ss:$0 sm:$0xff]  ;;  %v3555_v23 = vpop.f32.mrf.mxu1  ;;  %v4072_v43 = vld [vmem:[%s4225_s25 + $0x10] sm:$0xff] }
 0x381   : > { %v3477_v3 = vmul.f32 %v3461_v35, %v2789_v55  ;;  %v3355_v4 = vmul.f32 %v4063_v46, %v3354_v30  ;;  %4064 = vrcp.f32 %v3391_v8  ;;  %v3416_v47 = vadd.f32 0.05243302, %v3415_v63 }
 0x382   : > { %v3427_v61 = vadd.f32 0.112945676, %v3426_v28  ;;  %v2790_v18 = vmul.f32 0.5, %v6088_v52  ;;  %v3380_v17 = vadd.f32 1.1283791, %v3379_v1  ;;  %v3403_v19 = vand.u32 2147483648, %v3391_v8 }
 0x383   : > { %v3356_v16 = vadd.f32 %v4063_v46, %v3355_v4  ;;  %v3401_v36 = vand.u32 2147483647, %v3391_v8  ;;  %v3417_v9 = vmul.f32 %v3416_v47, %v6173_v13  ;;  %v3556_v27 = vadd.f32 %v6207_v44, %v3555_v23 }
 0x384   : > { %v3428_v48 = vmul.f32 %v3427_v61, %v6173_v13  ;;  %vm3397_vm7 = vweird.f32 %v3391_v8  ;;  %v3404_v11 = vor.u32 1.1754944e-38, %v3403_v19  ;;  %v3381_v7 = vmul.f32 %v3380_v17, %v6133_v56  ;;  %v4071_v56 = vld [vmem:[%s4225_s25 + $0x8] sm:$0xff]  ;;  %v4076_v17 = vld [vmem:[%s4225_s25 + $0x30] sm:$0xff] }
 0x385   : > { %v3360_v62 = vsel %vm3359_vm15, %v4063_v46, %v3356_v16  ;;  %3939 = vmatmul.msk.f32.gmra.mxu1 %vm3489_vm13, %v3477_v3  ;;  %v3603_v26 = vadd.f32 %v4070_v22, %v3556_v27  ;;  %v3418_v0 = vadd.f32 0.18741608, %v3417_v9  ;;  %vm3402_vm5 = vcmp.eq.f32.partialorder %v3401_v36, 8.507059e+37  ;;  %v4077_v9 = vld [vmem:[%s4225_s25 + $0x38] sm:$0xff] }
 0x386   : > { %v3365_v41 = vsel %vm3362_vm9, %v3364_v38, %v3360_v62  ;;  %v3429_v59 = vadd.f32 0.4994258, %v3428_v48  ;;  %v2791_v35 = vmul.f32 0.5, %v6117_v45  ;;  %v2792_v63 = vmul.f32 0.5, %v6138_v32  ;;  %v4074_v32 = vld [vmem:[%s4225_s25 + $0x20] sm:$0xff] }
 0x387   : > { %v3366_v5 = vmul.f32 %v3365_v41, %v3341_v39  ;;  %v4065_v24 = vpop.eup %4064  ;;  %3619 = vst.msk [vmem:[%s6218_s28] sm:$0xff] %vm526_vm0, %v3603_v26  ;;  %v3419_v20 = vmul.f32 %v3418_v0, %v6173_v13  ;;  %v4073_v41 = vld [vmem:[%s4225_s25 + $0x18] sm:$0xff]  ;;  %v4079_v26 = vld [vmem:[%s4225_s25 + $0x48] sm:$0xff] }
 0x388   : > { %v3393_v50 = vmul.f32 %v4065_v24, %v3391_v8  ;;  %v3430_v37 = vmul.f32 %v3429_v59, %v6173_v13  ;;  %vm3398_vm4 = vweird.f32 %v4065_v24 }
 0x389   : > { %v3924_v6 = vclamps-f32 %v3366_v5, 1.0  ;;  %vm3399_vm10 = vmor %vm3397_vm7, %vm3398_vm4  ;;  %v3420_v34 = vadd.f32 1.1283791, %v3419_v20  ;;  %v4081_v20 = vld [vmem:[%s4225_s25 + $0x58] sm:$0xff] }
 0x38a   : > { %v3394_v2 = vsub.f32 1.0, %v3393_v50  ;;  %v3431_v14 = vadd.f32 1.0, %v3430_v37  ;;  %v4075_v50 = vld [vmem:[%s4225_s25 + $0x28] sm:$0xff] }
 0x38b   : > { %v3462_v40 = vadd.f32 1.0, %v3924_v6  ;;  %v3421_v28 = vmul.f32 %v3420_v34, %v6151_v42 }
 0x38c   : > { %v3395_v57 = vmul.f32 %v4065_v24, %v3394_v2  ;;  %4066 = vrcp.f32 %v3431_v14  ;;  %v3443_v30 = vand.u32 2147483648, %v3431_v14  ;;  %v3441_v8 = vand.u32 2147483647, %v3431_v14 }
 0x38d   : > { %v3478_v58 = vmul.f32 %v3462_v40, %v2790_v18  ;;  %vm3437_vm8 = vweird.f32 %v3431_v14 }
 0x38e   : > { %v3396_v52 = vadd.f32 %v4065_v24, %v3395_v57  ;;  %v3444_v45 = vor.u32 1.1754944e-38, %v3443_v30  ;;  %vm3442_vm14 = vcmp.eq.f32.partialorder %v3441_v8, 8.507059e+37  ;;  %v4078_v57 = vld [vmem:[%s4225_s25 + $0x40] sm:$0xff] }
 0x38f   : > { %3940 = vmatmul.msk.f32.gmra.mxu1 %vm3489_vm13, %v3478_v58 }
 0x390   : > { %v3400_v25 = vsel %vm3399_vm10, %v4065_v24, %v3396_v52 }
 0x391   : > { %v3405_v31 = vsel %vm3402_vm5, %v3404_v11, %v3400_v25  ;;  %v4080_v25 = vld [vmem:[%s4225_s25 + $0x50] sm:$0xff] }
 0x392   : > { %v3406_v60 = vmul.f32 %v3405_v31, %v3381_v7  ;;  %v4067_v46 = vpop.eup %4066  ;;  %v3558_v10 = vpop.f32.mrf.mxu1 }
 0x393   : > { %v3433_v33 = vmul.f32 %v4067_v46, %v3431_v14  ;;  %v3559_v51 = vadd.f32 %v6207_v44, %v3558_v10  ;;  %vm3438_vm11 = vweird.f32 %v4067_v46 }
 0x394   : > { %v3925_v53 = vclamps-f32 %v3406_v60, 1.0  ;;  %vm3439_vm2 = vmor %vm3437_vm8, %vm3438_vm11 }
 0x395   : > { %v3434_v54 = vsub.f32 1.0, %v3433_v33  ;;  %v3604_v55 = vadd.f32 %v4071_v56, %v3559_v51  ;;  %v4082_v51 = vld [vmem:[%s4225_s25 + $0x60] sm:$0xff]  ;;  %v4083_v56 = vld [vmem:[%s4225_s25 + $0x68] sm:$0xff] }
 0x396   : > { %v3463_v12 = vadd.f32 1.0, %v3925_v53 }
 0x397   : > { %v3435_v21 = vmul.f32 %v4067_v46, %v3434_v54  ;;  %3620 = vst.msk [vmem:[%s6218_s28 + $0x8] sm:$0xff] %vm526_vm0, %v3604_v55 }
 0x398   : > { %v3479_v29 = vmul.f32 %v3463_v12, %v2791_v35 }
 0x399   : > { %v3436_v13 = vadd.f32 %v4067_v46, %v3435_v21 }
 0x39a   : > { %3941 = vmatmul.msk.f32.gmra.mxu1 %vm3489_vm13, %v3479_v29  ;;  %v3561_v15 = vpop.f32.mrf.mxu1  ;;  %v4084_v29 = vld [vmem:[%s4225_s25 + $0x70] sm:$0xff] }
 0x39b   : > { %v3440_v3 = vsel %vm3439_vm2, %v4067_v46, %v3436_v13  ;;  %v3562_v4 = vadd.f32 %v6207_v44, %v3561_v15 }
 0x39c   : > { %v3445_v49 = vsel %vm3442_vm14, %v3444_v45, %v3440_v3  ;;  %v4085_v45 = vld [vmem:[%s4225_s25 + $0x78] sm:$0xff] }
 0x39d   : > { %v3446_v16 = vmul.f32 %v3445_v49, %v3421_v28  ;;  %v3605_v61 = vadd.f32 %v4072_v43, %v3562_v4 }
 0x39f   : > { %v3926_v38 = vclamps-f32 %v3446_v16, 1.0  ;;  %3621 = vst.msk [vmem:[%s6218_s28 + $0x10] sm:$0xff] %vm526_vm0, %v3605_v61 }
 0x3a1   : > { %v3464_v39 = vadd.f32 1.0, %v3926_v38 }
 0x3a2   : > { %v3564_v42 = vpop.f32.mrf.mxu1 }
 0x3a3   : > { %v3480_v62 = vmul.f32 %v3464_v39, %v2792_v63  ;;  %v3565_v48 = vadd.f32 %v6207_v44, %v3564_v42 }
 0x3a5   : > { %3942 = vmatmul.msk.f32.gmra.mxu1 %vm3489_vm13, %v3480_v62  ;;  %v3606_v5 = vadd.f32 %v4073_v41, %v3565_v48 }
 0x3a7   : > { %3622 = vst.msk [vmem:[%s6218_s28 + $0x18] sm:$0xff] %vm526_vm0, %v3606_v5 }
 0x3aa   : > { %v3567_v1 = vpop.f32.mrf.mxu1 }
 0x3ab   : > { %v3568_v59 = vadd.f32 %v6207_v44, %v3567_v1 }
 0x3ad   : > { %v3607_v24 = vadd.f32 %v4074_v32, %v3568_v59 }
 0x3af   : > { %3623 = vst.msk [vmem:[%s6218_s28 + $0x20] sm:$0xff] %vm526_vm0, %v3607_v24 }
 0x3b2   : > { %v3570_v47 = vpop.f32.mrf.mxu1 }
 0x3b3   : > { %v3571_v6 = vadd.f32 %v6207_v44, %v3570_v47 }
 0x3b5   : > { %v3608_v37 = vadd.f32 %v4075_v50, %v3571_v6 }
 0x3b7   : > { %3624 = vst.msk [vmem:[%s6218_s28 + $0x28] sm:$0xff] %vm526_vm0, %v3608_v37 }
 0x3c2   : > { %v3573_v18 = vpop.f32.mrf.mxu1 }
 0x3c3   : > { %v3574_v40 = vadd.f32 %v6207_v44, %v3573_v18 }
 0x3c5   : > { %v3609_v2 = vadd.f32 %v4076_v17, %v3574_v40 }
 0x3c7   : > { %3625 = vst.msk [vmem:[%s6218_s28 + $0x30] sm:$0xff] %vm526_vm0, %v3609_v2 }
 0x3cb   : > { %v3576_v36 = vpop.f32.mrf.mxu1 }
 0x3cc   : > { %v3577_v19 = vadd.f32 %v6207_v44, %v3576_v36 }
 0x3ce   : > { %v3610_v14 = vadd.f32 %v4077_v9, %v3577_v19 }
 0x3d0   : > { %3626 = vst.msk [vmem:[%s6218_s28 + $0x38] sm:$0xff] %vm526_vm0, %v3610_v14 }
 0x3d3   : > { %v3579_v23 = vpop.f32.mrf.mxu1 }
 0x3d4   : > { %v3580_v58 = vadd.f32 %v6207_v44, %v3579_v23 }
 0x3d6   : > { %v3611_v27 = vadd.f32 %v4078_v57, %v3580_v58 }
 0x3d8   : > { %3627 = vst.msk [vmem:[%s6218_s28 + $0x40] sm:$0xff] %vm526_vm0, %v3611_v27 }
 0x3e0   : > { %v3582_v52 = vpop.f32.mrf.mxu1 }
 0x3e1   : > { %v3583_v22 = vadd.f32 %v6207_v44, %v3582_v52 }
 0x3e3   : > { %v3612_v11 = vadd.f32 %v4079_v26, %v3583_v22 }
 0x3e5   : > { %3628 = vst.msk [vmem:[%s6218_s28 + $0x48] sm:$0xff] %vm526_vm0, %v3612_v11 }
 0x3ec   : > { %v3585_v0 = vpop.f32.mrf.mxu1 }
 0x3ed   : > { %v3586_v7 = vadd.f32 %v6207_v44, %v3585_v0 }
 0x3ef   : > { %v3613_v31 = vadd.f32 %v4080_v25, %v3586_v7 }
 0x3f1   : > { %3629 = vst.msk [vmem:[%s6218_s28 + $0x50] sm:$0xff] %vm526_vm0, %v3613_v31 }
 0x3fa   : > { %v3588_v60 = vpop.f32.mrf.mxu1 }
 0x3fb   : > { %v3589_v46 = vadd.f32 %v6207_v44, %v3588_v60 }
 0x3fd   : > { %v3614_v10 = vadd.f32 %v4081_v20, %v3589_v46 }
 0x3ff   : > { %3630 = vst.msk [vmem:[%s6218_s28 + $0x58] sm:$0xff] %vm526_vm0, %v3614_v10 }
 0x402   : > { %v3591_v53 = vpop.f32.mrf.mxu1 }
 0x403   : > { %v3592_v33 = vadd.f32 %v6207_v44, %v3591_v53 }
 0x405   : > { %v3615_v35 = vadd.f32 %v4082_v51, %v3592_v33 }
 0x407   : > { %3631 = vst.msk [vmem:[%s6218_s28 + $0x60] sm:$0xff] %vm526_vm0, %v3615_v35 }
 0x40c   : > { %v3594_v12 = vpop.f32.mrf.mxu1 }
 0x40d   : > { %v3595_v54 = vadd.f32 %v6207_v44, %v3594_v12 }
 0x40f   : > { %v3616_v55 = vadd.f32 %v4083_v56, %v3595_v54 }
 0x411   : > { %3632 = vst.msk [vmem:[%s6218_s28 + $0x68] sm:$0xff] %vm526_vm0, %v3616_v55 }
 0x417   : > { %v3597_v34 = vpop.f32.mrf.mxu1 }
 0x418   : > { %v3598_v30 = vadd.f32 %v6207_v44, %v3597_v34 }
 0x41a   : > { %v3617_v21 = vadd.f32 %v4084_v29, %v3598_v30 }
 0x41c   : > { %3633 = vst.msk [vmem:[%s6218_s28 + $0x70] sm:$0xff] %vm526_vm0, %v3617_v21 }
 0x422   : > { %v3600_v8 = vpop.f32.mrf.mxu1 }
 0x423   : > { %v3601_v13 = vadd.f32 %v6207_v44, %v3600_v8 }
 0x425   : > { %v3618_v15 = vadd.f32 %v4085_v45, %v3601_v13 }
 0x427   : > { %3634 = vst.msk [vmem:[%s6218_s28 + $0x78] sm:$0xff] %vm526_vm0, %v3618_v15 }
 0x428 PF: > { %s19_s13 = sadd.s32 1, %s4124_s13   ;;  %s6434_s30 = smov %s4116_s11 }
 0x429   : > { %p16_p12 = scmp.ge.s32.totalorder %s19_s13, 6   ;;  %s6435_s10 = smov %s4120_s12 }
 0x42a   : > { %s6436_s11 = smov %s6439_s14  ;;  %s6437_s12 = smov %s6443_s15 }
 0x42b   :  { %18 = sbr.rel (!%p16_p12) target bundleno = 3 (0x3), region = 92 }

</bundles_post_ra>
